<compile_context>
chip_gen: v7x
topology: tpu7x:2x2x1
jax: 0.10.0
libtpu: 0.0.40
codegen_flags: <defaults>
</compile_context>

<pallas_src>
import math

import jax
import jax.numpy as jnp
from jax import lax
from jax.experimental import pallas as pl
from jax.experimental.pallas import tpu as pltpu

D_MODEL = 768
NUM_HEADS = 8
HEAD_DIM = D_MODEL // NUM_HEADS          # 96 (real head dim -> softmax scale)
HEAD_PAD = 128                           # padded head dim (lane-tile aligned)
QKV_PAD = 3 * NUM_HEADS * HEAD_PAD       # 3072
CTX_PAD = NUM_HEADS * HEAD_PAD           # 1024


# ----------------------------------------------------------------------------
# Single fused kernel: video proj + text MHA + mean-pool + fc1/relu/fc2
# ----------------------------------------------------------------------------
def _fused_kernel(xv_ref, xt_ref,
                  wv_ref, bv_ref,
                  wqkv_ref, bqkv_ref, wout_ref, bout_ref,
                  w1_ref, b1_ref, w2_ref, b2_ref,
                  o_ref):
    B = xv_ref.shape[0]
    BT = xt_ref.shape[0]
    T = BT // B
    scale = 1.0 / math.sqrt(float(HEAD_DIM))     # 1/sqrt(96), NOT 1/sqrt(128)

    # ---- video branch: S=1 attention == identity softmax -> one fused matmul
    xv = xv_ref[...].astype(jnp.bfloat16)                                   # (B, D)
    attn_video = jnp.dot(xv, wv_ref[...],
                         preferred_element_type=jnp.float32) + bv_ref[...]  # (B, D) f32

    # ---- text branch: one QKV projection for the whole batch (B*T rows)
    xt = xt_ref[...].astype(jnp.bfloat16)                                   # (B*T, D)
    qkv = jnp.dot(xt, wqkv_ref[...],
                  preferred_element_type=jnp.float32) + bqkv_ref[...]       # (B*T, 3*H*128)

    koff = NUM_HEADS * HEAD_PAD
    voff = 2 * NUM_HEADS * HEAD_PAD

    batch_ctx = []
    for b in range(B):                      # B, NUM_HEADS tiny -> static unroll
        r0 = b * T
        head_ctx = []
        for h in range(NUM_HEADS):
            c0 = h * HEAD_PAD               # 128-lane aligned offsets
            q = qkv[r0:r0 + T, c0:c0 + HEAD_PAD]                            # (T, 128)
            k = qkv[r0:r0 + T, koff + c0:koff + c0 + HEAD_PAD]              # (T, 128)
            v = qkv[r0:r0 + T, voff + c0:voff + c0 + HEAD_PAD]              # (T, 128)
            # q @ k^T without materializing a transpose (padded lanes are zero)
            s = lax.dot_general(q, k, (((1,), (1,)), ((), ())),
                                preferred_element_type=jnp.float32) * scale  # (T, T)
            s = s - jnp.max(s, axis=-1, keepdims=True)
            p = jnp.exp(s)
            p = p * pl.reciprocal(jnp.sum(p, axis=-1, keepdims=True), approx=True)
            head_ctx.append(jnp.dot(p, v, preferred_element_type=jnp.float32))
        batch_ctx.append(jnp.concatenate(head_ctx, axis=-1))                # (T, H*128)
    ctx = jnp.concatenate(batch_ctx, axis=0)                                # (B*T, H*128)

    attn_text = jnp.dot(ctx.astype(jnp.bfloat16), wout_ref[...],
                        preferred_element_type=jnp.float32) + bout_ref[...]  # (B*T, D)

    # ---- concat([video, text], seq) -> mean over (1 + T) tokens
    text_sum = jnp.sum(attn_text.reshape(B, T, D_MODEL), axis=1)            # (B, D)
    pooled = (attn_video + text_sum) * (1.0 / float(T + 1))                 # (B, D)

    # ---- classifier head (small weights kept f32)
    h1 = jnp.dot(pooled, w1_ref[...], preferred_element_type=jnp.float32) + b1_ref[...]
    h1 = jnp.maximum(h1, 0.0)
    logits = jnp.dot(h1, w2_ref[...], preferred_element_type=jnp.float32) + b2_ref[...]
    o_ref[...] = logits.astype(o_ref.dtype)


# ----------------------------------------------------------------------------
# Wrapper-side weight preparation (done once)
# ----------------------------------------------------------------------------
def fold_video_mha(wqkv, bqkv, wout, bout):
    """S=1 self-attention: softmax over one key is identity, so
       out = (x @ Wv + bv) @ Wout + bout = x @ (Wv @ Wout) + (bv @ Wout + bout)."""
    wv = wqkv[:, 2 * D_MODEL:]                       # (D, D) value projection
    bv = bqkv[2 * D_MODEL:]                          # (D,)
    w_fused = (wv @ wout).astype(jnp.bfloat16)       # (D, D)
    b_fused = (bv @ wout + bout).reshape(1, D_MODEL).astype(jnp.float32)
    return w_fused, b_fused


def pack_text_mha(wqkv, bqkv, wout, bout):
    """Zero-pad per-head columns 96 -> 128 so in-kernel head slices / concats
       never cross a (8,128) lane-tile boundary.  Padded K/V lanes are zero so
       they contribute nothing; softmax scale stays 1/sqrt(96)."""
    wqkv_p = jnp.zeros((D_MODEL, QKV_PAD), jnp.float32)
    bqkv_p = jnp.zeros((QKV_PAD,), jnp.float32)
    wout_p = jnp.zeros((CTX_PAD, D_MODEL), jnp.float32)
    for s in range(3):                               # Q, K, V sections
        for h in range(NUM_HEADS):
            src = s * D_MODEL + h * HEAD_DIM
            dst = s * NUM_HEADS * HEAD_PAD + h * HEAD_PAD
            wqkv_p = wqkv_p.at[:, dst:dst + HEAD_DIM].set(wqkv[:, src:src + HEAD_DIM])
            bqkv_p = bqkv_p.at[dst:dst + HEAD_DIM].set(bqkv[src:src + HEAD_DIM])
    for h in range(NUM_HEADS):
        wout_p = wout_p.at[h * HEAD_PAD:h * HEAD_PAD + HEAD_DIM, :].set(
            wout[h * HEAD_DIM:(h + 1) * HEAD_DIM, :])
    return (wqkv_p.astype(jnp.bfloat16),
            bqkv_p.reshape(1, QKV_PAD),
            wout_p.astype(jnp.bfloat16),
            bout.reshape(1, D_MODEL).astype(jnp.float32))


def prepare_params(params):
    wv_f, bv_f = fold_video_mha(*params["video_mha"])
    wqkv_p, bqkv_p, wout_p, bout_p = pack_text_mha(*params["text_mha"])
    return dict(
        wv=wv_f, bv=bv_f,
        wqkv=wqkv_p, bqkv=bqkv_p, wout=wout_p, bout=bout_p,
        w1=params["w1"], b1=params["b1"].reshape(1, -1),
        w2=params["w2"], b2=params["b2"].reshape(1, -1),
    )


def early_fusion_forward(video_features, text_features, packed):
    """video_features: (B, 1, D), text_features: (B, T, D)."""
    B, sv, d = video_features.shape
    assert sv == 1 and d == D_MODEL
    bt, t, _ = text_features.shape
    assert bt == B
    xv = video_features.reshape(B, D_MODEL)
    xt = text_features.reshape(B * t, D_MODEL)
    num_classes = packed["w2"].shape[1]
    return pl.pallas_call(
        _fused_kernel,
        out_shape=jax.ShapeDtypeStruct((B, num_classes), jnp.float32),
        compiler_params=pltpu.CompilerParams(vmem_limit_bytes=32 * 1024 * 1024),
    )(xv, xt,
      packed["wv"], packed["bv"],
      packed["wqkv"], packed["bqkv"], packed["wout"], packed["bout"],
      packed["w1"], packed["b1"], packed["w2"], packed["b2"])


# ----------------------------------------------------------------------------
# Pure-JAX reference (mirrors PyTorch nn.MultiheadAttention semantics)
# ----------------------------------------------------------------------------
def _mha_ref(x, wqkv, bqkv, wout, bout):
    B, S, D = x.shape
    qkv = x @ wqkv + bqkv                                         # (B, S, 3D)
    q, k, v = jnp.split(qkv, 3, axis=-1)

    def heads(t):
        return t.reshape(B, S, NUM_HEADS, HEAD_DIM).transpose(0, 2, 1, 3)

    q, k, v = heads(q), heads(k), heads(v)
    s = jnp.einsum("bhqd,bhkd->bhqk", q, k) / jnp.sqrt(jnp.float32(HEAD_DIM))
    p = jax.nn.softmax(s, axis=-1)
    ctx = jnp.einsum("bhqk,bhkd->bhqd", p, v)
    ctx = ctx.transpose(0, 2, 1, 3).reshape(B, S, D)
    return ctx @ wout + bout


def reference_forward(video_features, text_features, params):
    av = _mha_ref(video_features, *params["video_mha"])
    at = _mha_ref(text_features, *params["text_mha"])
    combined = jnp.concatenate([av, at], axis=1)
    pooled = combined.mean(axis=1)
    h = jnp.maximum(pooled @ params["w1"] + params["b1"], 0.0)
    return h @ params["w2"] + params["b2"]


# ----------------------------------------------------------------------------
if __name__ == "__main__":
    B = 2            # batch
    T_TEXT = 8       # text sequence length (BERT tokens)
    NUM_CLASSES = 4

    key = jax.random.PRNGKey(0)
    keys = jax.random.split(key, 8)

    # Backbone outputs (see TODO(synk) above).
    video_features = jax.random.normal(keys[0], (B, 1, D_MODEL), jnp.float32)
    text_features = jax.random.normal(keys[1], (B, T_TEXT, D_MODEL), jnp.float32)

    def init_mha(k):
        k1, k2, k3, k4 = jax.random.split(k, 4)
        wqkv = 0.02 * jax.random.normal(k1, (D_MODEL, 3 * D_MODEL), jnp.float32)  # in_proj_weight.T
        bqkv = 0.02 * jax.random.normal(k2, (3 * D_MODEL,), jnp.float32)
        wout = 0.02 * jax.random.normal(k3, (D_MODEL, D_MODEL), jnp.float32)      # out_proj.weight.T
        bout = 0.02 * jax.random.normal(k4, (D_MODEL,), jnp.float32)
        return wqkv, bqkv, wout, bout

    params = {
        "video_mha": init_mha(keys[2]),
        "text_mha": init_mha(keys[3]),
        "w1": 0.02 * jax.random.normal(keys[4], (D_MODEL, 128), jnp.float32),
        "b1": 0.02 * jax.random.normal(keys[5], (128,), jnp.float32),
        "w2": 0.02 * jax.random.normal(keys[6], (128, NUM_CLASSES), jnp.float32),
        "b2": 0.02 * jax.random.normal(keys[7], (NUM_CLASSES,), jnp.float32),
    }

    packed = prepare_params(params)
    logits = early_fusion_forward(video_features, text_features, packed)
    jax.block_until_ready(logits)

    assert logits.shape == (B, NUM_CLASSES), logits.shape
    assert bool(jnp.all(jnp.isfinite(logits)))

    ref = reference_forward(video_features, text_features, params)
    max_diff = float(jnp.max(jnp.abs(logits - ref)))
    assert max_diff < 1e-2, f"kernel/reference mismatch, max abs diff = {max_diff}"

    print("KERNEL_OK")
</pallas_src>

<mosaic_0001>
module attributes {stable_mosaic.version = 11 : i64} {
  func.func @_fused_kernel(%arg0: memref<2x768xf32, #tpu.memory_space<vmem>>, %arg1: memref<16x768xf32, #tpu.memory_space<vmem>>, %arg2: memref<768x768xbf16, #tpu.memory_space<vmem>>, %arg3: memref<1x768xf32, #tpu.memory_space<vmem>>, %arg4: memref<768x3072xbf16, #tpu.memory_space<vmem>>, %arg5: memref<1x3072xf32, #tpu.memory_space<vmem>>, %arg6: memref<1024x768xbf16, #tpu.memory_space<vmem>>, %arg7: memref<1x768xf32, #tpu.memory_space<vmem>>, %arg8: memref<768x128xf32, #tpu.memory_space<vmem>>, %arg9: memref<1x128xf32, #tpu.memory_space<vmem>>, %arg10: memref<128x4xf32, #tpu.memory_space<vmem>>, %arg11: memref<1x4xf32, #tpu.memory_space<vmem>>, %arg12: memref<2x4xf32, #tpu.memory_space<vmem>>) attributes {dimension_semantics = [], scalar_prefetch = 0 : i64, scratch_operands = 0 : i64, tpu.core_type = #tpu.core_type<tc>} {
    %c0 = arith.constant 0 : index
    %c0_0 = arith.constant 0 : index
    %0 = vector.load %arg0[%c0, %c0_0] : memref<2x768xf32, #tpu.memory_space<vmem>>, vector<2x768xf32>
    %1 = arith.truncf %0 : vector<2x768xf32> to vector<2x768xbf16>
    %c0_1 = arith.constant 0 : index
    %c0_2 = arith.constant 0 : index
    %2 = vector.load %arg2[%c0_1, %c0_2] : memref<768x768xbf16, #tpu.memory_space<vmem>>, vector<768x768xbf16>
    %cst = arith.constant dense<0.000000e+00> : vector<2x768xf32>
    %3 = tpu.matmul %1, %2, %cst {dimension_numbers = #tpu.dot_dimension_numbers<[1], [0], [0], [1], [0, 0, 1, 1], [], []>} : vector<2x768xbf16>, vector<768x768xbf16>, vector<2x768xf32> -> vector<2x768xf32>
    %c0_3 = arith.constant 0 : index
    %c0_4 = arith.constant 0 : index
    %4 = vector.load %arg3[%c0_3, %c0_4] : memref<1x768xf32, #tpu.memory_space<vmem>>, vector<1x768xf32>
    %5 = vector.broadcast %4 : vector<1x768xf32> to vector<2x768xf32>
    %6 = arith.addf %3, %5 : vector<2x768xf32>
    %c0_5 = arith.constant 0 : index
    %c0_6 = arith.constant 0 : index
    %7 = vector.load %arg1[%c0_5, %c0_6] : memref<16x768xf32, #tpu.memory_space<vmem>>, vector<16x768xf32>
    %8 = arith.truncf %7 : vector<16x768xf32> to vector<16x768xbf16>
    %c0_7 = arith.constant 0 : index
    %c0_8 = arith.constant 0 : index
    %9 = vector.load %arg4[%c0_7, %c0_8] : memref<768x3072xbf16, #tpu.memory_space<vmem>>, vector<768x3072xbf16>
    %cst_9 = arith.constant dense<0.000000e+00> : vector<16x3072xf32>
    %10 = tpu.matmul %8, %9, %cst_9 {dimension_numbers = #tpu.dot_dimension_numbers<[1], [0], [0], [1], [0, 0, 1, 1], [], []>} : vector<16x768xbf16>, vector<768x3072xbf16>, vector<16x3072xf32> -> vector<16x3072xf32>
    %c0_10 = arith.constant 0 : index
    %c0_11 = arith.constant 0 : index
    %11 = vector.load %arg5[%c0_10, %c0_11] : memref<1x3072xf32, #tpu.memory_space<vmem>>, vector<1x3072xf32>
    %12 = vector.broadcast %11 : vector<1x3072xf32> to vector<16x3072xf32>
    %13 = arith.addf %10, %12 : vector<16x3072xf32>
    %14 = vector.extract_strided_slice %13 {offsets = [0, 0], sizes = [8, 128], strides = [1, 1]} : vector<16x3072xf32> to vector<8x128xf32>
    %15 = vector.extract_strided_slice %13 {offsets = [0, 1024], sizes = [8, 128], strides = [1, 1]} : vector<16x3072xf32> to vector<8x128xf32>
    %16 = vector.extract_strided_slice %13 {offsets = [0, 2048], sizes = [8, 128], strides = [1, 1]} : vector<16x3072xf32> to vector<8x128xf32>
    %cst_12 = arith.constant dense<0.000000e+00> : vector<8x8xf32>
    %17 = tpu.matmul %14, %15, %cst_12 {dimension_numbers = #tpu.dot_dimension_numbers<[1], [1], [0], [0], [0, 0, 1, 0], [], []>} : vector<8x128xf32>, vector<8x128xf32>, vector<8x8xf32> -> vector<8x8xf32>
    %cst_13 = arith.constant 0.102062076 : f32
    %18 = vector.broadcast %cst_13 : f32 to vector<8x8xf32>
    %19 = arith.mulf %17, %18 : vector<8x8xf32>
    %cst_14 = arith.constant dense<0xFF800000> : vector<8xf32>
    %20 = vector.multi_reduction <maximumf>, %19, %cst_14 [1] : vector<8x8xf32> to vector<8xf32>
    %21 = vector.shape_cast %20 : vector<8xf32> to vector<8x1xf32>
    %22 = vector.broadcast %21 : vector<8x1xf32> to vector<8x8xf32>
    %23 = arith.subf %19, %22 : vector<8x8xf32>
    %24 = math.exp %23 : vector<8x8xf32>
    %cst_15 = arith.constant dense<0.000000e+00> : vector<8xf32>
    %25 = vector.multi_reduction <add>, %24, %cst_15 [1] : vector<8x8xf32> to vector<8xf32>
    %26 = vector.shape_cast %25 : vector<8xf32> to vector<8x1xf32>
    %27 = tpu.reciprocal %26 {approx = true} : vector<8x1xf32> -> vector<8x1xf32>
    %28 = vector.broadcast %27 : vector<8x1xf32> to vector<8x8xf32>
    %29 = arith.mulf %24, %28 : vector<8x8xf32>
    %cst_16 = arith.constant dense<0.000000e+00> : vector<8x128xf32>
    %30 = tpu.matmul %29, %16, %cst_16 {dimension_numbers = #tpu.dot_dimension_numbers<[1], [0], [0], [1], [0, 0, 1, 1], [], []>} : vector<8x8xf32>, vector<8x128xf32>, vector<8x128xf32> -> vector<8x128xf32>
    %31 = vector.extract_strided_slice %13 {offsets = [0, 128], sizes = [8, 128], strides = [1, 1]} : vector<16x3072xf32> to vector<8x128xf32>
    %32 = vector.extract_strided_slice %13 {offsets = [0, 1152], sizes = [8, 128], strides = [1, 1]} : vector<16x3072xf32> to vector<8x128xf32>
    %33 = vector.extract_strided_slice %13 {offsets = [0, 2176], sizes = [8, 128], strides = [1, 1]} : vector<16x3072xf32> to vector<8x128xf32>
    %cst_17 = arith.constant dense<0.000000e+00> : vector<8x8xf32>
    %34 = tpu.matmul %31, %32, %cst_17 {dimension_numbers = #tpu.dot_dimension_numbers<[1], [1], [0], [0], [0, 0, 1, 0], [], []>} : vector<8x128xf32>, vector<8x128xf32>, vector<8x8xf32> -> vector<8x8xf32>
    %cst_18 = arith.constant 0.102062076 : f32
    %35 = vector.broadcast %cst_18 : f32 to vector<8x8xf32>
    %36 = arith.mulf %34, %35 : vector<8x8xf32>
    %cst_19 = arith.constant dense<0xFF800000> : vector<8xf32>
    %37 = vector.multi_reduction <maximumf>, %36, %cst_19 [1] : vector<8x8xf32> to vector<8xf32>
    %38 = vector.shape_cast %37 : vector<8xf32> to vector<8x1xf32>
    %39 = vector.broadcast %38 : vector<8x1xf32> to vector<8x8xf32>
    %40 = arith.subf %36, %39 : vector<8x8xf32>
    %41 = math.exp %40 : vector<8x8xf32>
    %cst_20 = arith.constant dense<0.000000e+00> : vector<8xf32>
    %42 = vector.multi_reduction <add>, %41, %cst_20 [1] : vector<8x8xf32> to vector<8xf32>
    %43 = vector.shape_cast %42 : vector<8xf32> to vector<8x1xf32>
    %44 = tpu.reciprocal %43 {approx = true} : vector<8x1xf32> -> vector<8x1xf32>
    %45 = vector.broadcast %44 : vector<8x1xf32> to vector<8x8xf32>
    %46 = arith.mulf %41, %45 : vector<8x8xf32>
    %cst_21 = arith.constant dense<0.000000e+00> : vector<8x128xf32>
    %47 = tpu.matmul %46, %33, %cst_21 {dimension_numbers = #tpu.dot_dimension_numbers<[1], [0], [0], [1], [0, 0, 1, 1], [], []>} : vector<8x8xf32>, vector<8x128xf32>, vector<8x128xf32> -> vector<8x128xf32>
    %48 = vector.extract_strided_slice %13 {offsets = [0, 256], sizes = [8, 128], strides = [1, 1]} : vector<16x3072xf32> to vector<8x128xf32>
    %49 = vector.extract_strided_slice %13 {offsets = [0, 1280], sizes = [8, 128], strides = [1, 1]} : vector<16x3072xf32> to vector<8x128xf32>
    %50 = vector.extract_strided_slice %13 {offsets = [0, 2304], sizes = [8, 128], strides = [1, 1]} : vector<16x3072xf32> to vector<8x128xf32>
    %cst_22 = arith.constant dense<0.000000e+00> : vector<8x8xf32>
    %51 = tpu.matmul %48, %49, %cst_22 {dimension_numbers = #tpu.dot_dimension_numbers<[1], [1], [0], [0], [0, 0, 1, 0], [], []>} : vector<8x128xf32>, vector<8x128xf32>, vector<8x8xf32> -> vector<8x8xf32>
    %cst_23 = arith.constant 0.102062076 : f32
    %52 = vector.broadcast %cst_23 : f32 to vector<8x8xf32>
    %53 = arith.mulf %51, %52 : vector<8x8xf32>
    %cst_24 = arith.constant dense<0xFF800000> : vector<8xf32>
    %54 = vector.multi_reduction <maximumf>, %53, %cst_24 [1] : vector<8x8xf32> to vector<8xf32>
    %55 = vector.shape_cast %54 : vector<8xf32> to vector<8x1xf32>
    %56 = vector.broadcast %55 : vector<8x1xf32> to vector<8x8xf32>
    %57 = arith.subf %53, %56 : vector<8x8xf32>
    %58 = math.exp %57 : vector<8x8xf32>
    %cst_25 = arith.constant dense<0.000000e+00> : vector<8xf32>
    %59 = vector.multi_reduction <add>, %58, %cst_25 [1] : vector<8x8xf32> to vector<8xf32>
    %60 = vector.shape_cast %59 : vector<8xf32> to vector<8x1xf32>
    %61 = tpu.reciprocal %60 {approx = true} : vector<8x1xf32> -> vector<8x1xf32>
    %62 = vector.broadcast %61 : vector<8x1xf32> to vector<8x8xf32>
    %63 = arith.mulf %58, %62 : vector<8x8xf32>
    %cst_26 = arith.constant dense<0.000000e+00> : vector<8x128xf32>
    %64 = tpu.matmul %63, %50, %cst_26 {dimension_numbers = #tpu.dot_dimension_numbers<[1], [0], [0], [1], [0, 0, 1, 1], [], []>} : vector<8x8xf32>, vector<8x128xf32>, vector<8x128xf32> -> vector<8x128xf32>
    %65 = vector.extract_strided_slice %13 {offsets = [0, 384], sizes = [8, 128], strides = [1, 1]} : vector<16x3072xf32> to vector<8x128xf32>
    %66 = vector.extract_strided_slice %13 {offsets = [0, 1408], sizes = [8, 128], strides = [1, 1]} : vector<16x3072xf32> to vector<8x128xf32>
    %67 = vector.extract_strided_slice %13 {offsets = [0, 2432], sizes = [8, 128], strides = [1, 1]} : vector<16x3072xf32> to vector<8x128xf32>
    %cst_27 = arith.constant dense<0.000000e+00> : vector<8x8xf32>
    %68 = tpu.matmul %65, %66, %cst_27 {dimension_numbers = #tpu.dot_dimension_numbers<[1], [1], [0], [0], [0, 0, 1, 0], [], []>} : vector<8x128xf32>, vector<8x128xf32>, vector<8x8xf32> -> vector<8x8xf32>
    %cst_28 = arith.constant 0.102062076 : f32
    %69 = vector.broadcast %cst_28 : f32 to vector<8x8xf32>
    %70 = arith.mulf %68, %69 : vector<8x8xf32>
    %cst_29 = arith.constant dense<0xFF800000> : vector<8xf32>
    %71 = vector.multi_reduction <maximumf>, %70, %cst_29 [1] : vector<8x8xf32> to vector<8xf32>
    %72 = vector.shape_cast %71 : vector<8xf32> to vector<8x1xf32>
    %73 = vector.broadcast %72 : vector<8x1xf32> to vector<8x8xf32>
    %74 = arith.subf %70, %73 : vector<8x8xf32>
    %75 = math.exp %74 : vector<8x8xf32>
    %cst_30 = arith.constant dense<0.000000e+00> : vector<8xf32>
    %76 = vector.multi_reduction <add>, %75, %cst_30 [1] : vector<8x8xf32> to vector<8xf32>
    %77 = vector.shape_cast %76 : vector<8xf32> to vector<8x1xf32>
    %78 = tpu.reciprocal %77 {approx = true} : vector<8x1xf32> -> vector<8x1xf32>
    %79 = vector.broadcast %78 : vector<8x1xf32> to vector<8x8xf32>
    %80 = arith.mulf %75, %79 : vector<8x8xf32>
    %cst_31 = arith.constant dense<0.000000e+00> : vector<8x128xf32>
    %81 = tpu.matmul %80, %67, %cst_31 {dimension_numbers = #tpu.dot_dimension_numbers<[1], [0], [0], [1], [0, 0, 1, 1], [], []>} : vector<8x8xf32>, vector<8x128xf32>, vector<8x128xf32> -> vector<8x128xf32>
    %82 = vector.extract_strided_slice %13 {offsets = [0, 512], sizes = [8, 128], strides = [1, 1]} : vector<16x3072xf32> to vector<8x128xf32>
    %83 = vector.extract_strided_slice %13 {offsets = [0, 1536], sizes = [8, 128], strides = [1, 1]} : vector<16x3072xf32> to vector<8x128xf32>
    %84 = vector.extract_strided_slice %13 {offsets = [0, 2560], sizes = [8, 128], strides = [1, 1]} : vector<16x3072xf32> to vector<8x128xf32>
    %cst_32 = arith.constant dense<0.000000e+00> : vector<8x8xf32>
    %85 = tpu.matmul %82, %83, %cst_32 {dimension_numbers = #tpu.dot_dimension_numbers<[1], [1], [0], [0], [0, 0, 1, 0], [], []>} : vector<8x128xf32>, vector<8x128xf32>, vector<8x8xf32> -> vector<8x8xf32>
    %cst_33 = arith.constant 0.102062076 : f32
    %86 = vector.broadcast %cst_33 : f32 to vector<8x8xf32>
    %87 = arith.mulf %85, %86 : vector<8x8xf32>
    %cst_34 = arith.constant dense<0xFF800000> : vector<8xf32>
    %88 = vector.multi_reduction <maximumf>, %87, %cst_34 [1] : vector<8x8xf32> to vector<8xf32>
    %89 = vector.shape_cast %88 : vector<8xf32> to vector<8x1xf32>
    %90 = vector.broadcast %89 : vector<8x1xf32> to vector<8x8xf32>
    %91 = arith.subf %87, %90 : vector<8x8xf32>
    %92 = math.exp %91 : vector<8x8xf32>
    %cst_35 = arith.constant dense<0.000000e+00> : vector<8xf32>
    %93 = vector.multi_reduction <add>, %92, %cst_35 [1] : vector<8x8xf32> to vector<8xf32>
    %94 = vector.shape_cast %93 : vector<8xf32> to vector<8x1xf32>
    %95 = tpu.reciprocal %94 {approx = true} : vector<8x1xf32> -> vector<8x1xf32>
    %96 = vector.broadcast %95 : vector<8x1xf32> to vector<8x8xf32>
    %97 = arith.mulf %92, %96 : vector<8x8xf32>
    %cst_36 = arith.constant dense<0.000000e+00> : vector<8x128xf32>
    %98 = tpu.matmul %97, %84, %cst_36 {dimension_numbers = #tpu.dot_dimension_numbers<[1], [0], [0], [1], [0, 0, 1, 1], [], []>} : vector<8x8xf32>, vector<8x128xf32>, vector<8x128xf32> -> vector<8x128xf32>
    %99 = vector.extract_strided_slice %13 {offsets = [0, 640], sizes = [8, 128], strides = [1, 1]} : vector<16x3072xf32> to vector<8x128xf32>
    %100 = vector.extract_strided_slice %13 {offsets = [0, 1664], sizes = [8, 128], strides = [1, 1]} : vector<16x3072xf32> to vector<8x128xf32>
    %101 = vector.extract_strided_slice %13 {offsets = [0, 2688], sizes = [8, 128], strides = [1, 1]} : vector<16x3072xf32> to vector<8x128xf32>
    %cst_37 = arith.constant dense<0.000000e+00> : vector<8x8xf32>
    %102 = tpu.matmul %99, %100, %cst_37 {dimension_numbers = #tpu.dot_dimension_numbers<[1], [1], [0], [0], [0, 0, 1, 0], [], []>} : vector<8x128xf32>, vector<8x128xf32>, vector<8x8xf32> -> vector<8x8xf32>
    %cst_38 = arith.constant 0.102062076 : f32
    %103 = vector.broadcast %cst_38 : f32 to vector<8x8xf32>
    %104 = arith.mulf %102, %103 : vector<8x8xf32>
    %cst_39 = arith.constant dense<0xFF800000> : vector<8xf32>
    %105 = vector.multi_reduction <maximumf>, %104, %cst_39 [1] : vector<8x8xf32> to vector<8xf32>
    %106 = vector.shape_cast %105 : vector<8xf32> to vector<8x1xf32>
    %107 = vector.broadcast %106 : vector<8x1xf32> to vector<8x8xf32>
    %108 = arith.subf %104, %107 : vector<8x8xf32>
    %109 = math.exp %108 : vector<8x8xf32>
    %cst_40 = arith.constant dense<0.000000e+00> : vector<8xf32>
    %110 = vector.multi_reduction <add>, %109, %cst_40 [1] : vector<8x8xf32> to vector<8xf32>
    %111 = vector.shape_cast %110 : vector<8xf32> to vector<8x1xf32>
    %112 = tpu.reciprocal %111 {approx = true} : vector<8x1xf32> -> vector<8x1xf32>
    %113 = vector.broadcast %112 : vector<8x1xf32> to vector<8x8xf32>
    %114 = arith.mulf %109, %113 : vector<8x8xf32>
    %cst_41 = arith.constant dense<0.000000e+00> : vector<8x128xf32>
    %115 = tpu.matmul %114, %101, %cst_41 {dimension_numbers = #tpu.dot_dimension_numbers<[1], [0], [0], [1], [0, 0, 1, 1], [], []>} : vector<8x8xf32>, vector<8x128xf32>, vector<8x128xf32> -> vector<8x128xf32>
    %116 = vector.extract_strided_slice %13 {offsets = [0, 768], sizes = [8, 128], strides = [1, 1]} : vector<16x3072xf32> to vector<8x128xf32>
    %117 = vector.extract_strided_slice %13 {offsets = [0, 1792], sizes = [8, 128], strides = [1, 1]} : vector<16x3072xf32> to vector<8x128xf32>
    %118 = vector.extract_strided_slice %13 {offsets = [0, 2816], sizes = [8, 128], strides = [1, 1]} : vector<16x3072xf32> to vector<8x128xf32>
    %cst_42 = arith.constant dense<0.000000e+00> : vector<8x8xf32>
    %119 = tpu.matmul %116, %117, %cst_42 {dimension_numbers = #tpu.dot_dimension_numbers<[1], [1], [0], [0], [0, 0, 1, 0], [], []>} : vector<8x128xf32>, vector<8x128xf32>, vector<8x8xf32> -> vector<8x8xf32>
    %cst_43 = arith.constant 0.102062076 : f32
    %120 = vector.broadcast %cst_43 : f32 to vector<8x8xf32>
    %121 = arith.mulf %119, %120 : vector<8x8xf32>
    %cst_44 = arith.constant dense<0xFF800000> : vector<8xf32>
    %122 = vector.multi_reduction <maximumf>, %121, %cst_44 [1] : vector<8x8xf32> to vector<8xf32>
    %123 = vector.shape_cast %122 : vector<8xf32> to vector<8x1xf32>
    %124 = vector.broadcast %123 : vector<8x1xf32> to vector<8x8xf32>
    %125 = arith.subf %121, %124 : vector<8x8xf32>
    %126 = math.exp %125 : vector<8x8xf32>
    %cst_45 = arith.constant dense<0.000000e+00> : vector<8xf32>
    %127 = vector.multi_reduction <add>, %126, %cst_45 [1] : vector<8x8xf32> to vector<8xf32>
    %128 = vector.shape_cast %127 : vector<8xf32> to vector<8x1xf32>
    %129 = tpu.reciprocal %128 {approx = true} : vector<8x1xf32> -> vector<8x1xf32>
    %130 = vector.broadcast %129 : vector<8x1xf32> to vector<8x8xf32>
    %131 = arith.mulf %126, %130 : vector<8x8xf32>
    %cst_46 = arith.constant dense<0.000000e+00> : vector<8x128xf32>
    %132 = tpu.matmul %131, %118, %cst_46 {dimension_numbers = #tpu.dot_dimension_numbers<[1], [0], [0], [1], [0, 0, 1, 1], [], []>} : vector<8x8xf32>, vector<8x128xf32>, vector<8x128xf32> -> vector<8x128xf32>
    %133 = vector.extract_strided_slice %13 {offsets = [0, 896], sizes = [8, 128], strides = [1, 1]} : vector<16x3072xf32> to vector<8x128xf32>
    %134 = vector.extract_strided_slice %13 {offsets = [0, 1920], sizes = [8, 128], strides = [1, 1]} : vector<16x3072xf32> to vector<8x128xf32>
    %135 = vector.extract_strided_slice %13 {offsets = [0, 2944], sizes = [8, 128], strides = [1, 1]} : vector<16x3072xf32> to vector<8x128xf32>
    %cst_47 = arith.constant dense<0.000000e+00> : vector<8x8xf32>
    %136 = tpu.matmul %133, %134, %cst_47 {dimension_numbers = #tpu.dot_dimension_numbers<[1], [1], [0], [0], [0, 0, 1, 0], [], []>} : vector<8x128xf32>, vector<8x128xf32>, vector<8x8xf32> -> vector<8x8xf32>
    %cst_48 = arith.constant 0.102062076 : f32
    %137 = vector.broadcast %cst_48 : f32 to vector<8x8xf32>
    %138 = arith.mulf %136, %137 : vector<8x8xf32>
    %cst_49 = arith.constant dense<0xFF800000> : vector<8xf32>
    %139 = vector.multi_reduction <maximumf>, %138, %cst_49 [1] : vector<8x8xf32> to vector<8xf32>
    %140 = vector.shape_cast %139 : vector<8xf32> to vector<8x1xf32>
    %141 = vector.broadcast %140 : vector<8x1xf32> to vector<8x8xf32>
    %142 = arith.subf %138, %141 : vector<8x8xf32>
    %143 = math.exp %142 : vector<8x8xf32>
    %cst_50 = arith.constant dense<0.000000e+00> : vector<8xf32>
    %144 = vector.multi_reduction <add>, %143, %cst_50 [1] : vector<8x8xf32> to vector<8xf32>
    %145 = vector.shape_cast %144 : vector<8xf32> to vector<8x1xf32>
    %146 = tpu.reciprocal %145 {approx = true} : vector<8x1xf32> -> vector<8x1xf32>
    %147 = vector.broadcast %146 : vector<8x1xf32> to vector<8x8xf32>
    %148 = arith.mulf %143, %147 : vector<8x8xf32>
    %cst_51 = arith.constant dense<0.000000e+00> : vector<8x128xf32>
    %149 = tpu.matmul %148, %135, %cst_51 {dimension_numbers = #tpu.dot_dimension_numbers<[1], [0], [0], [1], [0, 0, 1, 1], [], []>} : vector<8x8xf32>, vector<8x128xf32>, vector<8x128xf32> -> vector<8x128xf32>
    %150 = tpu.concatenate %30, %47, %64, %81, %98, %115, %132, %149 in 1 : vector<8x128xf32>, vector<8x128xf32>, vector<8x128xf32>, vector<8x128xf32>, vector<8x128xf32>, vector<8x128xf32>, vector<8x128xf32>, vector<8x128xf32> -> vector<8x1024xf32>
    %151 = vector.extract_strided_slice %13 {offsets = [8, 0], sizes = [8, 128], strides = [1, 1]} : vector<16x3072xf32> to vector<8x128xf32>
    %152 = vector.extract_strided_slice %13 {offsets = [8, 1024], sizes = [8, 128], strides = [1, 1]} : vector<16x3072xf32> to vector<8x128xf32>
    %153 = vector.extract_strided_slice %13 {offsets = [8, 2048], sizes = [8, 128], strides = [1, 1]} : vector<16x3072xf32> to vector<8x128xf32>
    %cst_52 = arith.constant dense<0.000000e+00> : vector<8x8xf32>
    %154 = tpu.matmul %151, %152, %cst_52 {dimension_numbers = #tpu.dot_dimension_numbers<[1], [1], [0], [0], [0, 0, 1, 0], [], []>} : vector<8x128xf32>, vector<8x128xf32>, vector<8x8xf32> -> vector<8x8xf32>
    %cst_53 = arith.constant 0.102062076 : f32
    %155 = vector.broadcast %cst_53 : f32 to vector<8x8xf32>
    %156 = arith.mulf %154, %155 : vector<8x8xf32>
    %cst_54 = arith.constant dense<0xFF800000> : vector<8xf32>
    %157 = vector.multi_reduction <maximumf>, %156, %cst_54 [1] : vector<8x8xf32> to vector<8xf32>
    %158 = vector.shape_cast %157 : vector<8xf32> to vector<8x1xf32>
    %159 = vector.broadcast %158 : vector<8x1xf32> to vector<8x8xf32>
    %160 = arith.subf %156, %159 : vector<8x8xf32>
    %161 = math.exp %160 : vector<8x8xf32>
    %cst_55 = arith.constant dense<0.000000e+00> : vector<8xf32>
    %162 = vector.multi_reduction <add>, %161, %cst_55 [1] : vector<8x8xf32> to vector<8xf32>
    %163 = vector.shape_cast %162 : vector<8xf32> to vector<8x1xf32>
    %164 = tpu.reciprocal %163 {approx = true} : vector<8x1xf32> -> vector<8x1xf32>
    %165 = vector.broadcast %164 : vector<8x1xf32> to vector<8x8xf32>
    %166 = arith.mulf %161, %165 : vector<8x8xf32>
    %cst_56 = arith.constant dense<0.000000e+00> : vector<8x128xf32>
    %167 = tpu.matmul %166, %153, %cst_56 {dimension_numbers = #tpu.dot_dimension_numbers<[1], [0], [0], [1], [0, 0, 1, 1], [], []>} : vector<8x8xf32>, vector<8x128xf32>, vector<8x128xf32> -> vector<8x128xf32>
    %168 = vector.extract_strided_slice %13 {offsets = [8, 128], sizes = [8, 128], strides = [1, 1]} : vector<16x3072xf32> to vector<8x128xf32>
    %169 = vector.extract_strided_slice %13 {offsets = [8, 1152], sizes = [8, 128], strides = [1, 1]} : vector<16x3072xf32> to vector<8x128xf32>
    %170 = vector.extract_strided_slice %13 {offsets = [8, 2176], sizes = [8, 128], strides = [1, 1]} : vector<16x3072xf32> to vector<8x128xf32>
    %cst_57 = arith.constant dense<0.000000e+00> : vector<8x8xf32>
    %171 = tpu.matmul %168, %169, %cst_57 {dimension_numbers = #tpu.dot_dimension_numbers<[1], [1], [0], [0], [0, 0, 1, 0], [], []>} : vector<8x128xf32>, vector<8x128xf32>, vector<8x8xf32> -> vector<8x8xf32>
    %cst_58 = arith.constant 0.102062076 : f32
    %172 = vector.broadcast %cst_58 : f32 to vector<8x8xf32>
    %173 = arith.mulf %171, %172 : vector<8x8xf32>
    %cst_59 = arith.constant dense<0xFF800000> : vector<8xf32>
    %174 = vector.multi_reduction <maximumf>, %173, %cst_59 [1] : vector<8x8xf32> to vector<8xf32>
    %175 = vector.shape_cast %174 : vector<8xf32> to vector<8x1xf32>
    %176 = vector.broadcast %175 : vector<8x1xf32> to vector<8x8xf32>
    %177 = arith.subf %173, %176 : vector<8x8xf32>
    %178 = math.exp %177 : vector<8x8xf32>
    %cst_60 = arith.constant dense<0.000000e+00> : vector<8xf32>
    %179 = vector.multi_reduction <add>, %178, %cst_60 [1] : vector<8x8xf32> to vector<8xf32>
    %180 = vector.shape_cast %179 : vector<8xf32> to vector<8x1xf32>
    %181 = tpu.reciprocal %180 {approx = true} : vector<8x1xf32> -> vector<8x1xf32>
    %182 = vector.broadcast %181 : vector<8x1xf32> to vector<8x8xf32>
    %183 = arith.mulf %178, %182 : vector<8x8xf32>
    %cst_61 = arith.constant dense<0.000000e+00> : vector<8x128xf32>
    %184 = tpu.matmul %183, %170, %cst_61 {dimension_numbers = #tpu.dot_dimension_numbers<[1], [0], [0], [1], [0, 0, 1, 1], [], []>} : vector<8x8xf32>, vector<8x128xf32>, vector<8x128xf32> -> vector<8x128xf32>
    %185 = vector.extract_strided_slice %13 {offsets = [8, 256], sizes = [8, 128], strides = [1, 1]} : vector<16x3072xf32> to vector<8x128xf32>
    %186 = vector.extract_strided_slice %13 {offsets = [8, 1280], sizes = [8, 128], strides = [1, 1]} : vector<16x3072xf32> to vector<8x128xf32>
    %187 = vector.extract_strided_slice %13 {offsets = [8, 2304], sizes = [8, 128], strides = [1, 1]} : vector<16x3072xf32> to vector<8x128xf32>
    %cst_62 = arith.constant dense<0.000000e+00> : vector<8x8xf32>
    %188 = tpu.matmul %185, %186, %cst_62 {dimension_numbers = #tpu.dot_dimension_numbers<[1], [1], [0], [0], [0, 0, 1, 0], [], []>} : vector<8x128xf32>, vector<8x128xf32>, vector<8x8xf32> -> vector<8x8xf32>
    %cst_63 = arith.constant 0.102062076 : f32
    %189 = vector.broadcast %cst_63 : f32 to vector<8x8xf32>
    %190 = arith.mulf %188, %189 : vector<8x8xf32>
    %cst_64 = arith.constant dense<0xFF800000> : vector<8xf32>
    %191 = vector.multi_reduction <maximumf>, %190, %cst_64 [1] : vector<8x8xf32> to vector<8xf32>
    %192 = vector.shape_cast %191 : vector<8xf32> to vector<8x1xf32>
    %193 = vector.broadcast %192 : vector<8x1xf32> to vector<8x8xf32>
    %194 = arith.subf %190, %193 : vector<8x8xf32>
    %195 = math.exp %194 : vector<8x8xf32>
    %cst_65 = arith.constant dense<0.000000e+00> : vector<8xf32>
    %196 = vector.multi_reduction <add>, %195, %cst_65 [1] : vector<8x8xf32> to vector<8xf32>
    %197 = vector.shape_cast %196 : vector<8xf32> to vector<8x1xf32>
    %198 = tpu.reciprocal %197 {approx = true} : vector<8x1xf32> -> vector<8x1xf32>
    %199 = vector.broadcast %198 : vector<8x1xf32> to vector<8x8xf32>
    %200 = arith.mulf %195, %199 : vector<8x8xf32>
    %cst_66 = arith.constant dense<0.000000e+00> : vector<8x128xf32>
    %201 = tpu.matmul %200, %187, %cst_66 {dimension_numbers = #tpu.dot_dimension_numbers<[1], [0], [0], [1], [0, 0, 1, 1], [], []>} : vector<8x8xf32>, vector<8x128xf32>, vector<8x128xf32> -> vector<8x128xf32>
    %202 = vector.extract_strided_slice %13 {offsets = [8, 384], sizes = [8, 128], strides = [1, 1]} : vector<16x3072xf32> to vector<8x128xf32>
    %203 = vector.extract_strided_slice %13 {offsets = [8, 1408], sizes = [8, 128], strides = [1, 1]} : vector<16x3072xf32> to vector<8x128xf32>
    %204 = vector.extract_strided_slice %13 {offsets = [8, 2432], sizes = [8, 128], strides = [1, 1]} : vector<16x3072xf32> to vector<8x128xf32>
    %cst_67 = arith.constant dense<0.000000e+00> : vector<8x8xf32>
    %205 = tpu.matmul %202, %203, %cst_67 {dimension_numbers = #tpu.dot_dimension_numbers<[1], [1], [0], [0], [0, 0, 1, 0], [], []>} : vector<8x128xf32>, vector<8x128xf32>, vector<8x8xf32> -> vector<8x8xf32>
    %cst_68 = arith.constant 0.102062076 : f32
    %206 = vector.broadcast %cst_68 : f32 to vector<8x8xf32>
    %207 = arith.mulf %205, %206 : vector<8x8xf32>
    %cst_69 = arith.constant dense<0xFF800000> : vector<8xf32>
    %208 = vector.multi_reduction <maximumf>, %207, %cst_69 [1] : vector<8x8xf32> to vector<8xf32>
    %209 = vector.shape_cast %208 : vector<8xf32> to vector<8x1xf32>
    %210 = vector.broadcast %209 : vector<8x1xf32> to vector<8x8xf32>
    %211 = arith.subf %207, %210 : vector<8x8xf32>
    %212 = math.exp %211 : vector<8x8xf32>
    %cst_70 = arith.constant dense<0.000000e+00> : vector<8xf32>
    %213 = vector.multi_reduction <add>, %212, %cst_70 [1] : vector<8x8xf32> to vector<8xf32>
    %214 = vector.shape_cast %213 : vector<8xf32> to vector<8x1xf32>
    %215 = tpu.reciprocal %214 {approx = true} : vector<8x1xf32> -> vector<8x1xf32>
    %216 = vector.broadcast %215 : vector<8x1xf32> to vector<8x8xf32>
    %217 = arith.mulf %212, %216 : vector<8x8xf32>
    %cst_71 = arith.constant dense<0.000000e+00> : vector<8x128xf32>
    %218 = tpu.matmul %217, %204, %cst_71 {dimension_numbers = #tpu.dot_dimension_numbers<[1], [0], [0], [1], [0, 0, 1, 1], [], []>} : vector<8x8xf32>, vector<8x128xf32>, vector<8x128xf32> -> vector<8x128xf32>
    %219 = vector.extract_strided_slice %13 {offsets = [8, 512], sizes = [8, 128], strides = [1, 1]} : vector<16x3072xf32> to vector<8x128xf32>
    %220 = vector.extract_strided_slice %13 {offsets = [8, 1536], sizes = [8, 128], strides = [1, 1]} : vector<16x3072xf32> to vector<8x128xf32>
    %221 = vector.extract_strided_slice %13 {offsets = [8, 2560], sizes = [8, 128], strides = [1, 1]} : vector<16x3072xf32> to vector<8x128xf32>
    %cst_72 = arith.constant dense<0.000000e+00> : vector<8x8xf32>
    %222 = tpu.matmul %219, %220, %cst_72 {dimension_numbers = #tpu.dot_dimension_numbers<[1], [1], [0], [0], [0, 0, 1, 0], [], []>} : vector<8x128xf32>, vector<8x128xf32>, vector<8x8xf32> -> vector<8x8xf32>
    %cst_73 = arith.constant 0.102062076 : f32
    %223 = vector.broadcast %cst_73 : f32 to vector<8x8xf32>
    %224 = arith.mulf %222, %223 : vector<8x8xf32>
    %cst_74 = arith.constant dense<0xFF800000> : vector<8xf32>
    %225 = vector.multi_reduction <maximumf>, %224, %cst_74 [1] : vector<8x8xf32> to vector<8xf32>
    %226 = vector.shape_cast %225 : vector<8xf32> to vector<8x1xf32>
    %227 = vector.broadcast %226 : vector<8x1xf32> to vector<8x8xf32>
    %228 = arith.subf %224, %227 : vector<8x8xf32>
    %229 = math.exp %228 : vector<8x8xf32>
    %cst_75 = arith.constant dense<0.000000e+00> : vector<8xf32>
    %230 = vector.multi_reduction <add>, %229, %cst_75 [1] : vector<8x8xf32> to vector<8xf32>
    %231 = vector.shape_cast %230 : vector<8xf32> to vector<8x1xf32>
    %232 = tpu.reciprocal %231 {approx = true} : vector<8x1xf32> -> vector<8x1xf32>
    %233 = vector.broadcast %232 : vector<8x1xf32> to vector<8x8xf32>
    %234 = arith.mulf %229, %233 : vector<8x8xf32>
    %cst_76 = arith.constant dense<0.000000e+00> : vector<8x128xf32>
    %235 = tpu.matmul %234, %221, %cst_76 {dimension_numbers = #tpu.dot_dimension_numbers<[1], [0], [0], [1], [0, 0, 1, 1], [], []>} : vector<8x8xf32>, vector<8x128xf32>, vector<8x128xf32> -> vector<8x128xf32>
    %236 = vector.extract_strided_slice %13 {offsets = [8, 640], sizes = [8, 128], strides = [1, 1]} : vector<16x3072xf32> to vector<8x128xf32>
    %237 = vector.extract_strided_slice %13 {offsets = [8, 1664], sizes = [8, 128], strides = [1, 1]} : vector<16x3072xf32> to vector<8x128xf32>
    %238 = vector.extract_strided_slice %13 {offsets = [8, 2688], sizes = [8, 128], strides = [1, 1]} : vector<16x3072xf32> to vector<8x128xf32>
    %cst_77 = arith.constant dense<0.000000e+00> : vector<8x8xf32>
    %239 = tpu.matmul %236, %237, %cst_77 {dimension_numbers = #tpu.dot_dimension_numbers<[1], [1], [0], [0], [0, 0, 1, 0], [], []>} : vector<8x128xf32>, vector<8x128xf32>, vector<8x8xf32> -> vector<8x8xf32>
    %cst_78 = arith.constant 0.102062076 : f32
    %240 = vector.broadcast %cst_78 : f32 to vector<8x8xf32>
    %241 = arith.mulf %239, %240 : vector<8x8xf32>
    %cst_79 = arith.constant dense<0xFF800000> : vector<8xf32>
    %242 = vector.multi_reduction <maximumf>, %241, %cst_79 [1] : vector<8x8xf32> to vector<8xf32>
    %243 = vector.shape_cast %242 : vector<8xf32> to vector<8x1xf32>
    %244 = vector.broadcast %243 : vector<8x1xf32> to vector<8x8xf32>
    %245 = arith.subf %241, %244 : vector<8x8xf32>
    %246 = math.exp %245 : vector<8x8xf32>
    %cst_80 = arith.constant dense<0.000000e+00> : vector<8xf32>
    %247 = vector.multi_reduction <add>, %246, %cst_80 [1] : vector<8x8xf32> to vector<8xf32>
    %248 = vector.shape_cast %247 : vector<8xf32> to vector<8x1xf32>
    %249 = tpu.reciprocal %248 {approx = true} : vector<8x1xf32> -> vector<8x1xf32>
    %250 = vector.broadcast %249 : vector<8x1xf32> to vector<8x8xf32>
    %251 = arith.mulf %246, %250 : vector<8x8xf32>
    %cst_81 = arith.constant dense<0.000000e+00> : vector<8x128xf32>
    %252 = tpu.matmul %251, %238, %cst_81 {dimension_numbers = #tpu.dot_dimension_numbers<[1], [0], [0], [1], [0, 0, 1, 1], [], []>} : vector<8x8xf32>, vector<8x128xf32>, vector<8x128xf32> -> vector<8x128xf32>
    %253 = vector.extract_strided_slice %13 {offsets = [8, 768], sizes = [8, 128], strides = [1, 1]} : vector<16x3072xf32> to vector<8x128xf32>
    %254 = vector.extract_strided_slice %13 {offsets = [8, 1792], sizes = [8, 128], strides = [1, 1]} : vector<16x3072xf32> to vector<8x128xf32>
    %255 = vector.extract_strided_slice %13 {offsets = [8, 2816], sizes = [8, 128], strides = [1, 1]} : vector<16x3072xf32> to vector<8x128xf32>
    %cst_82 = arith.constant dense<0.000000e+00> : vector<8x8xf32>
    %256 = tpu.matmul %253, %254, %cst_82 {dimension_numbers = #tpu.dot_dimension_numbers<[1], [1], [0], [0], [0, 0, 1, 0], [], []>} : vector<8x128xf32>, vector<8x128xf32>, vector<8x8xf32> -> vector<8x8xf32>
    %cst_83 = arith.constant 0.102062076 : f32
    %257 = vector.broadcast %cst_83 : f32 to vector<8x8xf32>
    %258 = arith.mulf %256, %257 : vector<8x8xf32>
    %cst_84 = arith.constant dense<0xFF800000> : vector<8xf32>
    %259 = vector.multi_reduction <maximumf>, %258, %cst_84 [1] : vector<8x8xf32> to vector<8xf32>
    %260 = vector.shape_cast %259 : vector<8xf32> to vector<8x1xf32>
    %261 = vector.broadcast %260 : vector<8x1xf32> to vector<8x8xf32>
    %262 = arith.subf %258, %261 : vector<8x8xf32>
    %263 = math.exp %262 : vector<8x8xf32>
    %cst_85 = arith.constant dense<0.000000e+00> : vector<8xf32>
    %264 = vector.multi_reduction <add>, %263, %cst_85 [1] : vector<8x8xf32> to vector<8xf32>
    %265 = vector.shape_cast %264 : vector<8xf32> to vector<8x1xf32>
    %266 = tpu.reciprocal %265 {approx = true} : vector<8x1xf32> -> vector<8x1xf32>
    %267 = vector.broadcast %266 : vector<8x1xf32> to vector<8x8xf32>
    %268 = arith.mulf %263, %267 : vector<8x8xf32>
    %cst_86 = arith.constant dense<0.000000e+00> : vector<8x128xf32>
    %269 = tpu.matmul %268, %255, %cst_86 {dimension_numbers = #tpu.dot_dimension_numbers<[1], [0], [0], [1], [0, 0, 1, 1], [], []>} : vector<8x8xf32>, vector<8x128xf32>, vector<8x128xf32> -> vector<8x128xf32>
    %270 = vector.extract_strided_slice %13 {offsets = [8, 896], sizes = [8, 128], strides = [1, 1]} : vector<16x3072xf32> to vector<8x128xf32>
    %271 = vector.extract_strided_slice %13 {offsets = [8, 1920], sizes = [8, 128], strides = [1, 1]} : vector<16x3072xf32> to vector<8x128xf32>
    %272 = vector.extract_strided_slice %13 {offsets = [8, 2944], sizes = [8, 128], strides = [1, 1]} : vector<16x3072xf32> to vector<8x128xf32>
    %cst_87 = arith.constant dense<0.000000e+00> : vector<8x8xf32>
    %273 = tpu.matmul %270, %271, %cst_87 {dimension_numbers = #tpu.dot_dimension_numbers<[1], [1], [0], [0], [0, 0, 1, 0], [], []>} : vector<8x128xf32>, vector<8x128xf32>, vector<8x8xf32> -> vector<8x8xf32>
    %cst_88 = arith.constant 0.102062076 : f32
    %274 = vector.broadcast %cst_88 : f32 to vector<8x8xf32>
    %275 = arith.mulf %273, %274 : vector<8x8xf32>
    %cst_89 = arith.constant dense<0xFF800000> : vector<8xf32>
    %276 = vector.multi_reduction <maximumf>, %275, %cst_89 [1] : vector<8x8xf32> to vector<8xf32>
    %277 = vector.shape_cast %276 : vector<8xf32> to vector<8x1xf32>
    %278 = vector.broadcast %277 : vector<8x1xf32> to vector<8x8xf32>
    %279 = arith.subf %275, %278 : vector<8x8xf32>
    %280 = math.exp %279 : vector<8x8xf32>
    %cst_90 = arith.constant dense<0.000000e+00> : vector<8xf32>
    %281 = vector.multi_reduction <add>, %280, %cst_90 [1] : vector<8x8xf32> to vector<8xf32>
    %282 = vector.shape_cast %281 : vector<8xf32> to vector<8x1xf32>
    %283 = tpu.reciprocal %282 {approx = true} : vector<8x1xf32> -> vector<8x1xf32>
    %284 = vector.broadcast %283 : vector<8x1xf32> to vector<8x8xf32>
    %285 = arith.mulf %280, %284 : vector<8x8xf32>
    %cst_91 = arith.constant dense<0.000000e+00> : vector<8x128xf32>
    %286 = tpu.matmul %285, %272, %cst_91 {dimension_numbers = #tpu.dot_dimension_numbers<[1], [0], [0], [1], [0, 0, 1, 1], [], []>} : vector<8x8xf32>, vector<8x128xf32>, vector<8x128xf32> -> vector<8x128xf32>
    %287 = tpu.concatenate %167, %184, %201, %218, %235, %252, %269, %286 in 1 : vector<8x128xf32>, vector<8x128xf32>, vector<8x128xf32>, vector<8x128xf32>, vector<8x128xf32>, vector<8x128xf32>, vector<8x128xf32>, vector<8x128xf32> -> vector<8x1024xf32>
    %288 = tpu.concatenate %150, %287 in 0 : vector<8x1024xf32>, vector<8x1024xf32> -> vector<16x1024xf32>
    %289 = arith.truncf %288 : vector<16x1024xf32> to vector<16x1024xbf16>
    %c0_92 = arith.constant 0 : index
    %c0_93 = arith.constant 0 : index
    %290 = vector.load %arg6[%c0_92, %c0_93] : memref<1024x768xbf16, #tpu.memory_space<vmem>>, vector<1024x768xbf16>
    %cst_94 = arith.constant dense<0.000000e+00> : vector<16x768xf32>
    %291 = tpu.matmul %289, %290, %cst_94 {dimension_numbers = #tpu.dot_dimension_numbers<[1], [0], [0], [1], [0, 0, 1, 1], [], []>} : vector<16x1024xbf16>, vector<1024x768xbf16>, vector<16x768xf32> -> vector<16x768xf32>
    %c0_95 = arith.constant 0 : index
    %c0_96 = arith.constant 0 : index
    %292 = vector.load %arg7[%c0_95, %c0_96] : memref<1x768xf32, #tpu.memory_space<vmem>>, vector<1x768xf32>
    %293 = vector.broadcast %292 : vector<1x768xf32> to vector<16x768xf32>
    %294 = arith.addf %291, %293 : vector<16x768xf32>
    %295 = vector.shape_cast %294 : vector<16x768xf32> to vector<2x8x768xf32>
    %cst_97 = arith.constant dense<0.000000e+00> : vector<2x768xf32>
    %296 = vector.multi_reduction <add>, %295, %cst_97 [1] : vector<2x8x768xf32> to vector<2x768xf32>
    %297 = arith.addf %6, %296 : vector<2x768xf32>
    %cst_98 = arith.constant 0.111111112 : f32
    %298 = vector.broadcast %cst_98 : f32 to vector<2x768xf32>
    %299 = arith.mulf %297, %298 : vector<2x768xf32>
    %c0_99 = arith.constant 0 : index
    %c0_100 = arith.constant 0 : index
    %300 = vector.load %arg8[%c0_99, %c0_100] : memref<768x128xf32, #tpu.memory_space<vmem>>, vector<768x128xf32>
    %cst_101 = arith.constant dense<0.000000e+00> : vector<2x128xf32>
    %301 = tpu.matmul %299, %300, %cst_101 {dimension_numbers = #tpu.dot_dimension_numbers<[1], [0], [0], [1], [0, 0, 1, 1], [], []>} : vector<2x768xf32>, vector<768x128xf32>, vector<2x128xf32> -> vector<2x128xf32>
    %c0_102 = arith.constant 0 : index
    %c0_103 = arith.constant 0 : index
    %302 = vector.load %arg9[%c0_102, %c0_103] : memref<1x128xf32, #tpu.memory_space<vmem>>, vector<1x128xf32>
    %303 = vector.broadcast %302 : vector<1x128xf32> to vector<2x128xf32>
    %304 = arith.addf %301, %303 : vector<2x128xf32>
    %cst_104 = arith.constant 0.000000e+00 : f32
    %305 = vector.broadcast %cst_104 : f32 to vector<2x128xf32>
    %306 = arith.maximumf %304, %305 : vector<2x128xf32>
    %c0_105 = arith.constant 0 : index
    %c0_106 = arith.constant 0 : index
    %307 = vector.load %arg10[%c0_105, %c0_106] : memref<128x4xf32, #tpu.memory_space<vmem>>, vector<128x4xf32>
    %cst_107 = arith.constant dense<0.000000e+00> : vector<2x4xf32>
    %308 = tpu.matmul %306, %307, %cst_107 {dimension_numbers = #tpu.dot_dimension_numbers<[1], [0], [0], [1], [0, 0, 1, 1], [], []>} : vector<2x128xf32>, vector<128x4xf32>, vector<2x4xf32> -> vector<2x4xf32>
    %c0_108 = arith.constant 0 : index
    %c0_109 = arith.constant 0 : index
    %309 = vector.load %arg11[%c0_108, %c0_109] : memref<1x4xf32, #tpu.memory_space<vmem>>, vector<1x4xf32>
    %310 = vector.broadcast %309 : vector<1x4xf32> to vector<2x4xf32>
    %311 = arith.addf %308, %310 : vector<2x4xf32>
    %c0_110 = arith.constant 0 : index
    %c0_111 = arith.constant 0 : index
    %312 = vector.load %arg12[%c0_110, %c0_111] : memref<2x4xf32, #tpu.memory_space<vmem>>, vector<2x4xf32>
    tpu.vector_store %arg12[%c0_110, %c0_111], %311 {strides = array<i32>} : memref<2x4xf32, #tpu.memory_space<vmem>>, vector<2x4xf32>,
    return
  }
}

</mosaic_0001>

<bundles_post_ra>
// kernel: tpu_custom_call.1
= control target key start
LH: loop header
LB: loop body
LE: loop exit
PB: predicated region body
PF: predicated region fallthrough
CT: control target
= control target key end

     0   :  { %17 = vsyncpa [#allocation3], 0  ;;  %s21807_s0 = inlined_call_operand.hbm [shape: f32[2,768], index: 0, kind: input, shape index: {}]   ;;  %s21808_s1 = inlined_call_operand.hbm [shape: f32[16,768], index: 1, kind: input, shape index: {}]   ;;  %s21809_s2 = inlined_call_operand.hbm [shape: bf16[768,768], index: 2, kind: input, shape index: {}]   ;;  %s21810_s3 = inlined_call_operand.hbm [shape: f32[1,768], index: 3, kind: input, shape index: {}]   ;;  %s21811_s4 = inlined_call_operand.hbm [shape: bf16[768,3072], index: 4, kind: input, shape index: {}]   ;;  %s21812_s5 = inlined_call_operand.hbm [shape: f32[1,3072], index: 5, kind: input, shape index: {}]   ;;  %s21813_s6 = inlined_call_operand.hbm [shape: bf16[1024,768], index: 6, kind: input, shape index: {}]   ;;  %s21814_s7 = inlined_call_operand.hbm [shape: f32[1,768], index: 7, kind: input, shape index: {}]   ;;  %s21815_s8 = inlined_call_operand.hbm [shape: f32[768,128], index: 8, kind: input, shape index: {}]   ;;  %s21816_s9 = inlined_call_operand.hbm [shape: f32[1,128], index: 9, kind: input, shape index: {}]   ;;  %s21817_s10 = inlined_call_operand.vmem [shape: f32[128,4], index: 10, kind: input, shape index: {}]   ;;  %s21818_s11 = inlined_call_operand.hbm [shape: f32[1,4], index: 11, kind: input, shape index: {}]   ;;  %s21819_s12 = inlined_call_operand.hbm [shape: f32[2,4], index: 12, kind: output, shape index: {}]  }
   0x1   :  { %18 = vsyncpa [#allocation6], 0 }
   0x2   :  { %19 = vsyncpa [#allocation9], 0 }
   0x3   :  { %20 = vsyncpa [#allocation12], 0 }
   0x4   :  { %21 = vsyncpa [#allocation15], 0 }
   0x5   :  { %22 = vsyncpa [#allocation18], 0 }
   0x6   :  { %23 = vsyncpa [#allocation4], 0  ;;  %s20747_s21 = smov [#allocation5]   ;;  %s20469_s25 = scalar_lea.hbm %s21808_s1, 1536 }
   0x7   :  { %s39_s22 = sshll.u32 %s20747_s21, 4  ;;  %p20470_p0 = scmp.ne.s32.totalorder %s21808_s1, %s20469_s25  ;;  %s40_s22 = int_to_ptr.vmem [resolvable:$true] %s39_s22 }
   0x8   :  { %p20473_p1 = scmp.lt.u32.totalorder %s20469_s25, %s21808_s1 }
   0xa   :  { %p20475_p2 = pnand %p20473_p1, %p20470_p0 }
   0xc   :  { %20478 = shalt.err (!%p20475_p2)
}
   0xd   :  { %s20479_s30 = scalar_lea.vmem %s40_s22, 1536  ;;  %p20484_p4 = scmp.lt.s32.totalorder %s40_s22, %s40_s22 }
   0xe   :  { %p20480_p3 = scmp.ne.s32.totalorder %s40_s22, %s20479_s30  ;;  %p20485_p5 = scmp.lt.s32.totalorder %s20479_s30, %s20479_s30 }
  0x10   :  { %p20486_p6 = por %p20485_p5, %p20484_p4 }
  0x12   :  { %p20487_p7 = pnand %p20486_p6, %p20480_p3 }
  0x14   :  { %20490 = shalt.err (!%p20487_p7)
}
  0x15   :  { %s20748_s13 = smov 768   ;;  %s20749_s14 = smov 48  }
  0x16   :  { %45 = dma.hbm_to_vmem [thread:$0]  %s21808_s1, 1536, %s40_s22, [#allocation6], %s20748_s13, %s20748_s13, %s20749_s14  }
  0x17   :  { %s20750_s17 = smov [#allocation8]   ;;  %s20751_s19 = smov [#allocation11]  }
  0x18   :  { %s64_s18 = sshll.u32 %s20750_s17, 4  ;;  %s86_s20 = sshll.u32 %s20751_s19, 4  ;;  %s65_s18 = int_to_ptr.vmem [resolvable:$true] %s64_s18  ;;  %s87_s20 = int_to_ptr.vmem [resolvable:$true] %s86_s20 }
  0x19   :  { %s20491_s24 = scalar_lea.hbm %s21810_s3, 96 }
  0x1a   :  { %p20492_p8 = scmp.ne.s32.totalorder %s21810_s3, %s20491_s24  ;;  %p20495_p9 = scmp.lt.u32.totalorder %s20491_s24, %s21810_s3 }
  0x1c   :  { %p20497_p10 = pnand %p20495_p9, %p20492_p8 }
  0x1e   :  { %20500 = shalt.err (!%p20497_p10)
}
  0x1f   :  { %s20501_s1 = scalar_lea.vmem %s65_s18, 96  ;;  %p20506_p12 = scmp.lt.s32.totalorder %s65_s18, %s65_s18 }
  0x20   :  { %p20502_p11 = scmp.ne.s32.totalorder %s65_s18, %s20501_s1  ;;  %p20507_p13 = scmp.lt.s32.totalorder %s20501_s1, %s20501_s1 }
  0x22   :  { %p20508_p0 = por %p20507_p13, %p20506_p12 }
  0x24   :  { %p20509_p1 = pnand %p20508_p0, %p20502_p11 }
  0x26   :  { %20512 = shalt.err (!%p20509_p1)
}
  0x27   :  { %67 = dma.hbm_to_vmem [thread:$0]  %s21810_s3, 96, %s65_s18, [#allocation9]  }
  0x28   :  { %s20513_s14 = scalar_lea.hbm %s21812_s5, 384 }
  0x29   :  { %p20514_p2 = scmp.ne.s32.totalorder %s21812_s5, %s20513_s14  ;;  %p20517_p3 = scmp.lt.u32.totalorder %s20513_s14, %s21812_s5 }
  0x2b   :  { %p20519_p4 = pnand %p20517_p3, %p20514_p2 }
  0x2d   :  { %20522 = shalt.err (!%p20519_p4)
}
  0x2e   :  { %s20523_s21 = scalar_lea.vmem %s87_s20, 384  ;;  %p20528_p6 = scmp.lt.s32.totalorder %s87_s20, %s87_s20 }
  0x2f   :  { %p20524_p5 = scmp.ne.s32.totalorder %s87_s20, %s20523_s21  ;;  %p20529_p7 = scmp.lt.s32.totalorder %s20523_s21, %s20523_s21 }
  0x31   :  { %p20530_p8 = por %p20529_p7, %p20528_p6 }
  0x33   :  { %p20531_p9 = pnand %p20530_p8, %p20524_p5 }
  0x35   :  { %20534 = shalt.err (!%p20531_p9)
}
  0x36   :  { %89 = dma.hbm_to_vmem [thread:$0]  %s21812_s5, 384, %s87_s20, [#allocation12]  }
  0x37   :  { %s20752_s23 = smov [#allocation14]   ;;  %s20753_s25 = smov [#allocation17]  }
  0x38   :  { %s108_s24 = sshll.u32 %s20752_s23, 4  ;;  %s130_s26 = sshll.u32 %s20753_s25, 4  ;;  %s109_s24 = int_to_ptr.vmem [resolvable:$true] %s108_s24  ;;  %s131_s26 = int_to_ptr.vmem [resolvable:$true] %s130_s26 }
  0x39   :  { %s20535_s1 = scalar_lea.hbm %s21814_s7, 96 }
  0x3a   :  { %p20536_p10 = scmp.ne.s32.totalorder %s21814_s7, %s20535_s1  ;;  %p20539_p11 = scmp.lt.u32.totalorder %s20535_s1, %s21814_s7 }
  0x3c   :  { %p20541_p12 = pnand %p20539_p11, %p20536_p10 }
  0x3e   :  { %20544 = shalt.err (!%p20541_p12)
}
  0x3f   :  { %s20545_s5 = scalar_lea.vmem %s109_s24, 96  ;;  %p20550_p0 = scmp.lt.s32.totalorder %s109_s24, %s109_s24 }
  0x40   :  { %p20546_p13 = scmp.ne.s32.totalorder %s109_s24, %s20545_s5  ;;  %p20551_p1 = scmp.lt.s32.totalorder %s20545_s5, %s20545_s5 }
  0x42   :  { %p20552_p2 = por %p20551_p1, %p20550_p0 }
  0x44   :  { %p20553_p3 = pnand %p20552_p2, %p20546_p13 }
  0x46   :  { %20556 = shalt.err (!%p20553_p3)
}
  0x47   :  { %111 = dma.hbm_to_vmem [thread:$0]  %s21814_s7, 96, %s109_s24, [#allocation15]  }
  0x48   :  { %s20557_s17 = scalar_lea.hbm %s21816_s9, 16 }
  0x49   :  { %p20558_p4 = scmp.ne.s32.totalorder %s21816_s9, %s20557_s17  ;;  %p20561_p5 = scmp.lt.u32.totalorder %s20557_s17, %s21816_s9 }
  0x4b   :  { %p20563_p6 = pnand %p20561_p5, %p20558_p4 }
  0x4d   :  { %20566 = shalt.err (!%p20563_p6)
}
  0x4e   :  { %s20567_s23 = scalar_lea.vmem %s131_s26, 16  ;;  %s20571_s25 = scalar_lea.vmem %s131_s26, 32 }
  0x4f   :  { %p20568_p7 = scmp.ne.s32.totalorder %s131_s26, %s20567_s23  ;;  %p20572_p8 = scmp.lt.s32.totalorder %s131_s26, %s131_s26 }
  0x50   :  { %p20573_p9 = scmp.lt.s32.totalorder %s20571_s25, %s20567_s23 }
  0x52   :  { %p20574_p10 = por %p20573_p9, %p20572_p8 }
  0x54   :  { %p20575_p11 = pnand %p20574_p10, %p20568_p7 }
  0x56   :  { %20578 = shalt.err (!%p20575_p11)
}
  0x57   :  { %133 = dma.hbm_to_vmem [thread:$0]  %s21816_s9, 16, %s131_s26, [#allocation18]  }
  0x58   :  { %s20754_s27 = smov [#allocation2]   ;;  %s20755_s1 = smov [#allocation7]  }
  0x59   :  { %s30_s28 = sshll.u32 %s20754_s27, 4  ;;  %s51_s22 = sshll.u32 %s20755_s1, 4  ;;  %s31_s28 = int_to_ptr.vmem [resolvable:$true] %s30_s28  ;;  %s52_s22 = int_to_ptr.vmem [resolvable:$true] %s51_s22 }
  0x5a   :  { %s20579_s13 = scalar_lea.hbm %s21807_s0, 192 }
  0x5b   :  { %p20580_p12 = scmp.ne.s32.totalorder %s21807_s0, %s20579_s13  ;;  %p20583_p13 = scmp.lt.u32.totalorder %s20579_s13, %s21807_s0 }
  0x5d   :  { %p20585_p0 = pnand %p20583_p13, %p20580_p12 }
  0x5f   :  { %20588 = shalt.err (!%p20585_p0)
}
  0x60   :  { %s20589_s9 = scalar_lea.vmem %s31_s28, 192  ;;  %p20594_p2 = scmp.lt.s32.totalorder %s31_s28, %s31_s28 }
  0x61   :  { %p20590_p1 = scmp.ne.s32.totalorder %s31_s28, %s20589_s9  ;;  %p20595_p3 = scmp.lt.s32.totalorder %s20589_s9, %s20589_s9 }
  0x63   :  { %p20596_p4 = por %p20595_p3, %p20594_p2 }
  0x65   :  { %p20597_p5 = pnand %p20596_p4, %p20590_p1 }
  0x67   :  { %20600 = shalt.err (!%p20597_p5)
}
  0x68   :  { %33 = dma.hbm_to_vmem [thread:$0]  %s21807_s0, 192, %s31_s28, [#allocation3]  }
  0x69   :  { %s20601_s21 = scalar_lea.hbm %s21809_s2, 36864 }
  0x6a   :  { %p20602_p6 = scmp.ne.s32.totalorder %s21809_s2, %s20601_s21  ;;  %p20605_p7 = scmp.lt.u32.totalorder %s20601_s21, %s21809_s2 }
  0x6c   :  { %p20607_p8 = pnand %p20605_p7, %p20602_p6 }
  0x6e   :  { %20610 = shalt.err (!%p20607_p8)
}
  0x6f   :  { %s20611_s7 = scalar_lea.vmem %s52_s22, 36864  ;;  %p20616_p10 = scmp.lt.s32.totalorder %s52_s22, %s52_s22 }
  0x70   :  { %p20612_p9 = scmp.ne.s32.totalorder %s52_s22, %s20611_s7  ;;  %p20617_p11 = scmp.lt.s32.totalorder %s20611_s7, %s20611_s7 }
  0x72   :  { %p20618_p12 = por %p20617_p11, %p20616_p10 }
  0x74   :  { %p20619_p13 = pnand %p20618_p12, %p20612_p9 }
  0x76   :  { %20622 = shalt.err (!%p20619_p13)
}
  0x77   :  { %s20756_s0 = smov 384   ;;  %s20757_s24 = smov 24  }
  0x78   :  { %57 = dma.hbm_to_vmem [thread:$0]  %s21809_s2, 36864, %s52_s22, [#allocation6], %s20756_s0, %s20756_s0, %s20757_s24  }
  0x79   :  { %s20758_s1 = smov [#allocation10]   ;;  %s20623_s5 = scalar_lea.hbm %s21811_s4, 147456 }
  0x7a   :  { %s73_s29 = sshll.u32 %s20758_s1, 4  ;;  %p20624_p0 = scmp.ne.s32.totalorder %s21811_s4, %s20623_s5  ;;  %s74_s29 = int_to_ptr.vmem [resolvable:$true] %s73_s29 }
  0x7b   :  { %p20627_p1 = scmp.lt.u32.totalorder %s20623_s5, %s21811_s4 }
  0x7d   :  { %p20629_p2 = pnand %p20627_p1, %p20624_p0 }
  0x7f   :  { %20632 = shalt.err (!%p20629_p2)
}
  0x80   :  { %s20633_s26 = scalar_lea.vmem %s74_s29, 147456  ;;  %p20638_p4 = scmp.lt.s32.totalorder %s74_s29, %s74_s29 }
  0x81   :  { %p20634_p3 = scmp.ne.s32.totalorder %s74_s29, %s20633_s26  ;;  %p20639_p5 = scmp.lt.s32.totalorder %s20633_s26, %s20633_s26 }
  0x83   :  { %p20640_p6 = por %p20639_p5, %p20638_p4 }
  0x85   :  { %p20641_p7 = pnand %p20640_p6, %p20634_p3 }
  0x87   :  { %20644 = shalt.err (!%p20641_p7)
}
  0x88   :  { %s20759_s2 = smov 1536   ;;  %s20760_s22 = smov 96  }
  0x89   :  { %79 = dma.hbm_to_vmem [thread:$0]  %s21811_s4, 147456, %s74_s29, [#allocation9], %s20759_s2, %s20759_s2, %s20760_s22  }
  0x8a   :  { %s20761_s19 = smov [#allocation13]   ;;  %s20762_s3 = smov [#allocation16]  }
  0x8b   :  { %s95_s21 = sshll.u32 %s20761_s19, 4  ;;  %s117_s18 = sshll.u32 %s20762_s3, 4  ;;  %s96_s21 = int_to_ptr.vmem [resolvable:$true] %s95_s21  ;;  %s20935_s18 = int_to_ptr.vmem [resolvable:$true] %s117_s18 }
  0x8c   :  { %s20645_s7 = scalar_lea.hbm %s21813_s6, 49152 }
  0x8d   :  { %p20646_p8 = scmp.ne.s32.totalorder %s21813_s6, %s20645_s7  ;;  %p20649_p9 = scmp.lt.u32.totalorder %s20645_s7, %s21813_s6 }
  0x8f   :  { %p20651_p10 = pnand %p20649_p9, %p20646_p8 }
  0x91   :  { %20654 = shalt.err (!%p20651_p10)
}
  0x92   :  { %s20655_s4 = scalar_lea.vmem %s96_s21, 49152  ;;  %p20660_p12 = scmp.lt.s32.totalorder %s96_s21, %s96_s21 }
  0x93   :  { %p20656_p11 = scmp.ne.s32.totalorder %s96_s21, %s20655_s4  ;;  %p20661_p13 = scmp.lt.s32.totalorder %s20655_s4, %s20655_s4 }
  0x95   :  { %p20662_p0 = por %p20661_p13, %p20660_p12 }
  0x97   :  { %p20663_p1 = pnand %p20662_p0, %p20656_p11 }
  0x99   :  { %20666 = shalt.err (!%p20663_p1)
}
  0x9a   :  { %101 = dma.hbm_to_vmem [thread:$0]  %s21813_s6, 49152, %s96_s21, [#allocation12], %s20756_s0, %s20756_s0, %s20757_s24  }
  0x9b   :  { %s20667_s14 = scalar_lea.hbm %s21815_s8, 12288 }
  0x9c   :  { %p20668_p2 = scmp.ne.s32.totalorder %s21815_s8, %s20667_s14  ;;  %p20671_p3 = scmp.lt.u32.totalorder %s20667_s14, %s21815_s8 }
  0x9e   :  { %p20673_p4 = pnand %p20671_p3, %p20668_p2 }
  0xa0   :  { %20676 = shalt.err (!%p20673_p4)
}
  0xa1   :  { %s20677_s22 = scalar_lea.vmem %s20935_s18, 12288  ;;  %p20682_p6 = scmp.lt.s32.totalorder %s20935_s18, %s20935_s18 }
  0xa2   :  { %p20678_p5 = scmp.ne.s32.totalorder %s20935_s18, %s20677_s22  ;;  %p20683_p7 = scmp.lt.s32.totalorder %s20677_s22, %s20677_s22 }
  0xa4   :  { %p20684_p8 = por %p20683_p7, %p20682_p6 }
  0xa6   :  { %p20685_p9 = pnand %p20684_p8, %p20678_p5 }
  0xa8   :  { %20688 = shalt.err (!%p20685_p9)
}
  0xa9   :  { %s20763_s6 = smov 128   ;;  %s20764_s0 = smov 8  }
  0xaa   :  { %123 = dma.hbm_to_vmem [thread:$0]  %s21815_s8, 12288, %s20935_s18, [#allocation15], %s20763_s6, %s20763_s6, %s20764_s0  }
  0xab   :  { %s20765_s17 = smov [#allocation19]   ;;  %s20689_s23 = scalar_lea.hbm %s21818_s11, 16 }
  0xac   :  { %s142_s19 = sshll.u32 %s20765_s17, 4  ;;  %p20690_p10 = scmp.ne.s32.totalorder %s21818_s11, %s20689_s23  ;;  %s143_s19 = int_to_ptr.vmem [resolvable:$true] %s142_s19 }
  0xad   :  { %p20693_p11 = scmp.lt.u32.totalorder %s20689_s23, %s21818_s11 }
  0xaf   :  { %p20695_p12 = pnand %p20693_p11, %p20690_p10 }
  0xb1   :  { %20698 = shalt.err (!%p20695_p12)
}
  0xb2   :  { %s20699_s1 = scalar_lea.vmem %s143_s19, 16  ;;  %s20703_s8 = scalar_lea.vmem %s143_s19, 32 }
  0xb3   :  { %p20700_p13 = scmp.ne.s32.totalorder %s143_s19, %s20699_s1  ;;  %p20704_p0 = scmp.lt.s32.totalorder %s143_s19, %s143_s19 }
  0xb4   :  { %p20705_p1 = scmp.lt.s32.totalorder %s20703_s8, %s20699_s1 }
  0xb6   :  { %p20706_p2 = por %p20705_p1, %p20704_p0 }
  0xb8   :  { %p20707_p3 = pnand %p20706_p2, %p20700_p13 }
  0xba   :  { %20710 = shalt.err (!%p20707_p3)
}
  0xbb   :  { %145 = dma.hbm_to_vmem [thread:$0]  %s21818_s11, 16, %s143_s19, [#allocation18]  }
  0xbc   :  { %20733 = dma.done.wait [#allocation3], 192  }
  0xbd   :  { %20734 = vsyncadd [#allocation3], 4294967104 }
  0xbe   :  { %20735 = dma.done.wait [#allocation6], 38400  }
  0xbf   :  { %20736 = vsyncadd [#allocation6], 4294928896 }
  0xc0   :  { %20737 = dma.done.wait [#allocation9], 147552  }
  0xc1   :  { %20738 = vsyncadd [#allocation9], 4294819744 }
  0xc2   :  { %20739 = dma.done.wait [#allocation12], 49536  }
  0xc3   :  { %20740 = vsyncadd [#allocation12], 4294917760 }
  0xc4   :  { %20741 = dma.done.wait [#allocation15], 12384  }
  0xc5   :  { %20742 = vsyncadd [#allocation15], 4294954912 }
  0xc6   :  { %20743 = dma.done.wait [#allocation18], 32  }
  0xc7   :  { %20744 = vsyncadd [#allocation18], 4294967264  ;;  %v19392_v0 = vld [vmem:[#allocation7 + $0x4] ss:$24 sps:$4 sm:$0xff]   ;;  %v19396_v2 = vld [vmem:[#allocation7] ss:$24 sps:$4 sm:$0xff]   ;;  %v187_v38 = vlaneseq }
  0xc8   :  { %v19394_v1 = vld [vmem:[#allocation7 + $0x604] ss:$24 sps:$4 sm:$0xff]   ;;  %1980 = vmatprep.subr.bf16.mxu1 %v19392_v0  ;;  %v19397_v3 = vld [vmem:[#allocation7 + $0x600] ss:$24 sps:$4 sm:$0xff]   ;;  %v19398_v4 = vld [vmem:[#allocation7 + $0x34] ss:$24 sps:$4 sm:$0xff]  }
  0xc9   :  { %2062 = vmatprep.subr.bf16.mxu0 %v19394_v1  ;;  %1981 = vmatpush1.bf16.msra.mxu1 %v19396_v2  ;;  %v19400_v5 = vld [vmem:[#allocation7 + $0x634] ss:$24 sps:$4 sm:$0xff]   ;;  %v19402_v6 = vld [vmem:[#allocation7 + $0x30] ss:$24 sps:$4 sm:$0xff]   ;;  %v19404_v8 = vld [vmem:[#allocation7 + $0x64] ss:$24 sps:$4 sm:$0xff]  }
  0xca   :  { %2063 = vmatpush1.bf16.msra.mxu0 %v19397_v3  ;;  %1982 = vmatprep.subr.bf16.mxu1 %v19398_v4  ;;  %v19403_v7 = vld [vmem:[#allocation7 + $0x630] ss:$24 sps:$4 sm:$0xff]   ;;  %v19406_v9 = vld [vmem:[#allocation7 + $0x664] ss:$24 sps:$4 sm:$0xff]   ;;  %v19408_v10 = vld [vmem:[#allocation7 + $0x60] ss:$24 sps:$4 sm:$0xff]  }
  0xcb   :  { %2064 = vmatprep.subr.bf16.mxu0 %v19400_v5  ;;  %v19409_v11 = vld [vmem:[#allocation7 + $0x660] ss:$24 sps:$4 sm:$0xff]   ;;  %v19410_v12 = vld [vmem:[#allocation7 + $0x94] ss:$24 sps:$4 sm:$0xff]   ;;  %v19414_v14 = vld [vmem:[#allocation7 + $0x90] ss:$24 sps:$4 sm:$0xff]  }
  0xcc   :  { %v19412_v13 = vld [vmem:[#allocation7 + $0x694] ss:$24 sps:$4 sm:$0xff]   ;;  %v19415_v15 = vld [vmem:[#allocation7 + $0x690] ss:$24 sps:$4 sm:$0xff]   ;;  %v19416_v16 = vld [vmem:[#allocation7 + $0xc4] ss:$24 sps:$4 sm:$0xff]  }
  0xcd   :  { %1983 = vmatpush1.bf16.msra.mxu1 %v19402_v6  ;;  %v19418_v17 = vld [vmem:[#allocation7 + $0x6c4] ss:$24 sps:$4 sm:$0xff]   ;;  %v19420_v18 = vld [vmem:[#allocation7 + $0xc0] ss:$24 sps:$4 sm:$0xff]   ;;  %v19422_v20 = vld [vmem:[#allocation7 + $0xf4] ss:$24 sps:$4 sm:$0xff]  }
  0xce   :  { %2065 = vmatpush1.bf16.msra.mxu0 %v19403_v7  ;;  %1984 = vmatprep.subr.bf16.mxu1 %v19404_v8  ;;  %v19421_v19 = vld [vmem:[#allocation7 + $0x6c0] ss:$24 sps:$4 sm:$0xff]   ;;  %v19424_v21 = vld [vmem:[#allocation7 + $0x6f4] ss:$24 sps:$4 sm:$0xff]   ;;  %v19426_v22 = vld [vmem:[#allocation7 + $0xf0] ss:$24 sps:$4 sm:$0xff]  }
  0xcf   :  { %2066 = vmatprep.subr.bf16.mxu0 %v19406_v9  ;;  %v19427_v23 = vld [vmem:[#allocation7 + $0x6f0] ss:$24 sps:$4 sm:$0xff]   ;;  %v19428_v24 = vld [vmem:[#allocation7 + $0x124] ss:$24 sps:$4 sm:$0xff]   ;;  %v19432_v26 = vld [vmem:[#allocation7 + $0x120] ss:$24 sps:$4 sm:$0xff]  }
  0xd0   :  { %v19430_v25 = vld [vmem:[#allocation7 + $0x724] ss:$24 sps:$4 sm:$0xff]   ;;  %v19433_v27 = vld [vmem:[#allocation7 + $0x720] ss:$24 sps:$4 sm:$0xff]   ;;  %v19434_v28 = vld [vmem:[#allocation7 + $0x154] ss:$24 sps:$4 sm:$0xff]  }
  0xd1   :  { %1985 = vmatpush1.bf16.msra.mxu1 %v19408_v10  ;;  %v19436_v29 = vld [vmem:[#allocation7 + $0x754] ss:$24 sps:$4 sm:$0xff]   ;;  %v19438_v30 = vld [vmem:[#allocation7 + $0x150] ss:$24 sps:$4 sm:$0xff]   ;;  %v19440_v32 = vld [vmem:[#allocation7 + $0x184] ss:$24 sps:$4 sm:$0xff]  }
  0xd2   :  { %2067 = vmatpush1.bf16.msra.mxu0 %v19409_v11  ;;  %1986 = vmatprep.subr.bf16.mxu1 %v19410_v12  ;;  %v19439_v31 = vld [vmem:[#allocation7 + $0x750] ss:$24 sps:$4 sm:$0xff]   ;;  %v19442_v33 = vld [vmem:[#allocation7 + $0x784] ss:$24 sps:$4 sm:$0xff]   ;;  %v19444_v34 = vld [vmem:[#allocation7 + $0x180] ss:$24 sps:$4 sm:$0xff]  }
  0xd3   :  { %2068 = vmatprep.subr.bf16.mxu0 %v19412_v13  ;;  %v19445_v35 = vld [vmem:[#allocation7 + $0x780] ss:$24 sps:$4 sm:$0xff]   ;;  %v20766_v36 = vmov 1983009808   ;;  %v19446_v39 = vld [vmem:[#allocation7 + $0x1b4] ss:$24 sps:$4 sm:$0xff]  }
  0xd4   :  { %v185_v37 = vunpack.c.l.s4 %v20766_v36  ;;  %v19448_v40 = vld [vmem:[#allocation7 + $0x7b4] ss:$24 sps:$4 sm:$0xff]   ;;  %v19450_v41 = vld [vmem:[#allocation7 + $0x1b0] ss:$24 sps:$4 sm:$0xff]   ;;  %v20981_v43 = vshrl.u32 %v187_v38, 7  ;;  %vm20768_vm0 = vmmov 0  }
  0xd5   :  { %1987 = vmatpush1.bf16.msra.mxu1 %v19414_v14  ;;  %v19451_v44 = vld [vmem:[#allocation7 + $0x7b0] ss:$24 sps:$4 sm:$0xff]   ;;  %v19452_v45 = vld [vmem:[#allocation7 + $0x1e4] ss:$24 sps:$4 sm:$0xff]   ;;  %v19456_v47 = vld [vmem:[#allocation7 + $0x1e0] ss:$24 sps:$4 sm:$0xff]  }
  0xd6   :  { %2069 = vmatpush1.bf16.msra.mxu0 %v19415_v15  ;;  %1988 = vmatprep.subr.bf16.mxu1 %v19416_v16  ;;  %v186_v42 = vunpack.c.0.s8 %v185_v37  ;;  %v19454_v46 = vld [vmem:[#allocation7 + $0x7e4] ss:$24 sps:$4 sm:$0xff]   ;;  %v19457_v48 = vld [vmem:[#allocation7 + $0x7e0] ss:$24 sps:$4 sm:$0xff]   ;;  %v19458_v50 = vld [vmem:[#allocation7 + $0x214] ss:$24 sps:$4 sm:$0xff]  }
  0xd7   :  { %2070 = vmatprep.subr.bf16.mxu0 %v19418_v17  ;;  %v19460_v51 = vld [vmem:[#allocation7 + $0x814] ss:$24 sps:$4 sm:$0xff]   ;;  %v19462_v52 = vld [vmem:[#allocation7 + $0x210] ss:$24 sps:$4 sm:$0xff]   ;;  %v19464_v56 = vld [vmem:[#allocation7 + $0x244] ss:$24 sps:$4 sm:$0xff]  }
  0xd8   :  { %v189_v49 = vsub.s32 %v186_v42, %v20981_v43  ;;  %v179_v53 = vld [vmem:[#allocation2] sm:$0xff]  ;;  %v19463_v54 = vld [vmem:[#allocation7 + $0x810] ss:$24 sps:$4 sm:$0xff]   ;;  %v19466_v58 = vld [vmem:[#allocation7 + $0x844] ss:$24 sps:$4 sm:$0xff]   ;;  %vm11024_vm1 = vcmask 64512  }
  0xd9   :  { %1989 = vmatpush1.bf16.msra.mxu1 %v19420_v18  ;;  %v16832_v57 = vld.sshfl [vmem:[#allocation2 + $0x8] sm:$0x33 pattern:$0x76325410]  ;;  %v19468_v61 = vld [vmem:[#allocation7 + $0x240] ss:$24 sps:$4 sm:$0xff]   ;;  %v183_v7 = vcombine.high %v179_v53, %v179_v53 }
  0xda   :  { %2071 = vmatpush1.bf16.msra.mxu0 %v19421_v19  ;;  %1990 = vmatprep.subr.bf16.mxu1 %v19422_v20  ;;  %v190_v55 = vrot.slane %v179_v53, %v189_v49  ;;  %v207_v60 = vcombine.high %v16832_v57, %v16832_v57  ;;  %v19469_v0 = vld [vmem:[#allocation7 + $0x840] ss:$24 sps:$4 sm:$0xff]   ;;  %v19470_v1 = vld [vmem:[#allocation7 + $0x274] ss:$24 sps:$4 sm:$0xff]   ;;  %v19474_v3 = vld [vmem:[#allocation7 + $0x270] ss:$24 sps:$4 sm:$0xff]   ;;  %v20996_v20 = vpack.c.bf16 %v16832_v57, %v16832_v57 }
  0xdb   :  { %2072 = vmatprep.subr.bf16.mxu0 %v19424_v21  ;;  %v19472_v2 = vld [vmem:[#allocation7 + $0x874] ss:$24 sps:$4 sm:$0xff]   ;;  %v19475_v4 = vld [vmem:[#allocation7 + $0x870] ss:$24 sps:$4 sm:$0xff]   ;;  %v19476_v5 = vld [vmem:[#allocation7 + $0x2a4] ss:$24 sps:$4 sm:$0xff]   ;;  %v20990_v12 = vrot.slane %v183_v7, %v189_v49 }
  0xdc   :  { %v198_v59 = vcombine.high %v190_v55, %v190_v55  ;;  %v20986_v63 = vpack.c.bf16 %v207_v60, %v207_v60  ;;  %v19478_v6 = vld [vmem:[#allocation7 + $0x8a4] ss:$24 sps:$4 sm:$0xff]   ;;  %v19480_v8 = vld [vmem:[#allocation7 + $0x2a0] ss:$24 sps:$4 sm:$0xff]   ;;  %v19482_v10 = vld [vmem:[#allocation7 + $0x2d4] ss:$24 sps:$4 sm:$0xff]   ;;  %v20994_v18 = vpack.c.bf16 %v190_v55, %v190_v55 }
  0xdd   :  { %1991 = vmatpush1.bf16.msra.mxu1 %v19426_v22  ;;  %v19481_v9 = vld [vmem:[#allocation7 + $0x8a0] ss:$24 sps:$4 sm:$0xff]   ;;  %v19484_v11 = vld [vmem:[#allocation7 + $0x8d4] ss:$24 sps:$4 sm:$0xff]   ;;  %v19486_v13 = vld [vmem:[#allocation7 + $0x2d0] ss:$24 sps:$4 sm:$0xff]   ;;  %v199_v17 = vcombine.high %v20990_v12, %v20990_v12 }
  0xde   :  { %2073 = vmatpush1.bf16.msra.mxu0 %v19427_v23  ;;  %1992 = vmatprep.subr.bf16.mxu1 %v19428_v24  ;;  %v20984_v62 = vpack.c.bf16 %v198_v59, %v198_v59  ;;  %v19487_v14 = vld [vmem:[#allocation7 + $0x8d0] ss:$24 sps:$4 sm:$0xff]   ;;  %v19490_v15 = vld [vmem:[#allocation7 + $0x304] ss:$24 sps:$4 sm:$0xff]   ;;  %v19488_v19 = vld [vmem:[#allocation7 + $0x300] ss:$24 sps:$4 sm:$0xff]  }
  0xdf   :  { %2074 = vmatprep.subr.bf16.mxu0 %v19430_v25  ;;  %2094 = vmatprep.mubr.bf16.mxu0 %v20986_v63  ;;  %v19493_v16 = vld [vmem:[#allocation7 + $0x30c] ss:$24 sps:$4 sm:$0xff]   ;;  %v19491_v21 = vld [vmem:[#allocation7 + $0x308] ss:$24 sps:$4 sm:$0xff]   ;;  %v19499_v23 = vld [vmem:[#allocation7 + $0x33c] ss:$24 sps:$4 sm:$0xff]   ;;  %v20998_v24 = vpack.c.bf16 %v199_v17, %v199_v17 }
  0xe0   :  { %2012 = vmatprep.mubr.bf16.mxu1 %v20984_v62  ;;  %v19496_v22 = vld [vmem:[#allocation7 + $0x334] ss:$24 sps:$4 sm:$0xff]   ;;  %v19494_v25 = vld [vmem:[#allocation7 + $0x330] ss:$24 sps:$4 sm:$0xff]   ;;  %v19512_v37 = vld [vmem:[#allocation7 + $0x3c0] ss:$24 sps:$4 sm:$0xff]  }
  0xe1   :  { %1993 = vmatpush1.bf16.msra.mxu1 %v19432_v26  ;;  %v19497_v26 = vld [vmem:[#allocation7 + $0x338] ss:$24 sps:$4 sm:$0xff]   ;;  %v19517_v36 = vld [vmem:[#allocation7 + $0x3cc] ss:$24 sps:$4 sm:$0xff]   ;;  %v19515_v38 = vld [vmem:[#allocation7 + $0x3c8] ss:$24 sps:$4 sm:$0xff]  }
  0xe2   :  { %2075 = vmatpush1.bf16.msra.mxu0 %v19433_v27  ;;  %1994 = vmatprep.subr.bf16.mxu1 %v19434_v28  ;;  %v19502_v27 = vld [vmem:[#allocation7 + $0x364] ss:$24 sps:$4 sm:$0xff]   ;;  %v19521_v42 = vld [vmem:[#allocation7 + $0x3f8] ss:$24 sps:$4 sm:$0xff]   ;;  %v19539_v55 = vld [vmem:[#allocation7 + $0x488] ss:$24 sps:$4 sm:$0xff]  }
  0xe3   :  { %2076 = vmatprep.subr.bf16.mxu0 %v19436_v29  ;;  %v19505_v28 = vld [vmem:[#allocation7 + $0x36c] ss:$24 sps:$4 sm:$0xff]   ;;  %v19500_v29 = vld [vmem:[#allocation7 + $0x360] ss:$24 sps:$4 sm:$0xff]   ;;  %v19535_v49 = vld [vmem:[#allocation7 + $0x45c] ss:$24 sps:$4 sm:$0xff]  }
  0xe4   :  { %v19541_v53 = vld [vmem:[#allocation7 + $0x48c] ss:$24 sps:$4 sm:$0xff]   ;;  %v19547_v57 = vld [vmem:[#allocation7 + $0x4bc] ss:$24 sps:$4 sm:$0xff]   ;;  %v19545_v59 = vld [vmem:[#allocation7 + $0x4b8] ss:$24 sps:$4 sm:$0xff]  }
  0xe5   :  { %1995 = vmatpush1.bf16.msra.mxu1 %v19438_v30  ;;  %v19503_v30 = vld [vmem:[#allocation7 + $0x368] ss:$24 sps:$4 sm:$0xff]   ;;  %v19550_v60 = vld [vmem:[#allocation7 + $0x4e4] ss:$24 sps:$4 sm:$0xff]   ;;  %vm16378_vm2 = vcmask 1041409   ;;  %s20770_s13 = smov [#allocation20]  }
  0xe6   :  { %2077 = vmatpush1.bf16.msra.mxu0 %v19439_v31  ;;  %1996 = vmatprep.subr.bf16.mxu1 %v19440_v32  ;;  %v19508_v31 = vld [vmem:[#allocation7 + $0x394] ss:$24 sps:$4 sm:$0xff]   ;;  %v19572_v17 = vld [vmem:[#allocation7 + $0x5a0] ss:$24 sps:$4 sm:$0xff]   ;;  %s16818_s5 = sshll.u32 %s20770_s13, 4  ;;  %vm16810_vm3 = vcmask 25600   ;;  %s16819_s5 = int_to_ptr.vmem [resolvable:$true] %s16818_s5 }
  0xe7   :  { %2078 = vmatprep.subr.bf16.mxu0 %v19442_v33  ;;  %v19511_v32 = vld [vmem:[#allocation7 + $0x39c] ss:$24 sps:$4 sm:$0xff]   ;;  %v19506_v33 = vld [vmem:[#allocation7 + $0x390] ss:$24 sps:$4 sm:$0xff]   ;;  %v19565_v7 = vld [vmem:[#allocation7 + $0x54c] ss:$24 sps:$4 sm:$0xff]   ;;  %p20716_p5 = scmp.lt.s32.totalorder %s16819_s5, %s16819_s5 }
  0xe8   :  { %s20711_s20 = scalar_lea.vmem %s16819_s5, 32 }
  0xe9   :  { %1997 = vmatpush1.bf16.msra.mxu1 %v19444_v34  ;;  %v19509_v34 = vld [vmem:[#allocation7 + $0x398] ss:$24 sps:$4 sm:$0xff]   ;;  %p20712_p4 = scmp.ne.s32.totalorder %s16819_s5, %s20711_s20  ;;  %p20717_p6 = scmp.lt.s32.totalorder %s20711_s20, %s20711_s20 }
  0xea   :  { %2079 = vmatpush1.bf16.msra.mxu0 %v19445_v35  ;;  %1998 = vmatprep.subr.bf16.mxu1 %v19446_v39  ;;  %v19514_v35 = vld [vmem:[#allocation7 + $0x3c4] ss:$24 sps:$4 sm:$0xff]   ;;  %v19520_v39 = vld [vmem:[#allocation7 + $0x3f4] ss:$24 sps:$4 sm:$0xff]  }
  0xeb   :  { %2080 = vmatprep.subr.bf16.mxu0 %v19448_v40  ;;  %v19523_v40 = vld [vmem:[#allocation7 + $0x3fc] ss:$24 sps:$4 sm:$0xff]   ;;  %p20718_p7 = por %p20717_p6, %p20716_p5 }
  0xed   :  { %1999 = vmatpush1.bf16.msra.mxu1 %v19450_v41  ;;  %v19518_v41 = vld [vmem:[#allocation7 + $0x3f0] ss:$24 sps:$4 sm:$0xff]   ;;  %p20719_p8 = pnand %p20718_p7, %p20712_p4 }
  0xee   :  { %2081 = vmatpush1.bf16.msra.mxu0 %v19451_v44  ;;  %2000 = vmatprep.subr.bf16.mxu1 %v19452_v45  ;;  %v19526_v44 = vld [vmem:[#allocation7 + $0x424] ss:$24 sps:$4 sm:$0xff]  }
  0xef   :  { %2082 = vmatprep.subr.bf16.mxu0 %v19454_v46  ;;  %v19529_v45 = vld [vmem:[#allocation7 + $0x42c] ss:$24 sps:$4 sm:$0xff]   ;;  %v19524_v46 = vld [vmem:[#allocation7 + $0x420] ss:$24 sps:$4 sm:$0xff]  }
  0xf1   :  { %2001 = vmatpush1.bf16.msra.mxu1 %v19456_v47  ;;  %v19527_v47 = vld [vmem:[#allocation7 + $0x428] ss:$24 sps:$4 sm:$0xff]  }
  0xf2   :  { %2083 = vmatpush1.bf16.msra.mxu0 %v19457_v48  ;;  %2002 = vmatprep.subr.bf16.mxu1 %v19458_v50  ;;  %v19532_v48 = vld [vmem:[#allocation7 + $0x454] ss:$24 sps:$4 sm:$0xff]   ;;  %v19530_v50 = vld [vmem:[#allocation7 + $0x450] ss:$24 sps:$4 sm:$0xff]  }
  0xf3   :  { %2084 = vmatprep.subr.bf16.mxu0 %v19460_v51  ;;  %v19533_v51 = vld [vmem:[#allocation7 + $0x458] ss:$24 sps:$4 sm:$0xff]  }
  0xf5   :  { %2003 = vmatpush1.bf16.msra.mxu1 %v19462_v52  ;;  %v19538_v52 = vld [vmem:[#allocation7 + $0x484] ss:$24 sps:$4 sm:$0xff]  }
  0xf6   :  { %2085 = vmatpush1.bf16.msra.mxu0 %v19463_v54  ;;  %2004 = vmatprep.subr.bf16.mxu1 %v19464_v56  ;;  %v19536_v54 = vld [vmem:[#allocation7 + $0x480] ss:$24 sps:$4 sm:$0xff]   ;;  %v19544_v56 = vld [vmem:[#allocation7 + $0x4b4] ss:$24 sps:$4 sm:$0xff]  }
  0xf7   :  { %2086 = vmatprep.subr.bf16.mxu0 %v19466_v58  ;;  %v19542_v58 = vld [vmem:[#allocation7 + $0x4b0] ss:$24 sps:$4 sm:$0xff]  }
  0xf9   :  { %2005 = vmatpush1.bf16.msra.mxu1 %v19468_v61  ;;  %v19553_v61 = vld [vmem:[#allocation7 + $0x4ec] ss:$24 sps:$4 sm:$0xff]  }
  0xfa   :  { %2087 = vmatpush1.bf16.msra.mxu0 %v19469_v0  ;;  %2006 = vmatprep.subr.bf16.mxu1 %v19470_v1  ;;  %v19548_v0 = vld [vmem:[#allocation7 + $0x4e0] ss:$24 sps:$4 sm:$0xff]  }
  0xfb   :  { %2088 = vmatprep.subr.bf16.mxu0 %v19472_v2  ;;  %v19551_v1 = vld [vmem:[#allocation7 + $0x4e8] ss:$24 sps:$4 sm:$0xff]   ;;  %v19556_v2 = vld [vmem:[#allocation7 + $0x514] ss:$24 sps:$4 sm:$0xff]  }
  0xfd   :  { %2007 = vmatpush1.bf16.msra.mxu1 %v19474_v3  ;;  %v19559_v3 = vld [vmem:[#allocation7 + $0x51c] ss:$24 sps:$4 sm:$0xff]  }
  0xfe   :  { %2089 = vmatpush1.bf16.msra.mxu0 %v19475_v4  ;;  %2008 = vmatprep.subr.bf16.mxu1 %v19476_v5  ;;  %v19554_v4 = vld [vmem:[#allocation7 + $0x510] ss:$24 sps:$4 sm:$0xff]  }
  0xff   :  { %2090 = vmatprep.subr.bf16.mxu0 %v19478_v6  ;;  %v19557_v5 = vld [vmem:[#allocation7 + $0x518] ss:$24 sps:$4 sm:$0xff]   ;;  %v19562_v6 = vld [vmem:[#allocation7 + $0x544] ss:$24 sps:$4 sm:$0xff]  }
 0x101   :  { %2009 = vmatpush1.bf16.msra.mxu1 %v19480_v8  ;;  %v19560_v8 = vld [vmem:[#allocation7 + $0x540] ss:$24 sps:$4 sm:$0xff]  }
 0x102   :  { %2091 = vmatpush1.bf16.msra.mxu0 %v19481_v9  ;;  %2010 = vmatprep.subr.bf16.mxu1 %v19482_v10  ;;  %v19563_v9 = vld [vmem:[#allocation7 + $0x548] ss:$24 sps:$4 sm:$0xff]   ;;  %v19568_v10 = vld [vmem:[#allocation7 + $0x574] ss:$24 sps:$4 sm:$0xff]  }
 0x103   :  { %2092 = vmatprep.subr.bf16.mxu0 %v19484_v11  ;;  %v19571_v11 = vld [vmem:[#allocation7 + $0x57c] ss:$24 sps:$4 sm:$0xff]  }
 0x105   :  { %2011 = vmatpush1.bf16.msra.mxu1 %v19486_v13  ;;  %v19566_v13 = vld [vmem:[#allocation7 + $0x570] ss:$24 sps:$4 sm:$0xff]  }
 0x106   :  { %2093 = vmatpush1.bf16.msra.mxu0 %v19487_v14  ;;  %2021 = vmatprep.subr.bf16.mxu1 %v19490_v15  ;;  %v19569_v14 = vld [vmem:[#allocation7 + $0x578] ss:$24 sps:$4 sm:$0xff]   ;;  %v19574_v15 = vld [vmem:[#allocation7 + $0x5a4] ss:$24 sps:$4 sm:$0xff]  }
 0x107   :  { %2144 = vmatprep.subr.bf16.mxu0 %v19493_v16  ;;  %v19577_v16 = vld [vmem:[#allocation7 + $0x5ac] ss:$24 sps:$4 sm:$0xff]  }
 0x108   :  { %2013 = vmatmul.mubr.bf16.vlgmr.msra.gmra.mrb[0].mxu1 %v20994_v18 }
 0x109   :  { %2095 = vmatmul.mubr.bf16.vlgmr.msra.gmra.mrb[0].mxu0 %v20996_v20  ;;  %2022 = vmatpush1.bf16.msra.mxu1 %v19488_v19  ;;  %v19575_v19 = vld [vmem:[#allocation7 + $0x5a8] ss:$24 sps:$4 sm:$0xff]  }
 0x10a   :  { %2145 = vmatpush1.bf16.msra.mxu0 %v19491_v21  ;;  %2023 = vmatprep.subr.bf16.mxu1 %v19496_v22  ;;  %v19580_v21 = vld [vmem:[#allocation7 + $0x5d4] ss:$24 sps:$4 sm:$0xff]  }
 0x10b   :  { %2146 = vmatprep.subr.bf16.mxu0 %v19499_v23  ;;  %2053 = vmatprep.mubr.bf16.mxu1 %v20998_v24  ;;  %v19583_v22 = vld [vmem:[#allocation7 + $0x5dc] ss:$24 sps:$4 sm:$0xff]   ;;  %v19578_v23 = vld [vmem:[#allocation7 + $0x5d0] ss:$24 sps:$4 sm:$0xff]  }
 0x10c   :  { %2176 = vmatprep.mubr.bf16.mxu0 %v20998_v24 }
 0x10d   :  { %2024 = vmatpush1.bf16.msra.mxu1 %v19494_v25  ;;  %v19581_v25 = vld [vmem:[#allocation7 + $0x5d8] ss:$24 sps:$4 sm:$0xff]  }
 0x10e   :  { %2147 = vmatpush1.bf16.msra.mxu0 %v19497_v26  ;;  %2025 = vmatprep.subr.bf16.mxu1 %v19502_v27  ;;  %v19587_v26 = vld [vmem:[#allocation7 + $0xc] ss:$24 sps:$4 sm:$0xff]  }
 0x10f   :  { %2148 = vmatprep.subr.bf16.mxu0 %v19505_v28  ;;  %v19590_v27 = vld [vmem:[#allocation7 + $0x14] ss:$24 sps:$4 sm:$0xff]   ;;  %v21006_v28 = vpack.c.bf16 %v20990_v12, %v20990_v12 }
 0x110   :  { %v19602_v12 = vld [vmem:[#allocation7 + $0x74] ss:$24 sps:$4 sm:$0xff]  }
 0x111   :  { %2026 = vmatpush1.bf16.msra.mxu1 %v19500_v29  ;;  %v19585_v29 = vld [vmem:[#allocation7 + $0x8] ss:$24 sps:$4 sm:$0xff]  }
 0x112   :  { %2149 = vmatpush1.bf16.msra.mxu0 %v19503_v30  ;;  %2027 = vmatprep.subr.bf16.mxu1 %v19508_v31  ;;  %v19588_v30 = vld [vmem:[#allocation7 + $0x10] ss:$24 sps:$4 sm:$0xff]   ;;  %v19593_v31 = vld [vmem:[#allocation7 + $0x3c] ss:$24 sps:$4 sm:$0xff]  }
 0x113   :  { %2150 = vmatprep.subr.bf16.mxu0 %v19511_v32  ;;  %v19596_v32 = vld [vmem:[#allocation7 + $0x44] ss:$24 sps:$4 sm:$0xff]  }
 0x115   :  { %2028 = vmatpush1.bf16.msra.mxu1 %v19506_v33  ;;  %v19591_v33 = vld [vmem:[#allocation7 + $0x38] ss:$24 sps:$4 sm:$0xff]  }
 0x116   :  { %2151 = vmatpush1.bf16.msra.mxu0 %v19509_v34  ;;  %2029 = vmatprep.subr.bf16.mxu1 %v19514_v35  ;;  %v19594_v34 = vld [vmem:[#allocation7 + $0x40] ss:$24 sps:$4 sm:$0xff]   ;;  %v19599_v35 = vld [vmem:[#allocation7 + $0x6c] ss:$24 sps:$4 sm:$0xff]  }
 0x117   :  { %2152 = vmatprep.subr.bf16.mxu0 %v19517_v36  ;;  %v19597_v36 = vld [vmem:[#allocation7 + $0x68] ss:$24 sps:$4 sm:$0xff]  }
 0x119   :  { %2030 = vmatpush1.bf16.msra.mxu1 %v19512_v37  ;;  %v19600_v37 = vld [vmem:[#allocation7 + $0x70] ss:$24 sps:$4 sm:$0xff]  }
 0x11a   :  { %2153 = vmatpush1.bf16.msra.mxu0 %v19515_v38  ;;  %2031 = vmatprep.subr.bf16.mxu1 %v19520_v39  ;;  %v19605_v38 = vld [vmem:[#allocation7 + $0x9c] ss:$24 sps:$4 sm:$0xff]  }
 0x11b   :  { %2154 = vmatprep.subr.bf16.mxu0 %v19523_v40  ;;  %v19608_v39 = vld [vmem:[#allocation7 + $0xa4] ss:$24 sps:$4 sm:$0xff]   ;;  %v19603_v40 = vld [vmem:[#allocation7 + $0x98] ss:$24 sps:$4 sm:$0xff]  }
 0x11d   :  { %2032 = vmatpush1.bf16.msra.mxu1 %v19518_v41  ;;  %v19606_v41 = vld [vmem:[#allocation7 + $0xa0] ss:$24 sps:$4 sm:$0xff]  }
 0x11e   :  { %2155 = vmatpush1.bf16.msra.mxu0 %v19521_v42  ;;  %2033 = vmatprep.subr.bf16.mxu1 %v19526_v44  ;;  %v19611_v42 = vld [vmem:[#allocation7 + $0xcc] ss:$24 sps:$4 sm:$0xff]  }
 0x11f   :  { %2156 = vmatprep.subr.bf16.mxu0 %v19529_v45  ;;  %v19614_v44 = vld [vmem:[#allocation7 + $0xd4] ss:$24 sps:$4 sm:$0xff]   ;;  %v19609_v45 = vld [vmem:[#allocation7 + $0xc8] ss:$24 sps:$4 sm:$0xff]  }
 0x121   :  { %2034 = vmatpush1.bf16.msra.mxu1 %v19524_v46  ;;  %v19617_v46 = vld [vmem:[#allocation7 + $0xfc] ss:$24 sps:$4 sm:$0xff]  }
 0x122   :  { %2157 = vmatpush1.bf16.msra.mxu0 %v19527_v47  ;;  %2035 = vmatprep.subr.bf16.mxu1 %v19532_v48  ;;  %v19620_v47 = vld [vmem:[#allocation7 + $0x104] ss:$24 sps:$4 sm:$0xff]   ;;  %v19615_v48 = vld [vmem:[#allocation7 + $0xf8] ss:$24 sps:$4 sm:$0xff]  }
 0x123   :  { %2158 = vmatprep.subr.bf16.mxu0 %v19535_v49  ;;  %v19618_v49 = vld [vmem:[#allocation7 + $0x100] ss:$24 sps:$4 sm:$0xff]  }
 0x125   :  { %2036 = vmatpush1.bf16.msra.mxu1 %v19530_v50  ;;  %v19623_v50 = vld [vmem:[#allocation7 + $0x12c] ss:$24 sps:$4 sm:$0xff]  }
 0x126   :  { %2159 = vmatpush1.bf16.msra.mxu0 %v19533_v51  ;;  %2037 = vmatprep.subr.bf16.mxu1 %v19538_v52  ;;  %v19626_v51 = vld [vmem:[#allocation7 + $0x134] ss:$24 sps:$4 sm:$0xff]   ;;  %v19621_v52 = vld [vmem:[#allocation7 + $0x128] ss:$24 sps:$4 sm:$0xff]  }
 0x127   :  { %2160 = vmatprep.subr.bf16.mxu0 %v19541_v53  ;;  %v19624_v53 = vld [vmem:[#allocation7 + $0x130] ss:$24 sps:$4 sm:$0xff]  }
 0x129   :  { %2038 = vmatpush1.bf16.msra.mxu1 %v19536_v54  ;;  %v19629_v54 = vld [vmem:[#allocation7 + $0x15c] ss:$24 sps:$4 sm:$0xff]  }
 0x12a   :  { %2161 = vmatpush1.bf16.msra.mxu0 %v19539_v55  ;;  %2039 = vmatprep.subr.bf16.mxu1 %v19544_v56  ;;  %v19632_v55 = vld [vmem:[#allocation7 + $0x164] ss:$24 sps:$4 sm:$0xff]   ;;  %v19627_v56 = vld [vmem:[#allocation7 + $0x158] ss:$24 sps:$4 sm:$0xff]  }
 0x12b   :  { %2162 = vmatprep.subr.bf16.mxu0 %v19547_v57  ;;  %v19630_v57 = vld [vmem:[#allocation7 + $0x160] ss:$24 sps:$4 sm:$0xff]  }
 0x12d   :  { %2040 = vmatpush1.bf16.msra.mxu1 %v19542_v58  ;;  %v19635_v58 = vld [vmem:[#allocation7 + $0x18c] ss:$24 sps:$4 sm:$0xff]  }
 0x12e   :  { %2163 = vmatpush1.bf16.msra.mxu0 %v19545_v59  ;;  %2041 = vmatprep.subr.bf16.mxu1 %v19550_v60  ;;  %v19638_v59 = vld [vmem:[#allocation7 + $0x194] ss:$24 sps:$4 sm:$0xff]   ;;  %v19633_v60 = vld [vmem:[#allocation7 + $0x188] ss:$24 sps:$4 sm:$0xff]  }
 0x12f   :  { %2164 = vmatprep.subr.bf16.mxu0 %v19553_v61  ;;  %v19636_v61 = vld [vmem:[#allocation7 + $0x190] ss:$24 sps:$4 sm:$0xff]  }
 0x131   :  { %2042 = vmatpush1.bf16.msra.mxu1 %v19548_v0  ;;  %v19641_v0 = vld [vmem:[#allocation7 + $0x1bc] ss:$24 sps:$4 sm:$0xff]  }
 0x132   :  { %2165 = vmatpush1.bf16.msra.mxu0 %v19551_v1  ;;  %2043 = vmatprep.subr.bf16.mxu1 %v19556_v2  ;;  %v19644_v1 = vld [vmem:[#allocation7 + $0x1c4] ss:$24 sps:$4 sm:$0xff]   ;;  %v19639_v2 = vld [vmem:[#allocation7 + $0x1b8] ss:$24 sps:$4 sm:$0xff]  }
 0x133   :  { %2166 = vmatprep.subr.bf16.mxu0 %v19559_v3  ;;  %v19642_v3 = vld [vmem:[#allocation7 + $0x1c0] ss:$24 sps:$4 sm:$0xff]  }
 0x135   :  { %2044 = vmatpush1.bf16.msra.mxu1 %v19554_v4  ;;  %v19647_v4 = vld [vmem:[#allocation7 + $0x1ec] ss:$24 sps:$4 sm:$0xff]  }
 0x136   :  { %2167 = vmatpush1.bf16.msra.mxu0 %v19557_v5  ;;  %2045 = vmatprep.subr.bf16.mxu1 %v19562_v6  ;;  %v19650_v5 = vld [vmem:[#allocation7 + $0x1f4] ss:$24 sps:$4 sm:$0xff]   ;;  %v19645_v6 = vld [vmem:[#allocation7 + $0x1e8] ss:$24 sps:$4 sm:$0xff]  }
 0x137   :  { %2168 = vmatprep.subr.bf16.mxu0 %v19565_v7  ;;  %v19648_v7 = vld [vmem:[#allocation7 + $0x1f0] ss:$24 sps:$4 sm:$0xff]  }
 0x139   :  { %2046 = vmatpush1.bf16.msra.mxu1 %v19560_v8  ;;  %v19653_v8 = vld [vmem:[#allocation7 + $0x21c] ss:$24 sps:$4 sm:$0xff]  }
 0x13a   :  { %2169 = vmatpush1.bf16.msra.mxu0 %v19563_v9  ;;  %2047 = vmatprep.subr.bf16.mxu1 %v19568_v10  ;;  %v19656_v9 = vld [vmem:[#allocation7 + $0x224] ss:$24 sps:$4 sm:$0xff]   ;;  %v19651_v10 = vld [vmem:[#allocation7 + $0x218] ss:$24 sps:$4 sm:$0xff]  }
 0x13b   :  { %2170 = vmatprep.subr.bf16.mxu0 %v19571_v11  ;;  %v19654_v11 = vld [vmem:[#allocation7 + $0x220] ss:$24 sps:$4 sm:$0xff]  }
 0x13d   :  { %2048 = vmatpush1.bf16.msra.mxu1 %v19566_v13  ;;  %v19659_v13 = vld [vmem:[#allocation7 + $0x24c] ss:$24 sps:$4 sm:$0xff]  }
 0x13e   :  { %2171 = vmatpush1.bf16.msra.mxu0 %v19569_v14  ;;  %2049 = vmatprep.subr.bf16.mxu1 %v19574_v15  ;;  %v19662_v14 = vld [vmem:[#allocation7 + $0x254] ss:$24 sps:$4 sm:$0xff]   ;;  %v19657_v15 = vld [vmem:[#allocation7 + $0x248] ss:$24 sps:$4 sm:$0xff]  }
 0x13f   :  { %2172 = vmatprep.subr.bf16.mxu0 %v19577_v16  ;;  %v19660_v16 = vld [vmem:[#allocation7 + $0x250] ss:$24 sps:$4 sm:$0xff]  }
 0x141   :  { %2050 = vmatpush1.bf16.msra.mxu1 %v19572_v17  ;;  %v19665_v17 = vld [vmem:[#allocation7 + $0x27c] ss:$24 sps:$4 sm:$0xff]  }
 0x142   :  { %2173 = vmatpush1.bf16.msra.mxu0 %v19575_v19  ;;  %2051 = vmatprep.subr.bf16.mxu1 %v19580_v21  ;;  %v19668_v19 = vld [vmem:[#allocation7 + $0x284] ss:$24 sps:$4 sm:$0xff]   ;;  %v19663_v21 = vld [vmem:[#allocation7 + $0x278] ss:$24 sps:$4 sm:$0xff]  }
 0x143   :  { %2174 = vmatprep.subr.bf16.mxu0 %v19583_v22  ;;  %v19666_v22 = vld [vmem:[#allocation7 + $0x280] ss:$24 sps:$4 sm:$0xff]  }
 0x145   :  { %2052 = vmatpush1.bf16.msra.mxu1 %v19578_v23  ;;  %v19671_v23 = vld [vmem:[#allocation7 + $0x2ac] ss:$24 sps:$4 sm:$0xff]  }
 0x146   :  { %2175 = vmatpush1.bf16.msra.mxu0 %v19581_v25  ;;  %2103 = vmatprep.subr.bf16.mxu1 %v19587_v26  ;;  %v19674_v25 = vld [vmem:[#allocation7 + $0x2b4] ss:$24 sps:$4 sm:$0xff]   ;;  %v19669_v26 = vld [vmem:[#allocation7 + $0x2a8] ss:$24 sps:$4 sm:$0xff]  }
 0x147   :  { %2226 = vmatprep.subr.bf16.mxu0 %v19590_v27  ;;  %v19672_v27 = vld [vmem:[#allocation7 + $0x2b0] ss:$24 sps:$4 sm:$0xff]  }
 0x148   :  { %2054 = vmatmul.mubr.bf16.vlgmr.msra.gmra.mrb[4].mxu1 %v21006_v28 }
 0x149   :  { %2177 = vmatmul.mubr.bf16.vlgmr.msra.gmra.mrb[4].mxu0 %v21006_v28  ;;  %2104 = vmatpush1.bf16.msra.mxu1 %v19585_v29  ;;  %v19677_v29 = vld [vmem:[#allocation7 + $0x2dc] ss:$24 sps:$4 sm:$0xff]  }
 0x14a   :  { %2227 = vmatpush1.bf16.msra.mxu0 %v19588_v30  ;;  %2105 = vmatprep.subr.bf16.mxu1 %v19593_v31  ;;  %v19680_v30 = vld [vmem:[#allocation7 + $0x2e4] ss:$24 sps:$4 sm:$0xff]   ;;  %v19675_v31 = vld [vmem:[#allocation7 + $0x2d8] ss:$24 sps:$4 sm:$0xff]  }
 0x14b   :  { %2228 = vmatprep.subr.bf16.mxu0 %v19596_v32  ;;  %2135 = vmatprep.mubr.bf16.mxu1 %v20984_v62  ;;  %v19678_v32 = vld [vmem:[#allocation7 + $0x2e0] ss:$24 sps:$4 sm:$0xff]  }
 0x14c   :  { %2258 = vmatprep.mubr.bf16.mxu0 %v20984_v62  ;;  %v19612_v62 = vld [vmem:[#allocation7 + $0xd0] ss:$24 sps:$4 sm:$0xff]  }
 0x14d   :  { %2106 = vmatpush1.bf16.msra.mxu1 %v19591_v33  ;;  %v19683_v33 = vld [vmem:[#allocation7 + $0x60c] ss:$24 sps:$4 sm:$0xff]  }
 0x14e   :  { %2229 = vmatpush1.bf16.msra.mxu0 %v19594_v34  ;;  %2107 = vmatprep.subr.bf16.mxu1 %v19599_v35  ;;  %v19686_v34 = vld [vmem:[#allocation7 + $0x614] ss:$24 sps:$4 sm:$0xff]   ;;  %v19681_v35 = vld [vmem:[#allocation7 + $0x608] ss:$24 sps:$4 sm:$0xff]  }
 0x14f   :  { %2230 = vmatprep.subr.bf16.mxu0 %v19602_v12  ;;  %v19684_v12 = vld [vmem:[#allocation7 + $0x610] ss:$24 sps:$4 sm:$0xff]  }
 0x151   :  { %2108 = vmatpush1.bf16.msra.mxu1 %v19597_v36  ;;  %v19689_v36 = vld [vmem:[#allocation7 + $0x63c] ss:$24 sps:$4 sm:$0xff]  }
 0x152   :  { %2231 = vmatpush1.bf16.msra.mxu0 %v19600_v37  ;;  %2109 = vmatprep.subr.bf16.mxu1 %v19605_v38  ;;  %v19692_v37 = vld [vmem:[#allocation7 + $0x644] ss:$24 sps:$4 sm:$0xff]   ;;  %v19687_v38 = vld [vmem:[#allocation7 + $0x638] ss:$24 sps:$4 sm:$0xff]  }
 0x153   :  { %2232 = vmatprep.subr.bf16.mxu0 %v19608_v39  ;;  %v19690_v39 = vld [vmem:[#allocation7 + $0x640] ss:$24 sps:$4 sm:$0xff]  }
 0x155   :  { %2110 = vmatpush1.bf16.msra.mxu1 %v19603_v40  ;;  %v19695_v40 = vld [vmem:[#allocation7 + $0x66c] ss:$24 sps:$4 sm:$0xff]  }
 0x156   :  { %2233 = vmatpush1.bf16.msra.mxu0 %v19606_v41  ;;  %2111 = vmatprep.subr.bf16.mxu1 %v19611_v42  ;;  %v19698_v41 = vld [vmem:[#allocation7 + $0x674] ss:$24 sps:$4 sm:$0xff]   ;;  %v19693_v42 = vld [vmem:[#allocation7 + $0x668] ss:$24 sps:$4 sm:$0xff]  }
 0x157   :  { %2234 = vmatprep.subr.bf16.mxu0 %v19614_v44  ;;  %v19696_v44 = vld [vmem:[#allocation7 + $0x670] ss:$24 sps:$4 sm:$0xff]  }
 0x159   :  { %2112 = vmatpush1.bf16.msra.mxu1 %v19609_v45  ;;  %v19701_v45 = vld [vmem:[#allocation7 + $0x69c] ss:$24 sps:$4 sm:$0xff]  }
 0x15a   :  { %2235 = vmatpush1.bf16.msra.mxu0 %v19612_v62  ;;  %2113 = vmatprep.subr.bf16.mxu1 %v19617_v46  ;;  %v19699_v62 = vld [vmem:[#allocation7 + $0x698] ss:$24 sps:$4 sm:$0xff]  }
 0x15b   :  { %2236 = vmatprep.subr.bf16.mxu0 %v19620_v47  ;;  %v19702_v46 = vld [vmem:[#allocation7 + $0x6a0] ss:$24 sps:$4 sm:$0xff]   ;;  %v19707_v47 = vld [vmem:[#allocation7 + $0x6cc] ss:$24 sps:$4 sm:$0xff]  }
 0x15d   :  { %2114 = vmatpush1.bf16.msra.mxu1 %v19615_v48  ;;  %v19710_v48 = vld [vmem:[#allocation7 + $0x6d4] ss:$24 sps:$4 sm:$0xff]  }
 0x15e   :  { %2237 = vmatpush1.bf16.msra.mxu0 %v19618_v49  ;;  %2115 = vmatprep.subr.bf16.mxu1 %v19623_v50  ;;  %v19705_v49 = vld [vmem:[#allocation7 + $0x6c8] ss:$24 sps:$4 sm:$0xff]   ;;  %v19713_v50 = vld [vmem:[#allocation7 + $0x6fc] ss:$24 sps:$4 sm:$0xff]  }
 0x15f   :  { %2238 = vmatprep.subr.bf16.mxu0 %v19626_v51  ;;  %v19716_v51 = vld [vmem:[#allocation7 + $0x704] ss:$24 sps:$4 sm:$0xff]  }
 0x161   :  { %2116 = vmatpush1.bf16.msra.mxu1 %v19621_v52  ;;  %v19711_v52 = vld [vmem:[#allocation7 + $0x6f8] ss:$24 sps:$4 sm:$0xff]  }
 0x162   :  { %2239 = vmatpush1.bf16.msra.mxu0 %v19624_v53  ;;  %2117 = vmatprep.subr.bf16.mxu1 %v19629_v54  ;;  %v19714_v53 = vld [vmem:[#allocation7 + $0x700] ss:$24 sps:$4 sm:$0xff]   ;;  %v19719_v54 = vld [vmem:[#allocation7 + $0x72c] ss:$24 sps:$4 sm:$0xff]  }
 0x163   :  { %2240 = vmatprep.subr.bf16.mxu0 %v19632_v55  ;;  %v19722_v55 = vld [vmem:[#allocation7 + $0x734] ss:$24 sps:$4 sm:$0xff]  }
 0x165   :  { %2118 = vmatpush1.bf16.msra.mxu1 %v19627_v56  ;;  %v19717_v56 = vld [vmem:[#allocation7 + $0x728] ss:$24 sps:$4 sm:$0xff]  }
 0x166   :  { %2241 = vmatpush1.bf16.msra.mxu0 %v19630_v57  ;;  %2119 = vmatprep.subr.bf16.mxu1 %v19635_v58  ;;  %v19720_v57 = vld [vmem:[#allocation7 + $0x730] ss:$24 sps:$4 sm:$0xff]   ;;  %v19725_v58 = vld [vmem:[#allocation7 + $0x75c] ss:$24 sps:$4 sm:$0xff]  }
 0x167   :  { %2242 = vmatprep.subr.bf16.mxu0 %v19638_v59  ;;  %v19728_v59 = vld [vmem:[#allocation7 + $0x764] ss:$24 sps:$4 sm:$0xff]  }
 0x169   :  { %2120 = vmatpush1.bf16.msra.mxu1 %v19633_v60  ;;  %v19723_v60 = vld [vmem:[#allocation7 + $0x758] ss:$24 sps:$4 sm:$0xff]  }
 0x16a   :  { %2243 = vmatpush1.bf16.msra.mxu0 %v19636_v61  ;;  %2121 = vmatprep.subr.bf16.mxu1 %v19641_v0  ;;  %v19726_v61 = vld [vmem:[#allocation7 + $0x760] ss:$24 sps:$4 sm:$0xff]   ;;  %v19731_v0 = vld [vmem:[#allocation7 + $0x78c] ss:$24 sps:$4 sm:$0xff]  }
 0x16b   :  { %2244 = vmatprep.subr.bf16.mxu0 %v19644_v1  ;;  %v19734_v1 = vld [vmem:[#allocation7 + $0x794] ss:$24 sps:$4 sm:$0xff]  }
 0x16d   :  { %2122 = vmatpush1.bf16.msra.mxu1 %v19639_v2  ;;  %v19729_v2 = vld [vmem:[#allocation7 + $0x788] ss:$24 sps:$4 sm:$0xff]  }
 0x16e   :  { %2245 = vmatpush1.bf16.msra.mxu0 %v19642_v3  ;;  %2123 = vmatprep.subr.bf16.mxu1 %v19647_v4  ;;  %v19732_v3 = vld [vmem:[#allocation7 + $0x790] ss:$24 sps:$4 sm:$0xff]   ;;  %v19737_v4 = vld [vmem:[#allocation7 + $0x7bc] ss:$24 sps:$4 sm:$0xff]  }
 0x16f   :  { %2246 = vmatprep.subr.bf16.mxu0 %v19650_v5  ;;  %v19740_v5 = vld [vmem:[#allocation7 + $0x7c4] ss:$24 sps:$4 sm:$0xff]  }
 0x171   :  { %2124 = vmatpush1.bf16.msra.mxu1 %v19645_v6  ;;  %v19735_v6 = vld [vmem:[#allocation7 + $0x7b8] ss:$24 sps:$4 sm:$0xff]  }
 0x172   :  { %2247 = vmatpush1.bf16.msra.mxu0 %v19648_v7  ;;  %2125 = vmatprep.subr.bf16.mxu1 %v19653_v8  ;;  %v19738_v7 = vld [vmem:[#allocation7 + $0x7c0] ss:$24 sps:$4 sm:$0xff]   ;;  %v19743_v8 = vld [vmem:[#allocation7 + $0x7ec] ss:$24 sps:$4 sm:$0xff]  }
 0x173   :  { %2248 = vmatprep.subr.bf16.mxu0 %v19656_v9  ;;  %v19746_v9 = vld [vmem:[#allocation7 + $0x7f4] ss:$24 sps:$4 sm:$0xff]  }
 0x175   :  { %2126 = vmatpush1.bf16.msra.mxu1 %v19651_v10  ;;  %v19741_v10 = vld [vmem:[#allocation7 + $0x7e8] ss:$24 sps:$4 sm:$0xff]  }
 0x176   :  { %2249 = vmatpush1.bf16.msra.mxu0 %v19654_v11  ;;  %2127 = vmatprep.subr.bf16.mxu1 %v19659_v13  ;;  %v19744_v11 = vld [vmem:[#allocation7 + $0x7f0] ss:$24 sps:$4 sm:$0xff]   ;;  %v19749_v13 = vld [vmem:[#allocation7 + $0x81c] ss:$24 sps:$4 sm:$0xff]  }
 0x177   :  { %2250 = vmatprep.subr.bf16.mxu0 %v19662_v14  ;;  %v19752_v14 = vld [vmem:[#allocation7 + $0x824] ss:$24 sps:$4 sm:$0xff]  }
 0x179   :  { %2128 = vmatpush1.bf16.msra.mxu1 %v19657_v15  ;;  %v19747_v15 = vld [vmem:[#allocation7 + $0x818] ss:$24 sps:$4 sm:$0xff]  }
 0x17a   :  { %2251 = vmatpush1.bf16.msra.mxu0 %v19660_v16  ;;  %2129 = vmatprep.subr.bf16.mxu1 %v19665_v17  ;;  %v19750_v16 = vld [vmem:[#allocation7 + $0x820] ss:$24 sps:$4 sm:$0xff]   ;;  %v19755_v17 = vld [vmem:[#allocation7 + $0x84c] ss:$24 sps:$4 sm:$0xff]  }
 0x17b   :  { %2252 = vmatprep.subr.bf16.mxu0 %v19668_v19  ;;  %v19758_v19 = vld [vmem:[#allocation7 + $0x854] ss:$24 sps:$4 sm:$0xff]  }
 0x17d   :  { %2130 = vmatpush1.bf16.msra.mxu1 %v19663_v21  ;;  %v19753_v21 = vld [vmem:[#allocation7 + $0x848] ss:$24 sps:$4 sm:$0xff]  }
 0x17e   :  { %2253 = vmatpush1.bf16.msra.mxu0 %v19666_v22  ;;  %2131 = vmatprep.subr.bf16.mxu1 %v19671_v23  ;;  %v19756_v22 = vld [vmem:[#allocation7 + $0x850] ss:$24 sps:$4 sm:$0xff]   ;;  %v19761_v23 = vld [vmem:[#allocation7 + $0x87c] ss:$24 sps:$4 sm:$0xff]  }
 0x17f   :  { %2254 = vmatprep.subr.bf16.mxu0 %v19674_v25  ;;  %v19764_v25 = vld [vmem:[#allocation7 + $0x884] ss:$24 sps:$4 sm:$0xff]  }
 0x181   :  { %2132 = vmatpush1.bf16.msra.mxu1 %v19669_v26  ;;  %v19759_v26 = vld [vmem:[#allocation7 + $0x878] ss:$24 sps:$4 sm:$0xff]  }
 0x182   :  { %2255 = vmatpush1.bf16.msra.mxu0 %v19672_v27  ;;  %2133 = vmatprep.subr.bf16.mxu1 %v19677_v29  ;;  %v19762_v27 = vld [vmem:[#allocation7 + $0x880] ss:$24 sps:$4 sm:$0xff]   ;;  %v19767_v29 = vld [vmem:[#allocation7 + $0x8ac] ss:$24 sps:$4 sm:$0xff]  }
 0x183   :  { %2256 = vmatprep.subr.bf16.mxu0 %v19680_v30  ;;  %v19770_v30 = vld [vmem:[#allocation7 + $0x8b4] ss:$24 sps:$4 sm:$0xff]  }
 0x185   :  { %2134 = vmatpush1.bf16.msra.mxu1 %v19675_v31  ;;  %v19765_v31 = vld [vmem:[#allocation7 + $0x8a8] ss:$24 sps:$4 sm:$0xff]  }
 0x186   :  { %2257 = vmatpush1.bf16.msra.mxu0 %v19678_v32  ;;  %2185 = vmatprep.subr.bf16.mxu1 %v19683_v33  ;;  %v19768_v32 = vld [vmem:[#allocation7 + $0x8b0] ss:$24 sps:$4 sm:$0xff]   ;;  %v19773_v33 = vld [vmem:[#allocation7 + $0x8dc] ss:$24 sps:$4 sm:$0xff]  }
 0x187   :  { %2308 = vmatprep.subr.bf16.mxu0 %v19686_v34  ;;  %v19776_v34 = vld [vmem:[#allocation7 + $0x8e4] ss:$24 sps:$4 sm:$0xff]  }
 0x188   :  { %2136 = vmatmul.mubr.bf16.vlgmr.msra.gmra.mrb[8].mxu1 %v20994_v18 }
 0x189   :  { %2259 = vmatmul.mubr.bf16.vlgmr.msra.gmra.mrb[8].mxu0 %v20994_v18  ;;  %2186 = vmatpush1.bf16.msra.mxu1 %v19681_v35  ;;  %v19704_v18 = vld [vmem:[#allocation7 + $0x6a4] ss:$24 sps:$4 sm:$0xff]   ;;  %v2368_v35 = vld [vmem:[#allocation10 + $0x8] sm:$0xff] }
 0x18a   :  { %2309 = vmatpush1.bf16.msra.mxu0 %v19684_v12  ;;  %2187 = vmatprep.subr.bf16.mxu1 %v19689_v36  ;;  %v2380_v12 = vld [vmem:[#allocation10 + $0x68] sm:$0xff] }
 0x18b   :  { %2310 = vmatprep.subr.bf16.mxu0 %v19692_v37  ;;  %2217 = vmatprep.mubr.bf16.mxu1 %v20986_v63  ;;  %v19771_v36 = vld [vmem:[#allocation7 + $0x8d8] ss:$24 sps:$4 sm:$0xff]  }
 0x18c   :  { %2340 = vmatprep.mubr.bf16.mxu0 %v20986_v63  ;;  %v19708_v63 = vld [vmem:[#allocation7 + $0x6d0] ss:$24 sps:$4 sm:$0xff]   ;;  %v19774_v37 = vld [vmem:[#allocation7 + $0x8e0] ss:$24 sps:$4 sm:$0xff]  }
 0x18d   :  { %2188 = vmatpush1.bf16.msra.mxu1 %v19687_v38  ;;  %v19779_v38 = vld [vmem:[#allocation7 + $0x314] ss:$24 sps:$4 sm:$0xff]  }
 0x18e   :  { %2311 = vmatpush1.bf16.msra.mxu0 %v19690_v39  ;;  %2189 = vmatprep.subr.bf16.mxu1 %v19695_v40  ;;  %v2392_v39 = vld [vmem:[#allocation10 + $0xc8] sm:$0xff] }
 0x18f   :  { %2312 = vmatprep.subr.bf16.mxu0 %v19698_v41  ;;  %v2404_v40 = vld [vmem:[#allocation10 + $0x128] sm:$0xff]  ;;  %v17124_v41 = vcombine.high %v2368_v35, %v2380_v12 }
 0x191   :  { %2190 = vmatpush1.bf16.msra.mxu1 %v19693_v42  ;;  %v2350_v42 = vld [vmem:[#allocation5 + $0x8] sm:$0xff] }
 0x192   :  { %2313 = vmatpush1.bf16.msra.mxu0 %v19696_v44  ;;  %2191 = vmatprep.subr.bf16.mxu1 %v19701_v45  ;;  %v2356_v44 = vld [vmem:[#allocation5 + $0x38] sm:$0xff]  ;;  %v19777_v45 = vld [vmem:[#allocation7 + $0x310] ss:$24 sps:$4 sm:$0xff]  }
 0x193   :  { %2314 = vmatprep.subr.bf16.mxu0 %v19704_v18  ;;  %v17123_v18 = vcombine.low %v2368_v35, %v2380_v12  ;;  %v19803_v12 = vld [vmem:[#allocation7 + $0x494] ss:$24 sps:$4 sm:$0xff]  }
 0x195   :  { %2192 = vmatpush1.bf16.msra.mxu1 %v19699_v62  ;;  %v19782_v62 = vld [vmem:[#allocation7 + $0x344] ss:$24 sps:$4 sm:$0xff]  }
 0x196   :  { %2315 = vmatpush1.bf16.msra.mxu0 %v19702_v46  ;;  %2193 = vmatprep.subr.bf16.mxu1 %v19707_v47  ;;  %v17148_v46 = vcombine.high %v2392_v39, %v2404_v40  ;;  %v2416_v47 = vld [vmem:[#allocation10 + $0x188] sm:$0xff] }
 0x197   :  { %2316 = vmatprep.subr.bf16.mxu0 %v19710_v48  ;;  %v2428_v48 = vld [vmem:[#allocation10 + $0x1e8] sm:$0xff] }
 0x199   :  { %2194 = vmatpush1.bf16.msra.mxu1 %v19705_v49  ;;  %v21016_v49 = vpack.c.bf16 %v2356_v44, %v2350_v42  ;;  %v2608_v42 = vld [vmem:[#allocation10 + $0x788] sm:$0xff] }
 0x19a   :  { %2317 = vmatpush1.bf16.msra.mxu0 %v19708_v63  ;;  %2195 = vmatprep.subr.bf16.mxu1 %v19713_v50  ;;  %v19780_v63 = vld [vmem:[#allocation7 + $0x340] ss:$24 sps:$4 sm:$0xff]   ;;  %v17147_v50 = vcombine.low %v2392_v39, %v2404_v40  ;;  %v19801_v39 = vld [vmem:[#allocation7 + $0x490] ss:$24 sps:$4 sm:$0xff]  }
 0x19b   :  { %2318 = vmatprep.subr.bf16.mxu0 %v19716_v51  ;;  %v19785_v51 = vld [vmem:[#allocation7 + $0x374] ss:$24 sps:$4 sm:$0xff]  }
 0x19d   :  { %2196 = vmatpush1.bf16.msra.mxu1 %v19711_v52  ;;  %v2440_v52 = vld [vmem:[#allocation10 + $0x248] sm:$0xff] }
 0x19e   :  { %2319 = vmatpush1.bf16.msra.mxu0 %v19714_v53  ;;  %2197 = vmatprep.subr.bf16.mxu1 %v19719_v54  ;;  %v17172_v53 = vcombine.high %v2416_v47, %v2428_v48  ;;  %v2452_v54 = vld [vmem:[#allocation10 + $0x2a8] sm:$0xff] }
 0x19f   :  { %2320 = vmatprep.subr.bf16.mxu0 %v19722_v55  ;;  %v19783_v55 = vld [vmem:[#allocation7 + $0x370] ss:$24 sps:$4 sm:$0xff]  }
 0x1a1   :  { %2198 = vmatpush1.bf16.msra.mxu1 %v19717_v56  ;;  %v17171_v56 = vcombine.low %v2416_v47, %v2428_v48  ;;  %v2632_v47 = vld [vmem:[#allocation10 + $0x848] sm:$0xff] }
 0x1a2   :  { %2321 = vmatpush1.bf16.msra.mxu0 %v19720_v57  ;;  %2199 = vmatprep.subr.bf16.mxu1 %v19725_v58  ;;  %v19788_v57 = vld [vmem:[#allocation7 + $0x3a4] ss:$24 sps:$4 sm:$0xff]   ;;  %v17196_v58 = vcombine.high %v2440_v52, %v2452_v54 }
 0x1a3   :  { %2322 = vmatprep.subr.bf16.mxu0 %v19728_v59  ;;  %v2476_v59 = vld [vmem:[#allocation10 + $0x368] sm:$0xff] }
 0x1a5   :  { %2200 = vmatpush1.bf16.msra.mxu1 %v19723_v60  ;;  %v19786_v60 = vld [vmem:[#allocation7 + $0x3a0] ss:$24 sps:$4 sm:$0xff]  }
 0x1a6   :  { %2323 = vmatpush1.bf16.msra.mxu0 %v19726_v61  ;;  %2201 = vmatprep.subr.bf16.mxu1 %v19731_v0  ;;  %v17195_v61 = vcombine.low %v2440_v52, %v2452_v54  ;;  %v19791_v0 = vld [vmem:[#allocation7 + $0x3d4] ss:$24 sps:$4 sm:$0xff]   ;;  %v19812_v52 = vld [vmem:[#allocation7 + $0x524] ss:$24 sps:$4 sm:$0xff]  }
 0x1a7   :  { %2324 = vmatprep.subr.bf16.mxu0 %v19734_v1  ;;  %v2488_v1 = vld [vmem:[#allocation10 + $0x3c8] sm:$0xff] }
 0x1a9   :  { %2202 = vmatpush1.bf16.msra.mxu1 %v19729_v2  ;;  %v2500_v2 = vld [vmem:[#allocation10 + $0x428] sm:$0xff] }
 0x1aa   :  { %2325 = vmatpush1.bf16.msra.mxu0 %v19732_v3  ;;  %2203 = vmatprep.subr.bf16.mxu1 %v19737_v4  ;;  %v19789_v3 = vld [vmem:[#allocation7 + $0x3d0] ss:$24 sps:$4 sm:$0xff]  }
 0x1ab   :  { %2326 = vmatprep.subr.bf16.mxu0 %v19740_v5  ;;  %v19794_v5 = vld [vmem:[#allocation7 + $0x404] ss:$24 sps:$4 sm:$0xff]  }
 0x1ad   :  { %2204 = vmatpush1.bf16.msra.mxu1 %v19735_v6  ;;  %v2512_v6 = vld [vmem:[#allocation10 + $0x488] sm:$0xff] }
 0x1ae   :  { %2327 = vmatpush1.bf16.msra.mxu0 %v19738_v7  ;;  %2205 = vmatprep.subr.bf16.mxu1 %v19743_v8  ;;  %v17244_v7 = vcombine.high %v2488_v1, %v2500_v2  ;;  %v2524_v8 = vld [vmem:[#allocation10 + $0x4e8] sm:$0xff] }
 0x1af   :  { %2328 = vmatprep.subr.bf16.mxu0 %v19746_v9  ;;  %v19792_v9 = vld [vmem:[#allocation7 + $0x400] ss:$24 sps:$4 sm:$0xff]  }
 0x1b1   :  { %2206 = vmatpush1.bf16.msra.mxu1 %v19741_v10  ;;  %v17243_v10 = vcombine.low %v2488_v1, %v2500_v2  ;;  %v19818_v1 = vld [vmem:[#allocation7 + $0x584] ss:$24 sps:$4 sm:$0xff]  }
 0x1b2   :  { %2329 = vmatpush1.bf16.msra.mxu0 %v19744_v11  ;;  %2207 = vmatprep.subr.bf16.mxu1 %v19749_v13  ;;  %v19797_v11 = vld [vmem:[#allocation7 + $0x434] ss:$24 sps:$4 sm:$0xff]  }
 0x1b3   :  { %2330 = vmatprep.subr.bf16.mxu0 %v19752_v14  ;;  %v2536_v13 = vld [vmem:[#allocation10 + $0x548] sm:$0xff]  ;;  %v17268_v14 = vcombine.high %v2512_v6, %v2524_v8 }
 0x1b5   :  { %2208 = vmatpush1.bf16.msra.mxu1 %v19747_v15  ;;  %v2548_v15 = vld [vmem:[#allocation10 + $0x5a8] sm:$0xff] }
 0x1b6   :  { %2331 = vmatpush1.bf16.msra.mxu0 %v19750_v16  ;;  %2209 = vmatprep.subr.bf16.mxu1 %v19755_v17  ;;  %v19795_v17 = vld [vmem:[#allocation7 + $0x430] ss:$24 sps:$4 sm:$0xff]   ;;  %v17291_v35 = vcombine.low %v2536_v13, %v2548_v15 }
 0x1b7   :  { %2332 = vmatprep.subr.bf16.mxu0 %v19758_v19 }
 0x1b9   :  { %2210 = vmatpush1.bf16.msra.mxu1 %v19753_v21 }
 0x1ba   :  { %2333 = vmatpush1.bf16.msra.mxu0 %v19756_v22  ;;  %2211 = vmatprep.subr.bf16.mxu1 %v19761_v23 }
 0x1bb   :  { %2334 = vmatprep.subr.bf16.mxu0 %v19764_v25  ;;  %v17267_v25 = vcombine.low %v2512_v6, %v2524_v8  ;;  %v19821_v6 = vld [vmem:[#allocation7 + $0x5b4] ss:$24 sps:$4 sm:$0xff]  }
 0x1bd   :  { %2212 = vmatpush1.bf16.msra.mxu1 %v19759_v26  ;;  %v19800_v26 = vld [vmem:[#allocation7 + $0x464] ss:$24 sps:$4 sm:$0xff]  }
 0x1be   :  { %2335 = vmatpush1.bf16.msra.mxu0 %v19762_v27  ;;  %2213 = vmatprep.subr.bf16.mxu1 %v19767_v29  ;;  %v2560_v27 = vld [vmem:[#allocation10 + $0x608] sm:$0xff] }
 0x1bf   :  { %2336 = vmatprep.subr.bf16.mxu0 %v19770_v30 }
 0x1c1   :  { %2214 = vmatpush1.bf16.msra.mxu1 %v19765_v31  ;;  %v17292_v31 = vcombine.high %v2536_v13, %v2548_v15  ;;  %v2379_v15 = vld [vmem:[#allocation10 + $0x60] sm:$0xff] }
 0x1c2   :  { %2337 = vmatpush1.bf16.msra.mxu0 %v19768_v32  ;;  %2215 = vmatprep.subr.bf16.mxu1 %v19773_v33  ;;  %v2572_v32 = vld [vmem:[#allocation10 + $0x668] sm:$0xff] }
 0x1c3   :  { %2338 = vmatprep.subr.bf16.mxu0 %v19776_v34  ;;  %v19798_v34 = vld [vmem:[#allocation7 + $0x460] ss:$24 sps:$4 sm:$0xff]   ;;  %v17315_v40 = vcombine.low %v2560_v27, %v2572_v32 }
 0x1c5   :  { %2216 = vmatpush1.bf16.msra.mxu1 %v19771_v36  ;;  %v2584_v36 = vld [vmem:[#allocation10 + $0x6c8] sm:$0xff] }
 0x1c6   :  { %2339 = vmatpush1.bf16.msra.mxu0 %v19774_v37  ;;  %2267 = vmatprep.subr.bf16.mxu1 %v19779_v38  ;;  %v17316_v37 = vcombine.high %v2560_v27, %v2572_v32  ;;  %v2596_v38 = vld [vmem:[#allocation10 + $0x728] sm:$0xff]  ;;  %v2349_v27 = vld [vmem:[#allocation5] sm:$0xff] }
 0x1c7   :  { %9534 = vmatprep.subr.bf16.mxu0 %v17124_v41  ;;  %v19806_v41 = vld [vmem:[#allocation7 + $0x4c4] ss:$24 sps:$4 sm:$0xff]   ;;  %v17340_v44 = vcombine.high %v2584_v36, %v2596_v38 }
 0x1c8   :  { %2218 = vmatmul.mubr.bf16.vlgmr.msra.gmra.mrb[12].mxu1 %v20996_v20  ;;  %v2403_v32 = vld [vmem:[#allocation10 + $0x120] sm:$0xff] }
 0x1c9   :  { %2341 = vmatmul.mubr.bf16.vlgmr.msra.gmra.mrb[12].mxu0 %v20996_v20  ;;  %2268 = vmatpush1.bf16.msra.mxu1 %v19777_v45  ;;  %v2464_v20 = vld [vmem:[#allocation10 + $0x308] sm:$0xff] }
 0x1ca   :  { %9535 = vmatpush1.bf16.msra.mxu0 %v17123_v18  ;;  %2269 = vmatprep.subr.bf16.mxu1 %v19782_v62  ;;  %v17219_v4 = vcombine.low %v2464_v20, %v2476_v59  ;;  %v2620_v45 = vld [vmem:[#allocation10 + $0x7e8] sm:$0xff]  ;;  %v19804_v18 = vld [vmem:[#allocation7 + $0x4c0] ss:$24 sps:$4 sm:$0xff]   ;;  %v17339_v62 = vcombine.low %v2584_v36, %v2596_v38 }
 0x1cb   :  { %9536 = vmatprep.subr.bf16.mxu0 %v17148_v46  ;;  %2299 = vmatprep.mubr.bf16.mxu1 %v20998_v24  ;;  %v17220_v24 = vcombine.high %v2464_v20, %v2476_v59  ;;  %v19809_v46 = vld [vmem:[#allocation7 + $0x4f4] ss:$24 sps:$4 sm:$0xff]   ;;  %v17364_v48 = vcombine.high %v2608_v42, %v2620_v45  ;;  %v2352_v36 = vld [vmem:[#allocation5 + $0x18] sm:$0xff] }
 0x1cc   :  { %9566 = vmatprep.mubr.bf16.mxu0 %v21016_v49  ;;  %v19815_v20 = vld [vmem:[#allocation7 + $0x554] ss:$24 sps:$4 sm:$0xff]  }
 0x1cd   :  { %2270 = vmatpush1.bf16.msra.mxu1 %v19780_v63  ;;  %v2644_v63 = vld [vmem:[#allocation10 + $0x8a8] sm:$0xff] }
 0x1ce   :  { %9537 = vmatpush1.bf16.msra.mxu0 %v17147_v50  ;;  %2271 = vmatprep.subr.bf16.mxu1 %v19785_v51  ;;  %v19807_v50 = vld [vmem:[#allocation7 + $0x4f0] ss:$24 sps:$4 sm:$0xff]   ;;  %v17363_v51 = vcombine.low %v2608_v42, %v2620_v45  ;;  %v17388_v54 = vcombine.high %v2632_v47, %v2644_v63 }
 0x1cf   :  { %9538 = vmatprep.subr.bf16.mxu0 %v17172_v53  ;;  %v2656_v53 = vld [vmem:[#allocation10 + $0x908] sm:$0xff]  ;;  %v2427_v45 = vld [vmem:[#allocation10 + $0x1e0] sm:$0xff] }
 0x1d1   :  { %2272 = vmatpush1.bf16.msra.mxu1 %v19783_v55  ;;  %v2668_v55 = vld [vmem:[#allocation10 + $0x968] sm:$0xff] }
 0x1d2   :  { %9539 = vmatpush1.bf16.msra.mxu0 %v17171_v56  ;;  %2273 = vmatprep.subr.bf16.mxu1 %v19788_v57  ;;  %v19810_v56 = vld [vmem:[#allocation7 + $0x520] ss:$24 sps:$4 sm:$0xff]   ;;  %v17387_v57 = vcombine.low %v2632_v47, %v2644_v63  ;;  %v17412_v59 = vcombine.high %v2656_v53, %v2668_v55  ;;  %v2439_v63 = vld [vmem:[#allocation10 + $0x240] sm:$0xff] }
 0x1d3   :  { %9540 = vmatprep.subr.bf16.mxu0 %v17196_v58  ;;  %v2680_v58 = vld [vmem:[#allocation10 + $0x9c8] sm:$0xff] }
 0x1d5   :  { %2274 = vmatpush1.bf16.msra.mxu1 %v19786_v60  ;;  %v2692_v60 = vld [vmem:[#allocation10 + $0xa28] sm:$0xff] }
 0x1d6   :  { %9541 = vmatpush1.bf16.msra.mxu0 %v17195_v61  ;;  %2275 = vmatprep.subr.bf16.mxu1 %v19791_v0  ;;  %v19813_v61 = vld [vmem:[#allocation7 + $0x550] ss:$24 sps:$4 sm:$0xff]   ;;  %v17411_v0 = vcombine.low %v2656_v53, %v2668_v55  ;;  %v17436_v2 = vcombine.high %v2680_v58, %v2692_v60 }
 0x1d7   :  { %9542 = vmatprep.subr.bf16.mxu0 %v17220_v24  ;;  %v2704_v24 = vld [vmem:[#allocation10 + $0xa88] sm:$0xff] }
 0x1d9   :  { %2276 = vmatpush1.bf16.msra.mxu1 %v19789_v3  ;;  %v2716_v3 = vld [vmem:[#allocation10 + $0xae8] sm:$0xff] }
 0x1da   :  { %9543 = vmatpush1.bf16.msra.mxu0 %v17219_v4  ;;  %2277 = vmatprep.subr.bf16.mxu1 %v19794_v5  ;;  %v19816_v4 = vld [vmem:[#allocation7 + $0x580] ss:$24 sps:$4 sm:$0xff]   ;;  %v17435_v5 = vcombine.low %v2680_v58, %v2692_v60  ;;  %v17460_v8 = vcombine.high %v2704_v24, %v2716_v3  ;;  %v17459_v13 = vcombine.low %v2704_v24, %v2716_v3  ;;  %v2860_v60 = vld [vmem:[#allocation10 + $0xf68] sm:$0xff]  ;;  %v2487_v24 = vld [vmem:[#allocation10 + $0x3c0] sm:$0xff] }
 0x1db   :  { %9544 = vmatprep.subr.bf16.mxu0 %v17244_v7  ;;  %v21022_v16 = vpop.f32.mrb[0].mxu1  ;;  %v2728_v7 = vld [vmem:[#allocation10 + $0xb48] sm:$0xff] }
 0x1dc   :  { %v21024_v19 = vpop.f32.mrb[0].mxu0  ;;  %v21026_v21 = vpop.f32.mrb[1].mxu1  ;;  %v2872_v3 = vld [vmem:[#allocation10 + $0xfc8] sm:$0xff] }
 0x1dd   :  { %v21028_v22 = vpop.f32.mrb[1].mxu0  ;;  %v2018_v23 = vpop.f32.mrb[2].mxu1  ;;  %2278 = vmatpush1.bf16.msra.mxu1 %v19792_v9  ;;  %v2740_v9 = vld [vmem:[#allocation10 + $0xba8] sm:$0xff] }
 0x1de   :  { %9545 = vmatpush1.bf16.msra.mxu0 %v17243_v10  ;;  %v2100_v29 = vpop.f32.mrb[2].mxu0  ;;  %v2019_v30 = vpop.f32.mrb[3].mxu1  ;;  %2279 = vmatprep.subr.bf16.mxu1 %v19797_v11  ;;  %v19819_v10 = vld [vmem:[#allocation7 + $0x5b0] ss:$24 sps:$4 sm:$0xff]   ;;  %v19824_v11 = vld [vmem:[#allocation7 + $0x5e4] ss:$24 sps:$4 sm:$0xff]   ;;  %v17484_v23 = vcombine.high %v2728_v7, %v2740_v9 }
 0x1df   :  { %9546 = vmatprep.subr.bf16.mxu0 %v17268_v14  ;;  %v2101_v33 = vpop.f32.mrb[3].mxu0  ;;  %v2367_v14 = vld [vmem:[#allocation10] sm:$0xff]  ;;  %v2355_v29 = vld [vmem:[#allocation5 + $0x30] sm:$0xff]  ;;  %v17483_v30 = vcombine.low %v2728_v7, %v2740_v9 }
 0x1e0   :  { %v2776_v33 = vld [vmem:[#allocation10 + $0xcc8] sm:$0xff]  ;;  %v21030_v38 = vpack.c.bf16 %v2355_v29, %v2349_v27 }
 0x1e1   :  { %2280 = vmatpush1.bf16.msra.mxu1 %v19795_v17  ;;  %v2752_v17 = vld [vmem:[#allocation10 + $0xc08] sm:$0xff] }
 0x1e2   :  { %9547 = vmatpush1.bf16.msra.mxu0 %v17267_v25  ;;  %2281 = vmatprep.subr.bf16.mxu1 %v19800_v26  ;;  %v2764_v25 = vld [vmem:[#allocation10 + $0xc68] sm:$0xff]  ;;  %v19822_v26 = vld [vmem:[#allocation7 + $0x5e0] ss:$24 sps:$4 sm:$0xff]  }
 0x1e3   :  { %9548 = vmatprep.subr.bf16.mxu0 %v17292_v31  ;;  %v2391_v31 = vld [vmem:[#allocation10 + $0xc0] sm:$0xff]  ;;  %v2884_v7 = vld [vmem:[#allocation10 + $0x1028] sm:$0xff] }
 0x1e4   :  { %v17145_v47 = vcombine.low %v2391_v31, %v2403_v32  ;;  %v17627_v29 = vcombine.low %v2872_v3, %v2884_v7 }
 0x1e5   :  { %2282 = vmatpush1.bf16.msra.mxu1 %v19798_v34  ;;  %v2788_v34 = vld [vmem:[#allocation10 + $0xd28] sm:$0xff] }
 0x1e6   :  { %9549 = vmatpush1.bf16.msra.mxu0 %v17291_v35  ;;  %2283 = vmatprep.subr.bf16.mxu1 %v19803_v12  ;;  %v17122_v35 = vcombine.high %v2367_v14, %v2379_v15  ;;  %v17508_v12 = vcombine.high %v2752_v17, %v2764_v25  ;;  %v17532_v42 = vcombine.high %v2776_v33, %v2788_v34 }
 0x1e7   :  { %9550 = vmatprep.subr.bf16.mxu0 %v17316_v37  ;;  %v2358_v37 = vld [vmem:[#allocation5 + $0x48] sm:$0xff] }
 0x1e9   :  { %2284 = vmatpush1.bf16.msra.mxu1 %v19801_v39  ;;  %v17121_v39 = vcombine.low %v2367_v14, %v2379_v15  ;;  %v2896_v14 = vld [vmem:[#allocation10 + $0x1088] sm:$0xff] }
 0x1ea   :  { %9551 = vmatpush1.bf16.msra.mxu0 %v17315_v40  ;;  %2285 = vmatprep.subr.bf16.mxu1 %v19806_v41  ;;  %v17507_v40 = vcombine.low %v2752_v17, %v2764_v25  ;;  %v17146_v41 = vcombine.high %v2391_v31, %v2403_v32  ;;  %v2908_v25 = vld [vmem:[#allocation10 + $0x10e8] sm:$0xff]  ;;  %v2547_v31 = vld [vmem:[#allocation10 + $0x5a0] sm:$0xff] }
 0x1eb   :  { %9552 = vmatprep.subr.bf16.mxu0 %v17340_v44  ;;  %v2415_v44 = vld [vmem:[#allocation10 + $0x180] sm:$0xff]  ;;  %v2920_v32 = vld [vmem:[#allocation10 + $0x1148] sm:$0xff] }
 0x1ed   :  { %2286 = vmatpush1.bf16.msra.mxu1 %v19804_v18  ;;  %v2800_v18 = vld [vmem:[#allocation10 + $0xd88] sm:$0xff] }
 0x1ee   :  { %9553 = vmatpush1.bf16.msra.mxu0 %v17339_v62  ;;  %2287 = vmatprep.subr.bf16.mxu1 %v19809_v46  ;;  %v2812_v62 = vld [vmem:[#allocation10 + $0xde8] sm:$0xff]  ;;  %v21032_v46 = vpack.c.bf16 %v2358_v37, %v2352_v36 }
 0x1ef   :  { %9554 = vmatprep.subr.bf16.mxu0 %v17364_v48  ;;  %v17531_v48 = vcombine.low %v2776_v33, %v2788_v34  ;;  %v17556_v53 = vcombine.high %v2800_v18, %v2812_v62  ;;  %v17555_v55 = vcombine.low %v2800_v18, %v2812_v62  ;;  %v2559_v62 = vld [vmem:[#allocation10 + $0x600] sm:$0xff] }
 0x1f1   :  { %2288 = vmatpush1.bf16.msra.mxu1 %v19807_v50  ;;  %v2451_v50 = vld [vmem:[#allocation10 + $0x2a0] sm:$0xff] }
 0x1f2   :  { %9555 = vmatpush1.bf16.msra.mxu0 %v17363_v51  ;;  %2289 = vmatprep.subr.bf16.mxu1 %v19812_v52  ;;  %v2824_v51 = vld [vmem:[#allocation10 + $0xe48] sm:$0xff]  ;;  %v17170_v52 = vcombine.high %v2415_v44, %v2427_v45  ;;  %v17194_v58 = vcombine.high %v2439_v63, %v2451_v50 }
 0x1f3   :  { %9556 = vmatprep.subr.bf16.mxu0 %v17388_v54  ;;  %v2836_v54 = vld [vmem:[#allocation10 + $0xea8] sm:$0xff] }
 0x1f5   :  { %2290 = vmatpush1.bf16.msra.mxu1 %v19810_v56  ;;  %v2463_v56 = vld [vmem:[#allocation10 + $0x300] sm:$0xff] }
 0x1f6   :  { %9557 = vmatpush1.bf16.msra.mxu0 %v17387_v57  ;;  %2291 = vmatprep.subr.bf16.mxu1 %v19815_v20  ;;  %v2475_v57 = vld [vmem:[#allocation10 + $0x360] sm:$0xff]  ;;  %v2848_v20 = vld [vmem:[#allocation10 + $0xf08] sm:$0xff] }
 0x1f7   :  { %9558 = vmatprep.subr.bf16.mxu0 %v17412_v59  ;;  %v17580_v59 = vcombine.high %v2824_v51, %v2836_v54  ;;  %v17217_v9 = vcombine.low %v2463_v56, %v2475_v57 }
 0x1f9   :  { %2292 = vmatpush1.bf16.msra.mxu1 %v19813_v61  ;;  %v21038_v61 = vld [vmem:[#allocation8] sm:$0x3f] }
 0x1fa   :  { %9559 = vmatpush1.bf16.msra.mxu0 %v17411_v0  ;;  %2293 = vmatprep.subr.bf16.mxu1 %v19818_v1  ;;  %v17193_v0 = vcombine.low %v2439_v63, %v2451_v50  ;;  %v17579_v1 = vcombine.low %v2824_v51, %v2836_v54 }
 0x1fb   :  { %9560 = vmatprep.subr.bf16.mxu0 %v17436_v2  ;;  %v2499_v2 = vld [vmem:[#allocation10 + $0x420] sm:$0xff] }
 0x1fc   :  { %v17242_v17 = vcombine.high %v2487_v24, %v2499_v2  ;;  %v17241_v27 = vcombine.low %v2487_v24, %v2499_v2  ;;  %v2607_v24 = vld [vmem:[#allocation10 + $0x780] sm:$0xff] }
 0x1fd   :  { %2294 = vmatpush1.bf16.msra.mxu1 %v19816_v4  ;;  %v21041_v4 = vsub.s32 0, %v20981_v43  ;;  %v2619_v2 = vld [vmem:[#allocation10 + $0x7e0] sm:$0xff] }
 0x1fe   :  { %9561 = vmatpush1.bf16.msra.mxu0 %v17435_v5  ;;  %2295 = vmatprep.subr.bf16.mxu1 %v19821_v6  ;;  %v17218_v5 = vcombine.high %v2463_v56, %v2475_v57  ;;  %v17604_v6 = vcombine.high %v2848_v20, %v2860_v60  ;;  %v2583_v57 = vld [vmem:[#allocation10 + $0x6c0] sm:$0xff] }
 0x1ff   :  { %9562 = vmatprep.subr.bf16.mxu0 %v17460_v8  ;;  %21829 = vst [vmem:[#allocation28_spill] sm:$0xff] %v21041_v4  ;;  %v21044_v8 = vsub.s32 1, %v20981_v43  ;;  %v513_v15 = vrot.slane %v21038_v61, %v21041_v4 }
 0x201   :  { %2296 = vmatpush1.bf16.msra.mxu1 %v19819_v10  ;;  %21830 = vst [vmem:[#allocation29_spill] sm:$0xff] %v21044_v8  ;;  %v17603_v10 = vcombine.low %v2848_v20, %v2860_v60  ;;  %v2015_v33 = vadd.f32 %v21022_v16, %v513_v15  ;;  %v17651_v16 = vcombine.low %v2896_v14, %v2908_v25  ;;  %v2595_v20 = vld [vmem:[#allocation10 + $0x720] sm:$0xff]  ;;  %v2980_v60 = vld [vmem:[#allocation10 + $0x1328] sm:$0xff] }
 0x202   :  { %9563 = vmatpush1.bf16.msra.mxu0 %v17459_v13  ;;  %2297 = vmatprep.subr.bf16.mxu1 %v19824_v11  ;;  %v2511_v11 = vld [vmem:[#allocation10 + $0x480] sm:$0xff] }
 0x203   :  { %9564 = vmatprep.subr.bf16.mxu0 %v17484_v23  ;;  %v2523_v13 = vld [vmem:[#allocation10 + $0x4e0] sm:$0xff]  ;;  %v17628_v23 = vcombine.high %v2872_v3, %v2884_v7  ;;  %v17338_v3 = vcombine.high %v2583_v57, %v2595_v20  ;;  %v17337_v7 = vcombine.low %v2583_v57, %v2595_v20  ;;  %v3124_v57 = vld [vmem:[#allocation10 + $0x17a8] sm:$0xff] }
 0x204   :  { %v17266_v34 = vcombine.high %v2511_v11, %v2523_v13  ;;  %v17265_v18 = vcombine.low %v2511_v11, %v2523_v13  ;;  %v2643_v11 = vld [vmem:[#allocation10 + $0x8a0] sm:$0xff]  ;;  %v3016_v13 = vld [vmem:[#allocation10 + $0x1448] sm:$0xff] }
 0x205   :  { %2298 = vmatpush1.bf16.msra.mxu1 %v19822_v26  ;;  %v517_v26 = vrot.slane %v21038_v61, %v21044_v8 }
 0x206   :  { %9565 = vmatpush1.bf16.msra.mxu0 %v17483_v30  ;;  %9405 = vmatprep.subr.bf16.mxu1 %v17122_v35  ;;  %v2535_v30 = vld [vmem:[#allocation10 + $0x540] sm:$0xff]  ;;  %v17652_v35 = vcombine.high %v2896_v14, %v2908_v25  ;;  %v17362_v14 = vcombine.high %v2607_v24, %v2619_v2 }
 0x207   :  { %9577 = vmatprep.subr.bf16.mxu0 %v17508_v12  ;;  %v2932_v12 = vld [vmem:[#allocation10 + $0x11a8] sm:$0xff]  ;;  %v2017_v36 = vadd.f32 %v21026_v21, %v517_v26  ;;  %v17290_v51 = vcombine.high %v2535_v30, %v2547_v31  ;;  %v2655_v26 = vld [vmem:[#allocation10 + $0x900] sm:$0xff] }
 0x208   :  { %2300 = vmatmul.mubr.bf16.vlgmr.msra.gmra.mrb[16].mxu1 %v21006_v28  ;;  %v17169_v28 = vcombine.low %v2415_v44, %v2427_v45  ;;  %v17675_v56 = vcombine.low %v2920_v32, %v2932_v12 }
 0x209   :  { %9567 = vmatmul.mubr.bf16.vlgmr.msra.gmra.mrb[16].mxu0 %v21030_v38  ;;  %9406 = vmatpush1.bf16.msra.mxu1 %v17121_v39 }
 0x20a   :  { %9578 = vmatpush1.bf16.msra.mxu0 %v17507_v40  ;;  %9407 = vmatprep.subr.bf16.mxu1 %v17146_v41 }
 0x20b   :  { %9579 = vmatprep.subr.bf16.mxu0 %v17532_v42  ;;  %9437 = vmatprep.mubr.bf16.mxu1 %v21016_v49 }
 0x20c   :  { %9609 = vmatprep.mubr.bf16.mxu0 %v21032_v46 }
 0x20d   :  { %9408 = vmatpush1.bf16.msra.mxu1 %v17145_v47  ;;  %v2571_v47 = vld [vmem:[#allocation10 + $0x660] sm:$0xff] }
 0x20e   :  { %9580 = vmatpush1.bf16.msra.mxu0 %v17531_v48  ;;  %9409 = vmatprep.subr.bf16.mxu1 %v17170_v52  ;;  %v2944_v48 = vld [vmem:[#allocation10 + $0x1208] sm:$0xff]  ;;  %v17676_v52 = vcombine.high %v2920_v32, %v2932_v12  ;;  %v2691_v12 = vld [vmem:[#allocation10 + $0xa20] sm:$0xff] }
 0x20f   :  { %9581 = vmatprep.subr.bf16.mxu0 %v17556_v53  ;;  %v2956_v53 = vld [vmem:[#allocation10 + $0x1268] sm:$0xff] }
 0x210   :  { %v3052_v32 = vld [vmem:[#allocation10 + $0x1568] sm:$0xff] }
 0x211   :  { %9410 = vmatpush1.bf16.msra.mxu1 %v17169_v28 }
 0x212   :  { %9582 = vmatpush1.bf16.msra.mxu0 %v17555_v55  ;;  %9411 = vmatprep.subr.bf16.mxu1 %v17194_v58  ;;  %v17289_v55 = vcombine.low %v2535_v30, %v2547_v31  ;;  %v2968_v58 = vld [vmem:[#allocation10 + $0x12c8] sm:$0xff] }
 0x213   :  { %9583 = vmatprep.subr.bf16.mxu0 %v17580_v59  ;;  %v17700_v59 = vcombine.high %v2944_v48, %v2956_v53 }
 0x215   :  { %9412 = vmatpush1.bf16.msra.mxu1 %v17193_v0  ;;  %v17313_v0 = vcombine.low %v2559_v62, %v2571_v47 }
 0x216   :  { %9584 = vmatpush1.bf16.msra.mxu0 %v17579_v1  ;;  %9413 = vmatprep.subr.bf16.mxu1 %v17218_v5  ;;  %v17699_v1 = vcombine.low %v2944_v48, %v2956_v53  ;;  %v17724_v5 = vcombine.high %v2968_v58, %v2980_v60  ;;  %v2739_v53 = vld [vmem:[#allocation10 + $0xba0] sm:$0xff] }
 0x217   :  { %9585 = vmatprep.subr.bf16.mxu0 %v17604_v6  ;;  %v3004_v6 = vld [vmem:[#allocation10 + $0x13e8] sm:$0xff] }
 0x219   :  { %9414 = vmatpush1.bf16.msra.mxu1 %v17217_v9  ;;  %v17723_v9 = vcombine.low %v2968_v58, %v2980_v60  ;;  %v3136_v60 = vld [vmem:[#allocation10 + $0x1808] sm:$0xff] }
 0x21a   :  { %9586 = vmatpush1.bf16.msra.mxu0 %v17603_v10  ;;  %9415 = vmatprep.subr.bf16.mxu1 %v17242_v17  ;;  %v2631_v10 = vld [vmem:[#allocation10 + $0x840] sm:$0xff]  ;;  %v3028_v17 = vld [vmem:[#allocation10 + $0x14a8] sm:$0xff] }
 0x21b   :  { %9587 = vmatprep.subr.bf16.mxu0 %v17628_v23  ;;  %v2055_v37 = vpop.f32.mrb[4].mxu1  ;;  %v17361_v23 = vcombine.low %v2607_v24, %v2619_v2  ;;  %v17386_v30 = vcombine.high %v2631_v10, %v2643_v11  ;;  %v17772_v31 = vcombine.high %v3016_v13, %v3028_v17  ;;  %v3148_v24 = vld [vmem:[#allocation10 + $0x1868] sm:$0xff] }
 0x21c   :  { %v21052_v39 = vpop.f32.mrb[4].mxu0  ;;  %v2056_v40 = vadd.f32 %v2055_v37, %v2015_v33  ;;  %v2057_v41 = vpop.f32.mrb[5].mxu1  ;;  %v17385_v33 = vcombine.low %v2631_v10, %v2643_v11  ;;  %v2351_v2 = vld [vmem:[#allocation5 + $0x10] sm:$0xff] }
 0x21d   :  { %v21054_v42 = vpop.f32.mrb[5].mxu0  ;;  %v2058_v44 = vadd.f32 %v2057_v41, %v2017_v36  ;;  %v2059_v45 = vpop.f32.mrb[6].mxu1  ;;  %9416 = vmatpush1.bf16.msra.mxu1 %v17241_v27  ;;  %v2667_v27 = vld [vmem:[#allocation10 + $0x960] sm:$0xff]  ;;  %v3064_v36 = vld [vmem:[#allocation10 + $0x15c8] sm:$0xff] }
 0x21e   :  { %9588 = vmatpush1.bf16.msra.mxu0 %v17627_v29  ;;  %v2182_v63 = vpop.f32.mrb[6].mxu0  ;;  %v21057_v50 = vadd.f32 %v21024_v19, %v2056_v40  ;;  %v2060_v21 = vpop.f32.mrb[7].mxu1  ;;  %9417 = vmatprep.subr.bf16.mxu1 %v17266_v34  ;;  %v17314_v19 = vcombine.high %v2559_v62, %v2571_v47  ;;  %v3040_v29 = vld [vmem:[#allocation10 + $0x1508] sm:$0xff]  ;;  %v17771_v34 = vcombine.low %v3016_v13, %v3028_v17 }
 0x21f   :  { %9589 = vmatprep.subr.bf16.mxu0 %v17652_v35  ;;  %v2183_v54 = vpop.f32.mrb[7].mxu0  ;;  %v21060_v28 = vadd.f32 %v21028_v22, %v2058_v44  ;;  %v2992_v22 = vld [vmem:[#allocation10 + $0x1388] sm:$0xff]  ;;  %v2679_v35 = vld [vmem:[#allocation10 + $0x9c0] sm:$0xff]  ;;  %v17410_v37 = vcombine.high %v2655_v26, %v2667_v27  ;;  %v17796_v40 = vcombine.high %v3040_v29, %v3052_v32  ;;  %v17409_v44 = vcombine.low %v2655_v26, %v2667_v27 }
 0x220   :  { %21831 = vst [vmem:[#allocation30_spill] sm:$0xff] %v21057_v50  ;;  %v17748_v15 = vcombine.high %v2992_v22, %v3004_v6  ;;  %v17747_v25 = vcombine.low %v2992_v22, %v3004_v6  ;;  %v3076_v41 = vld [vmem:[#allocation10 + $0x1628] sm:$0xff]  ;;  %v17795_v45 = vcombine.low %v3040_v29, %v3052_v32  ;;  %v17434_v47 = vcombine.high %v2679_v35, %v2691_v12  ;;  %v2357_v22 = vld [vmem:[#allocation5 + $0x40] sm:$0xff] }
 0x221   :  { %21832 = vst [vmem:[#allocation31_spill] sm:$0xff] %v21060_v28  ;;  %9418 = vmatpush1.bf16.msra.mxu1 %v17265_v18  ;;  %v2703_v18 = vld [vmem:[#allocation10 + $0xa80] sm:$0xff]  ;;  %v3088_v62 = vld [vmem:[#allocation10 + $0x1688] sm:$0xff]  ;;  %v17820_v48 = vcombine.high %v3064_v36, %v3076_v41  ;;  %v17433_v21 = vcombine.low %v2679_v35, %v2691_v12  ;;  %v17892_v13 = vcombine.high %v3136_v60, %v3148_v24  ;;  %v2485_v28 = vld [vmem:[#allocation10 + $0x3b0] sm:$0xff] }
 0x222   :  { %9590 = vmatpush1.bf16.msra.mxu0 %v17651_v16  ;;  %9419 = vmatprep.subr.bf16.mxu1 %v17290_v51  ;;  %v2715_v16 = vld [vmem:[#allocation10 + $0xae0] sm:$0xff]  ;;  %v3100_v63 = vld [vmem:[#allocation10 + $0x16e8] sm:$0xff]  ;;  %v17819_v51 = vcombine.low %v3064_v36, %v3076_v41  ;;  %v21062_v17 = vpack.c.bf16 %v2357_v22, %v2351_v2 }
 0x223   :  { %9591 = vmatprep.subr.bf16.mxu0 %v17676_v52  ;;  %v2727_v52 = vld [vmem:[#allocation10 + $0xb40] sm:$0xff]  ;;  %v3112_v54 = vld [vmem:[#allocation10 + $0x1748] sm:$0xff]  ;;  %v17457_v20 = vcombine.low %v2703_v18, %v2715_v16  ;;  %v17843_v58 = vcombine.low %v3088_v62, %v3100_v63 }
 0x224   :  { %v2775_v6 = vld [vmem:[#allocation10 + $0xcc0] sm:$0xff]  ;;  %v3172_v10 = vld [vmem:[#allocation10 + $0x1928] sm:$0xff] }
 0x225   :  { %9420 = vmatpush1.bf16.msra.mxu1 %v17289_v55  ;;  %v17458_v55 = vcombine.high %v2703_v18, %v2715_v16  ;;  %v2799_v26 = vld [vmem:[#allocation10 + $0xd80] sm:$0xff]  ;;  %v3184_v29 = vld [vmem:[#allocation10 + $0x1988] sm:$0xff] }
 0x226   :  { %9592 = vmatpush1.bf16.msra.mxu0 %v17675_v56  ;;  %9421 = vmatprep.subr.bf16.mxu1 %v17314_v19  ;;  %v17844_v56 = vcombine.high %v3088_v62, %v3100_v63  ;;  %v2751_v19 = vld [vmem:[#allocation10 + $0xc00] sm:$0xff]  ;;  %v3196_v32 = vld [vmem:[#allocation10 + $0x19e8] sm:$0xff] }
 0x227   :  { %9593 = vmatprep.subr.bf16.mxu0 %v17700_v59  ;;  %v2763_v59 = vld [vmem:[#allocation10 + $0xc60] sm:$0xff]  ;;  %v17940_v41 = vcombine.high %v3184_v29, %v3196_v32  ;;  %v17939_v18 = vcombine.low %v3184_v29, %v3196_v32 }
 0x228   :  { %v17506_v11 = vcombine.high %v2751_v19, %v2763_v59  ;;  %v2811_v27 = vld [vmem:[#allocation10 + $0xde0] sm:$0xff] }
 0x229   :  { %9422 = vmatpush1.bf16.msra.mxu1 %v17313_v0  ;;  %v17482_v0 = vcombine.high %v2727_v52, %v2739_v53  ;;  %v2823_v12 = vld [vmem:[#allocation10 + $0xe40] sm:$0xff] }
 0x22a   :  { %9594 = vmatpush1.bf16.msra.mxu0 %v17699_v1  ;;  %9423 = vmatprep.subr.bf16.mxu1 %v17338_v3  ;;  %v17868_v1 = vcombine.high %v3112_v54, %v3124_v57  ;;  %v17481_v3 = vcombine.low %v2727_v52, %v2739_v53  ;;  %v2835_v36 = vld [vmem:[#allocation10 + $0xea0] sm:$0xff] }
 0x22b   :  { %9595 = vmatprep.subr.bf16.mxu0 %v17724_v5  ;;  %v17867_v5 = vcombine.low %v3112_v54, %v3124_v57  ;;  %v2847_v16 = vld [vmem:[#allocation10 + $0xf00] sm:$0xff] }
 0x22c   :  { %v2859_v62 = vld [vmem:[#allocation10 + $0xf60] sm:$0xff] }
 0x22d   :  { %9424 = vmatpush1.bf16.msra.mxu1 %v17337_v7  ;;  %v2787_v7 = vld [vmem:[#allocation10 + $0xd20] sm:$0xff] }
 0x22e   :  { %9596 = vmatpush1.bf16.msra.mxu0 %v17723_v9  ;;  %9425 = vmatprep.subr.bf16.mxu1 %v17362_v14  ;;  %v3160_v9 = vld [vmem:[#allocation10 + $0x18c8] sm:$0xff]  ;;  %v2871_v53 = vld [vmem:[#allocation10 + $0xfc0] sm:$0xff] }
 0x22f   :  { %9597 = vmatprep.subr.bf16.mxu0 %v17748_v15  ;;  %v2354_v14 = vld [vmem:[#allocation5 + $0x28] sm:$0xff]  ;;  %v2360_v15 = vld [vmem:[#allocation5 + $0x58] sm:$0xff]  ;;  %v17915_v35 = vcombine.low %v3160_v9, %v3172_v10 }
 0x230   :  { %v2883_v54 = vld [vmem:[#allocation10 + $0x1020] sm:$0xff] }
 0x231   :  { %9426 = vmatpush1.bf16.msra.mxu1 %v17361_v23  ;;  %v17505_v23 = vcombine.low %v2751_v19, %v2763_v59  ;;  %v17601_v19 = vcombine.low %v2847_v16, %v2859_v62  ;;  %v17626_v2 = vcombine.high %v2871_v53, %v2883_v54 }
 0x232   :  { %9598 = vmatpush1.bf16.msra.mxu0 %v17747_v25  ;;  %9427 = vmatprep.subr.bf16.mxu1 %v17386_v30  ;;  %v17891_v25 = vcombine.low %v3136_v60, %v3148_v24  ;;  %v17530_v30 = vcombine.high %v2775_v6, %v2787_v7  ;;  %v21074_v60 = vsub.s32 3, %v20981_v43  ;;  %v3280_v24 = vld [vmem:[#allocation10 + $0x1c88] sm:$0xff] }
 0x233   :  { %9599 = vmatprep.subr.bf16.mxu0 %v17772_v31  ;;  %v17916_v31 = vcombine.high %v3160_v9, %v3172_v10  ;;  %v2919_v10 = vld [vmem:[#allocation10 + $0x1140] sm:$0xff] }
 0x235   :  { %9428 = vmatpush1.bf16.msra.mxu1 %v17385_v33  ;;  %v21064_v33 = vpack.c.bf16 %v2360_v15, %v2354_v14 }
 0x236   :  { %9600 = vmatpush1.bf16.msra.mxu0 %v17771_v34  ;;  %9429 = vmatprep.subr.bf16.mxu1 %v17410_v37  ;;  %v17529_v34 = vcombine.low %v2775_v6, %v2787_v7  ;;  %v3208_v37 = vld [vmem:[#allocation10 + $0x1a48] sm:$0xff]  ;;  %v525_v6 = vrot.slane %v21038_v61, %v21074_v60  ;;  %v17625_v7 = vcombine.low %v2871_v53, %v2883_v54 }
 0x237   :  { %9601 = vmatprep.subr.bf16.mxu0 %v17796_v40  ;;  %v17554_v40 = vcombine.high %v2799_v26, %v2811_v27  ;;  %v3364_v53 = vld [vmem:[#allocation10 + $0x1f28] sm:$0xff] }
 0x239   :  { %9430 = vmatpush1.bf16.msra.mxu1 %v17409_v44  ;;  %v3220_v44 = vld [vmem:[#allocation10 + $0x1aa8] sm:$0xff] }
 0x23a   :  { %9602 = vmatpush1.bf16.msra.mxu0 %v17795_v45  ;;  %9431 = vmatprep.subr.bf16.mxu1 %v17434_v47  ;;  %v17553_v45 = vcombine.low %v2799_v26, %v2811_v27  ;;  %v3232_v47 = vld [vmem:[#allocation10 + $0x1b08] sm:$0xff]  ;;  %v17964_v63 = vcombine.high %v3208_v37, %v3220_v44  ;;  %v17963_v52 = vcombine.low %v3208_v37, %v3220_v44 }
 0x23b   :  { %9603 = vmatprep.subr.bf16.mxu0 %v17820_v48  ;;  %v17578_v48 = vcombine.high %v2823_v12, %v2835_v36 }
 0x23d   :  { %9432 = vmatpush1.bf16.msra.mxu1 %v17433_v21  ;;  %v3244_v21 = vld [vmem:[#allocation10 + $0x1b68] sm:$0xff] }
 0x23e   :  { %9604 = vmatpush1.bf16.msra.mxu0 %v17819_v51  ;;  %9433 = vmatprep.subr.bf16.mxu1 %v17458_v55  ;;  %v17577_v51 = vcombine.low %v2823_v12, %v2835_v36  ;;  %v3256_v55 = vld [vmem:[#allocation10 + $0x1bc8] sm:$0xff]  ;;  %v17988_v57 = vcombine.high %v3232_v47, %v3244_v21  ;;  %v17987_v59 = vcombine.low %v3232_v47, %v3244_v21  ;;  %v2967_v21 = vld [vmem:[#allocation10 + $0x12c0] sm:$0xff] }
 0x23f   :  { %9605 = vmatprep.subr.bf16.mxu0 %v17844_v56  ;;  %v17602_v56 = vcombine.high %v2847_v16, %v2859_v62  ;;  %v3328_v16 = vld [vmem:[#allocation10 + $0x1e08] sm:$0xff] }
 0x240   :  { %v3340_v62 = vld [vmem:[#allocation10 + $0x1e68] sm:$0xff] }
 0x241   :  { %9434 = vmatpush1.bf16.msra.mxu1 %v17457_v20  ;;  %v3268_v20 = vld [vmem:[#allocation10 + $0x1c28] sm:$0xff] }
 0x242   :  { %9606 = vmatpush1.bf16.msra.mxu0 %v17843_v58  ;;  %9435 = vmatprep.subr.bf16.mxu1 %v17482_v0  ;;  %v21071_v58 = vsub.s32 2, %v20981_v43  ;;  %v2895_v0 = vld [vmem:[#allocation10 + $0x1080] sm:$0xff]  ;;  %v18012_v22 = vcombine.high %v3256_v55, %v3268_v20  ;;  %v18011_v9 = vcombine.low %v3256_v55, %v3268_v20 }
 0x243   :  { %9607 = vmatprep.subr.bf16.mxu0 %v17868_v1  ;;  %v2907_v1 = vld [vmem:[#allocation10 + $0x10e0] sm:$0xff] }
 0x244   :  { %v17650_v14 = vcombine.high %v2895_v0, %v2907_v1  ;;  %v3003_v20 = vld [vmem:[#allocation10 + $0x13e0] sm:$0xff] }
 0x245   :  { %9436 = vmatpush1.bf16.msra.mxu1 %v17481_v3  ;;  %v3292_v3 = vld [vmem:[#allocation10 + $0x1ce8] sm:$0xff] }
 0x246   :  { %9608 = vmatpush1.bf16.msra.mxu0 %v17867_v5  ;;  %9448 = vmatprep.subr.bf16.mxu1 %v17506_v11  ;;  %v521_v5 = vrot.slane %v21038_v61, %v21071_v58  ;;  %v2931_v11 = vld [vmem:[#allocation10 + $0x11a0] sm:$0xff]  ;;  %v18036_v15 = vcombine.high %v3280_v24, %v3292_v3  ;;  %v17649_v61 = vcombine.low %v2895_v0, %v2907_v1 }
 0x247   :  { %9620 = vmatprep.subr.bf16.mxu0 %v17892_v13  ;;  %v3304_v13 = vld [vmem:[#allocation10 + $0x1d48] sm:$0xff]  ;;  %v17674_v37 = vcombine.high %v2919_v10, %v2931_v11  ;;  %v17673_v47 = vcombine.low %v2919_v10, %v2931_v11 }
 0x248   :  { %9438 = vmatmul.mubr.bf16.vlgmr.msra.gmra.mrb[20].mxu1 %v21030_v38 }
 0x249   :  { %9610 = vmatmul.mubr.bf16.vlgmr.msra.gmra.mrb[16].mxu0 %v21062_v17  ;;  %9449 = vmatpush1.bf16.msra.mxu1 %v17505_v23  ;;  %v3316_v23 = vld [vmem:[#allocation10 + $0x1da8] sm:$0xff] }
 0x24a   :  { %9621 = vmatpush1.bf16.msra.mxu0 %v17891_v25  ;;  %9450 = vmatprep.subr.bf16.mxu1 %v17530_v30 }
 0x24b   :  { %9622 = vmatprep.subr.bf16.mxu0 %v17916_v31  ;;  %9480 = vmatprep.mubr.bf16.mxu1 %v21032_v46 }
 0x24c   :  { %9652 = vmatprep.mubr.bf16.mxu0 %v21064_v33 }
 0x24d   :  { %9451 = vmatpush1.bf16.msra.mxu1 %v17529_v34  ;;  %v18035_v34 = vcombine.low %v3280_v24, %v3292_v3  ;;  %v3027_v3 = vld [vmem:[#allocation10 + $0x14a0] sm:$0xff] }
 0x24e   :  { %9623 = vmatpush1.bf16.msra.mxu0 %v17915_v35  ;;  %9452 = vmatprep.subr.bf16.mxu1 %v17554_v40  ;;  %v18060_v40 = vcombine.high %v3304_v13, %v3316_v23 }
 0x24f   :  { %9624 = vmatprep.subr.bf16.mxu0 %v17940_v41  ;;  %v2943_v41 = vld [vmem:[#allocation10 + $0x1200] sm:$0xff] }
 0x251   :  { %9453 = vmatpush1.bf16.msra.mxu1 %v17553_v45 }
 0x252   :  { %9625 = vmatpush1.bf16.msra.mxu0 %v17939_v18  ;;  %9454 = vmatprep.subr.bf16.mxu1 %v17578_v48  ;;  %v2955_v18 = vld [vmem:[#allocation10 + $0x1260] sm:$0xff]  ;;  %v18059_v48 = vcombine.low %v3304_v13, %v3316_v23  ;;  %v3436_v23 = vld [vmem:[#allocation10 + $0x2168] sm:$0xff] }
 0x253   :  { %9626 = vmatprep.subr.bf16.mxu0 %v17964_v63  ;;  %v18084_v63 = vcombine.high %v3328_v16, %v3340_v62  ;;  %v17697_v54 = vcombine.low %v2943_v41, %v2955_v18  ;;  %v3039_v13 = vld [vmem:[#allocation10 + $0x1500] sm:$0xff] }
 0x255   :  { %9455 = vmatpush1.bf16.msra.mxu1 %v17577_v51  ;;  %v2979_v51 = vld [vmem:[#allocation10 + $0x1320] sm:$0xff] }
 0x256   :  { %9627 = vmatpush1.bf16.msra.mxu0 %v17963_v52  ;;  %9456 = vmatprep.subr.bf16.mxu1 %v17602_v56  ;;  %v3352_v52 = vld [vmem:[#allocation10 + $0x1ec8] sm:$0xff]  ;;  %v17722_v55 = vcombine.high %v2967_v21, %v2979_v51  ;;  %v17721_v0 = vcombine.low %v2967_v21, %v2979_v51  ;;  %v3111_v21 = vld [vmem:[#allocation10 + $0x1740] sm:$0xff] }
 0x257   :  { %9628 = vmatprep.subr.bf16.mxu0 %v17988_v57  ;;  %v18108_v56 = vcombine.high %v3352_v52, %v3364_v53  ;;  %v2991_v57 = vld [vmem:[#allocation10 + $0x1380] sm:$0xff]  ;;  %v18107_v1 = vcombine.low %v3352_v52, %v3364_v53  ;;  %v3496_v52 = vld [vmem:[#allocation10 + $0x2348] sm:$0xff] }
 0x258   :  { %v17746_v24 = vcombine.high %v2991_v57, %v3003_v20  ;;  %v3123_v51 = vld [vmem:[#allocation10 + $0x17a0] sm:$0xff]  ;;  %v3508_v53 = vld [vmem:[#allocation10 + $0x23a8] sm:$0xff] }
 0x259   :  { %9457 = vmatpush1.bf16.msra.mxu1 %v17601_v19  ;;  %v3376_v19 = vld [vmem:[#allocation10 + $0x1f88] sm:$0xff] }
 0x25a   :  { %9629 = vmatpush1.bf16.msra.mxu0 %v17987_v59  ;;  %9458 = vmatprep.subr.bf16.mxu1 %v17626_v2  ;;  %v3388_v59 = vld [vmem:[#allocation10 + $0x1fe8] sm:$0xff] }
 0x25b   :  { %9630 = vmatprep.subr.bf16.mxu0 %v18012_v22  ;;  %v2137_v25 = vpop.f32.mrb[8].mxu1  ;;  %v18132_v2 = vcombine.high %v3376_v19, %v3388_v59  ;;  %v3015_v22 = vld [vmem:[#allocation10 + $0x1440] sm:$0xff] }
 0x25c   :  { %v21080_v26 = vpop.f32.mrb[8].mxu0  ;;  %v2138_v27 = vadd.f32 %v2137_v25, %v521_v5  ;;  %v2139_v29 = vpop.f32.mrb[9].mxu1  ;;  %v3400_v5 = vld [vmem:[#allocation10 + $0x2048] sm:$0xff]  ;;  %v17770_v10 = vcombine.high %v3015_v22, %v3027_v3  ;;  %v17769_v25 = vcombine.low %v3015_v22, %v3027_v3 }
 0x25d   :  { %v21082_v30 = vpop.f32.mrb[9].mxu0  ;;  %v2140_v31 = vadd.f32 %v2139_v29, %v525_v6  ;;  %v2141_v32 = vpop.f32.mrb[10].mxu1  ;;  %9459 = vmatpush1.bf16.msra.mxu1 %v17625_v7  ;;  %v3412_v6 = vld [vmem:[#allocation10 + $0x20a8] sm:$0xff]  ;;  %v17745_v7 = vcombine.low %v2991_v57, %v3003_v20  ;;  %v3135_v57 = vld [vmem:[#allocation10 + $0x1800] sm:$0xff] }
 0x25e   :  { %9631 = vmatpush1.bf16.msra.mxu0 %v18011_v9  ;;  %v2264_v35 = vpop.f32.mrb[10].mxu0  ;;  %v21085_v12 = vadd.f32 %v21052_v39, %v2138_v27  ;;  %v2142_v36 = vpop.f32.mrb[11].mxu1  ;;  %9460 = vmatprep.subr.bf16.mxu1 %v17650_v14  ;;  %v17698_v39 = vcombine.high %v2943_v41, %v2955_v18  ;;  %v18131_v9 = vcombine.low %v3376_v19, %v3388_v59  ;;  %v3051_v14 = vld [vmem:[#allocation10 + $0x1560] sm:$0xff]  ;;  %v2370_v19 = vld [vmem:[#allocation10 + $0x18] sm:$0xff] }
 0x25f   :  { %9632 = vmatprep.subr.bf16.mxu0 %v18036_v15  ;;  %v2265_v44 = vpop.f32.mrb[11].mxu0  ;;  %v21088_v45 = vadd.f32 %v21054_v42, %v2140_v31  ;;  %v18083_v42 = vcombine.low %v3328_v16, %v3340_v62  ;;  %v18156_v11 = vcombine.high %v3400_v5, %v3412_v6  ;;  %v3424_v15 = vld [vmem:[#allocation10 + $0x2108] sm:$0xff]  ;;  %v18155_v27 = vcombine.low %v3400_v5, %v3412_v6  ;;  %v3063_v32 = vld [vmem:[#allocation10 + $0x15c0] sm:$0xff]  ;;  %v2382_v59 = vld [vmem:[#allocation10 + $0x78] sm:$0xff] }
 0x260   :  { %v17794_v29 = vcombine.high %v3039_v13, %v3051_v14  ;;  %v18180_v31 = vcombine.high %v3424_v15, %v3436_v23  ;;  %v3460_v35 = vld [vmem:[#allocation10 + $0x2228] sm:$0xff]  ;;  %v17793_v36 = vcombine.low %v3039_v13, %v3051_v14  ;;  %v3087_v44 = vld [vmem:[#allocation10 + $0x1680] sm:$0xff]  ;;  %v17128_v3 = vcombine.high %v2370_v19, %v2382_v59 }
 0x261   :  { %9461 = vmatpush1.bf16.msra.mxu1 %v17649_v61  ;;  %v3075_v61 = vld [vmem:[#allocation10 + $0x1620] sm:$0xff]  ;;  %v3472_v16 = vld [vmem:[#allocation10 + $0x2288] sm:$0xff]  ;;  %v17127_v13 = vcombine.low %v2370_v19, %v2382_v59 }
 0x262   :  { %9633 = vmatpush1.bf16.msra.mxu0 %v18035_v34  ;;  %9462 = vmatprep.subr.bf16.mxu1 %v17674_v37  ;;  %v3448_v34 = vld [vmem:[#allocation10 + $0x21c8] sm:$0xff]  ;;  %v18179_v37 = vcombine.low %v3424_v15, %v3436_v23  ;;  %v3099_v18 = vld [vmem:[#allocation10 + $0x16e0] sm:$0xff] }
 0x263   :  { %9634 = vmatprep.subr.bf16.mxu0 %v18060_v40  ;;  %v17818_v40 = vcombine.high %v3063_v32, %v3075_v61  ;;  %v18204_v41 = vcombine.high %v3448_v34, %v3460_v35  ;;  %v3484_v62 = vld [vmem:[#allocation10 + $0x22e8] sm:$0xff]  ;;  %v3147_v20 = vld [vmem:[#allocation10 + $0x1860] sm:$0xff] }
 0x264   :  { %v17890_v22 = vcombine.high %v3135_v57, %v3147_v20  ;;  %v3159_v5 = vld [vmem:[#allocation10 + $0x18c0] sm:$0xff] }
 0x265   :  { %9463 = vmatpush1.bf16.msra.mxu1 %v17673_v47  ;;  %v17817_v47 = vcombine.low %v3063_v32, %v3075_v61  ;;  %v3171_v6 = vld [vmem:[#allocation10 + $0x1920] sm:$0xff] }
 0x266   :  { %9635 = vmatpush1.bf16.msra.mxu0 %v18059_v48  ;;  %9464 = vmatprep.subr.bf16.mxu1 %v17698_v39  ;;  %v18203_v48 = vcombine.low %v3448_v34, %v3460_v35  ;;  %v17842_v39 = vcombine.high %v3087_v44, %v3099_v18  ;;  %v17914_v14 = vcombine.high %v3159_v5, %v3171_v6  ;;  %v3183_v23 = vld [vmem:[#allocation10 + $0x1980] sm:$0xff] }
 0x267   :  { %9636 = vmatprep.subr.bf16.mxu0 %v18084_v63  ;;  %v18228_v63 = vcombine.high %v3472_v16, %v3484_v62  ;;  %v3207_v35 = vld [vmem:[#allocation10 + $0x1a40] sm:$0xff] }
 0x268   :  { %v3279_v59 = vld [vmem:[#allocation10 + $0x1c80] sm:$0xff] }
 0x269   :  { %9465 = vmatpush1.bf16.msra.mxu1 %v17697_v54  ;;  %v17841_v54 = vcombine.low %v3087_v44, %v3099_v18 }
 0x26a   :  { %9637 = vmatpush1.bf16.msra.mxu0 %v18083_v42  ;;  %9466 = vmatprep.subr.bf16.mxu1 %v17722_v55  ;;  %v18227_v42 = vcombine.low %v3472_v16, %v3484_v62  ;;  %v17866_v55 = vcombine.high %v3111_v21, %v3123_v51  ;;  %v3231_v62 = vld [vmem:[#allocation10 + $0x1b00] sm:$0xff] }
 0x26b   :  { %9638 = vmatprep.subr.bf16.mxu0 %v18108_v56  ;;  %v18252_v56 = vcombine.high %v3496_v52, %v3508_v53 }
 0x26d   :  { %9467 = vmatpush1.bf16.msra.mxu1 %v17721_v0  ;;  %v17865_v0 = vcombine.low %v3111_v21, %v3123_v51 }
 0x26e   :  { %9639 = vmatpush1.bf16.msra.mxu0 %v18107_v1  ;;  %9468 = vmatprep.subr.bf16.mxu1 %v17746_v24  ;;  %v18251_v1 = vcombine.low %v3496_v52, %v3508_v53  ;;  %v2353_v24 = vld [vmem:[#allocation5 + $0x20] sm:$0xff] }
 0x26f   :  { %9640 = vmatprep.subr.bf16.mxu0 %v18132_v2  ;;  %v2359_v2 = vld [vmem:[#allocation5 + $0x50] sm:$0xff]  ;;  %v3255_v53 = vld [vmem:[#allocation10 + $0x1bc0] sm:$0xff] }
 0x271   :  { %9469 = vmatpush1.bf16.msra.mxu1 %v17745_v7  ;;  %v2394_v7 = vld [vmem:[#allocation10 + $0xd8] sm:$0xff] }
 0x272   :  { %9641 = vmatpush1.bf16.msra.mxu0 %v18131_v9  ;;  %9470 = vmatprep.subr.bf16.mxu1 %v17770_v10  ;;  %v2406_v9 = vld [vmem:[#allocation10 + $0x138] sm:$0xff]  ;;  %v21090_v10 = vpack.c.bf16 %v2359_v2, %v2353_v24 }
 0x273   :  { %9642 = vmatprep.subr.bf16.mxu0 %v18156_v11  ;;  %v17889_v11 = vcombine.low %v3135_v57, %v3147_v20  ;;  %v17152_v15 = vcombine.high %v2394_v7, %v2406_v9  ;;  %v17151_v32 = vcombine.low %v2394_v7, %v2406_v9  ;;  %v2526_v24 = vld [vmem:[#allocation10 + $0x4f8] sm:$0xff]  ;;  %v3315_v9 = vld [vmem:[#allocation10 + $0x1da0] sm:$0xff] }
 0x275   :  { %9471 = vmatpush1.bf16.msra.mxu1 %v17769_v25  ;;  %v3195_v25 = vld [vmem:[#allocation10 + $0x19e0] sm:$0xff] }
 0x276   :  { %9643 = vmatpush1.bf16.msra.mxu0 %v18155_v27  ;;  %9472 = vmatprep.subr.bf16.mxu1 %v17794_v29  ;;  %v2418_v27 = vld [vmem:[#allocation10 + $0x198] sm:$0xff]  ;;  %v17938_v61 = vcombine.high %v3183_v23, %v3195_v25 }
 0x277   :  { %9644 = vmatprep.subr.bf16.mxu0 %v18180_v31  ;;  %v2430_v29 = vld [vmem:[#allocation10 + $0x1f8] sm:$0xff]  ;;  %v17913_v31 = vcombine.low %v3159_v5, %v3171_v6  ;;  %v3303_v6 = vld [vmem:[#allocation10 + $0x1d40] sm:$0xff] }
 0x278   :  { %v17176_v34 = vcombine.high %v2418_v27, %v2430_v29  ;;  %v17175_v44 = vcombine.low %v2418_v27, %v2430_v29 }
 0x279   :  { %9473 = vmatpush1.bf16.msra.mxu1 %v17793_v36  ;;  %v3219_v36 = vld [vmem:[#allocation10 + $0x1aa0] sm:$0xff] }
 0x27a   :  { %9645 = vmatpush1.bf16.msra.mxu0 %v18179_v37  ;;  %9474 = vmatprep.subr.bf16.mxu1 %v17818_v40  ;;  %v2442_v37 = vld [vmem:[#allocation10 + $0x258] sm:$0xff]  ;;  %v17962_v18 = vcombine.high %v3207_v35, %v3219_v36 }
 0x27b   :  { %9646 = vmatprep.subr.bf16.mxu0 %v18204_v41  ;;  %v2454_v40 = vld [vmem:[#allocation10 + $0x2b8] sm:$0xff]  ;;  %v17937_v41 = vcombine.low %v3183_v23, %v3195_v25 }
 0x27c   :  { %v17200_v16 = vcombine.high %v2442_v37, %v2454_v40  ;;  %v17199_v21 = vcombine.low %v2442_v37, %v2454_v40  ;;  %v3327_v37 = vld [vmem:[#allocation10 + $0x1e00] sm:$0xff] }
 0x27d   :  { %9475 = vmatpush1.bf16.msra.mxu1 %v17817_v47  ;;  %v3243_v47 = vld [vmem:[#allocation10 + $0x1b60] sm:$0xff] }
 0x27e   :  { %9647 = vmatpush1.bf16.msra.mxu0 %v18203_v48  ;;  %9476 = vmatprep.subr.bf16.mxu1 %v17842_v39  ;;  %v2466_v48 = vld [vmem:[#allocation10 + $0x318] sm:$0xff]  ;;  %v17986_v51 = vcombine.high %v3231_v62, %v3243_v47  ;;  %v3339_v40 = vld [vmem:[#allocation10 + $0x1e60] sm:$0xff] }
 0x27f   :  { %9648 = vmatprep.subr.bf16.mxu0 %v18228_v63  ;;  %v2478_v39 = vld [vmem:[#allocation10 + $0x378] sm:$0xff]  ;;  %v17961_v63 = vcombine.low %v3207_v35, %v3219_v36  ;;  %v18058_v35 = vcombine.high %v3303_v6, %v3315_v9 }
 0x280   :  { %v17224_v52 = vcombine.high %v2466_v48, %v2478_v39  ;;  %v17223_v57 = vcombine.low %v2466_v48, %v2478_v39  ;;  %v3363_v48 = vld [vmem:[#allocation10 + $0x1f20] sm:$0xff]  ;;  %v2586_v39 = vld [vmem:[#allocation10 + $0x6d8] sm:$0xff] }
 0x281   :  { %9477 = vmatpush1.bf16.msra.mxu1 %v17841_v54  ;;  %v3267_v54 = vld [vmem:[#allocation10 + $0x1c20] sm:$0xff] }
 0x282   :  { %9649 = vmatpush1.bf16.msra.mxu0 %v18227_v42  ;;  %9478 = vmatprep.subr.bf16.mxu1 %v17866_v55  ;;  %v2490_v42 = vld [vmem:[#allocation10 + $0x3d8] sm:$0xff]  ;;  %v18010_v20 = vcombine.high %v3255_v53, %v3267_v54  ;;  %v18009_v2 = vcombine.low %v3255_v53, %v3267_v54  ;;  %v3375_v54 = vld [vmem:[#allocation10 + $0x1f80] sm:$0xff] }
 0x283   :  { %9650 = vmatprep.subr.bf16.mxu0 %v18252_v56  ;;  %v2502_v55 = vld [vmem:[#allocation10 + $0x438] sm:$0xff]  ;;  %v17985_v56 = vcombine.low %v3231_v62, %v3243_v47  ;;  %v3351_v47 = vld [vmem:[#allocation10 + $0x1ec0] sm:$0xff] }
 0x284   :  { %v17248_v19 = vcombine.high %v2490_v42, %v2502_v55 }
 0x285   :  { %9479 = vmatpush1.bf16.msra.mxu1 %v17865_v0  ;;  %v3291_v0 = vld [vmem:[#allocation10 + $0x1ce0] sm:$0xff] }
 0x286   :  { %9651 = vmatpush1.bf16.msra.mxu0 %v18251_v1  ;;  %9491 = vmatprep.subr.bf16.mxu1 %v17890_v22  ;;  %v2514_v1 = vld [vmem:[#allocation10 + $0x498] sm:$0xff]  ;;  %v17247_v22 = vcombine.low %v2490_v42, %v2502_v55  ;;  %v3387_v42 = vld [vmem:[#allocation10 + $0x1fe0] sm:$0xff] }
 0x287   :  { %9792 = vmatprep.subr.bf16.mxu0 %v17128_v3  ;;  %v18034_v3 = vcombine.high %v3279_v59, %v3291_v0  ;;  %v17272_v5 = vcombine.high %v2514_v1, %v2526_v24  ;;  %v2610_v55 = vld [vmem:[#allocation10 + $0x798] sm:$0xff] }
 0x288   :  { %9481 = vmatmul.mubr.bf16.vlgmr.msra.gmra.mrb[20].mxu1 %v21062_v17 }
 0x289   :  { %9653 = vmatmul.mubr.bf16.vlgmr.msra.gmra.mrb[16].mxu0 %v21090_v10  ;;  %9492 = vmatpush1.bf16.msra.mxu1 %v17889_v11  ;;  %v2538_v11 = vld [vmem:[#allocation10 + $0x558] sm:$0xff] }
 0x28a   :  { %9793 = vmatpush1.bf16.msra.mxu0 %v17127_v13  ;;  %9493 = vmatprep.subr.bf16.mxu1 %v17914_v14  ;;  %v2550_v13 = vld [vmem:[#allocation10 + $0x5b8] sm:$0xff] }
 0x28b   :  { %9794 = vmatprep.subr.bf16.mxu0 %v17152_v15  ;;  %9523 = vmatprep.mubr.bf16.mxu1 %v21064_v33  ;;  %v17296_v36 = vcombine.high %v2538_v11, %v2550_v13 }
 0x28c   :  { %9824 = vmatprep.mubr.bf16.mxu0 %v21016_v49 }
 0x28d   :  { %9494 = vmatpush1.bf16.msra.mxu1 %v17913_v31  ;;  %v18033_v31 = vcombine.low %v3279_v59, %v3291_v0  ;;  %v3399_v0 = vld [vmem:[#allocation10 + $0x2040] sm:$0xff] }
 0x28e   :  { %9795 = vmatpush1.bf16.msra.mxu0 %v17151_v32  ;;  %9495 = vmatprep.subr.bf16.mxu1 %v17938_v61  ;;  %v17271_v32 = vcombine.low %v2514_v1, %v2526_v24  ;;  %v3411_v1 = vld [vmem:[#allocation10 + $0x20a0] sm:$0xff]  ;;  %v2634_v24 = vld [vmem:[#allocation10 + $0x858] sm:$0xff] }
 0x28f   :  { %9796 = vmatprep.subr.bf16.mxu0 %v17176_v34 }
 0x291   :  { %9496 = vmatpush1.bf16.msra.mxu1 %v17937_v41  ;;  %v2562_v41 = vld [vmem:[#allocation10 + $0x618] sm:$0xff] }
 0x292   :  { %9797 = vmatpush1.bf16.msra.mxu0 %v17175_v44  ;;  %9497 = vmatprep.subr.bf16.mxu1 %v17962_v18  ;;  %v2574_v44 = vld [vmem:[#allocation10 + $0x678] sm:$0xff]  ;;  %v17295_v18 = vcombine.low %v2538_v11, %v2550_v13 }
 0x293   :  { %9798 = vmatprep.subr.bf16.mxu0 %v17200_v16  ;;  %v18082_v16 = vcombine.high %v3327_v37, %v3339_v40  ;;  %v17320_v62 = vcombine.high %v2562_v41, %v2574_v44  ;;  %v2658_v11 = vld [vmem:[#allocation10 + $0x918] sm:$0xff] }
 0x294   :  { %v2670_v13 = vld [vmem:[#allocation10 + $0x978] sm:$0xff] }
 0x295   :  { %9498 = vmatpush1.bf16.msra.mxu1 %v17961_v63  ;;  %v2598_v63 = vld [vmem:[#allocation10 + $0x738] sm:$0xff] }
 0x296   :  { %9799 = vmatpush1.bf16.msra.mxu0 %v17199_v21  ;;  %9499 = vmatprep.subr.bf16.mxu1 %v17986_v51  ;;  %v18081_v21 = vcombine.low %v3327_v37, %v3339_v40  ;;  %v17319_v51 = vcombine.low %v2562_v41, %v2574_v44  ;;  %v17344_v53 = vcombine.high %v2586_v39, %v2598_v63  ;;  %v3471_v44 = vld [vmem:[#allocation10 + $0x2280] sm:$0xff] }
 0x297   :  { %9800 = vmatprep.subr.bf16.mxu0 %v17224_v52  ;;  %v18106_v52 = vcombine.high %v3351_v47, %v3363_v48 }
 0x299   :  { %9500 = vmatpush1.bf16.msra.mxu1 %v17985_v56  ;;  %v2622_v56 = vld [vmem:[#allocation10 + $0x7f8] sm:$0xff] }
 0x29a   :  { %9801 = vmatpush1.bf16.msra.mxu0 %v17223_v57  ;;  %9501 = vmatprep.subr.bf16.mxu1 %v18010_v20  ;;  %v18105_v57 = vcombine.low %v3351_v47, %v3363_v48  ;;  %v17343_v20 = vcombine.low %v2586_v39, %v2598_v63  ;;  %v17368_v59 = vcombine.high %v2610_v55, %v2622_v56  ;;  %v3495_v63 = vld [vmem:[#allocation10 + $0x2340] sm:$0xff] }
 0x29b   :  { %9802 = vmatprep.subr.bf16.mxu0 %v17248_v19  ;;  %v2219_v7 = vpop.f32.mrb[12].mxu1  ;;  %v18130_v19 = vcombine.high %v3375_v54, %v3387_v42 }
 0x29c   :  { %v21096_v14 = vpop.f32.mrb[12].mxu0  ;;  %v21099_v15 = vadd.f32 %v2219_v7, %v21085_v12  ;;  %v2221_v23 = vpop.f32.mrb[13].mxu1  ;;  %v3423_v7 = vld [vmem:[#allocation10 + $0x2100] sm:$0xff] }
 0x29d   :  { %v21101_v25 = vpop.f32.mrb[13].mxu0  ;;  %v21104_v27 = vadd.f32 %v2221_v23, %v21088_v45  ;;  %v2223_v29 = vpop.f32.mrb[14].mxu1  ;;  %9502 = vmatpush1.bf16.msra.mxu1 %v18009_v2  ;;  %v18057_v45 = vcombine.low %v3303_v6, %v3315_v9  ;;  %v2646_v2 = vld [vmem:[#allocation10 + $0x8b8] sm:$0xff]  ;;  %v3435_v9 = vld [vmem:[#allocation10 + $0x2160] sm:$0xff]  ;;  %v18153_v23 = vcombine.low %v3399_v0, %v3411_v1 }
 0x29e   :  { %21833 = vst [vmem:[#allocation32_spill] sm:$0xff] %v21099_v15  ;;  %9803 = vmatpush1.bf16.msra.mxu0 %v17247_v22  ;;  %v2346_v61 = vpop.f32.mrb[14].mxu0  ;;  %v2224_v34 = vpop.f32.mrb[15].mxu1  ;;  %9503 = vmatprep.subr.bf16.mxu1 %v18034_v3  ;;  %v18129_v22 = vcombine.low %v3375_v54, %v3387_v42  ;;  %v17367_v3 = vcombine.low %v2610_v55, %v2622_v56  ;;  %v2369_v56 = vld [vmem:[#allocation10 + $0x10] sm:$0xff]  ;;  %v2858_v15 = vld [vmem:[#allocation10 + $0xf58] sm:$0xff] }
 0x29f   :  { %21834 = vst [vmem:[#allocation33_spill] sm:$0xff] %v21104_v27  ;;  %9804 = vmatprep.subr.bf16.mxu0 %v17272_v5  ;;  %v2347_v12 = vpop.f32.mrb[15].mxu0  ;;  %v18154_v5 = vcombine.high %v3399_v0, %v3411_v1  ;;  %v17392_v6 = vcombine.high %v2634_v24, %v2646_v2  ;;  %v17391_v29 = vcombine.low %v2634_v24, %v2646_v2  ;;  %v3447_v61 = vld [vmem:[#allocation10 + $0x21c0] sm:$0xff]  ;;  %v2393_v2 = vld [vmem:[#allocation10 + $0xd0] sm:$0xff] }
 0x2a0   :  { %v3459_v34 = vld [vmem:[#allocation10 + $0x2220] sm:$0xff]  ;;  %v18177_v37 = vcombine.low %v3423_v7, %v3435_v9  ;;  %v17415_v12 = vcombine.low %v2658_v11, %v2670_v13 }
 0x2a1   :  { %9504 = vmatpush1.bf16.msra.mxu1 %v18033_v31  ;;  %v18178_v31 = vcombine.high %v3423_v7, %v3435_v9  ;;  %v18202_v40 = vcombine.high %v3447_v61, %v3459_v34 }
 0x2a2   :  { %9805 = vmatpush1.bf16.msra.mxu0 %v17271_v32  ;;  %9505 = vmatprep.subr.bf16.mxu1 %v18058_v35  ;;  %v17416_v32 = vcombine.high %v2658_v11, %v2670_v13  ;;  %v2682_v35 = vld [vmem:[#allocation10 + $0x9d8] sm:$0xff]  ;;  %v2417_v13 = vld [vmem:[#allocation10 + $0x190] sm:$0xff] }
 0x2a3   :  { %9806 = vmatprep.subr.bf16.mxu0 %v17296_v36  ;;  %v2694_v36 = vld [vmem:[#allocation10 + $0xa38] sm:$0xff] }
 0x2a4   :  { %v17440_v41 = vcombine.high %v2682_v35, %v2694_v36  ;;  %v17439_v47 = vcombine.low %v2682_v35, %v2694_v36  ;;  %v2441_v36 = vld [vmem:[#allocation10 + $0x250] sm:$0xff] }
 0x2a5   :  { %9506 = vmatpush1.bf16.msra.mxu1 %v18057_v45  ;;  %v3483_v45 = vld [vmem:[#allocation10 + $0x22e0] sm:$0xff] }
 0x2a6   :  { %9807 = vmatpush1.bf16.msra.mxu0 %v17295_v18  ;;  %9507 = vmatprep.subr.bf16.mxu1 %v18082_v16  ;;  %v2706_v18 = vld [vmem:[#allocation10 + $0xa98] sm:$0xff]  ;;  %v18226_v48 = vcombine.high %v3471_v44, %v3483_v45 }
 0x2a7   :  { %9808 = vmatprep.subr.bf16.mxu0 %v17320_v62  ;;  %v2718_v16 = vld [vmem:[#allocation10 + $0xaf8] sm:$0xff]  ;;  %v18201_v62 = vcombine.low %v3447_v61, %v3459_v34 }
 0x2a8   :  { %v17464_v39 = vcombine.high %v2706_v18, %v2718_v16  ;;  %v17463_v54 = vcombine.low %v2706_v18, %v2718_v16  ;;  %v2465_v16 = vld [vmem:[#allocation10 + $0x310] sm:$0xff] }
 0x2a9   :  { %9508 = vmatpush1.bf16.msra.mxu1 %v18081_v21  ;;  %v3507_v21 = vld [vmem:[#allocation10 + $0x23a0] sm:$0xff] }
 0x2aa   :  { %9809 = vmatpush1.bf16.msra.mxu0 %v17319_v51  ;;  %9509 = vmatprep.subr.bf16.mxu1 %v18106_v52  ;;  %v2730_v51 = vld [vmem:[#allocation10 + $0xb58] sm:$0xff]  ;;  %v18250_v42 = vcombine.high %v3495_v63, %v3507_v21 }
 0x2ab   :  { %9810 = vmatprep.subr.bf16.mxu0 %v17344_v53  ;;  %v2742_v52 = vld [vmem:[#allocation10 + $0xbb8] sm:$0xff]  ;;  %v18225_v53 = vcombine.low %v3471_v44, %v3483_v45 }
 0x2ac   :  { %v17488_v55 = vcombine.high %v2730_v51, %v2742_v52  ;;  %v17487_v0 = vcombine.low %v2730_v51, %v2742_v52  ;;  %v21114_v51 = vsub.s32 5, %v20981_v43 }
 0x2ad   :  { %9510 = vmatpush1.bf16.msra.mxu1 %v18105_v57  ;;  %v2381_v57 = vld [vmem:[#allocation10 + $0x70] sm:$0xff] }
 0x2ae   :  { %9811 = vmatpush1.bf16.msra.mxu0 %v17343_v20  ;;  %9511 = vmatprep.subr.bf16.mxu1 %v18130_v19  ;;  %v2754_v20 = vld [vmem:[#allocation10 + $0xc18] sm:$0xff]  ;;  %v17126_v1 = vcombine.high %v2369_v56, %v2381_v57  ;;  %21836 = vst [vmem:[#allocation35_spill] sm:$0xff] %v21114_v51 }
 0x2af   :  { %9812 = vmatprep.subr.bf16.mxu0 %v17368_v59  ;;  %v2766_v19 = vld [vmem:[#allocation10 + $0xc78] sm:$0xff]  ;;  %v18249_v59 = vcombine.low %v3495_v63, %v3507_v21 }
 0x2b0   :  { %v17512_v24 = vcombine.high %v2754_v20, %v2766_v19  ;;  %v17511_v7 = vcombine.low %v2754_v20, %v2766_v19 }
 0x2b1   :  { %9512 = vmatpush1.bf16.msra.mxu1 %v18129_v22  ;;  %v2405_v22 = vld [vmem:[#allocation10 + $0x130] sm:$0xff] }
 0x2b2   :  { %9813 = vmatpush1.bf16.msra.mxu0 %v17367_v3  ;;  %9513 = vmatprep.subr.bf16.mxu1 %v18154_v5  ;;  %v2778_v3 = vld [vmem:[#allocation10 + $0xcd8] sm:$0xff]  ;;  %v17150_v9 = vcombine.high %v2393_v2, %v2405_v22 }
 0x2b3   :  { %9814 = vmatprep.subr.bf16.mxu0 %v17392_v6  ;;  %v2790_v5 = vld [vmem:[#allocation10 + $0xd38] sm:$0xff]  ;;  %v17125_v6 = vcombine.low %v2369_v56, %v2381_v57 }
 0x2b4   :  { %v17536_v11 = vcombine.high %v2778_v3, %v2790_v5  ;;  %v17535_v61 = vcombine.low %v2778_v3, %v2790_v5  ;;  %v2886_v56 = vld [vmem:[#allocation10 + $0x1038] sm:$0xff] }
 0x2b5   :  { %9514 = vmatpush1.bf16.msra.mxu1 %v18153_v23  ;;  %v2429_v23 = vld [vmem:[#allocation10 + $0x1f0] sm:$0xff]  ;;  %v20465_v57 = vld [vmem:[#allocation8] sm:$0x3f] }
 0x2b6   :  { %9815 = vmatpush1.bf16.msra.mxu0 %v17391_v29  ;;  %9515 = vmatprep.subr.bf16.mxu1 %v18178_v31  ;;  %v2802_v29 = vld [vmem:[#allocation10 + $0xd98] sm:$0xff]  ;;  %v17174_v34 = vcombine.high %v2417_v13, %v2429_v23 }
 0x2b7   :  { %9816 = vmatprep.subr.bf16.mxu0 %v17416_v32  ;;  %v2814_v31 = vld [vmem:[#allocation10 + $0xdf8] sm:$0xff]  ;;  %v17149_v32 = vcombine.low %v2393_v2, %v2405_v22  ;;  %v2513_v2 = vld [vmem:[#allocation10 + $0x490] sm:$0xff] }
 0x2b8   :  { %v17560_v35 = vcombine.high %v2802_v29, %v2814_v31  ;;  %v17559_v44 = vcombine.low %v2802_v29, %v2814_v31  ;;  %v2525_v22 = vld [vmem:[#allocation10 + $0x4f0] sm:$0xff]  ;;  %v2898_v3 = vld [vmem:[#allocation10 + $0x1098] sm:$0xff] }
 0x2b9   :  { %9516 = vmatpush1.bf16.msra.mxu1 %v18177_v37  ;;  %v2453_v37 = vld [vmem:[#allocation10 + $0x2b0] sm:$0xff]  ;;  %v2910_v5 = vld [vmem:[#allocation10 + $0x10f8] sm:$0xff] }
 0x2ba   :  { %9817 = vmatpush1.bf16.msra.mxu0 %v17415_v12  ;;  %9517 = vmatprep.subr.bf16.mxu1 %v18202_v40  ;;  %v2826_v12 = vld [vmem:[#allocation10 + $0xe58] sm:$0xff]  ;;  %v17198_v45 = vcombine.high %v2441_v36, %v2453_v37  ;;  %v17197_v63 = vcombine.low %v2441_v36, %v2453_v37  ;;  %v2537_v29 = vld [vmem:[#allocation10 + $0x550] sm:$0xff] }
 0x2bb   :  { %9818 = vmatprep.subr.bf16.mxu0 %v17440_v41  ;;  %v2838_v40 = vld [vmem:[#allocation10 + $0xeb8] sm:$0xff]  ;;  %v17173_v41 = vcombine.low %v2417_v13, %v2429_v23  ;;  %v17270_v13 = vcombine.high %v2513_v2, %v2525_v22  ;;  %v17656_v23 = vcombine.high %v2898_v3, %v2910_v5 }
 0x2bc   :  { %v17584_v18 = vcombine.high %v2826_v12, %v2838_v40  ;;  %v17583_v21 = vcombine.low %v2826_v12, %v2838_v40  ;;  %v17655_v40 = vcombine.low %v2898_v3, %v2910_v5  ;;  %v2633_v5 = vld [vmem:[#allocation10 + $0x850] sm:$0xff] }
 0x2bd   :  { %9518 = vmatpush1.bf16.msra.mxu1 %v18201_v62  ;;  %v2477_v62 = vld [vmem:[#allocation10 + $0x370] sm:$0xff] }
 0x2be   :  { %9819 = vmatpush1.bf16.msra.mxu0 %v17439_v47  ;;  %9519 = vmatprep.subr.bf16.mxu1 %v18226_v48  ;;  %v2850_v47 = vld [vmem:[#allocation10 + $0xf18] sm:$0xff]  ;;  %v17222_v52 = vcombine.high %v2465_v16, %v2477_v62  ;;  %v17221_v19 = vcombine.low %v2465_v16, %v2477_v62  ;;  %v2573_v62 = vld [vmem:[#allocation10 + $0x670] sm:$0xff] }
 0x2bf   :  { %9820 = vmatprep.subr.bf16.mxu0 %v17464_v39  ;;  %v2862_v48 = vld [vmem:[#allocation10 + $0xf78] sm:$0xff]  ;;  %v21111_v39 = vsub.s32 4, %v20981_v43 }
 0x2c1   :  { %9520 = vmatpush1.bf16.msra.mxu1 %v18225_v53  ;;  %21835 = vst [vmem:[#allocation34_spill] sm:$0xff] %v21111_v39  ;;  %v17608_v53 = vcombine.high %v2850_v47, %v2862_v48  ;;  %v529_v20 = vrot.slane %v20465_v57, %v21111_v39 }
 0x2c2   :  { %9821 = vmatpush1.bf16.msra.mxu0 %v17463_v54  ;;  %9521 = vmatprep.subr.bf16.mxu1 %v18250_v42  ;;  %v2489_v54 = vld [vmem:[#allocation10 + $0x3d0] sm:$0xff] }
 0x2c3   :  { %9822 = vmatprep.subr.bf16.mxu0 %v17488_v55  ;;  %v2501_v42 = vld [vmem:[#allocation10 + $0x430] sm:$0xff]  ;;  %v2874_v55 = vld [vmem:[#allocation10 + $0xfd8] sm:$0xff] }
 0x2c5   :  { %9522 = vmatpush1.bf16.msra.mxu1 %v18249_v59  ;;  %v17607_v59 = vcombine.low %v2850_v47, %v2862_v48  ;;  %v2946_v47 = vld [vmem:[#allocation10 + $0x1218] sm:$0xff] }
 0x2c6   :  { %9823 = vmatpush1.bf16.msra.mxu0 %v17487_v0  ;;  %9663 = vmatprep.subr.bf16.mxu1 %v17126_v1  ;;  %v533_v0 = vrot.slane %v20465_v57, %v21114_v51  ;;  %v17246_v1 = vcombine.high %v2489_v54, %v2501_v42  ;;  %v2958_v48 = vld [vmem:[#allocation10 + $0x1278] sm:$0xff] }
 0x2c7   :  { %9835 = vmatprep.subr.bf16.mxu0 %v17512_v24  ;;  %v17632_v24 = vcombine.high %v2874_v55, %v2886_v56 }
 0x2c8   :  { %9524 = vmatmul.mubr.bf16.vlgmr.msra.gmra.mrb[20].mxu1 %v21090_v10 }
 0x2c9   :  { %9825 = vmatmul.mubr.bf16.vlgmr.msra.gmra.mrb[20].mxu0 %v21030_v38  ;;  %9664 = vmatpush1.bf16.msra.mxu1 %v17125_v6  ;;  %v2261_v6 = vadd.f32 %v21080_v26, %v529_v20  ;;  %v17269_v26 = vcombine.low %v2513_v2, %v2525_v22 }
 0x2ca   :  { %9836 = vmatpush1.bf16.msra.mxu0 %v17511_v7  ;;  %9665 = vmatprep.subr.bf16.mxu1 %v17150_v9  ;;  %v2263_v7 = vadd.f32 %v21082_v30, %v533_v0  ;;  %v17245_v9 = vcombine.low %v2489_v54, %v2501_v42  ;;  %v2597_v54 = vld [vmem:[#allocation10 + $0x730] sm:$0xff]  ;;  %v2970_v42 = vld [vmem:[#allocation10 + $0x12d8] sm:$0xff] }
 0x2cb   :  { %9837 = vmatprep.subr.bf16.mxu0 %v17536_v11  ;;  %9695 = vmatprep.mubr.bf16.mxu1 %v21016_v49  ;;  %v17631_v11 = vcombine.low %v2874_v55, %v2886_v56  ;;  %v2982_v55 = vld [vmem:[#allocation10 + $0x1338] sm:$0xff] }
 0x2cc   :  { %9867 = vmatprep.mubr.bf16.mxu0 %v21032_v46  ;;  %v17728_v20 = vcombine.high %v2970_v42, %v2982_v55  ;;  %v2994_v0 = vld [vmem:[#allocation10 + $0x1398] sm:$0xff]  ;;  %v17727_v2 = vcombine.low %v2970_v42, %v2982_v55  ;;  %v2729_v55 = vld [vmem:[#allocation10 + $0xb50] sm:$0xff] }
 0x2cd   :  { %9666 = vmatpush1.bf16.msra.mxu1 %v17149_v32  ;;  %v2549_v32 = vld [vmem:[#allocation10 + $0x5b0] sm:$0xff] }
 0x2ce   :  { %9838 = vmatpush1.bf16.msra.mxu0 %v17535_v61  ;;  %9667 = vmatprep.subr.bf16.mxu1 %v17174_v34  ;;  %v2922_v61 = vld [vmem:[#allocation10 + $0x1158] sm:$0xff] }
 0x2cf   :  { %9839 = vmatprep.subr.bf16.mxu0 %v17560_v35  ;;  %v2934_v34 = vld [vmem:[#allocation10 + $0x11b8] sm:$0xff] }
 0x2d1   :  { %9668 = vmatpush1.bf16.msra.mxu1 %v17173_v41 }
 0x2d2   :  { %9840 = vmatpush1.bf16.msra.mxu0 %v17559_v44  ;;  %9669 = vmatprep.subr.bf16.mxu1 %v17198_v45  ;;  %v17294_v44 = vcombine.high %v2537_v29, %v2549_v32  ;;  %v17680_v45 = vcombine.high %v2922_v61, %v2934_v34 }
 0x2d3   :  { %9841 = vmatprep.subr.bf16.mxu0 %v17584_v18  ;;  %v2561_v18 = vld [vmem:[#allocation10 + $0x610] sm:$0xff] }
 0x2d4   :  { %v17317_v56 = vcombine.low %v2561_v18, %v2573_v62 }
 0x2d5   :  { %9670 = vmatpush1.bf16.msra.mxu1 %v17197_v63  ;;  %v17293_v63 = vcombine.low %v2537_v29, %v2549_v32  ;;  %v2669_v32 = vld [vmem:[#allocation10 + $0x970] sm:$0xff] }
 0x2d6   :  { %9842 = vmatpush1.bf16.msra.mxu0 %v17583_v21  ;;  %9671 = vmatprep.subr.bf16.mxu1 %v17222_v52  ;;  %v17679_v21 = vcombine.low %v2922_v61, %v2934_v34  ;;  %v17704_v52 = vcombine.high %v2946_v47, %v2958_v48  ;;  %v3042_v61 = vld [vmem:[#allocation10 + $0x1518] sm:$0xff] }
 0x2d7   :  { %9843 = vmatprep.subr.bf16.mxu0 %v17608_v53  ;;  %v2585_v53 = vld [vmem:[#allocation10 + $0x6d0] sm:$0xff]  ;;  %v3054_v34 = vld [vmem:[#allocation10 + $0x1578] sm:$0xff] }
 0x2d8   :  { %v17342_v57 = vcombine.high %v2585_v53, %v2597_v54 }
 0x2d9   :  { %9672 = vmatpush1.bf16.msra.mxu1 %v17221_v19  ;;  %v2609_v19 = vld [vmem:[#allocation10 + $0x790] sm:$0xff] }
 0x2da   :  { %9844 = vmatpush1.bf16.msra.mxu0 %v17607_v59  ;;  %9673 = vmatprep.subr.bf16.mxu1 %v17246_v1  ;;  %v2621_v59 = vld [vmem:[#allocation10 + $0x7f0] sm:$0xff]  ;;  %v3006_v1 = vld [vmem:[#allocation10 + $0x13f8] sm:$0xff] }
 0x2db   :  { %9845 = vmatprep.subr.bf16.mxu0 %v17632_v24  ;;  %v2301_v31 = vpop.f32.mrb[16].mxu1  ;;  %v17341_v24 = vcombine.low %v2585_v53, %v2597_v54  ;;  %v17366_v22 = vcombine.high %v2609_v19, %v2621_v59  ;;  %v17752_v3 = vcombine.high %v2994_v0, %v3006_v1 }
 0x2dc   :  { %v2302_v35 = vadd.f32 %v2301_v31, %v2261_v6  ;;  %v2303_v36 = vpop.f32.mrb[17].mxu1  ;;  %v2645_v6 = vld [vmem:[#allocation10 + $0x8b0] sm:$0xff] }
 0x2dd   :  { %v2304_v37 = vadd.f32 %v2303_v36, %v2263_v7  ;;  %v2305_v12 = vpop.f32.mrb[18].mxu1  ;;  %9674 = vmatpush1.bf16.msra.mxu1 %v17245_v9  ;;  %v3018_v7 = vld [vmem:[#allocation10 + $0x1458] sm:$0xff]  ;;  %v2657_v31 = vld [vmem:[#allocation10 + $0x910] sm:$0xff] }
 0x2de   :  { %9846 = vmatpush1.bf16.msra.mxu0 %v17631_v11  ;;  %v21121_v30 = vadd.f32 %v21096_v14, %v2302_v35  ;;  %v2306_v41 = vpop.f32.mrb[19].mxu1  ;;  %9675 = vmatprep.subr.bf16.mxu1 %v17270_v13  ;;  %v17318_v14 = vcombine.high %v2561_v18, %v2573_v62  ;;  %v3030_v9 = vld [vmem:[#allocation10 + $0x14b8] sm:$0xff]  ;;  %v17365_v11 = vcombine.low %v2609_v19, %v2621_v59 }
 0x2df   :  { %9847 = vmatprep.subr.bf16.mxu0 %v17656_v23  ;;  %v21124_v16 = vadd.f32 %v21101_v25, %v2304_v37  ;;  %v17703_v25 = vcombine.low %v2946_v47, %v2958_v48  ;;  %v17751_v13 = vcombine.low %v2994_v0, %v3006_v1  ;;  %v17390_v23 = vcombine.high %v2633_v5, %v2645_v6  ;;  %v3066_v41 = vld [vmem:[#allocation10 + $0x15d8] sm:$0xff]  ;;  %v2705_v48 = vld [vmem:[#allocation10 + $0xa90] sm:$0xff] }
 0x2e0   :  { %21837 = vst [vmem:[#allocation36_spill] sm:$0xff] %v21121_v30  ;;  %v17776_v29 = vcombine.high %v3018_v7, %v3030_v9  ;;  %v17389_v35 = vcombine.low %v2633_v5, %v2645_v6  ;;  %v17775_v36 = vcombine.low %v3018_v7, %v3030_v9  ;;  %v17414_v37 = vcombine.high %v2657_v31, %v2669_v32  ;;  %v2753_v1 = vld [vmem:[#allocation10 + $0xc10] sm:$0xff] }
 0x2e1   :  { %21838 = vst [vmem:[#allocation37_spill] sm:$0xff] %v21124_v16  ;;  %9676 = vmatpush1.bf16.msra.mxu1 %v17269_v26  ;;  %v17800_v12 = vcombine.high %v3042_v61, %v3054_v34  ;;  %v2681_v26 = vld [vmem:[#allocation10 + $0x9d0] sm:$0xff]  ;;  %v17799_v18 = vcombine.low %v3042_v61, %v3054_v34 }
 0x2e2   :  { %9848 = vmatpush1.bf16.msra.mxu0 %v17655_v40  ;;  %9677 = vmatprep.subr.bf16.mxu1 %v17294_v44  ;;  %v2693_v40 = vld [vmem:[#allocation10 + $0xa30] sm:$0xff]  ;;  %v3078_v44 = vld [vmem:[#allocation10 + $0x1638] sm:$0xff] }
 0x2e3   :  { %9849 = vmatprep.subr.bf16.mxu0 %v17680_v45  ;;  %v17413_v45 = vcombine.low %v2657_v31, %v2669_v32  ;;  %v17438_v62 = vcombine.high %v2681_v26, %v2693_v40  ;;  %v17824_v47 = vcombine.high %v3066_v41, %v3078_v44  ;;  %v17823_v53 = vcombine.low %v3066_v41, %v3078_v44  ;;  %v2777_v9 = vld [vmem:[#allocation10 + $0xcd0] sm:$0xff] }
 0x2e4   :  { %v2801_v34 = vld [vmem:[#allocation10 + $0xd90] sm:$0xff] }
 0x2e5   :  { %9678 = vmatpush1.bf16.msra.mxu1 %v17293_v63  ;;  %v2717_v63 = vld [vmem:[#allocation10 + $0xaf0] sm:$0xff] }
 0x2e6   :  { %9850 = vmatpush1.bf16.msra.mxu0 %v17679_v21  ;;  %9679 = vmatprep.subr.bf16.mxu1 %v17318_v14  ;;  %v3090_v21 = vld [vmem:[#allocation10 + $0x1698] sm:$0xff]  ;;  %v17462_v54 = vcombine.high %v2705_v48, %v2717_v63  ;;  %v2825_v44 = vld [vmem:[#allocation10 + $0xe50] sm:$0xff] }
 0x2e7   :  { %9851 = vmatprep.subr.bf16.mxu0 %v17704_v52  ;;  %v3102_v14 = vld [vmem:[#allocation10 + $0x16f8] sm:$0xff]  ;;  %v17437_v52 = vcombine.low %v2681_v26, %v2693_v40 }
 0x2e8   :  { %v17848_v42 = vcombine.high %v3090_v21, %v3102_v14  ;;  %v17847_v19 = vcombine.low %v3090_v21, %v3102_v14  ;;  %v2849_v14 = vld [vmem:[#allocation10 + $0xf10] sm:$0xff] }
 0x2e9   :  { %9680 = vmatpush1.bf16.msra.mxu1 %v17317_v56  ;;  %v2741_v56 = vld [vmem:[#allocation10 + $0xbb0] sm:$0xff] }
 0x2ea   :  { %9852 = vmatpush1.bf16.msra.mxu0 %v17703_v25  ;;  %9681 = vmatprep.subr.bf16.mxu1 %v17342_v57  ;;  %v3114_v25 = vld [vmem:[#allocation10 + $0x1758] sm:$0xff]  ;;  %v17486_v59 = vcombine.high %v2729_v55, %v2741_v56 }
 0x2eb   :  { %9853 = vmatprep.subr.bf16.mxu0 %v17728_v20  ;;  %v3126_v57 = vld [vmem:[#allocation10 + $0x17b8] sm:$0xff]  ;;  %v17461_v20 = vcombine.low %v2705_v48, %v2717_v63 }
 0x2ec   :  { %v17872_v0 = vcombine.high %v3114_v25, %v3126_v57  ;;  %v17871_v5 = vcombine.low %v3114_v25, %v3126_v57  ;;  %v2873_v57 = vld [vmem:[#allocation10 + $0xfd0] sm:$0xff] }
 0x2ed   :  { %9682 = vmatpush1.bf16.msra.mxu1 %v17341_v24  ;;  %v2765_v24 = vld [vmem:[#allocation10 + $0xc70] sm:$0xff] }
 0x2ee   :  { %9854 = vmatpush1.bf16.msra.mxu0 %v17727_v2  ;;  %9683 = vmatprep.subr.bf16.mxu1 %v17366_v22  ;;  %v3138_v2 = vld [vmem:[#allocation10 + $0x1818] sm:$0xff]  ;;  %v17510_v6 = vcombine.high %v2753_v1, %v2765_v24 }
 0x2ef   :  { %9855 = vmatprep.subr.bf16.mxu0 %v17752_v3  ;;  %v3150_v22 = vld [vmem:[#allocation10 + $0x1878] sm:$0xff]  ;;  %v17485_v3 = vcombine.low %v2729_v55, %v2741_v56 }
 0x2f0   :  { %v17896_v7 = vcombine.high %v3138_v2, %v3150_v22  ;;  %v17895_v31 = vcombine.low %v3138_v2, %v3150_v22  ;;  %v2897_v22 = vld [vmem:[#allocation10 + $0x1090] sm:$0xff] }
 0x2f1   :  { %9684 = vmatpush1.bf16.msra.mxu1 %v17365_v11  ;;  %v2789_v11 = vld [vmem:[#allocation10 + $0xd30] sm:$0xff] }
 0x2f2   :  { %9856 = vmatpush1.bf16.msra.mxu0 %v17751_v13  ;;  %9685 = vmatprep.subr.bf16.mxu1 %v17390_v23  ;;  %v3162_v13 = vld [vmem:[#allocation10 + $0x18d8] sm:$0xff]  ;;  %v17534_v32 = vcombine.high %v2777_v9, %v2789_v11 }
 0x2f3   :  { %9857 = vmatprep.subr.bf16.mxu0 %v17776_v29  ;;  %v3174_v23 = vld [vmem:[#allocation10 + $0x1938] sm:$0xff]  ;;  %v17509_v29 = vcombine.low %v2753_v1, %v2765_v24 }
 0x2f4   :  { %v17920_v61 = vcombine.high %v3162_v13, %v3174_v23  ;;  %v17919_v26 = vcombine.low %v3162_v13, %v3174_v23  ;;  %v2921_v23 = vld [vmem:[#allocation10 + $0x1150] sm:$0xff] }
 0x2f5   :  { %9686 = vmatpush1.bf16.msra.mxu1 %v17389_v35  ;;  %v2813_v35 = vld [vmem:[#allocation10 + $0xdf0] sm:$0xff] }
 0x2f6   :  { %9858 = vmatpush1.bf16.msra.mxu0 %v17775_v36  ;;  %9687 = vmatprep.subr.bf16.mxu1 %v17414_v37  ;;  %v3186_v36 = vld [vmem:[#allocation10 + $0x1998] sm:$0xff]  ;;  %v17558_v40 = vcombine.high %v2801_v34, %v2813_v35 }
 0x2f7   :  { %9859 = vmatprep.subr.bf16.mxu0 %v17800_v12  ;;  %v3198_v37 = vld [vmem:[#allocation10 + $0x19f8] sm:$0xff]  ;;  %v17533_v12 = vcombine.low %v2777_v9, %v2789_v11 }
 0x2f8   :  { %v17944_v41 = vcombine.high %v3186_v36, %v3198_v37  ;;  %v17943_v48 = vcombine.low %v3186_v36, %v3198_v37  ;;  %v2945_v37 = vld [vmem:[#allocation10 + $0x1210] sm:$0xff] }
 0x2f9   :  { %9688 = vmatpush1.bf16.msra.mxu1 %v17413_v45  ;;  %v2837_v45 = vld [vmem:[#allocation10 + $0xeb0] sm:$0xff] }
 0x2fa   :  { %9860 = vmatpush1.bf16.msra.mxu0 %v17799_v18  ;;  %9689 = vmatprep.subr.bf16.mxu1 %v17438_v62  ;;  %v3210_v18 = vld [vmem:[#allocation10 + $0x1a58] sm:$0xff]  ;;  %v17582_v63 = vcombine.high %v2825_v44, %v2837_v45 }
 0x2fb   :  { %9861 = vmatprep.subr.bf16.mxu0 %v17824_v47  ;;  %v3222_v62 = vld [vmem:[#allocation10 + $0x1ab8] sm:$0xff]  ;;  %v17557_v47 = vcombine.low %v2801_v34, %v2813_v35 }
 0x2fc   :  { %v17968_v21 = vcombine.high %v3210_v18, %v3222_v62  ;;  %v17967_v55 = vcombine.low %v3210_v18, %v3222_v62  ;;  %v2969_v62 = vld [vmem:[#allocation10 + $0x12d0] sm:$0xff] }
 0x2fd   :  { %9690 = vmatpush1.bf16.msra.mxu1 %v17437_v52  ;;  %v2861_v52 = vld [vmem:[#allocation10 + $0xf70] sm:$0xff] }
 0x2fe   :  { %9862 = vmatpush1.bf16.msra.mxu0 %v17823_v53  ;;  %9691 = vmatprep.subr.bf16.mxu1 %v17462_v54  ;;  %v3234_v53 = vld [vmem:[#allocation10 + $0x1b18] sm:$0xff]  ;;  %v17606_v56 = vcombine.high %v2849_v14, %v2861_v52 }
 0x2ff   :  { %9863 = vmatprep.subr.bf16.mxu0 %v17848_v42  ;;  %v3246_v54 = vld [vmem:[#allocation10 + $0x1b78] sm:$0xff]  ;;  %v17581_v42 = vcombine.low %v2825_v44, %v2837_v45 }
 0x300   :  { %v17992_v25 = vcombine.high %v3234_v53, %v3246_v54  ;;  %v17991_v1 = vcombine.low %v3234_v53, %v3246_v54  ;;  %v2993_v54 = vld [vmem:[#allocation10 + $0x1390] sm:$0xff] }
 0x301   :  { %9692 = vmatpush1.bf16.msra.mxu1 %v17461_v20  ;;  %v2885_v20 = vld [vmem:[#allocation10 + $0x1030] sm:$0xff] }
 0x302   :  { %9864 = vmatpush1.bf16.msra.mxu0 %v17847_v19  ;;  %9693 = vmatprep.subr.bf16.mxu1 %v17486_v59  ;;  %v3258_v19 = vld [vmem:[#allocation10 + $0x1bd8] sm:$0xff]  ;;  %v17630_v24 = vcombine.high %v2873_v57, %v2885_v20 }
 0x303   :  { %9865 = vmatprep.subr.bf16.mxu0 %v17872_v0  ;;  %v3270_v59 = vld [vmem:[#allocation10 + $0x1c38] sm:$0xff]  ;;  %v17605_v0 = vcombine.low %v2849_v14, %v2861_v52 }
 0x304   :  { %v18016_v2 = vcombine.high %v3258_v19, %v3270_v59  ;;  %v18015_v9 = vcombine.low %v3258_v19, %v3270_v59  ;;  %v3017_v59 = vld [vmem:[#allocation10 + $0x1450] sm:$0xff] }
 0x305   :  { %9694 = vmatpush1.bf16.msra.mxu1 %v17485_v3  ;;  %v2909_v3 = vld [vmem:[#allocation10 + $0x10f0] sm:$0xff] }
 0x306   :  { %9866 = vmatpush1.bf16.msra.mxu0 %v17871_v5  ;;  %9706 = vmatprep.subr.bf16.mxu1 %v17510_v6  ;;  %v3282_v5 = vld [vmem:[#allocation10 + $0x1c98] sm:$0xff]  ;;  %v17654_v11 = vcombine.high %v2897_v22, %v2909_v3 }
 0x307   :  { %9878 = vmatprep.subr.bf16.mxu0 %v17896_v7  ;;  %v3294_v6 = vld [vmem:[#allocation10 + $0x1cf8] sm:$0xff]  ;;  %v17629_v7 = vcombine.low %v2873_v57, %v2885_v20 }
 0x308   :  { %9696 = vmatmul.mubr.bf16.vlgmr.msra.gmra.mrb[24].mxu1 %v21030_v38  ;;  %v18040_v13 = vcombine.high %v3282_v5, %v3294_v6  ;;  %v18039_v34 = vcombine.low %v3282_v5, %v3294_v6  ;;  %v3041_v6 = vld [vmem:[#allocation10 + $0x1510] sm:$0xff] }
 0x309   :  { %9868 = vmatmul.mubr.bf16.vlgmr.msra.gmra.mrb[20].mxu0 %v21062_v17  ;;  %9707 = vmatpush1.bf16.msra.mxu1 %v17509_v29  ;;  %v2933_v29 = vld [vmem:[#allocation10 + $0x11b0] sm:$0xff] }
 0x30a   :  { %9879 = vmatpush1.bf16.msra.mxu0 %v17895_v31  ;;  %9708 = vmatprep.subr.bf16.mxu1 %v17534_v32  ;;  %v3306_v31 = vld [vmem:[#allocation10 + $0x1d58] sm:$0xff]  ;;  %v17678_v35 = vcombine.high %v2921_v23, %v2933_v29 }
 0x30b   :  { %9880 = vmatprep.subr.bf16.mxu0 %v17920_v61  ;;  %9738 = vmatprep.mubr.bf16.mxu1 %v21032_v46  ;;  %v3318_v32 = vld [vmem:[#allocation10 + $0x1db8] sm:$0xff]  ;;  %v17653_v61 = vcombine.low %v2897_v22, %v2909_v3 }
 0x30c   :  { %9910 = vmatprep.mubr.bf16.mxu0 %v21064_v33  ;;  %v18064_v36 = vcombine.high %v3306_v31, %v3318_v32  ;;  %v18063_v44 = vcombine.low %v3306_v31, %v3318_v32  ;;  %v3065_v32 = vld [vmem:[#allocation10 + $0x15d0] sm:$0xff] }
 0x30d   :  { %9709 = vmatpush1.bf16.msra.mxu1 %v17533_v12  ;;  %v2957_v12 = vld [vmem:[#allocation10 + $0x1270] sm:$0xff] }
 0x30e   :  { %9881 = vmatpush1.bf16.msra.mxu0 %v17919_v26  ;;  %9710 = vmatprep.subr.bf16.mxu1 %v17558_v40  ;;  %v3330_v26 = vld [vmem:[#allocation10 + $0x1e18] sm:$0xff]  ;;  %v17702_v45 = vcombine.high %v2945_v37, %v2957_v12 }
 0x30f   :  { %9882 = vmatprep.subr.bf16.mxu0 %v17944_v41  ;;  %v3342_v40 = vld [vmem:[#allocation10 + $0x1e78] sm:$0xff]  ;;  %v17677_v41 = vcombine.low %v2921_v23, %v2933_v29 }
 0x310   :  { %v18088_v18 = vcombine.high %v3330_v26, %v3342_v40  ;;  %v18087_v14 = vcombine.low %v3330_v26, %v3342_v40  ;;  %v3089_v40 = vld [vmem:[#allocation10 + $0x1690] sm:$0xff] }
 0x311   :  { %9711 = vmatpush1.bf16.msra.mxu1 %v17557_v47  ;;  %v2981_v47 = vld [vmem:[#allocation10 + $0x1330] sm:$0xff] }
 0x312   :  { %9883 = vmatpush1.bf16.msra.mxu0 %v17943_v48  ;;  %9712 = vmatprep.subr.bf16.mxu1 %v17582_v63  ;;  %v3354_v48 = vld [vmem:[#allocation10 + $0x1ed8] sm:$0xff]  ;;  %v17726_v52 = vcombine.high %v2969_v62, %v2981_v47 }
 0x313   :  { %9884 = vmatprep.subr.bf16.mxu0 %v17968_v21  ;;  %v3366_v63 = vld [vmem:[#allocation10 + $0x1f38] sm:$0xff]  ;;  %v17701_v21 = vcombine.low %v2945_v37, %v2957_v12 }
 0x314   :  { %v18112_v53 = vcombine.high %v3354_v48, %v3366_v63  ;;  %v18111_v57 = vcombine.low %v3354_v48, %v3366_v63  ;;  %v3113_v63 = vld [vmem:[#allocation10 + $0x1750] sm:$0xff] }
 0x315   :  { %9713 = vmatpush1.bf16.msra.mxu1 %v17581_v42  ;;  %v3005_v42 = vld [vmem:[#allocation10 + $0x13f0] sm:$0xff] }
 0x316   :  { %9885 = vmatpush1.bf16.msra.mxu0 %v17967_v55  ;;  %9714 = vmatprep.subr.bf16.mxu1 %v17606_v56  ;;  %v3378_v55 = vld [vmem:[#allocation10 + $0x1f98] sm:$0xff]  ;;  %v17750_v20 = vcombine.high %v2993_v54, %v3005_v42 }
 0x317   :  { %9886 = vmatprep.subr.bf16.mxu0 %v17992_v25  ;;  %v3390_v56 = vld [vmem:[#allocation10 + $0x1ff8] sm:$0xff]  ;;  %v17725_v25 = vcombine.low %v2969_v62, %v2981_v47 }
 0x318   :  { %v18136_v19 = vcombine.high %v3378_v55, %v3390_v56  ;;  %v18135_v22 = vcombine.low %v3378_v55, %v3390_v56  ;;  %v3137_v56 = vld [vmem:[#allocation10 + $0x1810] sm:$0xff] }
 0x319   :  { %9715 = vmatpush1.bf16.msra.mxu1 %v17605_v0  ;;  %v3029_v0 = vld [vmem:[#allocation10 + $0x14b0] sm:$0xff] }
 0x31a   :  { %9887 = vmatpush1.bf16.msra.mxu0 %v17991_v1  ;;  %9716 = vmatprep.subr.bf16.mxu1 %v17630_v24  ;;  %v3402_v1 = vld [vmem:[#allocation10 + $0x2058] sm:$0xff]  ;;  %v17774_v3 = vcombine.high %v3017_v59, %v3029_v0 }
 0x31b   :  { %9888 = vmatprep.subr.bf16.mxu0 %v18016_v2  ;;  %v3414_v24 = vld [vmem:[#allocation10 + $0x20b8] sm:$0xff]  ;;  %v17749_v2 = vcombine.low %v2993_v54, %v3005_v42 }
 0x31c   :  { %v18160_v5 = vcombine.high %v3402_v1, %v3414_v24  ;;  %v18159_v23 = vcombine.low %v3402_v1, %v3414_v24  ;;  %v3161_v24 = vld [vmem:[#allocation10 + $0x18d0] sm:$0xff] }
 0x31d   :  { %9717 = vmatpush1.bf16.msra.mxu1 %v17629_v7  ;;  %v3053_v7 = vld [vmem:[#allocation10 + $0x1570] sm:$0xff] }
 0x31e   :  { %9889 = vmatpush1.bf16.msra.mxu0 %v18015_v9  ;;  %9718 = vmatprep.subr.bf16.mxu1 %v17654_v11  ;;  %v3426_v9 = vld [vmem:[#allocation10 + $0x2118] sm:$0xff]  ;;  %v17798_v29 = vcombine.high %v3041_v6, %v3053_v7 }
 0x31f   :  { %9890 = vmatprep.subr.bf16.mxu0 %v18040_v13  ;;  %v3438_v11 = vld [vmem:[#allocation10 + $0x2178] sm:$0xff]  ;;  %v17773_v13 = vcombine.low %v3017_v59, %v3029_v0 }
 0x320   :  { %v18184_v31 = vcombine.high %v3426_v9, %v3438_v11  ;;  %v18183_v37 = vcombine.low %v3426_v9, %v3438_v11  ;;  %v3185_v11 = vld [vmem:[#allocation10 + $0x1990] sm:$0xff] }
 0x321   :  { %9719 = vmatpush1.bf16.msra.mxu1 %v17653_v61  ;;  %v3077_v61 = vld [vmem:[#allocation10 + $0x1630] sm:$0xff] }
 0x322   :  { %9891 = vmatpush1.bf16.msra.mxu0 %v18039_v34  ;;  %9720 = vmatprep.subr.bf16.mxu1 %v17678_v35  ;;  %v3450_v34 = vld [vmem:[#allocation10 + $0x21d8] sm:$0xff]  ;;  %v17822_v12 = vcombine.high %v3065_v32, %v3077_v61 }
 0x323   :  { %9892 = vmatprep.subr.bf16.mxu0 %v18064_v36  ;;  %v3462_v35 = vld [vmem:[#allocation10 + $0x2238] sm:$0xff]  ;;  %v17797_v36 = vcombine.low %v3041_v6, %v3053_v7 }
 0x324   :  { %v18208_v26 = vcombine.high %v3450_v34, %v3462_v35  ;;  %v18207_v62 = vcombine.low %v3450_v34, %v3462_v35  ;;  %v3209_v35 = vld [vmem:[#allocation10 + $0x1a50] sm:$0xff] }
 0x325   :  { %9721 = vmatpush1.bf16.msra.mxu1 %v17677_v41  ;;  %v3101_v41 = vld [vmem:[#allocation10 + $0x16f0] sm:$0xff] }
 0x326   :  { %9893 = vmatpush1.bf16.msra.mxu0 %v18063_v44  ;;  %9722 = vmatprep.subr.bf16.mxu1 %v17702_v45  ;;  %v3474_v44 = vld [vmem:[#allocation10 + $0x2298] sm:$0xff]  ;;  %v17846_v47 = vcombine.high %v3089_v40, %v3101_v41 }
 0x327   :  { %9894 = vmatprep.subr.bf16.mxu0 %v18088_v18  ;;  %v3486_v45 = vld [vmem:[#allocation10 + $0x22f8] sm:$0xff]  ;;  %v17821_v18 = vcombine.low %v3065_v32, %v3077_v61 }
 0x328   :  { %v18232_v48 = vcombine.high %v3474_v44, %v3486_v45  ;;  %v18231_v54 = vcombine.low %v3474_v44, %v3486_v45  ;;  %v3233_v45 = vld [vmem:[#allocation10 + $0x1b10] sm:$0xff] }
 0x329   :  { %9723 = vmatpush1.bf16.msra.mxu1 %v17701_v21  ;;  %v3125_v21 = vld [vmem:[#allocation10 + $0x17b0] sm:$0xff] }
 0x32a   :  { %9895 = vmatpush1.bf16.msra.mxu0 %v18087_v14  ;;  %9724 = vmatprep.subr.bf16.mxu1 %v17726_v52  ;;  %v3498_v14 = vld [vmem:[#allocation10 + $0x2358] sm:$0xff]  ;;  %v17870_v42 = vcombine.high %v3113_v63, %v3125_v21 }
 0x32b   :  { %9896 = vmatprep.subr.bf16.mxu0 %v18112_v53  ;;  %v3510_v52 = vld [vmem:[#allocation10 + $0x23b8] sm:$0xff]  ;;  %v17845_v53 = vcombine.low %v3089_v40, %v3101_v41 }
 0x32c   :  { %v18256_v55 = vcombine.high %v3498_v14, %v3510_v52  ;;  %v18255_v59 = vcombine.low %v3498_v14, %v3510_v52  ;;  %v3257_v52 = vld [vmem:[#allocation10 + $0x1bd0] sm:$0xff] }
 0x32d   :  { %9725 = vmatpush1.bf16.msra.mxu1 %v17725_v25  ;;  %v3149_v25 = vld [vmem:[#allocation10 + $0x1870] sm:$0xff] }
 0x32e   :  { %9897 = vmatpush1.bf16.msra.mxu0 %v18111_v57  ;;  %9726 = vmatprep.subr.bf16.mxu1 %v17750_v20  ;;  %v2372_v57 = vld [vmem:[#allocation10 + $0x28] sm:$0xff]  ;;  %v17894_v0 = vcombine.high %v3137_v56, %v3149_v25 }
 0x32f   :  { %9898 = vmatprep.subr.bf16.mxu0 %v18136_v19  ;;  %v2384_v20 = vld [vmem:[#allocation10 + $0x88] sm:$0xff]  ;;  %v17869_v19 = vcombine.low %v3113_v63, %v3125_v21 }
 0x330   :  { %v17132_v1 = vcombine.high %v2372_v57, %v2384_v20  ;;  %v17131_v6 = vcombine.low %v2372_v57, %v2384_v20  ;;  %v3281_v20 = vld [vmem:[#allocation10 + $0x1c90] sm:$0xff] }
 0x331   :  { %9727 = vmatpush1.bf16.msra.mxu1 %v17749_v2  ;;  %v3173_v2 = vld [vmem:[#allocation10 + $0x1930] sm:$0xff] }
 0x332   :  { %9899 = vmatpush1.bf16.msra.mxu0 %v18135_v22  ;;  %9728 = vmatprep.subr.bf16.mxu1 %v17774_v3  ;;  %v2396_v22 = vld [vmem:[#allocation10 + $0xe8] sm:$0xff]  ;;  %v17918_v7 = vcombine.high %v3161_v24, %v3173_v2 }
 0x333   :  { %9900 = vmatprep.subr.bf16.mxu0 %v18160_v5  ;;  %v2408_v3 = vld [vmem:[#allocation10 + $0x148] sm:$0xff]  ;;  %v17893_v5 = vcombine.low %v3137_v56, %v3149_v25 }
 0x334   :  { %v17156_v9 = vcombine.high %v2396_v22, %v2408_v3  ;;  %v17155_v32 = vcombine.low %v2396_v22, %v2408_v3  ;;  %v3305_v3 = vld [vmem:[#allocation10 + $0x1d50] sm:$0xff] }
 0x335   :  { %9729 = vmatpush1.bf16.msra.mxu1 %v17773_v13  ;;  %v3197_v13 = vld [vmem:[#allocation10 + $0x19f0] sm:$0xff] }
 0x336   :  { %9901 = vmatpush1.bf16.msra.mxu0 %v18159_v23  ;;  %9730 = vmatprep.subr.bf16.mxu1 %v17798_v29  ;;  %v2420_v23 = vld [vmem:[#allocation10 + $0x1a8] sm:$0xff]  ;;  %v17942_v61 = vcombine.high %v3185_v11, %v3197_v13 }
 0x337   :  { %9902 = vmatprep.subr.bf16.mxu0 %v18184_v31  ;;  %v2432_v29 = vld [vmem:[#allocation10 + $0x208] sm:$0xff]  ;;  %v17917_v31 = vcombine.low %v3161_v24, %v3173_v2 }
 0x338   :  { %v17180_v34 = vcombine.high %v2420_v23, %v2432_v29  ;;  %v17179_v40 = vcombine.low %v2420_v23, %v2432_v29  ;;  %v3329_v29 = vld [vmem:[#allocation10 + $0x1e10] sm:$0xff] }
 0x339   :  { %9731 = vmatpush1.bf16.msra.mxu1 %v17797_v36  ;;  %v3221_v36 = vld [vmem:[#allocation10 + $0x1ab0] sm:$0xff] }
 0x33a   :  { %9903 = vmatpush1.bf16.msra.mxu0 %v18183_v37  ;;  %9732 = vmatprep.subr.bf16.mxu1 %v17822_v12  ;;  %v2444_v37 = vld [vmem:[#allocation10 + $0x268] sm:$0xff]  ;;  %v17966_v41 = vcombine.high %v3209_v35, %v3221_v36 }
 0x33b   :  { %9904 = vmatprep.subr.bf16.mxu0 %v18208_v26  ;;  %v2456_v12 = vld [vmem:[#allocation10 + $0x2c8] sm:$0xff]  ;;  %v17941_v26 = vcombine.low %v3185_v11, %v3197_v13 }
 0x33c   :  { %v17204_v44 = vcombine.high %v2444_v37, %v2456_v12  ;;  %v17203_v63 = vcombine.low %v2444_v37, %v2456_v12  ;;  %v3353_v12 = vld [vmem:[#allocation10 + $0x1ed0] sm:$0xff] }
 0x33d   :  { %9733 = vmatpush1.bf16.msra.mxu1 %v17821_v18  ;;  %v3245_v18 = vld [vmem:[#allocation10 + $0x1b70] sm:$0xff] }
 0x33e   :  { %9905 = vmatpush1.bf16.msra.mxu0 %v18207_v62  ;;  %9734 = vmatprep.subr.bf16.mxu1 %v17846_v47  ;;  %v2468_v62 = vld [vmem:[#allocation10 + $0x328] sm:$0xff]  ;;  %v17990_v21 = vcombine.high %v3233_v45, %v3245_v18 }
 0x33f   :  { %9906 = vmatprep.subr.bf16.mxu0 %v18232_v48  ;;  %v2480_v47 = vld [vmem:[#allocation10 + $0x388] sm:$0xff]  ;;  %v17965_v48 = vcombine.low %v3209_v35, %v3221_v36 }
 0x340   :  { %v17228_v14 = vcombine.high %v2468_v62, %v2480_v47  ;;  %v17227_v56 = vcombine.low %v2468_v62, %v2480_v47  ;;  %v3377_v47 = vld [vmem:[#allocation10 + $0x1f90] sm:$0xff] }
 0x341   :  { %9735 = vmatpush1.bf16.msra.mxu1 %v17845_v53  ;;  %v3269_v53 = vld [vmem:[#allocation10 + $0x1c30] sm:$0xff] }
 0x342   :  { %9907 = vmatpush1.bf16.msra.mxu0 %v18231_v54  ;;  %9736 = vmatprep.subr.bf16.mxu1 %v17870_v42  ;;  %v2492_v54 = vld [vmem:[#allocation10 + $0x3e8] sm:$0xff]  ;;  %v18014_v25 = vcombine.high %v3257_v52, %v3269_v53 }
 0x343   :  { %9908 = vmatprep.subr.bf16.mxu0 %v18256_v55  ;;  %v2504_v42 = vld [vmem:[#allocation10 + $0x448] sm:$0xff]  ;;  %v17989_v55 = vcombine.low %v3233_v45, %v3245_v18 }
 0x344   :  { %v17252_v57 = vcombine.high %v2492_v54, %v2504_v42  ;;  %v17251_v24 = vcombine.low %v2492_v54, %v2504_v42  ;;  %v3401_v42 = vld [vmem:[#allocation10 + $0x2050] sm:$0xff] }
 0x345   :  { %9737 = vmatpush1.bf16.msra.mxu1 %v17869_v19  ;;  %v3293_v19 = vld [vmem:[#allocation10 + $0x1cf0] sm:$0xff] }
 0x346   :  { %9909 = vmatpush1.bf16.msra.mxu0 %v18255_v59  ;;  %9749 = vmatprep.subr.bf16.mxu1 %v17894_v0  ;;  %v2516_v59 = vld [vmem:[#allocation10 + $0x4a8] sm:$0xff]  ;;  %v18038_v2 = vcombine.high %v3281_v20, %v3293_v19 }
 0x347   :  { %10050 = vmatprep.subr.bf16.mxu0 %v17132_v1  ;;  %v2528_v0 = vld [vmem:[#allocation10 + $0x508] sm:$0xff]  ;;  %v18013_v1 = vcombine.low %v3257_v52, %v3269_v53 }
 0x348   :  { %9739 = vmatmul.mubr.bf16.vlgmr.msra.gmra.mrb[24].mxu1 %v21062_v17  ;;  %v17276_v22 = vcombine.high %v2516_v59, %v2528_v0  ;;  %v17275_v11 = vcombine.low %v2516_v59, %v2528_v0  ;;  %v3425_v0 = vld [vmem:[#allocation10 + $0x2110] sm:$0xff] }
 0x349   :  { %9911 = vmatmul.mubr.bf16.vlgmr.msra.gmra.mrb[20].mxu0 %v21090_v10  ;;  %9750 = vmatpush1.bf16.msra.mxu1 %v17893_v5  ;;  %v3317_v5 = vld [vmem:[#allocation10 + $0x1db0] sm:$0xff] }
 0x34a   :  { %10051 = vmatpush1.bf16.msra.mxu0 %v17131_v6  ;;  %9751 = vmatprep.subr.bf16.mxu1 %v17918_v7  ;;  %v2540_v6 = vld [vmem:[#allocation10 + $0x568] sm:$0xff]  ;;  %v18062_v13 = vcombine.high %v3305_v3, %v3317_v5 }
 0x34b   :  { %10052 = vmatprep.subr.bf16.mxu0 %v17156_v9  ;;  %9781 = vmatprep.mubr.bf16.mxu1 %v21064_v33  ;;  %v2552_v7 = vld [vmem:[#allocation10 + $0x5c8] sm:$0xff]  ;;  %v18037_v9 = vcombine.low %v3281_v20, %v3293_v19 }
 0x34c   :  { %10082 = vmatprep.mubr.bf16.mxu0 %v21016_v49  ;;  %v17300_v23 = vcombine.high %v2540_v6, %v2552_v7  ;;  %v17299_v35 = vcombine.low %v2540_v6, %v2552_v7  ;;  %v3449_v7 = vld [vmem:[#allocation10 + $0x21d0] sm:$0xff] }
 0x34d   :  { %9752 = vmatpush1.bf16.msra.mxu1 %v17917_v31  ;;  %v3341_v31 = vld [vmem:[#allocation10 + $0x1e70] sm:$0xff] }
 0x34e   :  { %10053 = vmatpush1.bf16.msra.mxu0 %v17155_v32  ;;  %9753 = vmatprep.subr.bf16.mxu1 %v17942_v61  ;;  %v2564_v32 = vld [vmem:[#allocation10 + $0x628] sm:$0xff]  ;;  %v18086_v36 = vcombine.high %v3329_v29, %v3341_v31 }
 0x34f   :  { %10054 = vmatprep.subr.bf16.mxu0 %v17180_v34  ;;  %v2576_v61 = vld [vmem:[#allocation10 + $0x688] sm:$0xff]  ;;  %v18061_v34 = vcombine.low %v3305_v3, %v3317_v5 }
 0x350   :  { %v17324_v37 = vcombine.high %v2564_v32, %v2576_v61  ;;  %v17323_v45 = vcombine.low %v2564_v32, %v2576_v61  ;;  %v3473_v61 = vld [vmem:[#allocation10 + $0x2290] sm:$0xff] }
 0x351   :  { %9754 = vmatpush1.bf16.msra.mxu1 %v17941_v26  ;;  %v3365_v26 = vld [vmem:[#allocation10 + $0x1f30] sm:$0xff] }
 0x352   :  { %10055 = vmatpush1.bf16.msra.mxu0 %v17179_v40  ;;  %9755 = vmatprep.subr.bf16.mxu1 %v17966_v41  ;;  %v2588_v40 = vld [vmem:[#allocation10 + $0x6e8] sm:$0xff]  ;;  %v18110_v18 = vcombine.high %v3353_v12, %v3365_v26 }
 0x353   :  { %10056 = vmatprep.subr.bf16.mxu0 %v17204_v44  ;;  %v2600_v41 = vld [vmem:[#allocation10 + $0x748] sm:$0xff]  ;;  %v18085_v44 = vcombine.low %v3329_v29, %v3341_v31 }
 0x354   :  { %v17348_v62 = vcombine.high %v2588_v40, %v2600_v41  ;;  %v17347_v52 = vcombine.low %v2588_v40, %v2600_v41  ;;  %v3497_v41 = vld [vmem:[#allocation10 + $0x2350] sm:$0xff] }
 0x355   :  { %9756 = vmatpush1.bf16.msra.mxu1 %v17965_v48  ;;  %v3389_v48 = vld [vmem:[#allocation10 + $0x1ff0] sm:$0xff] }
 0x356   :  { %10057 = vmatpush1.bf16.msra.mxu0 %v17203_v63  ;;  %9757 = vmatprep.subr.bf16.mxu1 %v17990_v21  ;;  %v2612_v63 = vld [vmem:[#allocation10 + $0x7a8] sm:$0xff]  ;;  %v18134_v53 = vcombine.high %v3377_v47, %v3389_v48 }
 0x357   :  { %10058 = vmatprep.subr.bf16.mxu0 %v17228_v14  ;;  %v2624_v21 = vld [vmem:[#allocation10 + $0x808] sm:$0xff]  ;;  %v18109_v14 = vcombine.low %v3353_v12, %v3365_v26 }
 0x358   :  { %v17372_v54 = vcombine.high %v2612_v63, %v2624_v21  ;;  %v17371_v20 = vcombine.low %v2612_v63, %v2624_v21  ;;  %v2371_v21 = vld [vmem:[#allocation10 + $0x20] sm:$0xff] }
 0x359   :  { %9758 = vmatpush1.bf16.msra.mxu1 %v17989_v55  ;;  %v3413_v55 = vld [vmem:[#allocation10 + $0x20b0] sm:$0xff] }
 0x35a   :  { %10059 = vmatpush1.bf16.msra.mxu0 %v17227_v56  ;;  %9759 = vmatprep.subr.bf16.mxu1 %v18014_v25  ;;  %v2636_v56 = vld [vmem:[#allocation10 + $0x868] sm:$0xff]  ;;  %v18158_v19 = vcombine.high %v3401_v42, %v3413_v55 }
 0x35b   :  { %10060 = vmatprep.subr.bf16.mxu0 %v17252_v57  ;;  %v2648_v25 = vld [vmem:[#allocation10 + $0x8c8] sm:$0xff]  ;;  %v18133_v57 = vcombine.low %v3377_v47, %v3389_v48 }
 0x35c   :  { %v17396_v59 = vcombine.high %v2636_v56, %v2648_v25  ;;  %v17395_v3 = vcombine.low %v2636_v56, %v2648_v25  ;;  %v2395_v25 = vld [vmem:[#allocation10 + $0xe0] sm:$0xff] }
 0x35d   :  { %9760 = vmatpush1.bf16.msra.mxu1 %v18013_v1  ;;  %v3437_v1 = vld [vmem:[#allocation10 + $0x2170] sm:$0xff] }
 0x35e   :  { %10061 = vmatpush1.bf16.msra.mxu0 %v17251_v24  ;;  %9761 = vmatprep.subr.bf16.mxu1 %v18038_v2  ;;  %v2660_v24 = vld [vmem:[#allocation10 + $0x928] sm:$0xff]  ;;  %v18182_v5 = vcombine.high %v3425_v0, %v3437_v1 }
 0x35f   :  { %10062 = vmatprep.subr.bf16.mxu0 %v17276_v22  ;;  %v2672_v2 = vld [vmem:[#allocation10 + $0x988] sm:$0xff]  ;;  %v18157_v22 = vcombine.low %v3401_v42, %v3413_v55 }
 0x360   :  { %v17420_v6 = vcombine.high %v2660_v24, %v2672_v2  ;;  %v17419_v29 = vcombine.low %v2660_v24, %v2672_v2  ;;  %v2419_v2 = vld [vmem:[#allocation10 + $0x1a0] sm:$0xff] }
 0x361   :  { %9762 = vmatpush1.bf16.msra.mxu1 %v18037_v9  ;;  %v3461_v9 = vld [vmem:[#allocation10 + $0x2230] sm:$0xff] }
 0x362   :  { %10063 = vmatpush1.bf16.msra.mxu0 %v17275_v11  ;;  %9763 = vmatprep.subr.bf16.mxu1 %v18062_v13  ;;  %v2684_v11 = vld [vmem:[#allocation10 + $0x9e8] sm:$0xff]  ;;  %v18206_v31 = vcombine.high %v3449_v7, %v3461_v9 }
 0x363   :  { %10064 = vmatprep.subr.bf16.mxu0 %v17300_v23  ;;  %v2696_v13 = vld [vmem:[#allocation10 + $0xa48] sm:$0xff]  ;;  %v18181_v23 = vcombine.low %v3425_v0, %v3437_v1 }
 0x364   :  { %v17444_v32 = vcombine.high %v2684_v11, %v2696_v13  ;;  %v17443_v12 = vcombine.low %v2684_v11, %v2696_v13  ;;  %v2443_v13 = vld [vmem:[#allocation10 + $0x260] sm:$0xff] }
 0x365   :  { %9764 = vmatpush1.bf16.msra.mxu1 %v18061_v34  ;;  %v3485_v34 = vld [vmem:[#allocation10 + $0x22f0] sm:$0xff] }
 0x366   :  { %10065 = vmatpush1.bf16.msra.mxu0 %v17299_v35  ;;  %9765 = vmatprep.subr.bf16.mxu1 %v18086_v36  ;;  %v2708_v35 = vld [vmem:[#allocation10 + $0xaa8] sm:$0xff]  ;;  %v18230_v26 = vcombine.high %v3473_v61, %v3485_v34 }
 0x367   :  { %10066 = vmatprep.subr.bf16.mxu0 %v17324_v37  ;;  %v2720_v36 = vld [vmem:[#allocation10 + $0xb08] sm:$0xff]  ;;  %v18205_v37 = vcombine.low %v3449_v7, %v3461_v9 }
 0x368   :  { %v17468_v40 = vcombine.high %v2708_v35, %v2720_v36  ;;  %v17467_v47 = vcombine.low %v2708_v35, %v2720_v36  ;;  %v2467_v36 = vld [vmem:[#allocation10 + $0x320] sm:$0xff] }
 0x369   :  { %9766 = vmatpush1.bf16.msra.mxu1 %v18085_v44  ;;  %v3509_v44 = vld [vmem:[#allocation10 + $0x23b0] sm:$0xff] }
 0x36a   :  { %10067 = vmatpush1.bf16.msra.mxu0 %v17323_v45  ;;  %9767 = vmatprep.subr.bf16.mxu1 %v18110_v18  ;;  %v2732_v45 = vld [vmem:[#allocation10 + $0xb68] sm:$0xff]  ;;  %v18254_v48 = vcombine.high %v3497_v41, %v3509_v44 }
 0x36b   :  { %10068 = vmatprep.subr.bf16.mxu0 %v17348_v62  ;;  %v2744_v18 = vld [vmem:[#allocation10 + $0xbc8] sm:$0xff]  ;;  %v18229_v62 = vcombine.low %v3473_v61, %v3485_v34 }
 0x36c   :  { %v17492_v63 = vcombine.high %v2732_v45, %v2744_v18  ;;  %v17491_v42 = vcombine.low %v2732_v45, %v2744_v18  ;;  %v2491_v18 = vld [vmem:[#allocation10 + $0x3e0] sm:$0xff] }
 0x36d   :  { %9768 = vmatpush1.bf16.msra.mxu1 %v18109_v14  ;;  %v2383_v14 = vld [vmem:[#allocation10 + $0x80] sm:$0xff] }
 0x36e   :  { %10069 = vmatpush1.bf16.msra.mxu0 %v17347_v52  ;;  %9769 = vmatprep.subr.bf16.mxu1 %v18134_v53  ;;  %v2756_v52 = vld [vmem:[#allocation10 + $0xc28] sm:$0xff]  ;;  %v17130_v55 = vcombine.high %v2371_v21, %v2383_v14 }
 0x36f   :  { %10070 = vmatprep.subr.bf16.mxu0 %v17372_v54  ;;  %v2768_v53 = vld [vmem:[#allocation10 + $0xc88] sm:$0xff]  ;;  %v18253_v54 = vcombine.low %v3497_v41, %v3509_v44 }
 0x370   :  { %v17516_v56 = vcombine.high %v2756_v52, %v2768_v53  ;;  %v17515_v0 = vcombine.low %v2756_v52, %v2768_v53 }
 0x371   :  { %9770 = vmatpush1.bf16.msra.mxu1 %v18133_v57  ;;  %v2407_v57 = vld [vmem:[#allocation10 + $0x140] sm:$0xff] }
 0x372   :  { %10071 = vmatpush1.bf16.msra.mxu0 %v17371_v20  ;;  %9771 = vmatprep.subr.bf16.mxu1 %v18158_v19  ;;  %v2780_v20 = vld [vmem:[#allocation10 + $0xce8] sm:$0xff]  ;;  %v17154_v1 = vcombine.high %v2395_v25, %v2407_v57 }
 0x373   :  { %10072 = vmatprep.subr.bf16.mxu0 %v17396_v59  ;;  %v2792_v19 = vld [vmem:[#allocation10 + $0xd48] sm:$0xff]  ;;  %v17129_v59 = vcombine.low %v2371_v21, %v2383_v14  ;;  %v3519_v14 = vld [vmem:[#allocation11] sm:$0xff] }
 0x374   :  { %v17540_v24 = vcombine.high %v2780_v20, %v2792_v19  ;;  %v17539_v7 = vcombine.low %v2780_v20, %v2792_v19 }
 0x375   :  { %9772 = vmatpush1.bf16.msra.mxu1 %v18157_v22  ;;  %v2431_v22 = vld [vmem:[#allocation10 + $0x200] sm:$0xff] }
 0x376   :  { %10073 = vmatpush1.bf16.msra.mxu0 %v17395_v3  ;;  %9773 = vmatprep.subr.bf16.mxu1 %v18182_v5  ;;  %v2804_v3 = vld [vmem:[#allocation10 + $0xda8] sm:$0xff]  ;;  %v17178_v9 = vcombine.high %v2419_v2, %v2431_v22 }
 0x377   :  { %10074 = vmatprep.subr.bf16.mxu0 %v17420_v6  ;;  %v2816_v5 = vld [vmem:[#allocation10 + $0xe08] sm:$0xff]  ;;  %v17153_v6 = vcombine.low %v2395_v25, %v2407_v57  ;;  %v21139_v25 = vrot.slane %v3519_v14, %v21041_v4  ;;  %v21142_v57 = vrot.slane %v3519_v14, %v21044_v8 }
 0x378   :  { %v17564_v11 = vcombine.high %v2804_v3, %v2816_v5  ;;  %v17563_v61 = vcombine.low %v2804_v3, %v2816_v5  ;;  %v2936_v3 = vld [vmem:[#allocation10 + $0x11c8] sm:$0xff] }
 0x379   :  { %9774 = vmatpush1.bf16.msra.mxu1 %v18181_v23  ;;  %v2455_v23 = vld [vmem:[#allocation10 + $0x2c0] sm:$0xff]  ;;  %v2996_v14 = vld [vmem:[#allocation10 + $0x13a8] sm:$0xff] }
 0x37a   :  { %10075 = vmatpush1.bf16.msra.mxu0 %v17419_v29  ;;  %9775 = vmatprep.subr.bf16.mxu1 %v18206_v31  ;;  %v2828_v29 = vld [vmem:[#allocation10 + $0xe68] sm:$0xff]  ;;  %v17202_v34 = vcombine.high %v2443_v13, %v2455_v23 }
 0x37b   :  { %10076 = vmatprep.subr.bf16.mxu0 %v17444_v32  ;;  %v2840_v31 = vld [vmem:[#allocation10 + $0xec8] sm:$0xff]  ;;  %v17177_v32 = vcombine.low %v2419_v2, %v2431_v22  ;;  %v2551_v2 = vld [vmem:[#allocation10 + $0x5c0] sm:$0xff] }
 0x37c   :  { %v17588_v35 = vcombine.high %v2828_v29, %v2840_v31  ;;  %v17587_v41 = vcombine.low %v2828_v29, %v2840_v31  ;;  %v2924_v22 = vld [vmem:[#allocation10 + $0x1168] sm:$0xff] }
 0x37d   :  { %9776 = vmatpush1.bf16.msra.mxu1 %v18205_v37  ;;  %v2479_v37 = vld [vmem:[#allocation10 + $0x380] sm:$0xff]  ;;  %v17684_v31 = vcombine.high %v2924_v22, %v2936_v3 }
 0x37e   :  { %10077 = vmatpush1.bf16.msra.mxu0 %v17443_v12  ;;  %9777 = vmatprep.subr.bf16.mxu1 %v18230_v26  ;;  %v2852_v12 = vld [vmem:[#allocation10 + $0xf28] sm:$0xff]  ;;  %v17226_v44 = vcombine.high %v2467_v36, %v2479_v37 }
 0x37f   :  { %10078 = vmatprep.subr.bf16.mxu0 %v17468_v40  ;;  %v2864_v26 = vld [vmem:[#allocation10 + $0xf88] sm:$0xff]  ;;  %v17201_v40 = vcombine.low %v2443_v13, %v2455_v23 }
 0x380   :  { %v17612_v45 = vcombine.high %v2852_v12, %v2864_v26  ;;  %v17611_v21 = vcombine.low %v2852_v12, %v2864_v26 }
 0x381   :  { %9778 = vmatpush1.bf16.msra.mxu1 %v18229_v62  ;;  %v2503_v62 = vld [vmem:[#allocation10 + $0x440] sm:$0xff] }
 0x382   :  { %10079 = vmatpush1.bf16.msra.mxu0 %v17467_v47  ;;  %9779 = vmatprep.subr.bf16.mxu1 %v18254_v48  ;;  %v2876_v47 = vld [vmem:[#allocation10 + $0xfe8] sm:$0xff]  ;;  %v17250_v52 = vcombine.high %v2491_v18, %v2503_v62  ;;  %v17249_v20 = vcombine.low %v2491_v18, %v2503_v62 }
 0x383   :  { %10080 = vmatprep.subr.bf16.mxu0 %v17492_v63  ;;  %v2888_v48 = vld [vmem:[#allocation10 + $0x1048] sm:$0xff]  ;;  %v17225_v63 = vcombine.low %v2467_v36, %v2479_v37  ;;  %v17683_v37 = vcombine.low %v2924_v22, %v2936_v3  ;;  %v2659_v22 = vld [vmem:[#allocation10 + $0x920] sm:$0xff] }
 0x384   :  { %v17636_v53 = vcombine.high %v2876_v47, %v2888_v48  ;;  %v17635_v19 = vcombine.low %v2876_v47, %v2888_v48  ;;  %v2671_v3 = vld [vmem:[#allocation10 + $0x980] sm:$0xff] }
 0x385   :  { %9780 = vmatpush1.bf16.msra.mxu1 %v18253_v54  ;;  %v2515_v54 = vld [vmem:[#allocation10 + $0x4a0] sm:$0xff] }
 0x386   :  { %10081 = vmatpush1.bf16.msra.mxu0 %v17491_v42  ;;  %9921 = vmatprep.subr.bf16.mxu1 %v17130_v55  ;;  %v2527_v42 = vld [vmem:[#allocation10 + $0x500] sm:$0xff]  ;;  %v2900_v55 = vld [vmem:[#allocation10 + $0x10a8] sm:$0xff] }
 0x387   :  { %10093 = vmatprep.subr.bf16.mxu0 %v17516_v56  ;;  %v2912_v56 = vld [vmem:[#allocation10 + $0x1108] sm:$0xff] }
 0x388   :  { %9782 = vmatmul.mubr.bf16.vlgmr.msra.gmra.mrb[24].mxu1 %v21090_v10  ;;  %v17659_v13 = vcombine.low %v2900_v55, %v2912_v56 }
 0x389   :  { %10083 = vmatmul.mubr.bf16.vlgmr.msra.gmra.mrb[24].mxu0 %v21030_v38  ;;  %9922 = vmatpush1.bf16.msra.mxu1 %v17129_v59  ;;  %v17274_v59 = vcombine.high %v2515_v54, %v2527_v42 }
 0x38a   :  { %10094 = vmatpush1.bf16.msra.mxu0 %v17515_v0  ;;  %9923 = vmatprep.subr.bf16.mxu1 %v17154_v1  ;;  %v17660_v0 = vcombine.high %v2900_v55, %v2912_v56  ;;  %v2539_v1 = vld [vmem:[#allocation10 + $0x560] sm:$0xff] }
 0x38b   :  { %10095 = vmatprep.subr.bf16.mxu0 %v17540_v24  ;;  %9953 = vmatprep.mubr.bf16.mxu1 %v21016_v49  ;;  %v17298_v29 = vcombine.high %v2539_v1, %v2551_v2  ;;  %v17297_v36 = vcombine.low %v2539_v1, %v2551_v2  ;;  %v2635_v56 = vld [vmem:[#allocation10 + $0x860] sm:$0xff] }
 0x38c   :  { %10125 = vmatprep.mubr.bf16.mxu0 %v21032_v46 }
 0x38d   :  { %9924 = vmatpush1.bf16.msra.mxu1 %v17153_v6 }
 0x38e   :  { %10096 = vmatpush1.bf16.msra.mxu0 %v17539_v7  ;;  %9925 = vmatprep.subr.bf16.mxu1 %v17178_v9 }
 0x38f   :  { %10097 = vmatprep.subr.bf16.mxu0 %v17564_v11  ;;  %v17273_v11 = vcombine.low %v2515_v54, %v2527_v42 }
 0x391   :  { %9926 = vmatpush1.bf16.msra.mxu1 %v17177_v32  ;;  %v2563_v32 = vld [vmem:[#allocation10 + $0x620] sm:$0xff] }
 0x392   :  { %10098 = vmatpush1.bf16.msra.mxu0 %v17563_v61  ;;  %9927 = vmatprep.subr.bf16.mxu1 %v17202_v34  ;;  %v2575_v61 = vld [vmem:[#allocation10 + $0x680] sm:$0xff]  ;;  %v2948_v34 = vld [vmem:[#allocation10 + $0x1228] sm:$0xff] }
 0x393   :  { %10099 = vmatprep.subr.bf16.mxu0 %v17588_v35  ;;  %v2960_v35 = vld [vmem:[#allocation10 + $0x1288] sm:$0xff]  ;;  %v17322_v12 = vcombine.high %v2563_v32, %v2575_v61  ;;  %v17321_v18 = vcombine.low %v2563_v32, %v2575_v61  ;;  %v2683_v61 = vld [vmem:[#allocation10 + $0x9e0] sm:$0xff] }
 0x394   :  { %v17708_v26 = vcombine.high %v2948_v34, %v2960_v35  ;;  %v17707_v62 = vcombine.low %v2948_v34, %v2960_v35  ;;  %v2695_v34 = vld [vmem:[#allocation10 + $0xa40] sm:$0xff]  ;;  %v3068_v35 = vld [vmem:[#allocation10 + $0x15e8] sm:$0xff] }
 0x395   :  { %9928 = vmatpush1.bf16.msra.mxu1 %v17201_v40  ;;  %v2587_v40 = vld [vmem:[#allocation10 + $0x6e0] sm:$0xff] }
 0x396   :  { %10100 = vmatpush1.bf16.msra.mxu0 %v17587_v41  ;;  %9929 = vmatprep.subr.bf16.mxu1 %v17226_v44  ;;  %v2599_v41 = vld [vmem:[#allocation10 + $0x740] sm:$0xff]  ;;  %v2972_v44 = vld [vmem:[#allocation10 + $0x12e8] sm:$0xff] }
 0x397   :  { %10101 = vmatprep.subr.bf16.mxu0 %v17612_v45  ;;  %v2984_v45 = vld [vmem:[#allocation10 + $0x1348] sm:$0xff]  ;;  %v17346_v47 = vcombine.high %v2587_v40, %v2599_v41 }
 0x398   :  { %v17732_v48 = vcombine.high %v2972_v44, %v2984_v45  ;;  %v17731_v54 = vcombine.low %v2972_v44, %v2984_v45  ;;  %v2719_v44 = vld [vmem:[#allocation10 + $0xb00] sm:$0xff]  ;;  %v3092_v45 = vld [vmem:[#allocation10 + $0x16a8] sm:$0xff] }
 0x399   :  { %9930 = vmatpush1.bf16.msra.mxu1 %v17225_v63  ;;  %v2611_v63 = vld [vmem:[#allocation10 + $0x7a0] sm:$0xff] }
 0x39a   :  { %10102 = vmatpush1.bf16.msra.mxu0 %v17611_v21  ;;  %9931 = vmatprep.subr.bf16.mxu1 %v17250_v52  ;;  %v2623_v21 = vld [vmem:[#allocation10 + $0x800] sm:$0xff]  ;;  %v3008_v52 = vld [vmem:[#allocation10 + $0x1408] sm:$0xff] }
 0x39b   :  { %10103 = vmatprep.subr.bf16.mxu0 %v17636_v53  ;;  %v9525_v24 = vpop.f32.mrb[20].mxu1  ;;  %v17345_v53 = vcombine.low %v2587_v40, %v2599_v41  ;;  %v17370_v42 = vcombine.high %v2611_v63, %v2623_v21  ;;  %v17756_v55 = vcombine.high %v2996_v14, %v3008_v52  ;;  %v17755_v1 = vcombine.low %v2996_v14, %v3008_v52  ;;  %v2707_v41 = vld [vmem:[#allocation10 + $0xaa0] sm:$0xff]  ;;  %v3116_v52 = vld [vmem:[#allocation10 + $0x1768] sm:$0xff] }
 0x39c   :  { %v21145_v5 = vadd.f32 %v9525_v24, %v21139_v25  ;;  %v9527_v6 = vpop.f32.mrb[21].mxu1  ;;  %v2743_v14 = vld [vmem:[#allocation10 + $0xbc0] sm:$0xff] }
 0x39d   :  { %v21148_v7 = vadd.f32 %v9527_v6, %v21142_v57  ;;  %v21150_v9 = vpop.f32.mrb[22].mxu1  ;;  %9932 = vmatpush1.bf16.msra.mxu1 %v17249_v20  ;;  %v2647_v20 = vld [vmem:[#allocation10 + $0x8c0] sm:$0xff]  ;;  %v3044_v6 = vld [vmem:[#allocation10 + $0x1528] sm:$0xff] }
 0x39e   :  { %10104 = vmatpush1.bf16.msra.mxu0 %v17635_v19  ;;  %v21152_v23 = vpop.f32.mrb[23].mxu1  ;;  %9933 = vmatprep.subr.bf16.mxu1 %v17274_v59  ;;  %v3020_v19 = vld [vmem:[#allocation10 + $0x1468] sm:$0xff]  ;;  %v17394_v24 = vcombine.high %v2635_v56, %v2647_v20 }
 0x39f   :  { %21839 = vst [vmem:[#allocation38_spill] sm:$0xff] %v21148_v7  ;;  %10105 = vmatprep.subr.bf16.mxu0 %v17660_v0  ;;  %v3032_v59 = vld [vmem:[#allocation10 + $0x14c8] sm:$0xff]  ;;  %v17369_v0 = vcombine.low %v2611_v63, %v2623_v21  ;;  %v2731_v21 = vld [vmem:[#allocation10 + $0xb60] sm:$0xff] }
 0x3a0   :  { %v17780_v2 = vcombine.high %v3020_v19, %v3032_v59 }
 0x3a1   :  { %9934 = vmatpush1.bf16.msra.mxu1 %v17273_v11  ;;  %v3056_v11 = vld [vmem:[#allocation10 + $0x1588] sm:$0xff] }
 0x3a2   :  { %10106 = vmatpush1.bf16.msra.mxu0 %v17659_v13  ;;  %9935 = vmatprep.subr.bf16.mxu1 %v17298_v29  ;;  %v17393_v13 = vcombine.low %v2635_v56, %v2647_v20  ;;  %v17779_v29 = vcombine.low %v3020_v19, %v3032_v59  ;;  %v17804_v32 = vcombine.high %v3044_v6, %v3056_v11  ;;  %v2755_v20 = vld [vmem:[#allocation10 + $0xc20] sm:$0xff]  ;;  %v3140_v59 = vld [vmem:[#allocation10 + $0x1828] sm:$0xff] }
 0x3a3   :  { %10107 = vmatprep.subr.bf16.mxu0 %v17684_v31  ;;  %v17418_v31 = vcombine.high %v2659_v22, %v2671_v3  ;;  %v2767_v19 = vld [vmem:[#allocation10 + $0xc80] sm:$0xff] }
 0x3a5   :  { %9936 = vmatpush1.bf16.msra.mxu1 %v17297_v36  ;;  %v3080_v36 = vld [vmem:[#allocation10 + $0x1648] sm:$0xff] }
 0x3a6   :  { %10108 = vmatpush1.bf16.msra.mxu0 %v17683_v37  ;;  %9937 = vmatprep.subr.bf16.mxu1 %v17322_v12  ;;  %v17417_v37 = vcombine.low %v2659_v22, %v2671_v3  ;;  %v17803_v12 = vcombine.low %v3044_v6, %v3056_v11  ;;  %v17828_v40 = vcombine.high %v3068_v35, %v3080_v36  ;;  %v2779_v3 = vld [vmem:[#allocation10 + $0xce0] sm:$0xff]  ;;  %v3164_v11 = vld [vmem:[#allocation10 + $0x18e8] sm:$0xff] }
 0x3a7   :  { %10109 = vmatprep.subr.bf16.mxu0 %v17708_v26  ;;  %v17442_v26 = vcombine.high %v2683_v61, %v2695_v34  ;;  %v2791_v6 = vld [vmem:[#allocation10 + $0xd40] sm:$0xff] }
 0x3a9   :  { %9938 = vmatpush1.bf16.msra.mxu1 %v17321_v18  ;;  %v3104_v18 = vld [vmem:[#allocation10 + $0x1708] sm:$0xff] }
 0x3aa   :  { %10110 = vmatpush1.bf16.msra.mxu0 %v17707_v62  ;;  %9939 = vmatprep.subr.bf16.mxu1 %v17346_v47  ;;  %v17441_v62 = vcombine.low %v2683_v61, %v2695_v34  ;;  %v17827_v47 = vcombine.low %v3068_v35, %v3080_v36  ;;  %v17852_v63 = vcombine.high %v3092_v45, %v3104_v18  ;;  %v2803_v34 = vld [vmem:[#allocation10 + $0xda0] sm:$0xff]  ;;  %v3188_v36 = vld [vmem:[#allocation10 + $0x19a8] sm:$0xff] }
 0x3ab   :  { %10111 = vmatprep.subr.bf16.mxu0 %v17732_v48  ;;  %v17466_v48 = vcombine.high %v2707_v41, %v2719_v44  ;;  %v2815_v35 = vld [vmem:[#allocation10 + $0xe00] sm:$0xff] }
 0x3ad   :  { %9940 = vmatpush1.bf16.msra.mxu1 %v17345_v53  ;;  %v3128_v53 = vld [vmem:[#allocation10 + $0x17c8] sm:$0xff] }
 0x3ae   :  { %10112 = vmatpush1.bf16.msra.mxu0 %v17731_v54  ;;  %9941 = vmatprep.subr.bf16.mxu1 %v17370_v42  ;;  %v17465_v54 = vcombine.low %v2707_v41, %v2719_v44  ;;  %v17851_v42 = vcombine.low %v3092_v45, %v3104_v18  ;;  %v17876_v56 = vcombine.high %v3116_v52, %v3128_v53  ;;  %v2827_v44 = vld [vmem:[#allocation10 + $0xe60] sm:$0xff]  ;;  %v3212_v18 = vld [vmem:[#allocation10 + $0x1a68] sm:$0xff] }
 0x3af   :  { %10113 = vmatprep.subr.bf16.mxu0 %v17756_v55  ;;  %v17490_v55 = vcombine.high %v2731_v21, %v2743_v14  ;;  %v2839_v45 = vld [vmem:[#allocation10 + $0xec0] sm:$0xff] }
 0x3b1   :  { %9942 = vmatpush1.bf16.msra.mxu1 %v17369_v0  ;;  %v3152_v0 = vld [vmem:[#allocation10 + $0x1888] sm:$0xff] }
 0x3b2   :  { %10114 = vmatpush1.bf16.msra.mxu0 %v17755_v1  ;;  %9943 = vmatprep.subr.bf16.mxu1 %v17394_v24  ;;  %v17489_v1 = vcombine.low %v2731_v21, %v2743_v14  ;;  %v17875_v24 = vcombine.low %v3116_v52, %v3128_v53  ;;  %v17900_v22 = vcombine.high %v3140_v59, %v3152_v0  ;;  %v2851_v14 = vld [vmem:[#allocation10 + $0xf20] sm:$0xff]  ;;  %v3236_v53 = vld [vmem:[#allocation10 + $0x1b28] sm:$0xff] }
 0x3b3   :  { %10115 = vmatprep.subr.bf16.mxu0 %v17780_v2  ;;  %v17514_v2 = vcombine.high %v2755_v20, %v2767_v19  ;;  %v2863_v52 = vld [vmem:[#allocation10 + $0xf80] sm:$0xff] }
 0x3b5   :  { %9944 = vmatpush1.bf16.msra.mxu1 %v17393_v13  ;;  %v3176_v13 = vld [vmem:[#allocation10 + $0x1948] sm:$0xff] }
 0x3b6   :  { %10116 = vmatpush1.bf16.msra.mxu0 %v17779_v29  ;;  %9945 = vmatprep.subr.bf16.mxu1 %v17418_v31  ;;  %v17513_v29 = vcombine.low %v2755_v20, %v2767_v19  ;;  %v17899_v31 = vcombine.low %v3140_v59, %v3152_v0  ;;  %v17924_v61 = vcombine.high %v3164_v11, %v3176_v13  ;;  %v2875_v19 = vld [vmem:[#allocation10 + $0xfe0] sm:$0xff]  ;;  %v3260_v0 = vld [vmem:[#allocation10 + $0x1be8] sm:$0xff] }
 0x3b7   :  { %10117 = vmatprep.subr.bf16.mxu0 %v17804_v32  ;;  %v17538_v32 = vcombine.high %v2779_v3, %v2791_v6  ;;  %v2887_v59 = vld [vmem:[#allocation10 + $0x1040] sm:$0xff] }
 0x3b9   :  { %9946 = vmatpush1.bf16.msra.mxu1 %v17417_v37  ;;  %v3200_v37 = vld [vmem:[#allocation10 + $0x1a08] sm:$0xff] }
 0x3ba   :  { %10118 = vmatpush1.bf16.msra.mxu0 %v17803_v12  ;;  %9947 = vmatprep.subr.bf16.mxu1 %v17442_v26  ;;  %v17537_v12 = vcombine.low %v2779_v3, %v2791_v6  ;;  %v17923_v26 = vcombine.low %v3164_v11, %v3176_v13  ;;  %v17948_v41 = vcombine.high %v3188_v36, %v3200_v37  ;;  %v2899_v6 = vld [vmem:[#allocation10 + $0x10a0] sm:$0xff]  ;;  %v3284_v13 = vld [vmem:[#allocation10 + $0x1ca8] sm:$0xff] }
 0x3bb   :  { %10119 = vmatprep.subr.bf16.mxu0 %v17828_v40  ;;  %v17562_v40 = vcombine.high %v2803_v34, %v2815_v35  ;;  %v2911_v11 = vld [vmem:[#allocation10 + $0x1100] sm:$0xff] }
 0x3bd   :  { %9948 = vmatpush1.bf16.msra.mxu1 %v17441_v62  ;;  %v3224_v62 = vld [vmem:[#allocation10 + $0x1ac8] sm:$0xff] }
 0x3be   :  { %10120 = vmatpush1.bf16.msra.mxu0 %v17827_v47  ;;  %9949 = vmatprep.subr.bf16.mxu1 %v17466_v48  ;;  %v17561_v47 = vcombine.low %v2803_v34, %v2815_v35  ;;  %v17947_v48 = vcombine.low %v3188_v36, %v3200_v37  ;;  %v17972_v21 = vcombine.high %v3212_v18, %v3224_v62  ;;  %v2923_v35 = vld [vmem:[#allocation10 + $0x1160] sm:$0xff]  ;;  %v3308_v37 = vld [vmem:[#allocation10 + $0x1d68] sm:$0xff] }
 0x3bf   :  { %10121 = vmatprep.subr.bf16.mxu0 %v17852_v63  ;;  %v17586_v63 = vcombine.high %v2827_v44, %v2839_v45  ;;  %v2935_v36 = vld [vmem:[#allocation10 + $0x11c0] sm:$0xff] }
 0x3c1   :  { %9950 = vmatpush1.bf16.msra.mxu1 %v17465_v54  ;;  %v3248_v54 = vld [vmem:[#allocation10 + $0x1b88] sm:$0xff] }
 0x3c2   :  { %10122 = vmatpush1.bf16.msra.mxu0 %v17851_v42  ;;  %9951 = vmatprep.subr.bf16.mxu1 %v17490_v55  ;;  %v17585_v42 = vcombine.low %v2827_v44, %v2839_v45  ;;  %v17971_v55 = vcombine.low %v3212_v18, %v3224_v62  ;;  %v17996_v20 = vcombine.high %v3236_v53, %v3248_v54  ;;  %v2947_v45 = vld [vmem:[#allocation10 + $0x1220] sm:$0xff]  ;;  %v3332_v62 = vld [vmem:[#allocation10 + $0x1e28] sm:$0xff] }
 0x3c3   :  { %10123 = vmatprep.subr.bf16.mxu0 %v17876_v56  ;;  %v17610_v56 = vcombine.high %v2851_v14, %v2863_v52  ;;  %v2959_v18 = vld [vmem:[#allocation10 + $0x1280] sm:$0xff] }
 0x3c5   :  { %9952 = vmatpush1.bf16.msra.mxu1 %v17489_v1  ;;  %v3272_v1 = vld [vmem:[#allocation10 + $0x1c48] sm:$0xff] }
 0x3c6   :  { %10124 = vmatpush1.bf16.msra.mxu0 %v17875_v24  ;;  %9964 = vmatprep.subr.bf16.mxu1 %v17514_v2  ;;  %v17609_v24 = vcombine.low %v2851_v14, %v2863_v52  ;;  %v17995_v2 = vcombine.low %v3236_v53, %v3248_v54  ;;  %v18020_v3 = vcombine.high %v3260_v0, %v3272_v1  ;;  %v2971_v52 = vld [vmem:[#allocation10 + $0x12e0] sm:$0xff]  ;;  %v3356_v54 = vld [vmem:[#allocation10 + $0x1ee8] sm:$0xff] }
 0x3c7   :  { %10136 = vmatprep.subr.bf16.mxu0 %v17900_v22  ;;  %v17634_v22 = vcombine.high %v2875_v19, %v2887_v59  ;;  %v2983_v53 = vld [vmem:[#allocation10 + $0x1340] sm:$0xff] }
 0x3c8   :  { %9954 = vmatmul.mubr.bf16.vlgmr.msra.gmra.mrb[28].mxu1 %v21030_v38 }
 0x3c9   :  { %10126 = vmatmul.mubr.bf16.vlgmr.msra.gmra.mrb[24].mxu0 %v21062_v17  ;;  %9965 = vmatpush1.bf16.msra.mxu1 %v17513_v29  ;;  %v3296_v29 = vld [vmem:[#allocation10 + $0x1d08] sm:$0xff] }
 0x3ca   :  { %10137 = vmatpush1.bf16.msra.mxu0 %v17899_v31  ;;  %9966 = vmatprep.subr.bf16.mxu1 %v17538_v32  ;;  %v17633_v31 = vcombine.low %v2875_v19, %v2887_v59  ;;  %v18019_v32 = vcombine.low %v3260_v0, %v3272_v1  ;;  %v18044_v34 = vcombine.high %v3284_v13, %v3296_v29  ;;  %v2995_v59 = vld [vmem:[#allocation10 + $0x13a0] sm:$0xff]  ;;  %v3380_v1 = vld [vmem:[#allocation10 + $0x1fa8] sm:$0xff] }
 0x3cb   :  { %10138 = vmatprep.subr.bf16.mxu0 %v17924_v61  ;;  %9996 = vmatprep.mubr.bf16.mxu1 %v21032_v46  ;;  %v17658_v61 = vcombine.high %v2899_v6, %v2911_v11  ;;  %v3007_v0 = vld [vmem:[#allocation10 + $0x1400] sm:$0xff] }
 0x3cc   :  { %10168 = vmatprep.mubr.bf16.mxu0 %v21064_v33 }
 0x3cd   :  { %9967 = vmatpush1.bf16.msra.mxu1 %v17537_v12  ;;  %v3320_v12 = vld [vmem:[#allocation10 + $0x1dc8] sm:$0xff] }
 0x3ce   :  { %10139 = vmatpush1.bf16.msra.mxu0 %v17923_v26  ;;  %9968 = vmatprep.subr.bf16.mxu1 %v17562_v40  ;;  %v17657_v26 = vcombine.low %v2899_v6, %v2911_v11  ;;  %v18043_v40 = vcombine.low %v3284_v13, %v3296_v29  ;;  %v18068_v44 = vcombine.high %v3308_v37, %v3320_v12  ;;  %v3019_v11 = vld [vmem:[#allocation10 + $0x1460] sm:$0xff]  ;;  %v3404_v29 = vld [vmem:[#allocation10 + $0x2068] sm:$0xff] }
 0x3cf   :  { %10140 = vmatprep.subr.bf16.mxu0 %v17948_v41  ;;  %v17682_v41 = vcombine.high %v2923_v35, %v2935_v36  ;;  %v3031_v13 = vld [vmem:[#allocation10 + $0x14c0] sm:$0xff] }
 0x3d1   :  { %9969 = vmatpush1.bf16.msra.mxu1 %v17561_v47  ;;  %v3344_v47 = vld [vmem:[#allocation10 + $0x1e88] sm:$0xff] }
 0x3d2   :  { %10141 = vmatpush1.bf16.msra.mxu0 %v17947_v48  ;;  %9970 = vmatprep.subr.bf16.mxu1 %v17586_v63  ;;  %v17681_v48 = vcombine.low %v2923_v35, %v2935_v36  ;;  %v18067_v63 = vcombine.low %v3308_v37, %v3320_v12  ;;  %v18092_v14 = vcombine.high %v3332_v62, %v3344_v47  ;;  %v3043_v36 = vld [vmem:[#allocation10 + $0x1520] sm:$0xff]  ;;  %v3428_v12 = vld [vmem:[#allocation10 + $0x2128] sm:$0xff] }
 0x3d3   :  { %10142 = vmatprep.subr.bf16.mxu0 %v17972_v21  ;;  %v17706_v21 = vcombine.high %v2947_v45, %v2959_v18  ;;  %v3055_v37 = vld [vmem:[#allocation10 + $0x1580] sm:$0xff] }
 0x3d5   :  { %9971 = vmatpush1.bf16.msra.mxu1 %v17585_v42  ;;  %v3368_v42 = vld [vmem:[#allocation10 + $0x1f48] sm:$0xff] }
 0x3d6   :  { %10143 = vmatpush1.bf16.msra.mxu0 %v17971_v55  ;;  %9972 = vmatprep.subr.bf16.mxu1 %v17610_v56  ;;  %v17705_v55 = vcombine.low %v2947_v45, %v2959_v18  ;;  %v18091_v56 = vcombine.low %v3332_v62, %v3344_v47  ;;  %v18116_v19 = vcombine.high %v3356_v54, %v3368_v42  ;;  %v3067_v18 = vld [vmem:[#allocation10 + $0x15e0] sm:$0xff]  ;;  %v3452_v47 = vld [vmem:[#allocation10 + $0x21e8] sm:$0xff] }
 0x3d7   :  { %10144 = vmatprep.subr.bf16.mxu0 %v17996_v20  ;;  %v17730_v20 = vcombine.high %v2971_v52, %v2983_v53  ;;  %v3079_v62 = vld [vmem:[#allocation10 + $0x1640] sm:$0xff] }
 0x3d9   :  { %9973 = vmatpush1.bf16.msra.mxu1 %v17609_v24  ;;  %v3392_v24 = vld [vmem:[#allocation10 + $0x2008] sm:$0xff] }
 0x3da   :  { %10145 = vmatpush1.bf16.msra.mxu0 %v17995_v2  ;;  %9974 = vmatprep.subr.bf16.mxu1 %v17634_v22  ;;  %v17729_v2 = vcombine.low %v2971_v52, %v2983_v53  ;;  %v18115_v22 = vcombine.low %v3356_v54, %v3368_v42  ;;  %v18140_v6 = vcombine.high %v3380_v1, %v3392_v24  ;;  %v3091_v53 = vld [vmem:[#allocation10 + $0x16a0] sm:$0xff]  ;;  %v3476_v42 = vld [vmem:[#allocation10 + $0x22a8] sm:$0xff] }
 0x3db   :  { %10146 = vmatprep.subr.bf16.mxu0 %v18020_v3  ;;  %v17754_v3 = vcombine.high %v2995_v59, %v3007_v0  ;;  %v3103_v54 = vld [vmem:[#allocation10 + $0x1700] sm:$0xff] }
 0x3dd   :  { %9975 = vmatpush1.bf16.msra.mxu1 %v17633_v31  ;;  %v3416_v31 = vld [vmem:[#allocation10 + $0x20c8] sm:$0xff] }
 0x3de   :  { %10147 = vmatpush1.bf16.msra.mxu0 %v18019_v32  ;;  %9976 = vmatprep.subr.bf16.mxu1 %v17658_v61  ;;  %v17753_v32 = vcombine.low %v2995_v59, %v3007_v0  ;;  %v18139_v61 = vcombine.low %v3380_v1, %v3392_v24  ;;  %v18164_v35 = vcombine.high %v3404_v29, %v3416_v31  ;;  %v3115_v0 = vld [vmem:[#allocation10 + $0x1760] sm:$0xff]  ;;  %v3500_v24 = vld [vmem:[#allocation10 + $0x2368] sm:$0xff] }
 0x3df   :  { %10148 = vmatprep.subr.bf16.mxu0 %v18044_v34  ;;  %v17778_v34 = vcombine.high %v3019_v11, %v3031_v13  ;;  %v3127_v1 = vld [vmem:[#allocation10 + $0x17c0] sm:$0xff] }
 0x3e1   :  { %9977 = vmatpush1.bf16.msra.mxu1 %v17657_v26  ;;  %v3440_v26 = vld [vmem:[#allocation10 + $0x2188] sm:$0xff] }
 0x3e2   :  { %10149 = vmatpush1.bf16.msra.mxu0 %v18043_v40  ;;  %9978 = vmatprep.subr.bf16.mxu1 %v17682_v41  ;;  %v17777_v40 = vcombine.low %v3019_v11, %v3031_v13  ;;  %v18163_v41 = vcombine.low %v3404_v29, %v3416_v31  ;;  %v18188_v45 = vcombine.high %v3428_v12, %v3440_v26  ;;  %v3139_v13 = vld [vmem:[#allocation10 + $0x1820] sm:$0xff]  ;;  %v2374_v31 = vld [vmem:[#allocation10 + $0x38] sm:$0xff] }
 0x3e3   :  { %10150 = vmatprep.subr.bf16.mxu0 %v18068_v44  ;;  %v17802_v44 = vcombine.high %v3043_v36, %v3055_v37  ;;  %v3151_v29 = vld [vmem:[#allocation10 + $0x1880] sm:$0xff] }
 0x3e5   :  { %9979 = vmatpush1.bf16.msra.mxu1 %v17681_v48  ;;  %v3464_v48 = vld [vmem:[#allocation10 + $0x2248] sm:$0xff] }
 0x3e6   :  { %10151 = vmatpush1.bf16.msra.mxu0 %v18067_v63  ;;  %9980 = vmatprep.subr.bf16.mxu1 %v17706_v21  ;;  %v17801_v63 = vcombine.low %v3043_v36, %v3055_v37  ;;  %v18187_v21 = vcombine.low %v3428_v12, %v3440_v26  ;;  %v18212_v52 = vcombine.high %v3452_v47, %v3464_v48  ;;  %v3163_v37 = vld [vmem:[#allocation10 + $0x18e0] sm:$0xff]  ;;  %v2398_v26 = vld [vmem:[#allocation10 + $0xf8] sm:$0xff] }
 0x3e7   :  { %10152 = vmatprep.subr.bf16.mxu0 %v18092_v14  ;;  %v17826_v14 = vcombine.high %v3067_v18, %v3079_v62  ;;  %v3175_v12 = vld [vmem:[#allocation10 + $0x1940] sm:$0xff] }
 0x3e9   :  { %9981 = vmatpush1.bf16.msra.mxu1 %v17705_v55  ;;  %v3488_v55 = vld [vmem:[#allocation10 + $0x2308] sm:$0xff] }
 0x3ea   :  { %10153 = vmatpush1.bf16.msra.mxu0 %v18091_v56  ;;  %9982 = vmatprep.subr.bf16.mxu1 %v17730_v20  ;;  %v17825_v56 = vcombine.low %v3067_v18, %v3079_v62  ;;  %v18211_v20 = vcombine.low %v3452_v47, %v3464_v48  ;;  %v18236_v59 = vcombine.high %v3476_v42, %v3488_v55  ;;  %v3187_v62 = vld [vmem:[#allocation10 + $0x19a0] sm:$0xff]  ;;  %v2422_v48 = vld [vmem:[#allocation10 + $0x1b8] sm:$0xff] }
 0x3eb   :  { %10154 = vmatprep.subr.bf16.mxu0 %v18116_v19  ;;  %v17850_v19 = vcombine.high %v3091_v53, %v3103_v54  ;;  %v3199_v47 = vld [vmem:[#allocation10 + $0x1a00] sm:$0xff] }
 0x3ed   :  { %9983 = vmatpush1.bf16.msra.mxu1 %v17729_v2  ;;  %v3512_v2 = vld [vmem:[#allocation10 + $0x23c8] sm:$0xff] }
 0x3ee   :  { %10155 = vmatpush1.bf16.msra.mxu0 %v18115_v22  ;;  %9984 = vmatprep.subr.bf16.mxu1 %v17754_v3  ;;  %v17849_v22 = vcombine.low %v3091_v53, %v3103_v54  ;;  %v18235_v3 = vcombine.low %v3476_v42, %v3488_v55  ;;  %v18260_v11 = vcombine.high %v3500_v24, %v3512_v2  ;;  %v3211_v54 = vld [vmem:[#allocation10 + $0x1a60] sm:$0xff]  ;;  %v2446_v55 = vld [vmem:[#allocation10 + $0x278] sm:$0xff] }
 0x3ef   :  { %10156 = vmatprep.subr.bf16.mxu0 %v18140_v6  ;;  %v17874_v6 = vcombine.high %v3115_v0, %v3127_v1  ;;  %v3223_v42 = vld [vmem:[#allocation10 + $0x1ac0] sm:$0xff] }
 0x3f1   :  { %9985 = vmatpush1.bf16.msra.mxu1 %v17753_v32  ;;  %v2386_v32 = vld [vmem:[#allocation10 + $0x98] sm:$0xff] }
 0x3f2   :  { %10157 = vmatpush1.bf16.msra.mxu0 %v18139_v61  ;;  %9986 = vmatprep.subr.bf16.mxu1 %v17778_v34  ;;  %v17873_v61 = vcombine.low %v3115_v0, %v3127_v1  ;;  %v18259_v34 = vcombine.low %v3500_v24, %v3512_v2  ;;  %v17136_v36 = vcombine.high %v2374_v31, %v2386_v32  ;;  %v3235_v1 = vld [vmem:[#allocation10 + $0x1b20] sm:$0xff]  ;;  %v2470_v2 = vld [vmem:[#allocation10 + $0x338] sm:$0xff] }
 0x3f3   :  { %10158 = vmatprep.subr.bf16.mxu0 %v18164_v35  ;;  %v17898_v35 = vcombine.high %v3139_v13, %v3151_v29  ;;  %v3247_v24 = vld [vmem:[#allocation10 + $0x1b80] sm:$0xff] }
 0x3f5   :  { %9987 = vmatpush1.bf16.msra.mxu1 %v17777_v40  ;;  %v2410_v40 = vld [vmem:[#allocation10 + $0x158] sm:$0xff] }
 0x3f6   :  { %10159 = vmatpush1.bf16.msra.mxu0 %v18163_v41  ;;  %9988 = vmatprep.subr.bf16.mxu1 %v17802_v44  ;;  %v17897_v41 = vcombine.low %v3139_v13, %v3151_v29  ;;  %v17135_v44 = vcombine.low %v2374_v31, %v2386_v32  ;;  %v17160_v18 = vcombine.high %v2398_v26, %v2410_v40  ;;  %v3259_v29 = vld [vmem:[#allocation10 + $0x1be0] sm:$0xff]  ;;  %v2494_v32 = vld [vmem:[#allocation10 + $0x3f8] sm:$0xff] }
 0x3f7   :  { %10160 = vmatprep.subr.bf16.mxu0 %v18188_v45  ;;  %v17922_v45 = vcombine.high %v3163_v37, %v3175_v12  ;;  %v3271_v31 = vld [vmem:[#allocation10 + $0x1c40] sm:$0xff] }
 0x3f9   :  { %9989 = vmatpush1.bf16.msra.mxu1 %v17801_v63  ;;  %v2434_v63 = vld [vmem:[#allocation10 + $0x218] sm:$0xff] }
 0x3fa   :  { %10161 = vmatpush1.bf16.msra.mxu0 %v18187_v21  ;;  %9990 = vmatprep.subr.bf16.mxu1 %v17826_v14  ;;  %v17921_v21 = vcombine.low %v3163_v37, %v3175_v12  ;;  %v17159_v14 = vcombine.low %v2398_v26, %v2410_v40  ;;  %v17184_v53 = vcombine.high %v2422_v48, %v2434_v63  ;;  %v3283_v12 = vld [vmem:[#allocation10 + $0x1ca0] sm:$0xff]  ;;  %v2518_v40 = vld [vmem:[#allocation10 + $0x4b8] sm:$0xff] }
 0x3fb   :  { %10162 = vmatprep.subr.bf16.mxu0 %v18212_v52  ;;  %v17946_v52 = vcombine.high %v3187_v62, %v3199_v47  ;;  %v3295_v26 = vld [vmem:[#allocation10 + $0x1d00] sm:$0xff] }
 0x3fd   :  { %9991 = vmatpush1.bf16.msra.mxu1 %v17825_v56  ;;  %v2458_v56 = vld [vmem:[#allocation10 + $0x2d8] sm:$0xff] }
 0x3fe   :  { %10163 = vmatpush1.bf16.msra.mxu0 %v18211_v20  ;;  %9992 = vmatprep.subr.bf16.mxu1 %v17850_v19  ;;  %v17945_v20 = vcombine.low %v3187_v62, %v3199_v47  ;;  %v17183_v19 = vcombine.low %v2422_v48, %v2434_v63  ;;  %v17208_v0 = vcombine.high %v2446_v55, %v2458_v56  ;;  %v3307_v47 = vld [vmem:[#allocation10 + $0x1d60] sm:$0xff]  ;;  %v2542_v63 = vld [vmem:[#allocation10 + $0x578] sm:$0xff] }
 0x3ff   :  { %10164 = vmatprep.subr.bf16.mxu0 %v18236_v59  ;;  %v17970_v59 = vcombine.high %v3211_v54, %v3223_v42  ;;  %v3319_v48 = vld [vmem:[#allocation10 + $0x1dc0] sm:$0xff] }
 0x401   :  { %9993 = vmatpush1.bf16.msra.mxu1 %v17849_v22  ;;  %v2482_v22 = vld [vmem:[#allocation10 + $0x398] sm:$0xff] }
 0x402   :  { %10165 = vmatpush1.bf16.msra.mxu0 %v18235_v3  ;;  %9994 = vmatprep.subr.bf16.mxu1 %v17874_v6  ;;  %v17969_v3 = vcombine.low %v3211_v54, %v3223_v42  ;;  %v17207_v6 = vcombine.low %v2446_v55, %v2458_v56  ;;  %v17232_v13 = vcombine.high %v2470_v2, %v2482_v22  ;;  %v3331_v42 = vld [vmem:[#allocation10 + $0x1e20] sm:$0xff]  ;;  %v2566_v56 = vld [vmem:[#allocation10 + $0x638] sm:$0xff] }
 0x403   :  { %10166 = vmatprep.subr.bf16.mxu0 %v18260_v11  ;;  %v17994_v11 = vcombine.high %v3235_v1, %v3247_v24  ;;  %v3343_v55 = vld [vmem:[#allocation10 + $0x1e80] sm:$0xff] }
 0x405   :  { %9995 = vmatpush1.bf16.msra.mxu1 %v17873_v61  ;;  %v2506_v61 = vld [vmem:[#allocation10 + $0x458] sm:$0xff] }
 0x406   :  { %10167 = vmatpush1.bf16.msra.mxu0 %v18259_v34  ;;  %10007 = vmatprep.subr.bf16.mxu1 %v17898_v35  ;;  %v17993_v34 = vcombine.low %v3235_v1, %v3247_v24  ;;  %v17231_v35 = vcombine.low %v2470_v2, %v2482_v22  ;;  %v17256_v37 = vcombine.high %v2494_v32, %v2506_v61  ;;  %v3355_v24 = vld [vmem:[#allocation10 + $0x1ee0] sm:$0xff]  ;;  %v2590_v22 = vld [vmem:[#allocation10 + $0x6f8] sm:$0xff] }
 0x407   :  { %10308 = vmatprep.subr.bf16.mxu0 %v17136_v36  ;;  %v18018_v36 = vcombine.high %v3259_v29, %v3271_v31  ;;  %v3367_v2 = vld [vmem:[#allocation10 + $0x1f40] sm:$0xff] }
 0x408   :  { %9997 = vmatmul.mubr.bf16.vlgmr.msra.gmra.mrb[28].mxu1 %v21062_v17 }
 0x409   :  { %10169 = vmatmul.mubr.bf16.vlgmr.msra.gmra.mrb[24].mxu0 %v21090_v10  ;;  %10008 = vmatpush1.bf16.msra.mxu1 %v17897_v41  ;;  %v2530_v41 = vld [vmem:[#allocation10 + $0x518] sm:$0xff] }
 0x40a   :  { %10309 = vmatpush1.bf16.msra.mxu0 %v17135_v44  ;;  %10009 = vmatprep.subr.bf16.mxu1 %v17922_v45  ;;  %v18017_v44 = vcombine.low %v3259_v29, %v3271_v31  ;;  %v17255_v45 = vcombine.low %v2494_v32, %v2506_v61  ;;  %v17280_v62 = vcombine.high %v2518_v40, %v2530_v41  ;;  %v3379_v31 = vld [vmem:[#allocation10 + $0x1fa0] sm:$0xff]  ;;  %v2614_v61 = vld [vmem:[#allocation10 + $0x7b8] sm:$0xff] }
 0x40b   :  { %10310 = vmatprep.subr.bf16.mxu0 %v17160_v18  ;;  %10039 = vmatprep.mubr.bf16.mxu1 %v21064_v33  ;;  %v18042_v18 = vcombine.high %v3283_v12, %v3295_v26  ;;  %v3391_v32 = vld [vmem:[#allocation10 + $0x2000] sm:$0xff] }
 0x40c   :  { %10340 = vmatprep.mubr.bf16.mxu0 %v21016_v49 }
 0x40d   :  { %10010 = vmatpush1.bf16.msra.mxu1 %v17921_v21  ;;  %v2554_v21 = vld [vmem:[#allocation10 + $0x5d8] sm:$0xff] }
 0x40e   :  { %10311 = vmatpush1.bf16.msra.mxu0 %v17159_v14  ;;  %10011 = vmatprep.subr.bf16.mxu1 %v17946_v52  ;;  %v18041_v14 = vcombine.low %v3283_v12, %v3295_v26  ;;  %v17279_v52 = vcombine.low %v2518_v40, %v2530_v41  ;;  %v17304_v54 = vcombine.high %v2542_v63, %v2554_v21  ;;  %v3403_v26 = vld [vmem:[#allocation10 + $0x2060] sm:$0xff]  ;;  %v2638_v41 = vld [vmem:[#allocation10 + $0x878] sm:$0xff] }
 0x40f   :  { %10312 = vmatprep.subr.bf16.mxu0 %v17184_v53  ;;  %v18066_v53 = vcombine.high %v3307_v47, %v3319_v48  ;;  %v3415_v40 = vld [vmem:[#allocation10 + $0x20c0] sm:$0xff] }
 0x411   :  { %10012 = vmatpush1.bf16.msra.mxu1 %v17945_v20  ;;  %v2578_v20 = vld [vmem:[#allocation10 + $0x698] sm:$0xff] }
 0x412   :  { %10313 = vmatpush1.bf16.msra.mxu0 %v17183_v19  ;;  %10013 = vmatprep.subr.bf16.mxu1 %v17970_v59  ;;  %v18065_v19 = vcombine.low %v3307_v47, %v3319_v48  ;;  %v17303_v59 = vcombine.low %v2542_v63, %v2554_v21  ;;  %v17328_v1 = vcombine.high %v2566_v56, %v2578_v20  ;;  %v3427_v48 = vld [vmem:[#allocation10 + $0x2120] sm:$0xff]  ;;  %v2662_v21 = vld [vmem:[#allocation10 + $0x938] sm:$0xff] }
 0x413   :  { %10314 = vmatprep.subr.bf16.mxu0 %v17208_v0  ;;  %v18090_v0 = vcombine.high %v3331_v42, %v3343_v55  ;;  %v3439_v63 = vld [vmem:[#allocation10 + $0x2180] sm:$0xff] }
 0x415   :  { %10014 = vmatpush1.bf16.msra.mxu1 %v17969_v3  ;;  %v2602_v3 = vld [vmem:[#allocation10 + $0x758] sm:$0xff] }
 0x416   :  { %10315 = vmatpush1.bf16.msra.mxu0 %v17207_v6  ;;  %10015 = vmatprep.subr.bf16.mxu1 %v17994_v11  ;;  %v18089_v6 = vcombine.low %v3331_v42, %v3343_v55  ;;  %v17327_v11 = vcombine.low %v2566_v56, %v2578_v20  ;;  %v17352_v29 = vcombine.high %v2590_v22, %v2602_v3  ;;  %v3451_v55 = vld [vmem:[#allocation10 + $0x21e0] sm:$0xff]  ;;  %v2686_v20 = vld [vmem:[#allocation10 + $0x9f8] sm:$0xff] }
 0x417   :  { %10316 = vmatprep.subr.bf16.mxu0 %v17232_v13  ;;  %v18114_v13 = vcombine.high %v3355_v24, %v3367_v2  ;;  %v3463_v56 = vld [vmem:[#allocation10 + $0x2240] sm:$0xff] }
 0x419   :  { %10016 = vmatpush1.bf16.msra.mxu1 %v17993_v34  ;;  %v2626_v34 = vld [vmem:[#allocation10 + $0x818] sm:$0xff] }
 0x41a   :  { %10317 = vmatpush1.bf16.msra.mxu0 %v17231_v35  ;;  %10017 = vmatprep.subr.bf16.mxu1 %v18018_v36  ;;  %v18113_v35 = vcombine.low %v3355_v24, %v3367_v2  ;;  %v17351_v36 = vcombine.low %v2590_v22, %v2602_v3  ;;  %v17376_v12 = vcombine.high %v2614_v61, %v2626_v34  ;;  %v3475_v2 = vld [vmem:[#allocation10 + $0x22a0] sm:$0xff]  ;;  %v2710_v3 = vld [vmem:[#allocation10 + $0xab8] sm:$0xff] }
 0x41b   :  { %10318 = vmatprep.subr.bf16.mxu0 %v17256_v37  ;;  %v18138_v37 = vcombine.high %v3379_v31, %v3391_v32  ;;  %v3487_v22 = vld [vmem:[#allocation10 + $0x2300] sm:$0xff] }
 0x41d   :  { %10018 = vmatpush1.bf16.msra.mxu1 %v18017_v44  ;;  %v2650_v44 = vld [vmem:[#allocation10 + $0x8d8] sm:$0xff] }
 0x41e   :  { %10319 = vmatpush1.bf16.msra.mxu0 %v17255_v45  ;;  %10019 = vmatprep.subr.bf16.mxu1 %v18042_v18  ;;  %v18137_v45 = vcombine.low %v3379_v31, %v3391_v32  ;;  %v17375_v18 = vcombine.low %v2614_v61, %v2626_v34  ;;  %v17400_v47 = vcombine.high %v2638_v41, %v2650_v44  ;;  %v3499_v32 = vld [vmem:[#allocation10 + $0x2360] sm:$0xff]  ;;  %v2734_v34 = vld [vmem:[#allocation10 + $0xb78] sm:$0xff] }
 0x41f   :  { %10320 = vmatprep.subr.bf16.mxu0 %v17280_v62  ;;  %v18162_v62 = vcombine.high %v3403_v26, %v3415_v40  ;;  %v3511_v61 = vld [vmem:[#allocation10 + $0x23c0] sm:$0xff] }
 0x421   :  { %10020 = vmatpush1.bf16.msra.mxu1 %v18041_v14  ;;  %v2674_v14 = vld [vmem:[#allocation10 + $0x998] sm:$0xff] }
 0x422   :  { %10321 = vmatpush1.bf16.msra.mxu0 %v17279_v52  ;;  %10021 = vmatprep.subr.bf16.mxu1 %v18066_v53  ;;  %v18161_v52 = vcombine.low %v3403_v26, %v3415_v40  ;;  %v17399_v53 = vcombine.low %v2638_v41, %v2650_v44  ;;  %v17424_v42 = vcombine.high %v2662_v21, %v2674_v14  ;;  %v2373_v40 = vld [vmem:[#allocation10 + $0x30] sm:$0xff]  ;;  %v2758_v44 = vld [vmem:[#allocation10 + $0xc38] sm:$0xff] }
 0x423   :  { %10322 = vmatprep.subr.bf16.mxu0 %v17304_v54  ;;  %v18186_v54 = vcombine.high %v3427_v48, %v3439_v63  ;;  %v2385_v41 = vld [vmem:[#allocation10 + $0x90] sm:$0xff] }
 0x425   :  { %10022 = vmatpush1.bf16.msra.mxu1 %v18065_v19  ;;  %v2698_v19 = vld [vmem:[#allocation10 + $0xa58] sm:$0xff] }
 0x426   :  { %10323 = vmatpush1.bf16.msra.mxu0 %v17303_v59  ;;  %10023 = vmatprep.subr.bf16.mxu1 %v18090_v0  ;;  %v18185_v59 = vcombine.low %v3427_v48, %v3439_v63  ;;  %v17423_v0 = vcombine.low %v2662_v21, %v2674_v14  ;;  %v17448_v24 = vcombine.high %v2686_v20, %v2698_v19  ;;  %v2397_v63 = vld [vmem:[#allocation10 + $0xf0] sm:$0xff]  ;;  %v2782_v14 = vld [vmem:[#allocation10 + $0xcf8] sm:$0xff] }
 0x427   :  { %10324 = vmatprep.subr.bf16.mxu0 %v17328_v1  ;;  %v18210_v1 = vcombine.high %v3451_v55, %v3463_v56  ;;  %v2409_v21 = vld [vmem:[#allocation10 + $0x150] sm:$0xff] }
 0x429   :  { %10024 = vmatpush1.bf16.msra.mxu1 %v18089_v6  ;;  %v2722_v6 = vld [vmem:[#allocation10 + $0xb18] sm:$0xff] }
 0x42a   :  { %10325 = vmatpush1.bf16.msra.mxu0 %v17327_v11  ;;  %10025 = vmatprep.subr.bf16.mxu1 %v18114_v13  ;;  %v18209_v11 = vcombine.low %v3451_v55, %v3463_v56  ;;  %v17447_v13 = vcombine.low %v2686_v20, %v2698_v19  ;;  %v17472_v31 = vcombine.high %v2710_v3, %v2722_v6  ;;  %v2421_v56 = vld [vmem:[#allocation10 + $0x1b0] sm:$0xff]  ;;  %v2806_v19 = vld [vmem:[#allocation10 + $0xdb8] sm:$0xff] }
 0x42b   :  { %10326 = vmatprep.subr.bf16.mxu0 %v17352_v29  ;;  %v18234_v29 = vcombine.high %v3475_v2, %v3487_v22  ;;  %v2433_v20 = vld [vmem:[#allocation10 + $0x210] sm:$0xff] }
 0x42d   :  { %10026 = vmatpush1.bf16.msra.mxu1 %v18113_v35  ;;  %v2746_v35 = vld [vmem:[#allocation10 + $0xbd8] sm:$0xff] }
 0x42e   :  { %10327 = vmatpush1.bf16.msra.mxu0 %v17351_v36  ;;  %10027 = vmatprep.subr.bf16.mxu1 %v18138_v37  ;;  %v18233_v36 = vcombine.low %v3475_v2, %v3487_v22  ;;  %v17471_v37 = vcombine.low %v2710_v3, %v2722_v6  ;;  %v17496_v26 = vcombine.high %v2734_v34, %v2746_v35  ;;  %v2445_v22 = vld [vmem:[#allocation10 + $0x270] sm:$0xff]  ;;  %v2830_v6 = vld [vmem:[#allocation10 + $0xe78] sm:$0xff] }
 0x42f   :  { %10328 = vmatprep.subr.bf16.mxu0 %v17376_v12  ;;  %v18258_v12 = vcombine.high %v3499_v32, %v3511_v61  ;;  %v2457_v3 = vld [vmem:[#allocation10 + $0x2d0] sm:$0xff] }
 0x431   :  { %10028 = vmatpush1.bf16.msra.mxu1 %v18137_v45  ;;  %v2770_v45 = vld [vmem:[#allocation10 + $0xc98] sm:$0xff] }
 0x432   :  { %10329 = vmatpush1.bf16.msra.mxu0 %v17375_v18  ;;  %10029 = vmatprep.subr.bf16.mxu1 %v18162_v62  ;;  %v18257_v18 = vcombine.low %v3499_v32, %v3511_v61  ;;  %v17495_v62 = vcombine.low %v2734_v34, %v2746_v35  ;;  %v17520_v48 = vcombine.high %v2758_v44, %v2770_v45  ;;  %v2469_v61 = vld [vmem:[#allocation10 + $0x330] sm:$0xff]  ;;  %v2854_v35 = vld [vmem:[#allocation10 + $0xf38] sm:$0xff] }
 0x433   :  { %10330 = vmatprep.subr.bf16.mxu0 %v17400_v47  ;;  %v17134_v47 = vcombine.high %v2373_v40, %v2385_v41  ;;  %v2481_v34 = vld [vmem:[#allocation10 + $0x390] sm:$0xff] }
 0x435   :  { %10030 = vmatpush1.bf16.msra.mxu1 %v18161_v52  ;;  %v2794_v52 = vld [vmem:[#allocation10 + $0xd58] sm:$0xff] }
 0x436   :  { %10331 = vmatpush1.bf16.msra.mxu0 %v17399_v53  ;;  %10031 = vmatprep.subr.bf16.mxu1 %v18186_v54  ;;  %v17133_v53 = vcombine.low %v2373_v40, %v2385_v41  ;;  %v17519_v54 = vcombine.low %v2758_v44, %v2770_v45  ;;  %v17544_v55 = vcombine.high %v2782_v14, %v2794_v52  ;;  %v2493_v41 = vld [vmem:[#allocation10 + $0x3f0] sm:$0xff]  ;;  %v2878_v45 = vld [vmem:[#allocation10 + $0xff8] sm:$0xff] }
 0x437   :  { %10332 = vmatprep.subr.bf16.mxu0 %v17424_v42  ;;  %v17158_v42 = vcombine.high %v2397_v63, %v2409_v21  ;;  %v2505_v44 = vld [vmem:[#allocation10 + $0x450] sm:$0xff] }
 0x439   :  { %10032 = vmatpush1.bf16.msra.mxu1 %v18185_v59  ;;  %v2818_v59 = vld [vmem:[#allocation10 + $0xe18] sm:$0xff] }
 0x43a   :  { %10333 = vmatpush1.bf16.msra.mxu0 %v17423_v0  ;;  %10033 = vmatprep.subr.bf16.mxu1 %v18210_v1  ;;  %v17157_v0 = vcombine.low %v2397_v63, %v2409_v21  ;;  %v17543_v1 = vcombine.low %v2782_v14, %v2794_v52  ;;  %v17568_v2 = vcombine.high %v2806_v19, %v2818_v59  ;;  %v2517_v21 = vld [vmem:[#allocation10 + $0x4b0] sm:$0xff]  ;;  %v2902_v52 = vld [vmem:[#allocation10 + $0x10b8] sm:$0xff] }
 0x43b   :  { %10334 = vmatprep.subr.bf16.mxu0 %v17448_v24  ;;  %v17182_v24 = vcombine.high %v2421_v56, %v2433_v20  ;;  %v2529_v14 = vld [vmem:[#allocation10 + $0x510] sm:$0xff] }
 0x43d   :  { %10034 = vmatpush1.bf16.msra.mxu1 %v18209_v11  ;;  %v2842_v11 = vld [vmem:[#allocation10 + $0xed8] sm:$0xff] }
 0x43e   :  { %10335 = vmatpush1.bf16.msra.mxu0 %v17447_v13  ;;  %10035 = vmatprep.subr.bf16.mxu1 %v18234_v29  ;;  %v17181_v13 = vcombine.low %v2421_v56, %v2433_v20  ;;  %v17567_v29 = vcombine.low %v2806_v19, %v2818_v59  ;;  %v17592_v32 = vcombine.high %v2830_v6, %v2842_v11 }
 0x43f   :  { %10336 = vmatprep.subr.bf16.mxu0 %v17472_v31  ;;  %v17206_v31 = vcombine.high %v2445_v22, %v2457_v3  ;;  %v17253_v56 = vcombine.low %v2493_v41, %v2505_v44  ;;  %v17278_v19 = vcombine.high %v2517_v21, %v2529_v14 }
 0x441   :  { %10036 = vmatpush1.bf16.msra.mxu1 %v18233_v36  ;;  %v2866_v36 = vld [vmem:[#allocation10 + $0xf98] sm:$0xff] }
 0x442   :  { %10337 = vmatpush1.bf16.msra.mxu0 %v17471_v37  ;;  %10037 = vmatprep.subr.bf16.mxu1 %v18258_v12  ;;  %v17205_v37 = vcombine.low %v2445_v22, %v2457_v3  ;;  %v17591_v12 = vcombine.low %v2830_v6, %v2842_v11  ;;  %v17616_v40 = vcombine.high %v2854_v35, %v2866_v36  ;;  %v2938_v22 = vld [vmem:[#allocation10 + $0x11d8] sm:$0xff] }
 0x443   :  { %10338 = vmatprep.subr.bf16.mxu0 %v17496_v26  ;;  %v17230_v26 = vcombine.high %v2469_v61, %v2481_v34 }
 0x445   :  { %10038 = vmatpush1.bf16.msra.mxu1 %v18257_v18  ;;  %v2890_v18 = vld [vmem:[#allocation10 + $0x1058] sm:$0xff] }
 0x446   :  { %10339 = vmatpush1.bf16.msra.mxu0 %v17495_v62  ;;  %10179 = vmatprep.subr.bf16.mxu1 %v17134_v47  ;;  %v17229_v62 = vcombine.low %v2469_v61, %v2481_v34  ;;  %v17615_v47 = vcombine.low %v2854_v35, %v2866_v36  ;;  %v17640_v63 = vcombine.high %v2878_v45, %v2890_v18  ;;  %v2565_v35 = vld [vmem:[#allocation10 + $0x630] sm:$0xff] }
 0x447   :  { %10351 = vmatprep.subr.bf16.mxu0 %v17520_v48  ;;  %v17254_v48 = vcombine.high %v2493_v41, %v2505_v44  ;;  %v17639_v20 = vcombine.low %v2878_v45, %v2890_v18  ;;  %v2577_v36 = vld [vmem:[#allocation10 + $0x690] sm:$0xff] }
 0x448   :  { %10040 = vmatmul.mubr.bf16.vlgmr.msra.gmra.mrb[28].mxu1 %v21090_v10  ;;  %v17326_v41 = vcombine.high %v2565_v35, %v2577_v36  ;;  %v2589_v45 = vld [vmem:[#allocation10 + $0x6f0] sm:$0xff] }
 0x449   :  { %10341 = vmatmul.mubr.bf16.vlgmr.msra.gmra.mrb[28].mxu0 %v21030_v38  ;;  %10180 = vmatpush1.bf16.msra.mxu1 %v17133_v53  ;;  %v2914_v53 = vld [vmem:[#allocation10 + $0x1118] sm:$0xff]  ;;  %v2601_v18 = vld [vmem:[#allocation10 + $0x750] sm:$0xff] }
 0x44a   :  { %10352 = vmatpush1.bf16.msra.mxu0 %v17519_v54  ;;  %10181 = vmatprep.subr.bf16.mxu1 %v17158_v42  ;;  %v20466_v54 = vld [vmem:[#allocation11] sm:$0xff]  ;;  %v17664_v59 = vcombine.high %v2902_v52, %v2914_v53 }
 0x44b   :  { %10353 = vmatprep.subr.bf16.mxu0 %v17544_v55  ;;  %10211 = vmatprep.mubr.bf16.mxu1 %v21016_v49  ;;  %v21167_v42 = vrot.slane %v20466_v54, %v21111_v39  ;;  %v21170_v55 = vrot.slane %v20466_v54, %v21114_v51  ;;  %v2998_v54 = vld [vmem:[#allocation10 + $0x13b8] sm:$0xff] }
 0x44c   :  { %10383 = vmatprep.mubr.bf16.mxu0 %v21032_v46 }
 0x44d   :  { %10182 = vmatpush1.bf16.msra.mxu1 %v17157_v0  ;;  %v2541_v0 = vld [vmem:[#allocation10 + $0x570] sm:$0xff] }
 0x44e   :  { %10354 = vmatpush1.bf16.msra.mxu0 %v17543_v1  ;;  %10183 = vmatprep.subr.bf16.mxu1 %v17182_v24  ;;  %v2553_v24 = vld [vmem:[#allocation10 + $0x5d0] sm:$0xff] }
 0x44f   :  { %10355 = vmatprep.subr.bf16.mxu0 %v17568_v2  ;;  %v2926_v2 = vld [vmem:[#allocation10 + $0x1178] sm:$0xff]  ;;  %v17302_v61 = vcombine.high %v2541_v0, %v2553_v24 }
 0x450   :  { %v17688_v34 = vcombine.high %v2926_v2, %v2938_v22 }
 0x451   :  { %10184 = vmatpush1.bf16.msra.mxu1 %v17181_v13 }
 0x452   :  { %10356 = vmatpush1.bf16.msra.mxu0 %v17567_v29  ;;  %10185 = vmatprep.subr.bf16.mxu1 %v17206_v31  ;;  %v17277_v29 = vcombine.low %v2517_v21, %v2529_v14  ;;  %v17663_v31 = vcombine.low %v2902_v52, %v2914_v53  ;;  %v17350_v21 = vcombine.high %v2589_v45, %v2601_v18  ;;  %v2613_v52 = vld [vmem:[#allocation10 + $0x7b0] sm:$0xff] }
 0x453   :  { %10357 = vmatprep.subr.bf16.mxu0 %v17592_v32  ;;  %v2625_v53 = vld [vmem:[#allocation10 + $0x810] sm:$0xff] }
 0x455   :  { %10186 = vmatpush1.bf16.msra.mxu1 %v17205_v37  ;;  %v2950_v37 = vld [vmem:[#allocation10 + $0x1238] sm:$0xff] }
 0x456   :  { %10358 = vmatpush1.bf16.msra.mxu0 %v17591_v12  ;;  %10187 = vmatprep.subr.bf16.mxu1 %v17230_v26  ;;  %v2962_v12 = vld [vmem:[#allocation10 + $0x1298] sm:$0xff]  ;;  %v17301_v26 = vcombine.low %v2541_v0, %v2553_v24  ;;  %v2649_v24 = vld [vmem:[#allocation10 + $0x8d0] sm:$0xff] }
 0x457   :  { %10359 = vmatprep.subr.bf16.mxu0 %v17616_v40  ;;  %v17687_v40 = vcombine.low %v2926_v2, %v2938_v22  ;;  %v17712_v44 = vcombine.high %v2950_v37, %v2962_v12  ;;  %v3022_v2 = vld [vmem:[#allocation10 + $0x1478] sm:$0xff] }
 0x458   :  { %v3034_v22 = vld [vmem:[#allocation10 + $0x14d8] sm:$0xff] }
 0x459   :  { %10188 = vmatpush1.bf16.msra.mxu1 %v17229_v62  ;;  %v2974_v62 = vld [vmem:[#allocation10 + $0x12f8] sm:$0xff] }
 0x45a   :  { %10360 = vmatpush1.bf16.msra.mxu0 %v17615_v47  ;;  %10189 = vmatprep.subr.bf16.mxu1 %v17254_v48  ;;  %v2986_v47 = vld [vmem:[#allocation10 + $0x1358] sm:$0xff]  ;;  %v17325_v48 = vcombine.low %v2565_v35, %v2577_v36  ;;  %v2673_v35 = vld [vmem:[#allocation10 + $0x990] sm:$0xff] }
 0x45b   :  { %10361 = vmatprep.subr.bf16.mxu0 %v17640_v63  ;;  %v9783_v1 = vpop.f32.mrb[24].mxu1  ;;  %v17711_v63 = vcombine.low %v2950_v37, %v2962_v12  ;;  %v17736_v14 = vcombine.high %v2974_v62, %v2986_v47  ;;  %v3046_v36 = vld [vmem:[#allocation10 + $0x1538] sm:$0xff] }
 0x45c   :  { %v21173_v3 = vadd.f32 %v9783_v1, %v21167_v42  ;;  %v9785_v6 = vpop.f32.mrb[25].mxu1  ;;  %v2637_v1 = vld [vmem:[#allocation10 + $0x870] sm:$0xff]  ;;  %v3058_v37 = vld [vmem:[#allocation10 + $0x1598] sm:$0xff] }
 0x45d   :  { %v21176_v11 = vadd.f32 %v9785_v6, %v21170_v55  ;;  %v21178_v13 = vpop.f32.mrb[26].mxu1  ;;  %10190 = vmatpush1.bf16.msra.mxu1 %v17253_v56  ;;  %v3010_v56 = vld [vmem:[#allocation10 + $0x1418] sm:$0xff]  ;;  %v17373_v6 = vcombine.low %v2613_v52, %v2625_v53  ;;  %v17397_v12 = vcombine.low %v2637_v1, %v2649_v24 }
 0x45e   :  { %21840 = vst [vmem:[#allocation39_spill] sm:$0xff] %v21173_v3  ;;  %10362 = vmatpush1.bf16.msra.mxu0 %v17639_v20  ;;  %v21180_v32 = vpop.f32.mrb[27].mxu1  ;;  %10191 = vmatprep.subr.bf16.mxu1 %v17278_v19  ;;  %v17349_v20 = vcombine.low %v2589_v45, %v2601_v18  ;;  %v17735_v19 = vcombine.low %v2974_v62, %v2986_v47  ;;  %v2697_v45 = vld [vmem:[#allocation10 + $0xa50] sm:$0xff]  ;;  %v3070_v18 = vld [vmem:[#allocation10 + $0x15f8] sm:$0xff] }
 0x45f   :  { %21841 = vst [vmem:[#allocation40_spill] sm:$0xff] %v21176_v11  ;;  %10363 = vmatprep.subr.bf16.mxu0 %v17664_v59  ;;  %v17374_v59 = vcombine.high %v2613_v52, %v2625_v53  ;;  %v17760_v0 = vcombine.high %v2998_v54, %v3010_v56  ;;  %v3082_v62 = vld [vmem:[#allocation10 + $0x1658] sm:$0xff]  ;;  %v2721_v52 = vld [vmem:[#allocation10 + $0xb10] sm:$0xff] }
 0x460   :  { %v3094_v53 = vld [vmem:[#allocation10 + $0x16b8] sm:$0xff]  ;;  %v2497_v11 = vld [vmem:[#allocation10 + $0x410] sm:$0xff] }
 0x461   :  { %10192 = vmatpush1.bf16.msra.mxu1 %v17277_v29  ;;  %v17759_v29 = vcombine.low %v2998_v54, %v3010_v56  ;;  %v3106_v54 = vld [vmem:[#allocation10 + $0x1718] sm:$0xff] }
 0x462   :  { %10364 = vmatpush1.bf16.msra.mxu0 %v17663_v31  ;;  %10193 = vmatprep.subr.bf16.mxu1 %v17302_v61  ;;  %v17398_v31 = vcombine.high %v2637_v1, %v2649_v24  ;;  %v17784_v61 = vcombine.high %v3022_v2, %v3034_v22  ;;  %v2745_v1 = vld [vmem:[#allocation10 + $0xbd0] sm:$0xff]  ;;  %v3118_v24 = vld [vmem:[#allocation10 + $0x1778] sm:$0xff] }
 0x463   :  { %10365 = vmatprep.subr.bf16.mxu0 %v17688_v34  ;;  %v2661_v34 = vld [vmem:[#allocation10 + $0x930] sm:$0xff] }
 0x464   :  { %v17421_v47 = vcombine.low %v2661_v34, %v2673_v35 }
 0x465   :  { %10194 = vmatpush1.bf16.msra.mxu1 %v17301_v26  ;;  %v17783_v26 = vcombine.low %v3022_v2, %v3034_v22  ;;  %v3130_v2 = vld [vmem:[#allocation10 + $0x17d8] sm:$0xff] }
 0x466   :  { %10366 = vmatpush1.bf16.msra.mxu0 %v17687_v40  ;;  %10195 = vmatprep.subr.bf16.mxu1 %v17326_v41  ;;  %v17422_v40 = vcombine.high %v2661_v34, %v2673_v35  ;;  %v17808_v41 = vcombine.high %v3046_v36, %v3058_v37  ;;  %v2769_v34 = vld [vmem:[#allocation10 + $0xc90] sm:$0xff]  ;;  %v3142_v35 = vld [vmem:[#allocation10 + $0x1838] sm:$0xff] }
 0x467   :  { %10367 = vmatprep.subr.bf16.mxu0 %v17712_v44  ;;  %v2685_v44 = vld [vmem:[#allocation10 + $0x9f0] sm:$0xff] }
 0x468   :  { %v17445_v56 = vcombine.low %v2685_v44, %v2697_v45 }
 0x469   :  { %10196 = vmatpush1.bf16.msra.mxu1 %v17325_v48  ;;  %v17807_v48 = vcombine.low %v3046_v36, %v3058_v37  ;;  %v3154_v36 = vld [vmem:[#allocation10 + $0x1898] sm:$0xff] }
 0x46a   :  { %10368 = vmatpush1.bf16.msra.mxu0 %v17711_v63  ;;  %10197 = vmatprep.subr.bf16.mxu1 %v17350_v21  ;;  %v17446_v63 = vcombine.high %v2685_v44, %v2697_v45  ;;  %v17832_v21 = vcombine.high %v3070_v18, %v3082_v62  ;;  %v2793_v44 = vld [vmem:[#allocation10 + $0xd50] sm:$0xff]  ;;  %v3166_v45 = vld [vmem:[#allocation10 + $0x18f8] sm:$0xff] }
 0x46b   :  { %10369 = vmatprep.subr.bf16.mxu0 %v17736_v14  ;;  %v2709_v14 = vld [vmem:[#allocation10 + $0xab0] sm:$0xff] }
 0x46c   :  { %v17469_v22 = vcombine.low %v2709_v14, %v2721_v52 }
 0x46d   :  { %10198 = vmatpush1.bf16.msra.mxu1 %v17349_v20  ;;  %v17831_v20 = vcombine.low %v3070_v18, %v3082_v62  ;;  %v3178_v18 = vld [vmem:[#allocation10 + $0x1958] sm:$0xff] }
 0x46e   :  { %10370 = vmatpush1.bf16.msra.mxu0 %v17735_v19  ;;  %10199 = vmatprep.subr.bf16.mxu1 %v17374_v59  ;;  %v17470_v19 = vcombine.high %v2709_v14, %v2721_v52  ;;  %v17856_v59 = vcombine.high %v3094_v53, %v3106_v54  ;;  %v2817_v14 = vld [vmem:[#allocation10 + $0xe10] sm:$0xff]  ;;  %v3190_v52 = vld [vmem:[#allocation10 + $0x19b8] sm:$0xff] }
 0x46f   :  { %10371 = vmatprep.subr.bf16.mxu0 %v17760_v0  ;;  %v2733_v0 = vld [vmem:[#allocation10 + $0xb70] sm:$0xff] }
 0x470   :  { %v17493_v37 = vcombine.low %v2733_v0, %v2745_v1 }
 0x471   :  { %10200 = vmatpush1.bf16.msra.mxu1 %v17373_v6  ;;  %v17855_v6 = vcombine.low %v3094_v53, %v3106_v54  ;;  %v3202_v53 = vld [vmem:[#allocation10 + $0x1a18] sm:$0xff] }
 0x472   :  { %10372 = vmatpush1.bf16.msra.mxu0 %v17759_v29  ;;  %10201 = vmatprep.subr.bf16.mxu1 %v17398_v31  ;;  %v17494_v29 = vcombine.high %v2733_v0, %v2745_v1  ;;  %v17880_v31 = vcombine.high %v3118_v24, %v3130_v2  ;;  %v2841_v0 = vld [vmem:[#allocation10 + $0xed0] sm:$0xff]  ;;  %v3214_v1 = vld [vmem:[#allocation10 + $0x1a78] sm:$0xff] }
 0x473   :  { %10373 = vmatprep.subr.bf16.mxu0 %v17784_v61  ;;  %v2757_v61 = vld [vmem:[#allocation10 + $0xc30] sm:$0xff] }
 0x474   :  { %v17517_v62 = vcombine.low %v2757_v61, %v2769_v34 }
 0x475   :  { %10202 = vmatpush1.bf16.msra.mxu1 %v17397_v12  ;;  %v17879_v12 = vcombine.low %v3118_v24, %v3130_v2  ;;  %v3226_v24 = vld [vmem:[#allocation10 + $0x1ad8] sm:$0xff] }
 0x476   :  { %10374 = vmatpush1.bf16.msra.mxu0 %v17783_v26  ;;  %10203 = vmatprep.subr.bf16.mxu1 %v17422_v40  ;;  %v17518_v26 = vcombine.high %v2757_v61, %v2769_v34  ;;  %v17904_v40 = vcombine.high %v3142_v35, %v3154_v36  ;;  %v2865_v61 = vld [vmem:[#allocation10 + $0xf90] sm:$0xff]  ;;  %v3238_v34 = vld [vmem:[#allocation10 + $0x1b38] sm:$0xff] }
 0x477   :  { %10375 = vmatprep.subr.bf16.mxu0 %v17808_v41  ;;  %v2781_v41 = vld [vmem:[#allocation10 + $0xcf0] sm:$0xff] }
 0x478   :  { %v17541_v54 = vcombine.low %v2781_v41, %v2793_v44 }
 0x479   :  { %10204 = vmatpush1.bf16.msra.mxu1 %v17421_v47  ;;  %v17903_v47 = vcombine.low %v3142_v35, %v3154_v36  ;;  %v3250_v35 = vld [vmem:[#allocation10 + $0x1b98] sm:$0xff] }
 0x47a   :  { %10376 = vmatpush1.bf16.msra.mxu0 %v17807_v48  ;;  %10205 = vmatprep.subr.bf16.mxu1 %v17446_v63  ;;  %v17542_v48 = vcombine.high %v2781_v41, %v2793_v44  ;;  %v17928_v63 = vcombine.high %v3166_v45, %v3178_v18  ;;  %v2889_v41 = vld [vmem:[#allocation10 + $0x1050] sm:$0xff]  ;;  %v3262_v44 = vld [vmem:[#allocation10 + $0x1bf8] sm:$0xff] }
 0x47b   :  { %10377 = vmatprep.subr.bf16.mxu0 %v17832_v21  ;;  %v2805_v21 = vld [vmem:[#allocation10 + $0xdb0] sm:$0xff] }
 0x47c   :  { %v17565_v2 = vcombine.low %v2805_v21, %v2817_v14 }
 0x47d   :  { %10206 = vmatpush1.bf16.msra.mxu1 %v17445_v56  ;;  %v17927_v56 = vcombine.low %v3166_v45, %v3178_v18  ;;  %v3274_v45 = vld [vmem:[#allocation10 + $0x1c58] sm:$0xff] }
 0x47e   :  { %10378 = vmatpush1.bf16.msra.mxu0 %v17831_v20  ;;  %10207 = vmatprep.subr.bf16.mxu1 %v17470_v19  ;;  %v17566_v20 = vcombine.high %v2805_v21, %v2817_v14  ;;  %v17952_v19 = vcombine.high %v3190_v52, %v3202_v53  ;;  %v2913_v21 = vld [vmem:[#allocation10 + $0x1110] sm:$0xff]  ;;  %v3286_v14 = vld [vmem:[#allocation10 + $0x1cb8] sm:$0xff] }
 0x47f   :  { %10379 = vmatprep.subr.bf16.mxu0 %v17856_v59  ;;  %v2829_v59 = vld [vmem:[#allocation10 + $0xe70] sm:$0xff] }
 0x480   :  { %v17589_v36 = vcombine.low %v2829_v59, %v2841_v0 }
 0x481   :  { %10208 = vmatpush1.bf16.msra.mxu1 %v17469_v22  ;;  %v17951_v22 = vcombine.low %v3190_v52, %v3202_v53  ;;  %v3298_v52 = vld [vmem:[#allocation10 + $0x1d18] sm:$0xff] }
 0x482   :  { %10380 = vmatpush1.bf16.msra.mxu0 %v17855_v6  ;;  %10209 = vmatprep.subr.bf16.mxu1 %v17494_v29  ;;  %v17590_v6 = vcombine.high %v2829_v59, %v2841_v0  ;;  %v17976_v29 = vcombine.high %v3214_v1, %v3226_v24  ;;  %v2937_v59 = vld [vmem:[#allocation10 + $0x11d0] sm:$0xff]  ;;  %v3310_v0 = vld [vmem:[#allocation10 + $0x1d78] sm:$0xff] }
 0x483   :  { %10381 = vmatprep.subr.bf16.mxu0 %v17880_v31  ;;  %v2853_v31 = vld [vmem:[#allocation10 + $0xf30] sm:$0xff] }
 0x484   :  { %v17613_v18 = vcombine.low %v2853_v31, %v2865_v61 }
 0x485   :  { %10210 = vmatpush1.bf16.msra.mxu1 %v17493_v37  ;;  %v17975_v37 = vcombine.low %v3214_v1, %v3226_v24  ;;  %v3322_v1 = vld [vmem:[#allocation10 + $0x1dd8] sm:$0xff] }
 0x486   :  { %10382 = vmatpush1.bf16.msra.mxu0 %v17879_v12  ;;  %10222 = vmatprep.subr.bf16.mxu1 %v17518_v26  ;;  %v17614_v12 = vcombine.high %v2853_v31, %v2865_v61  ;;  %v18000_v26 = vcombine.high %v3238_v34, %v3250_v35  ;;  %v2961_v31 = vld [vmem:[#allocation10 + $0x1290] sm:$0xff]  ;;  %v3334_v61 = vld [vmem:[#allocation10 + $0x1e38] sm:$0xff] }
 0x487   :  { %10394 = vmatprep.subr.bf16.mxu0 %v17904_v40  ;;  %v2877_v40 = vld [vmem:[#allocation10 + $0xff0] sm:$0xff] }
 0x488   :  { %10212 = vmatmul.mubr.bf16.vlgmr.msra.gmra.mrb[32].mxu1 %v21030_v38  ;;  %v17637_v53 = vcombine.low %v2877_v40, %v2889_v41 }
 0x489   :  { %10384 = vmatmul.mubr.bf16.vlgmr.msra.gmra.mrb[28].mxu0 %v21062_v17  ;;  %10223 = vmatpush1.bf16.msra.mxu1 %v17517_v62  ;;  %v17999_v62 = vcombine.low %v3238_v34, %v3250_v35  ;;  %v3346_v34 = vld [vmem:[#allocation10 + $0x1e98] sm:$0xff] }
 0x48a   :  { %10395 = vmatpush1.bf16.msra.mxu0 %v17903_v47  ;;  %10224 = vmatprep.subr.bf16.mxu1 %v17542_v48  ;;  %v17638_v47 = vcombine.high %v2877_v40, %v2889_v41  ;;  %v18024_v48 = vcombine.high %v3262_v44, %v3274_v45  ;;  %v2985_v40 = vld [vmem:[#allocation10 + $0x1350] sm:$0xff]  ;;  %v3358_v41 = vld [vmem:[#allocation10 + $0x1ef8] sm:$0xff] }
 0x48b   :  { %10396 = vmatprep.subr.bf16.mxu0 %v17928_v63  ;;  %10254 = vmatprep.mubr.bf16.mxu1 %v21032_v46  ;;  %v2901_v63 = vld [vmem:[#allocation10 + $0x10b0] sm:$0xff] }
 0x48c   :  { %10426 = vmatprep.mubr.bf16.mxu0 %v21064_v33  ;;  %v17661_v24 = vcombine.low %v2901_v63, %v2913_v21 }
 0x48d   :  { %10225 = vmatpush1.bf16.msra.mxu1 %v17541_v54  ;;  %v18023_v54 = vcombine.low %v3262_v44, %v3274_v45  ;;  %v3370_v44 = vld [vmem:[#allocation10 + $0x1f58] sm:$0xff] }
 0x48e   :  { %10397 = vmatpush1.bf16.msra.mxu0 %v17927_v56  ;;  %10226 = vmatprep.subr.bf16.mxu1 %v17566_v20  ;;  %v17662_v56 = vcombine.high %v2901_v63, %v2913_v21  ;;  %v18048_v20 = vcombine.high %v3286_v14, %v3298_v52  ;;  %v3009_v63 = vld [vmem:[#allocation10 + $0x1410] sm:$0xff]  ;;  %v3382_v21 = vld [vmem:[#allocation10 + $0x1fb8] sm:$0xff] }
 0x48f   :  { %10398 = vmatprep.subr.bf16.mxu0 %v17952_v19  ;;  %v2925_v19 = vld [vmem:[#allocation10 + $0x1170] sm:$0xff] }
 0x490   :  { %v17685_v35 = vcombine.low %v2925_v19, %v2937_v59 }
 0x491   :  { %10227 = vmatpush1.bf16.msra.mxu1 %v17565_v2  ;;  %v18047_v2 = vcombine.low %v3286_v14, %v3298_v52  ;;  %v3394_v14 = vld [vmem:[#allocation10 + $0x2018] sm:$0xff] }
 0x492   :  { %10399 = vmatpush1.bf16.msra.mxu0 %v17951_v22  ;;  %10228 = vmatprep.subr.bf16.mxu1 %v17590_v6  ;;  %v17686_v22 = vcombine.high %v2925_v19, %v2937_v59  ;;  %v18072_v6 = vcombine.high %v3310_v0, %v3322_v1  ;;  %v3033_v19 = vld [vmem:[#allocation10 + $0x14d0] sm:$0xff]  ;;  %v3406_v59 = vld [vmem:[#allocation10 + $0x2078] sm:$0xff] }
 0x493   :  { %10400 = vmatprep.subr.bf16.mxu0 %v17976_v29  ;;  %v2949_v29 = vld [vmem:[#allocation10 + $0x1230] sm:$0xff] }
 0x494   :  { %v17709_v45 = vcombine.low %v2949_v29, %v2961_v31 }
 0x495   :  { %10229 = vmatpush1.bf16.msra.mxu1 %v17589_v36  ;;  %v18071_v36 = vcombine.low %v3310_v0, %v3322_v1  ;;  %v3418_v0 = vld [vmem:[#allocation10 + $0x20d8] sm:$0xff] }
 0x496   :  { %10401 = vmatpush1.bf16.msra.mxu0 %v17975_v37  ;;  %10230 = vmatprep.subr.bf16.mxu1 %v17614_v12  ;;  %v17710_v37 = vcombine.high %v2949_v29, %v2961_v31  ;;  %v18096_v12 = vcombine.high %v3334_v61, %v3346_v34  ;;  %v3057_v29 = vld [vmem:[#allocation10 + $0x1590] sm:$0xff]  ;;  %v3430_v31 = vld [vmem:[#allocation10 + $0x2138] sm:$0xff] }
 0x497   :  { %10402 = vmatprep.subr.bf16.mxu0 %v18000_v26  ;;  %v2973_v26 = vld [vmem:[#allocation10 + $0x12f0] sm:$0xff] }
 0x498   :  { %v17733_v52 = vcombine.low %v2973_v26, %v2985_v40 }
 0x499   :  { %10231 = vmatpush1.bf16.msra.mxu1 %v17613_v18  ;;  %v18095_v18 = vcombine.low %v3334_v61, %v3346_v34  ;;  %v3442_v61 = vld [vmem:[#allocation10 + $0x2198] sm:$0xff] }
 0x49a   :  { %10403 = vmatpush1.bf16.msra.mxu0 %v17999_v62  ;;  %10232 = vmatprep.subr.bf16.mxu1 %v17638_v47  ;;  %v17734_v62 = vcombine.high %v2973_v26, %v2985_v40  ;;  %v18120_v47 = vcombine.high %v3358_v41, %v3370_v44  ;;  %v3081_v26 = vld [vmem:[#allocation10 + $0x1650] sm:$0xff]  ;;  %v3454_v40 = vld [vmem:[#allocation10 + $0x21f8] sm:$0xff] }
 0x49b   :  { %10404 = vmatprep.subr.bf16.mxu0 %v18024_v48  ;;  %v2997_v48 = vld [vmem:[#allocation10 + $0x13b0] sm:$0xff] }
 0x49c   :  { %v17757_v1 = vcombine.low %v2997_v48, %v3009_v63 }
 0x49d   :  { %10233 = vmatpush1.bf16.msra.mxu1 %v17637_v53  ;;  %v18119_v53 = vcombine.low %v3358_v41, %v3370_v44  ;;  %v3466_v41 = vld [vmem:[#allocation10 + $0x2258] sm:$0xff] }
 0x49e   :  { %10405 = vmatpush1.bf16.msra.mxu0 %v18023_v54  ;;  %10234 = vmatprep.subr.bf16.mxu1 %v17662_v56  ;;  %v17758_v54 = vcombine.high %v2997_v48, %v3009_v63  ;;  %v18144_v56 = vcombine.high %v3382_v21, %v3394_v14  ;;  %v3105_v48 = vld [vmem:[#allocation10 + $0x1710] sm:$0xff]  ;;  %v3478_v63 = vld [vmem:[#allocation10 + $0x22b8] sm:$0xff] }
 0x49f   :  { %10406 = vmatprep.subr.bf16.mxu0 %v18048_v20  ;;  %v3021_v20 = vld [vmem:[#allocation10 + $0x1470] sm:$0xff] }
 0x4a0   :  { %v17781_v34 = vcombine.low %v3021_v20, %v3033_v19 }
 0x4a1   :  { %10235 = vmatpush1.bf16.msra.mxu1 %v17661_v24  ;;  %v18143_v24 = vcombine.low %v3382_v21, %v3394_v14  ;;  %v3490_v21 = vld [vmem:[#allocation10 + $0x2318] sm:$0xff] }
 0x4a2   :  { %10407 = vmatpush1.bf16.msra.mxu0 %v18047_v2  ;;  %10236 = vmatprep.subr.bf16.mxu1 %v17686_v22  ;;  %v17782_v2 = vcombine.high %v3021_v20, %v3033_v19  ;;  %v18168_v22 = vcombine.high %v3406_v59, %v3418_v0  ;;  %v3129_v20 = vld [vmem:[#allocation10 + $0x17d0] sm:$0xff]  ;;  %v3502_v19 = vld [vmem:[#allocation10 + $0x2378] sm:$0xff] }
 0x4a3   :  { %10408 = vmatprep.subr.bf16.mxu0 %v18072_v6  ;;  %v3045_v6 = vld [vmem:[#allocation10 + $0x1530] sm:$0xff] }
 0x4a4   :  { %v17805_v44 = vcombine.low %v3045_v6, %v3057_v29 }
 0x4a5   :  { %10237 = vmatpush1.bf16.msra.mxu1 %v17685_v35  ;;  %v18167_v35 = vcombine.low %v3406_v59, %v3418_v0  ;;  %v3514_v59 = vld [vmem:[#allocation10 + $0x23d8] sm:$0xff] }
 0x4a6   :  { %10409 = vmatpush1.bf16.msra.mxu0 %v18071_v36  ;;  %10238 = vmatprep.subr.bf16.mxu1 %v17710_v37  ;;  %v17806_v36 = vcombine.high %v3045_v6, %v3057_v29  ;;  %v18192_v37 = vcombine.high %v3430_v31, %v3442_v61  ;;  %v3153_v6 = vld [vmem:[#allocation10 + $0x1890] sm:$0xff]  ;;  %v2376_v29 = vld [vmem:[#allocation10 + $0x48] sm:$0xff] }
 0x4a7   :  { %10410 = vmatprep.subr.bf16.mxu0 %v18096_v12  ;;  %v3069_v12 = vld [vmem:[#allocation10 + $0x15f0] sm:$0xff] }
 0x4a8   :  { %v17829_v14 = vcombine.low %v3069_v12, %v3081_v26 }
 0x4a9   :  { %10239 = vmatpush1.bf16.msra.mxu1 %v17709_v45  ;;  %v18191_v45 = vcombine.low %v3430_v31, %v3442_v61  ;;  %v2388_v31 = vld [vmem:[#allocation10 + $0xa8] sm:$0xff] }
 0x4aa   :  { %10411 = vmatpush1.bf16.msra.mxu0 %v18095_v18  ;;  %10240 = vmatprep.subr.bf16.mxu1 %v17734_v62  ;;  %v17830_v18 = vcombine.high %v3069_v12, %v3081_v26  ;;  %v18216_v62 = vcombine.high %v3454_v40, %v3466_v41  ;;  %v3177_v12 = vld [vmem:[#allocation10 + $0x1950] sm:$0xff]  ;;  %v2400_v26 = vld [vmem:[#allocation10 + $0x108] sm:$0xff] }
 0x4ab   :  { %10412 = vmatprep.subr.bf16.mxu0 %v18120_v47  ;;  %v3093_v47 = vld [vmem:[#allocation10 + $0x16b0] sm:$0xff] }
 0x4ac   :  { %v17853_v0 = vcombine.low %v3093_v47, %v3105_v48 }
 0x4ad   :  { %10241 = vmatpush1.bf16.msra.mxu1 %v17733_v52  ;;  %v18215_v52 = vcombine.low %v3454_v40, %v3466_v41  ;;  %v2412_v40 = vld [vmem:[#allocation10 + $0x168] sm:$0xff] }
 0x4ae   :  { %10413 = vmatpush1.bf16.msra.mxu0 %v18119_v53  ;;  %10242 = vmatprep.subr.bf16.mxu1 %v17758_v54  ;;  %v17854_v53 = vcombine.high %v3093_v47, %v3105_v48  ;;  %v18240_v54 = vcombine.high %v3478_v63, %v3490_v21  ;;  %v3201_v47 = vld [vmem:[#allocation10 + $0x1a10] sm:$0xff]  ;;  %v2424_v48 = vld [vmem:[#allocation10 + $0x1c8] sm:$0xff] }
 0x4af   :  { %10414 = vmatprep.subr.bf16.mxu0 %v18144_v56  ;;  %v3117_v56 = vld [vmem:[#allocation10 + $0x1770] sm:$0xff] }
 0x4b0   :  { %v17877_v61 = vcombine.low %v3117_v56, %v3129_v20 }
 0x4b1   :  { %10243 = vmatpush1.bf16.msra.mxu1 %v17757_v1  ;;  %v18239_v1 = vcombine.low %v3478_v63, %v3490_v21  ;;  %v2436_v63 = vld [vmem:[#allocation10 + $0x228] sm:$0xff] }
 0x4b2   :  { %10415 = vmatpush1.bf16.msra.mxu0 %v18143_v24  ;;  %10244 = vmatprep.subr.bf16.mxu1 %v17782_v2  ;;  %v17878_v24 = vcombine.high %v3117_v56, %v3129_v20  ;;  %v18264_v2 = vcombine.high %v3502_v19, %v3514_v59  ;;  %v3225_v56 = vld [vmem:[#allocation10 + $0x1ad0] sm:$0xff]  ;;  %v2448_v20 = vld [vmem:[#allocation10 + $0x288] sm:$0xff] }
 0x4b3   :  { %10416 = vmatprep.subr.bf16.mxu0 %v18168_v22  ;;  %v3141_v22 = vld [vmem:[#allocation10 + $0x1830] sm:$0xff] }
 0x4b4   :  { %v17901_v41 = vcombine.low %v3141_v22, %v3153_v6 }
 0x4b5   :  { %10245 = vmatpush1.bf16.msra.mxu1 %v17781_v34  ;;  %v18263_v34 = vcombine.low %v3502_v19, %v3514_v59  ;;  %v2460_v19 = vld [vmem:[#allocation10 + $0x2e8] sm:$0xff] }
 0x4b6   :  { %10417 = vmatpush1.bf16.msra.mxu0 %v18167_v35  ;;  %10246 = vmatprep.subr.bf16.mxu1 %v17806_v36  ;;  %v17902_v35 = vcombine.high %v3141_v22, %v3153_v6  ;;  %v17140_v36 = vcombine.high %v2376_v29, %v2388_v31  ;;  %v3249_v22 = vld [vmem:[#allocation10 + $0x1b90] sm:$0xff]  ;;  %v2472_v6 = vld [vmem:[#allocation10 + $0x348] sm:$0xff] }
 0x4b7   :  { %10418 = vmatprep.subr.bf16.mxu0 %v18192_v37  ;;  %v3165_v37 = vld [vmem:[#allocation10 + $0x18f0] sm:$0xff] }
 0x4b8   :  { %v17925_v21 = vcombine.low %v3165_v37, %v3177_v12 }
 0x4b9   :  { %10247 = vmatpush1.bf16.msra.mxu1 %v17805_v44  ;;  %v17139_v44 = vcombine.low %v2376_v29, %v2388_v31  ;;  %v2484_v29 = vld [vmem:[#allocation10 + $0x3a8] sm:$0xff] }
 0x4ba   :  { %10419 = vmatpush1.bf16.msra.mxu0 %v18191_v45  ;;  %10248 = vmatprep.subr.bf16.mxu1 %v17830_v18  ;;  %v17926_v45 = vcombine.high %v3165_v37, %v3177_v12  ;;  %v17164_v18 = vcombine.high %v2400_v26, %v2412_v40  ;;  %v3273_v37 = vld [vmem:[#allocation10 + $0x1c50] sm:$0xff]  ;;  %v2496_v12 = vld [vmem:[#allocation10 + $0x408] sm:$0xff] }
 0x4bb   :  { %10420 = vmatprep.subr.bf16.mxu0 %v18216_v62  ;;  %v3189_v62 = vld [vmem:[#allocation10 + $0x19b0] sm:$0xff] }
 0x4bc   :  { %v17949_v59 = vcombine.low %v3189_v62, %v3201_v47 }
 0x4bd   :  { %10249 = vmatpush1.bf16.msra.mxu1 %v17829_v14  ;;  %v17163_v14 = vcombine.low %v2400_v26, %v2412_v40  ;;  %v2508_v26 = vld [vmem:[#allocation10 + $0x468] sm:$0xff] }
 0x4be   :  { %10421 = vmatpush1.bf16.msra.mxu0 %v18215_v52  ;;  %10250 = vmatprep.subr.bf16.mxu1 %v17854_v53  ;;  %v17950_v52 = vcombine.high %v3189_v62, %v3201_v47  ;;  %v17188_v53 = vcombine.high %v2424_v48, %v2436_v63  ;;  %v3297_v62 = vld [vmem:[#allocation10 + $0x1d10] sm:$0xff]  ;;  %v2520_v47 = vld [vmem:[#allocation10 + $0x4c8] sm:$0xff] }
 0x4bf   :  { %10422 = vmatprep.subr.bf16.mxu0 %v18240_v54  ;;  %v3213_v54 = vld [vmem:[#allocation10 + $0x1a70] sm:$0xff] }
 0x4c0   :  { %v17973_v31 = vcombine.low %v3213_v54, %v3225_v56 }
 0x4c1   :  { %10251 = vmatpush1.bf16.msra.mxu1 %v17853_v0  ;;  %v17187_v0 = vcombine.low %v2424_v48, %v2436_v63  ;;  %v2532_v48 = vld [vmem:[#allocation10 + $0x528] sm:$0xff] }
 0x4c2   :  { %10423 = vmatpush1.bf16.msra.mxu0 %v18239_v1  ;;  %10252 = vmatprep.subr.bf16.mxu1 %v17878_v24  ;;  %v17974_v1 = vcombine.high %v3213_v54, %v3225_v56  ;;  %v17212_v24 = vcombine.high %v2448_v20, %v2460_v19  ;;  %v3321_v54 = vld [vmem:[#allocation10 + $0x1dd0] sm:$0xff]  ;;  %v2544_v56 = vld [vmem:[#allocation10 + $0x588] sm:$0xff] }
 0x4c3   :  { %10424 = vmatprep.subr.bf16.mxu0 %v18264_v2  ;;  %v3237_v2 = vld [vmem:[#allocation10 + $0x1b30] sm:$0xff] }
 0x4c4   :  { %v17997_v40 = vcombine.low %v3237_v2, %v3249_v22 }
 0x4c5   :  { %10253 = vmatpush1.bf16.msra.mxu1 %v17877_v61  ;;  %v17211_v61 = vcombine.low %v2448_v20, %v2460_v19  ;;  %v2556_v20 = vld [vmem:[#allocation10 + $0x5e8] sm:$0xff] }
 0x4c6   :  { %10425 = vmatpush1.bf16.msra.mxu0 %v18263_v34  ;;  %10265 = vmatprep.subr.bf16.mxu1 %v17902_v35  ;;  %v17998_v34 = vcombine.high %v3237_v2, %v3249_v22  ;;  %v17236_v35 = vcombine.high %v2472_v6, %v2484_v29  ;;  %v3345_v2 = vld [vmem:[#allocation10 + $0x1e90] sm:$0xff]  ;;  %v2568_v22 = vld [vmem:[#allocation10 + $0x648] sm:$0xff] }
 0x4c7   :  { %10566 = vmatprep.subr.bf16.mxu0 %v17140_v36  ;;  %v3261_v36 = vld [vmem:[#allocation10 + $0x1bf0] sm:$0xff] }
 0x4c8   :  { %10255 = vmatmul.mubr.bf16.vlgmr.msra.gmra.mrb[32].mxu1 %v21062_v17  ;;  %v18021_v63 = vcombine.low %v3261_v36, %v3273_v37 }
 0x4c9   :  { %10427 = vmatmul.mubr.bf16.vlgmr.msra.gmra.mrb[28].mxu0 %v21090_v10  ;;  %10266 = vmatpush1.bf16.msra.mxu1 %v17901_v41  ;;  %v17235_v41 = vcombine.low %v2472_v6, %v2484_v29  ;;  %v2580_v6 = vld [vmem:[#allocation10 + $0x6a8] sm:$0xff] }
 0x4ca   :  { %10567 = vmatpush1.bf16.msra.mxu0 %v17139_v44  ;;  %10267 = vmatprep.subr.bf16.mxu1 %v17926_v45  ;;  %v18022_v44 = vcombine.high %v3261_v36, %v3273_v37  ;;  %v17260_v45 = vcombine.high %v2496_v12, %v2508_v26  ;;  %v3369_v36 = vld [vmem:[#allocation10 + $0x1f50] sm:$0xff]  ;;  %v2592_v37 = vld [vmem:[#allocation10 + $0x708] sm:$0xff] }
 0x4cb   :  { %10568 = vmatprep.subr.bf16.mxu0 %v17164_v18  ;;  %10297 = vmatprep.mubr.bf16.mxu1 %v21064_v33  ;;  %v3285_v18 = vld [vmem:[#allocation10 + $0x1cb0] sm:$0xff] }
 0x4cc   :  { %10598 = vmatprep.mubr.bf16.mxu0 %v21016_v49  ;;  %v18045_v19 = vcombine.low %v3285_v18, %v3297_v62 }
 0x4cd   :  { %10268 = vmatpush1.bf16.msra.mxu1 %v17925_v21  ;;  %v17259_v21 = vcombine.low %v2496_v12, %v2508_v26  ;;  %v2604_v12 = vld [vmem:[#allocation10 + $0x768] sm:$0xff] }
 0x4ce   :  { %10569 = vmatpush1.bf16.msra.mxu0 %v17163_v14  ;;  %10269 = vmatprep.subr.bf16.mxu1 %v17950_v52  ;;  %v18046_v14 = vcombine.high %v3285_v18, %v3297_v62  ;;  %v17284_v52 = vcombine.high %v2520_v47, %v2532_v48  ;;  %v3393_v18 = vld [vmem:[#allocation10 + $0x2010] sm:$0xff]  ;;  %v2616_v62 = vld [vmem:[#allocation10 + $0x7c8] sm:$0xff] }
 0x4cf   :  { %10570 = vmatprep.subr.bf16.mxu0 %v17188_v53  ;;  %v3309_v53 = vld [vmem:[#allocation10 + $0x1d70] sm:$0xff] }
 0x4d0   :  { %v18069_v29 = vcombine.low %v3309_v53, %v3321_v54 }
 0x4d1   :  { %10270 = vmatpush1.bf16.msra.mxu1 %v17949_v59  ;;  %v17283_v59 = vcombine.low %v2520_v47, %v2532_v48  ;;  %v2628_v47 = vld [vmem:[#allocation10 + $0x828] sm:$0xff] }
 0x4d2   :  { %10571 = vmatpush1.bf16.msra.mxu0 %v17187_v0  ;;  %10271 = vmatprep.subr.bf16.mxu1 %v17974_v1  ;;  %v18070_v0 = vcombine.high %v3309_v53, %v3321_v54  ;;  %v17308_v1 = vcombine.high %v2544_v56, %v2556_v20  ;;  %v3417_v53 = vld [vmem:[#allocation10 + $0x20d0] sm:$0xff]  ;;  %v2640_v54 = vld [vmem:[#allocation10 + $0x888] sm:$0xff] }
 0x4d3   :  { %10572 = vmatprep.subr.bf16.mxu0 %v17212_v24  ;;  %v3333_v24 = vld [vmem:[#allocation10 + $0x1e30] sm:$0xff] }
 0x4d4   :  { %v18093_v26 = vcombine.low %v3333_v24, %v3345_v2 }
 0x4d5   :  { %10272 = vmatpush1.bf16.msra.mxu1 %v17973_v31  ;;  %v17307_v31 = vcombine.low %v2544_v56, %v2556_v20  ;;  %v2652_v56 = vld [vmem:[#allocation10 + $0x8e8] sm:$0xff] }
 0x4d6   :  { %10573 = vmatpush1.bf16.msra.mxu0 %v17211_v61  ;;  %10273 = vmatprep.subr.bf16.mxu1 %v17998_v34  ;;  %v18094_v61 = vcombine.high %v3333_v24, %v3345_v2  ;;  %v17332_v34 = vcombine.high %v2568_v22, %v2580_v6  ;;  %v3441_v24 = vld [vmem:[#allocation10 + $0x2190] sm:$0xff]  ;;  %v2664_v2 = vld [vmem:[#allocation10 + $0x948] sm:$0xff] }
 0x4d7   :  { %10574 = vmatprep.subr.bf16.mxu0 %v17236_v35  ;;  %v3357_v35 = vld [vmem:[#allocation10 + $0x1ef0] sm:$0xff] }
 0x4d8   :  { %v18117_v48 = vcombine.low %v3357_v35, %v3369_v36 }
 0x4d9   :  { %10274 = vmatpush1.bf16.msra.mxu1 %v17997_v40  ;;  %v17331_v40 = vcombine.low %v2568_v22, %v2580_v6  ;;  %v2676_v22 = vld [vmem:[#allocation10 + $0x9a8] sm:$0xff] }
 0x4da   :  { %10575 = vmatpush1.bf16.msra.mxu0 %v17235_v41  ;;  %10275 = vmatprep.subr.bf16.mxu1 %v18022_v44  ;;  %v18118_v41 = vcombine.high %v3357_v35, %v3369_v36  ;;  %v17356_v44 = vcombine.high %v2592_v37, %v2604_v12  ;;  %v3465_v35 = vld [vmem:[#allocation10 + $0x2250] sm:$0xff]  ;;  %v2688_v36 = vld [vmem:[#allocation10 + $0xa08] sm:$0xff] }
 0x4db   :  { %10576 = vmatprep.subr.bf16.mxu0 %v17260_v45  ;;  %v3381_v45 = vld [vmem:[#allocation10 + $0x1fb0] sm:$0xff] }
 0x4dc   :  { %v18141_v20 = vcombine.low %v3381_v45, %v3393_v18 }
 0x4dd   :  { %10276 = vmatpush1.bf16.msra.mxu1 %v18021_v63  ;;  %v17355_v63 = vcombine.low %v2592_v37, %v2604_v12  ;;  %v2700_v37 = vld [vmem:[#allocation10 + $0xa68] sm:$0xff] }
 0x4de   :  { %10577 = vmatpush1.bf16.msra.mxu0 %v17259_v21  ;;  %10277 = vmatprep.subr.bf16.mxu1 %v18046_v14  ;;  %v18142_v21 = vcombine.high %v3381_v45, %v3393_v18  ;;  %v17380_v14 = vcombine.high %v2616_v62, %v2628_v47  ;;  %v3489_v45 = vld [vmem:[#allocation10 + $0x2310] sm:$0xff]  ;;  %v2712_v18 = vld [vmem:[#allocation10 + $0xac8] sm:$0xff] }
 0x4df   :  { %10578 = vmatprep.subr.bf16.mxu0 %v17284_v52  ;;  %v3405_v52 = vld [vmem:[#allocation10 + $0x2070] sm:$0xff] }
 0x4e0   :  { %v18165_v6 = vcombine.low %v3405_v52, %v3417_v53 }
 0x4e1   :  { %10278 = vmatpush1.bf16.msra.mxu1 %v18045_v19  ;;  %v17379_v19 = vcombine.low %v2616_v62, %v2628_v47  ;;  %v2724_v62 = vld [vmem:[#allocation10 + $0xb28] sm:$0xff] }
 0x4e2   :  { %10579 = vmatpush1.bf16.msra.mxu0 %v17283_v59  ;;  %10279 = vmatprep.subr.bf16.mxu1 %v18070_v0  ;;  %v18166_v59 = vcombine.high %v3405_v52, %v3417_v53  ;;  %v17404_v0 = vcombine.high %v2640_v54, %v2652_v56  ;;  %v3513_v52 = vld [vmem:[#allocation10 + $0x23d0] sm:$0xff]  ;;  %v2736_v53 = vld [vmem:[#allocation10 + $0xb88] sm:$0xff] }
 0x4e3   :  { %10580 = vmatprep.subr.bf16.mxu0 %v17308_v1  ;;  %v3429_v1 = vld [vmem:[#allocation10 + $0x2130] sm:$0xff] }
 0x4e4   :  { %v18189_v12 = vcombine.low %v3429_v1, %v3441_v24 }
 0x4e5   :  { %10280 = vmatpush1.bf16.msra.mxu1 %v18069_v29  ;;  %v17403_v29 = vcombine.low %v2640_v54, %v2652_v56  ;;  %v2748_v54 = vld [vmem:[#allocation10 + $0xbe8] sm:$0xff] }
 0x4e6   :  { %10581 = vmatpush1.bf16.msra.mxu0 %v17307_v31  ;;  %10281 = vmatprep.subr.bf16.mxu1 %v18094_v61  ;;  %v18190_v31 = vcombine.high %v3429_v1, %v3441_v24  ;;  %v17428_v61 = vcombine.high %v2664_v2, %v2676_v22  ;;  %v2387_v1 = vld [vmem:[#allocation10 + $0xa0] sm:$0xff]  ;;  %v2760_v24 = vld [vmem:[#allocation10 + $0xc48] sm:$0xff] }
 0x4e7   :  { %10582 = vmatprep.subr.bf16.mxu0 %v17332_v34  ;;  %v3453_v34 = vld [vmem:[#allocation10 + $0x21f0] sm:$0xff] }
 0x4e8   :  { %v18213_v47 = vcombine.low %v3453_v34, %v3465_v35 }
 0x4e9   :  { %10282 = vmatpush1.bf16.msra.mxu1 %v18093_v26  ;;  %v17427_v26 = vcombine.low %v2664_v2, %v2676_v22  ;;  %v2772_v2 = vld [vmem:[#allocation10 + $0xca8] sm:$0xff] }
 0x4ea   :  { %10583 = vmatpush1.bf16.msra.mxu0 %v17331_v40  ;;  %10283 = vmatprep.subr.bf16.mxu1 %v18118_v41  ;;  %v18214_v40 = vcombine.high %v3453_v34, %v3465_v35  ;;  %v17452_v41 = vcombine.high %v2688_v36, %v2700_v37  ;;  %v2411_v34 = vld [vmem:[#allocation10 + $0x160] sm:$0xff]  ;;  %v2784_v35 = vld [vmem:[#allocation10 + $0xd08] sm:$0xff] }
 0x4eb   :  { %10584 = vmatprep.subr.bf16.mxu0 %v17356_v44  ;;  %v3477_v44 = vld [vmem:[#allocation10 + $0x22b0] sm:$0xff] }
 0x4ec   :  { %v18237_v56 = vcombine.low %v3477_v44, %v3489_v45 }
 0x4ed   :  { %10284 = vmatpush1.bf16.msra.mxu1 %v18117_v48  ;;  %v17451_v48 = vcombine.low %v2688_v36, %v2700_v37  ;;  %v2796_v36 = vld [vmem:[#allocation10 + $0xd68] sm:$0xff] }
 0x4ee   :  { %10585 = vmatpush1.bf16.msra.mxu0 %v17355_v63  ;;  %10285 = vmatprep.subr.bf16.mxu1 %v18142_v21  ;;  %v18238_v63 = vcombine.high %v3477_v44, %v3489_v45  ;;  %v17476_v21 = vcombine.high %v2712_v18, %v2724_v62  ;;  %v2435_v44 = vld [vmem:[#allocation10 + $0x220] sm:$0xff]  ;;  %v2808_v45 = vld [vmem:[#allocation10 + $0xdc8] sm:$0xff] }
 0x4ef   :  { %10586 = vmatprep.subr.bf16.mxu0 %v17380_v14  ;;  %v3501_v14 = vld [vmem:[#allocation10 + $0x2370] sm:$0xff] }
 0x4f0   :  { %v18261_v22 = vcombine.low %v3501_v14, %v3513_v52 }
 0x4f1   :  { %10286 = vmatpush1.bf16.msra.mxu1 %v18141_v20  ;;  %v17475_v20 = vcombine.low %v2712_v18, %v2724_v62  ;;  %v2820_v18 = vld [vmem:[#allocation10 + $0xe28] sm:$0xff] }
 0x4f2   :  { %10587 = vmatpush1.bf16.msra.mxu0 %v17379_v19  ;;  %10287 = vmatprep.subr.bf16.mxu1 %v18166_v59  ;;  %v18262_v19 = vcombine.high %v3501_v14, %v3513_v52  ;;  %v17500_v59 = vcombine.high %v2736_v53, %v2748_v54  ;;  %v2459_v14 = vld [vmem:[#allocation10 + $0x2e0] sm:$0xff]  ;;  %v2832_v52 = vld [vmem:[#allocation10 + $0xe88] sm:$0xff] }
 0x4f3   :  { %10588 = vmatprep.subr.bf16.mxu0 %v17404_v0  ;;  %v2375_v0 = vld [vmem:[#allocation10 + $0x40] sm:$0xff] }
 0x4f4   :  { %v17137_v37 = vcombine.low %v2375_v0, %v2387_v1 }
 0x4f5   :  { %10288 = vmatpush1.bf16.msra.mxu1 %v18165_v6  ;;  %v17499_v6 = vcombine.low %v2736_v53, %v2748_v54  ;;  %v2844_v53 = vld [vmem:[#allocation10 + $0xee8] sm:$0xff] }
 0x4f6   :  { %10589 = vmatpush1.bf16.msra.mxu0 %v17403_v29  ;;  %10289 = vmatprep.subr.bf16.mxu1 %v18190_v31  ;;  %v17138_v29 = vcombine.high %v2375_v0, %v2387_v1  ;;  %v17524_v31 = vcombine.high %v2760_v24, %v2772_v2  ;;  %v2483_v0 = vld [vmem:[#allocation10 + $0x3a0] sm:$0xff]  ;;  %v2856_v1 = vld [vmem:[#allocation10 + $0xf48] sm:$0xff] }
 0x4f7   :  { %10590 = vmatprep.subr.bf16.mxu0 %v17428_v61  ;;  %v2399_v61 = vld [vmem:[#allocation10 + $0x100] sm:$0xff] }
 0x4f8   :  { %v17161_v62 = vcombine.low %v2399_v61, %v2411_v34 }
 0x4f9   :  { %10290 = vmatpush1.bf16.msra.mxu1 %v18189_v12  ;;  %v17523_v12 = vcombine.low %v2760_v24, %v2772_v2  ;;  %v2868_v24 = vld [vmem:[#allocation10 + $0xfa8] sm:$0xff] }
 0x4fa   :  { %10591 = vmatpush1.bf16.msra.mxu0 %v17427_v26  ;;  %10291 = vmatprep.subr.bf16.mxu1 %v18214_v40  ;;  %v17162_v26 = vcombine.high %v2399_v61, %v2411_v34  ;;  %v17548_v40 = vcombine.high %v2784_v35, %v2796_v36  ;;  %v2507_v61 = vld [vmem:[#allocation10 + $0x460] sm:$0xff]  ;;  %v2880_v34 = vld [vmem:[#allocation10 + $0x1008] sm:$0xff] }
 0x4fb   :  { %10592 = vmatprep.subr.bf16.mxu0 %v17452_v41  ;;  %v2423_v41 = vld [vmem:[#allocation10 + $0x1c0] sm:$0xff] }
 0x4fc   :  { %v17185_v54 = vcombine.low %v2423_v41, %v2435_v44 }
 0x4fd   :  { %10292 = vmatpush1.bf16.msra.mxu1 %v18213_v47  ;;  %v17547_v47 = vcombine.low %v2784_v35, %v2796_v36  ;;  %v2892_v35 = vld [vmem:[#allocation10 + $0x1068] sm:$0xff] }
 0x4fe   :  { %10593 = vmatpush1.bf16.msra.mxu0 %v17451_v48  ;;  %10293 = vmatprep.subr.bf16.mxu1 %v18238_v63  ;;  %v17186_v48 = vcombine.high %v2423_v41, %v2435_v44  ;;  %v17572_v63 = vcombine.high %v2808_v45, %v2820_v18  ;;  %v2519_v41 = vld [vmem:[#allocation10 + $0x4c0] sm:$0xff] }
 0x4ff   :  { %10594 = vmatprep.subr.bf16.mxu0 %v17476_v21  ;;  %v2447_v21 = vld [vmem:[#allocation10 + $0x280] sm:$0xff] }
 0x500   :  { %v17209_v2 = vcombine.low %v2447_v21, %v2459_v14  ;;  %v2531_v44 = vld [vmem:[#allocation10 + $0x520] sm:$0xff] }
 0x501   :  { %10294 = vmatpush1.bf16.msra.mxu1 %v18237_v56  ;;  %v17571_v56 = vcombine.low %v2808_v45, %v2820_v18  ;;  %v2904_v45 = vld [vmem:[#allocation10 + $0x10c8] sm:$0xff] }
 0x502   :  { %10595 = vmatpush1.bf16.msra.mxu0 %v17475_v20  ;;  %10295 = vmatprep.subr.bf16.mxu1 %v18262_v19  ;;  %v17210_v20 = vcombine.high %v2447_v21, %v2459_v14  ;;  %v17596_v19 = vcombine.high %v2832_v52, %v2844_v53  ;;  %v2916_v18 = vld [vmem:[#allocation10 + $0x1128] sm:$0xff]  ;;  %v17282_v21 = vcombine.high %v2519_v41, %v2531_v44 }
 0x503   :  { %10596 = vmatprep.subr.bf16.mxu0 %v17500_v59  ;;  %v2471_v59 = vld [vmem:[#allocation10 + $0x340] sm:$0xff]  ;;  %v17668_v14 = vcombine.high %v2904_v45, %v2916_v18 }
 0x504   :  { %v17233_v36 = vcombine.low %v2471_v59, %v2483_v0 }
 0x505   :  { %10296 = vmatpush1.bf16.msra.mxu1 %v18261_v22  ;;  %v17595_v22 = vcombine.low %v2832_v52, %v2844_v53  ;;  %v2543_v52 = vld [vmem:[#allocation10 + $0x580] sm:$0xff] }
 0x506   :  { %10597 = vmatpush1.bf16.msra.mxu0 %v17499_v6  ;;  %10437 = vmatprep.subr.bf16.mxu1 %v17138_v29  ;;  %v17234_v6 = vcombine.high %v2471_v59, %v2483_v0  ;;  %v17620_v29 = vcombine.high %v2856_v1, %v2868_v24 }
 0x507   :  { %10609 = vmatprep.subr.bf16.mxu0 %v17524_v31  ;;  %v2495_v31 = vld [vmem:[#allocation10 + $0x400] sm:$0xff] }
 0x508   :  { %10298 = vmatmul.mubr.bf16.vlgmr.msra.gmra.mrb[32].mxu1 %v21090_v10 }
 0x509   :  { %10599 = vmatmul.mubr.bf16.vlgmr.msra.gmra.mrb[32].mxu0 %v21030_v38  ;;  %10438 = vmatpush1.bf16.msra.mxu1 %v17137_v37  ;;  %v17619_v37 = vcombine.low %v2856_v1, %v2868_v24  ;;  %v17281_v24 = vcombine.low %v2519_v41, %v2531_v44  ;;  %v2603_v41 = vld [vmem:[#allocation10 + $0x760] sm:$0xff]  ;;  %v2976_v44 = vld [vmem:[#allocation10 + $0x1308] sm:$0xff] }
 0x50a   :  { %10610 = vmatpush1.bf16.msra.mxu0 %v17523_v12  ;;  %10439 = vmatprep.subr.bf16.mxu1 %v17162_v26  ;;  %v3520_v12 = vld [vmem:[#allocation11 + $0x8] sm:$0xff]  ;;  %v17258_v26 = vcombine.high %v2495_v31, %v2507_v61 }
 0x50b   :  { %10611 = vmatprep.subr.bf16.mxu0 %v17548_v40  ;;  %10469 = vmatprep.mubr.bf16.mxu1 %v21016_v49  ;;  %v17644_v40 = vcombine.high %v2880_v34, %v2892_v35 }
 0x50c   :  { %10641 = vmatprep.mubr.bf16.mxu0 %v21032_v46 }
 0x50d   :  { %10440 = vmatpush1.bf16.msra.mxu1 %v17161_v62  ;;  %v21195_v62 = vrot.slane %v3520_v12, %v21041_v4 }
 0x50e   :  { %10612 = vmatpush1.bf16.msra.mxu0 %v17547_v47  ;;  %10441 = vmatprep.subr.bf16.mxu1 %v17186_v48  ;;  %v21198_v47 = vrot.slane %v3520_v12, %v21044_v8  ;;  %v17257_v48 = vcombine.low %v2495_v31, %v2507_v61  ;;  %v2567_v31 = vld [vmem:[#allocation10 + $0x640] sm:$0xff] }
 0x50f   :  { %10613 = vmatprep.subr.bf16.mxu0 %v17572_v63  ;;  %v17643_v63 = vcombine.low %v2880_v34, %v2892_v35  ;;  %v2579_v61 = vld [vmem:[#allocation10 + $0x6a0] sm:$0xff]  ;;  %v2952_v34 = vld [vmem:[#allocation10 + $0x1248] sm:$0xff] }
 0x510   :  { %v2964_v35 = vld [vmem:[#allocation10 + $0x12a8] sm:$0xff]  ;;  %v17330_v12 = vcombine.high %v2567_v31, %v2579_v61 }
 0x511   :  { %10442 = vmatpush1.bf16.msra.mxu1 %v17185_v54  ;;  %v2555_v54 = vld [vmem:[#allocation10 + $0x5e0] sm:$0xff] }
 0x512   :  { %10614 = vmatpush1.bf16.msra.mxu0 %v17571_v56  ;;  %10443 = vmatprep.subr.bf16.mxu1 %v17210_v20  ;;  %v2928_v56 = vld [vmem:[#allocation10 + $0x1188] sm:$0xff] }
 0x513   :  { %10615 = vmatprep.subr.bf16.mxu0 %v17596_v19  ;;  %v2940_v20 = vld [vmem:[#allocation10 + $0x11e8] sm:$0xff] }
 0x515   :  { %10444 = vmatpush1.bf16.msra.mxu1 %v17209_v2  ;;  %v17667_v2 = vcombine.low %v2904_v45, %v2916_v18  ;;  %v2988_v45 = vld [vmem:[#allocation10 + $0x1368] sm:$0xff]  ;;  %v17329_v18 = vcombine.low %v2567_v31, %v2579_v61 }
 0x516   :  { %10616 = vmatpush1.bf16.msra.mxu0 %v17595_v22  ;;  %10445 = vmatprep.subr.bf16.mxu1 %v17234_v6  ;;  %v17306_v6 = vcombine.high %v2543_v52, %v2555_v54  ;;  %v3036_v31 = vld [vmem:[#allocation10 + $0x14e8] sm:$0xff] }
 0x517   :  { %10617 = vmatprep.subr.bf16.mxu0 %v17620_v29  ;;  %v17692_v29 = vcombine.high %v2928_v56, %v2940_v20 }
 0x519   :  { %10446 = vmatpush1.bf16.msra.mxu1 %v17233_v36  ;;  %v17305_v36 = vcombine.low %v2543_v52, %v2555_v54  ;;  %v3000_v52 = vld [vmem:[#allocation10 + $0x13c8] sm:$0xff] }
 0x51a   :  { %10618 = vmatpush1.bf16.msra.mxu0 %v17619_v37  ;;  %10447 = vmatprep.subr.bf16.mxu1 %v17258_v26  ;;  %v17691_v37 = vcombine.low %v2928_v56, %v2940_v20  ;;  %v17716_v26 = vcombine.high %v2952_v34, %v2964_v35  ;;  %v3012_v54 = vld [vmem:[#allocation10 + $0x1428] sm:$0xff]  ;;  %v17739_v20 = vcombine.low %v2976_v44, %v2988_v45 }
 0x51b   :  { %10619 = vmatprep.subr.bf16.mxu0 %v17644_v40  ;;  %v10041_v53 = vpop.f32.mrb[28].mxu1  ;;  %v2591_v40 = vld [vmem:[#allocation10 + $0x700] sm:$0xff] }
 0x51c   :  { %v21201_v19 = vadd.f32 %v10041_v53, %v21195_v62  ;;  %v10043_v59 = vpop.f32.mrb[29].mxu1  ;;  %v2627_v53 = vld [vmem:[#allocation10 + $0x820] sm:$0xff]  ;;  %v17353_v56 = vcombine.low %v2591_v40, %v2603_v41 }
 0x51d   :  { %v21204_v0 = vadd.f32 %v10043_v59, %v21198_v47  ;;  %v21206_v1 = vpop.f32.mrb[30].mxu1  ;;  %10448 = vmatpush1.bf16.msra.mxu1 %v17257_v48  ;;  %v17715_v48 = vcombine.low %v2952_v34, %v2964_v35  ;;  %v17763_v34 = vcombine.low %v3000_v52, %v3012_v54 }
 0x51e   :  { %10620 = vmatpush1.bf16.msra.mxu0 %v17643_v63  ;;  %v21208_v22 = vpop.f32.mrb[31].mxu1  ;;  %10449 = vmatprep.subr.bf16.mxu1 %v17282_v21  ;;  %v17354_v63 = vcombine.high %v2591_v40, %v2603_v41  ;;  %v17740_v21 = vcombine.high %v2976_v44, %v2988_v45  ;;  %v3060_v40 = vld [vmem:[#allocation10 + $0x15a8] sm:$0xff] }
 0x51f   :  { %21842 = vst [vmem:[#allocation41_spill] sm:$0xff] %v21204_v0  ;;  %10621 = vmatprep.subr.bf16.mxu0 %v17668_v14  ;;  %v2615_v14 = vld [vmem:[#allocation10 + $0x7c0] sm:$0xff] }
 0x520   :  { %v17378_v59 = vcombine.high %v2615_v14, %v2627_v53  ;;  %v17377_v61 = vcombine.low %v2615_v14, %v2627_v53  ;;  %v3084_v14 = vld [vmem:[#allocation10 + $0x1668] sm:$0xff] }
 0x521   :  { %10450 = vmatpush1.bf16.msra.mxu1 %v17281_v24  ;;  %v17764_v24 = vcombine.high %v3000_v52, %v3012_v54 }
 0x522   :  { %10622 = vmatpush1.bf16.msra.mxu0 %v17667_v2  ;;  %10451 = vmatprep.subr.bf16.mxu1 %v17306_v6  ;;  %v2639_v2 = vld [vmem:[#allocation10 + $0x880] sm:$0xff] }
 0x523   :  { %10623 = vmatprep.subr.bf16.mxu0 %v17692_v29  ;;  %v2651_v6 = vld [vmem:[#allocation10 + $0x8e0] sm:$0xff]  ;;  %v3024_v29 = vld [vmem:[#allocation10 + $0x1488] sm:$0xff] }
 0x524   :  { %v17402_v35 = vcombine.high %v2639_v2, %v2651_v6  ;;  %v17401_v41 = vcombine.low %v2639_v2, %v2651_v6  ;;  %v17787_v44 = vcombine.low %v3024_v29, %v3036_v31  ;;  %v3108_v2 = vld [vmem:[#allocation10 + $0x1728] sm:$0xff] }
 0x525   :  { %10452 = vmatpush1.bf16.msra.mxu1 %v17305_v36  ;;  %v17788_v36 = vcombine.high %v3024_v29, %v3036_v31 }
 0x526   :  { %10624 = vmatpush1.bf16.msra.mxu0 %v17691_v37  ;;  %10453 = vmatprep.subr.bf16.mxu1 %v17330_v12  ;;  %v2663_v37 = vld [vmem:[#allocation10 + $0x940] sm:$0xff] }
 0x527   :  { %10625 = vmatprep.subr.bf16.mxu0 %v17716_v26  ;;  %v2675_v12 = vld [vmem:[#allocation10 + $0x9a0] sm:$0xff]  ;;  %v3048_v26 = vld [vmem:[#allocation10 + $0x1548] sm:$0xff] }
 0x528   :  { %v17426_v45 = vcombine.high %v2663_v37, %v2675_v12  ;;  %v17425_v53 = vcombine.low %v2663_v37, %v2675_v12  ;;  %v17811_v52 = vcombine.low %v3048_v26, %v3060_v40  ;;  %v3132_v37 = vld [vmem:[#allocation10 + $0x17e8] sm:$0xff] }
 0x529   :  { %10454 = vmatpush1.bf16.msra.mxu1 %v17329_v18  ;;  %v17812_v18 = vcombine.high %v3048_v26, %v3060_v40 }
 0x52a   :  { %10626 = vmatpush1.bf16.msra.mxu0 %v17715_v48  ;;  %10455 = vmatprep.subr.bf16.mxu1 %v17354_v63  ;;  %v2687_v48 = vld [vmem:[#allocation10 + $0xa00] sm:$0xff] }
 0x52b   :  { %10627 = vmatprep.subr.bf16.mxu0 %v17740_v21  ;;  %v2699_v63 = vld [vmem:[#allocation10 + $0xa60] sm:$0xff]  ;;  %v3072_v21 = vld [vmem:[#allocation10 + $0x1608] sm:$0xff] }
 0x52c   :  { %v17450_v54 = vcombine.high %v2687_v48, %v2699_v63  ;;  %v17449_v6 = vcombine.low %v2687_v48, %v2699_v63  ;;  %v17835_v29 = vcombine.low %v3072_v21, %v3084_v14  ;;  %v3156_v48 = vld [vmem:[#allocation10 + $0x18a8] sm:$0xff] }
 0x52d   :  { %10456 = vmatpush1.bf16.msra.mxu1 %v17353_v56  ;;  %v17836_v56 = vcombine.high %v3072_v21, %v3084_v14 }
 0x52e   :  { %10628 = vmatpush1.bf16.msra.mxu0 %v17739_v20  ;;  %10457 = vmatprep.subr.bf16.mxu1 %v17378_v59  ;;  %v2711_v20 = vld [vmem:[#allocation10 + $0xac0] sm:$0xff] }
 0x52f   :  { %10629 = vmatprep.subr.bf16.mxu0 %v17764_v24  ;;  %v2723_v59 = vld [vmem:[#allocation10 + $0xb20] sm:$0xff]  ;;  %v3096_v24 = vld [vmem:[#allocation10 + $0x16c8] sm:$0xff] }
 0x530   :  { %v17474_v31 = vcombine.high %v2711_v20, %v2723_v59  ;;  %v17473_v12 = vcombine.low %v2711_v20, %v2723_v59  ;;  %v17859_v26 = vcombine.low %v3096_v24, %v3108_v2  ;;  %v3180_v20 = vld [vmem:[#allocation10 + $0x1968] sm:$0xff] }
 0x531   :  { %10458 = vmatpush1.bf16.msra.mxu1 %v17377_v61  ;;  %v17860_v61 = vcombine.high %v3096_v24, %v3108_v2 }
 0x532   :  { %10630 = vmatpush1.bf16.msra.mxu0 %v17763_v34  ;;  %10459 = vmatprep.subr.bf16.mxu1 %v17402_v35  ;;  %v2735_v34 = vld [vmem:[#allocation10 + $0xb80] sm:$0xff] }
 0x533   :  { %10631 = vmatprep.subr.bf16.mxu0 %v17788_v36  ;;  %v2747_v35 = vld [vmem:[#allocation10 + $0xbe0] sm:$0xff]  ;;  %v3120_v36 = vld [vmem:[#allocation10 + $0x1788] sm:$0xff] }
 0x534   :  { %v17498_v40 = vcombine.high %v2735_v34, %v2747_v35  ;;  %v17497_v63 = vcombine.low %v2735_v34, %v2747_v35  ;;  %v17883_v21 = vcombine.low %v3120_v36, %v3132_v37  ;;  %v3204_v34 = vld [vmem:[#allocation10 + $0x1a28] sm:$0xff] }
 0x535   :  { %10460 = vmatpush1.bf16.msra.mxu1 %v17401_v41  ;;  %v17884_v41 = vcombine.high %v3120_v36, %v3132_v37 }
 0x536   :  { %10632 = vmatpush1.bf16.msra.mxu0 %v17787_v44  ;;  %10461 = vmatprep.subr.bf16.mxu1 %v17426_v45  ;;  %v2759_v44 = vld [vmem:[#allocation10 + $0xc40] sm:$0xff] }
 0x537   :  { %10633 = vmatprep.subr.bf16.mxu0 %v17812_v18  ;;  %v2771_v45 = vld [vmem:[#allocation10 + $0xca0] sm:$0xff]  ;;  %v3144_v18 = vld [vmem:[#allocation10 + $0x1848] sm:$0xff] }
 0x538   :  { %v17522_v14 = vcombine.high %v2759_v44, %v2771_v45  ;;  %v17521_v59 = vcombine.low %v2759_v44, %v2771_v45  ;;  %v17907_v24 = vcombine.low %v3144_v18, %v3156_v48  ;;  %v3228_v44 = vld [vmem:[#allocation10 + $0x1ae8] sm:$0xff] }
 0x539   :  { %10462 = vmatpush1.bf16.msra.mxu1 %v17425_v53  ;;  %v17908_v53 = vcombine.high %v3144_v18, %v3156_v48 }
 0x53a   :  { %10634 = vmatpush1.bf16.msra.mxu0 %v17811_v52  ;;  %10463 = vmatprep.subr.bf16.mxu1 %v17450_v54  ;;  %v2783_v52 = vld [vmem:[#allocation10 + $0xd00] sm:$0xff] }
 0x53b   :  { %10635 = vmatprep.subr.bf16.mxu0 %v17836_v56  ;;  %v2795_v54 = vld [vmem:[#allocation10 + $0xd60] sm:$0xff]  ;;  %v3168_v56 = vld [vmem:[#allocation10 + $0x1908] sm:$0xff] }
 0x53c   :  { %v17546_v2 = vcombine.high %v2783_v52, %v2795_v54  ;;  %v17545_v35 = vcombine.low %v2783_v52, %v2795_v54  ;;  %v17931_v36 = vcombine.low %v3168_v56, %v3180_v20  ;;  %v3252_v52 = vld [vmem:[#allocation10 + $0x1ba8] sm:$0xff] }
 0x53d   :  { %10464 = vmatpush1.bf16.msra.mxu1 %v17449_v6  ;;  %v17932_v6 = vcombine.high %v3168_v56, %v3180_v20 }
 0x53e   :  { %10636 = vmatpush1.bf16.msra.mxu0 %v17835_v29  ;;  %10465 = vmatprep.subr.bf16.mxu1 %v17474_v31  ;;  %v2807_v29 = vld [vmem:[#allocation10 + $0xdc0] sm:$0xff] }
 0x53f   :  { %10637 = vmatprep.subr.bf16.mxu0 %v17860_v61  ;;  %v2819_v31 = vld [vmem:[#allocation10 + $0xe20] sm:$0xff]  ;;  %v3192_v61 = vld [vmem:[#allocation10 + $0x19c8] sm:$0xff] }
 0x540   :  { %v17570_v37 = vcombine.high %v2807_v29, %v2819_v31  ;;  %v17569_v45 = vcombine.low %v2807_v29, %v2819_v31  ;;  %v17955_v18 = vcombine.low %v3192_v61, %v3204_v34  ;;  %v3276_v29 = vld [vmem:[#allocation10 + $0x1c68] sm:$0xff] }
 0x541   :  { %10466 = vmatpush1.bf16.msra.mxu1 %v17473_v12  ;;  %v17956_v12 = vcombine.high %v3192_v61, %v3204_v34 }
 0x542   :  { %10638 = vmatpush1.bf16.msra.mxu0 %v17859_v26  ;;  %10467 = vmatprep.subr.bf16.mxu1 %v17498_v40  ;;  %v2831_v26 = vld [vmem:[#allocation10 + $0xe80] sm:$0xff] }
 0x543   :  { %10639 = vmatprep.subr.bf16.mxu0 %v17884_v41  ;;  %v2843_v40 = vld [vmem:[#allocation10 + $0xee0] sm:$0xff]  ;;  %v3216_v41 = vld [vmem:[#allocation10 + $0x1a88] sm:$0xff] }
 0x544   :  { %v17594_v48 = vcombine.high %v2831_v26, %v2843_v40  ;;  %v17593_v54 = vcombine.low %v2831_v26, %v2843_v40  ;;  %v17979_v56 = vcombine.low %v3216_v41, %v3228_v44  ;;  %v3300_v26 = vld [vmem:[#allocation10 + $0x1d28] sm:$0xff] }
 0x545   :  { %10468 = vmatpush1.bf16.msra.mxu1 %v17497_v63  ;;  %v17980_v63 = vcombine.high %v3216_v41, %v3228_v44 }
 0x546   :  { %10640 = vmatpush1.bf16.msra.mxu0 %v17883_v21  ;;  %10480 = vmatprep.subr.bf16.mxu1 %v17522_v14  ;;  %v2855_v21 = vld [vmem:[#allocation10 + $0xf40] sm:$0xff] }
 0x547   :  { %10652 = vmatprep.subr.bf16.mxu0 %v17908_v53  ;;  %v2867_v14 = vld [vmem:[#allocation10 + $0xfa0] sm:$0xff]  ;;  %v3240_v53 = vld [vmem:[#allocation10 + $0x1b48] sm:$0xff] }
 0x548   :  { %10470 = vmatmul.mubr.bf16.vlgmr.msra.gmra.mrb[36].mxu1 %v21030_v38  ;;  %v17618_v20 = vcombine.high %v2855_v21, %v2867_v14  ;;  %v17617_v31 = vcombine.low %v2855_v21, %v2867_v14  ;;  %v18003_v61 = vcombine.low %v3240_v53, %v3252_v52  ;;  %v3324_v21 = vld [vmem:[#allocation10 + $0x1de8] sm:$0xff] }
 0x549   :  { %10642 = vmatmul.mubr.bf16.vlgmr.msra.gmra.mrb[32].mxu0 %v21062_v17  ;;  %10481 = vmatpush1.bf16.msra.mxu1 %v17521_v59  ;;  %v18004_v59 = vcombine.high %v3240_v53, %v3252_v52 }
 0x54a   :  { %10653 = vmatpush1.bf16.msra.mxu0 %v17907_v24  ;;  %10482 = vmatprep.subr.bf16.mxu1 %v17546_v2  ;;  %v2879_v24 = vld [vmem:[#allocation10 + $0x1000] sm:$0xff] }
 0x54b   :  { %10654 = vmatprep.subr.bf16.mxu0 %v17932_v6  ;;  %10512 = vmatprep.mubr.bf16.mxu1 %v21032_v46  ;;  %v2891_v2 = vld [vmem:[#allocation10 + $0x1060] sm:$0xff]  ;;  %v3264_v6 = vld [vmem:[#allocation10 + $0x1c08] sm:$0xff] }
 0x54c   :  { %10684 = vmatprep.mubr.bf16.mxu0 %v21064_v33  ;;  %v17642_v34 = vcombine.high %v2879_v24, %v2891_v2  ;;  %v17641_v40 = vcombine.low %v2879_v24, %v2891_v2  ;;  %v18027_v41 = vcombine.low %v3264_v6, %v3276_v29  ;;  %v3348_v24 = vld [vmem:[#allocation10 + $0x1ea8] sm:$0xff] }
 0x54d   :  { %10483 = vmatpush1.bf16.msra.mxu1 %v17545_v35  ;;  %v18028_v35 = vcombine.high %v3264_v6, %v3276_v29 }
 0x54e   :  { %10655 = vmatpush1.bf16.msra.mxu0 %v17931_v36  ;;  %10484 = vmatprep.subr.bf16.mxu1 %v17570_v37  ;;  %v2903_v36 = vld [vmem:[#allocation10 + $0x10c0] sm:$0xff] }
 0x54f   :  { %10656 = vmatprep.subr.bf16.mxu0 %v17956_v12  ;;  %v2915_v37 = vld [vmem:[#allocation10 + $0x1120] sm:$0xff]  ;;  %v3288_v12 = vld [vmem:[#allocation10 + $0x1cc8] sm:$0xff] }
 0x550   :  { %v17666_v44 = vcombine.high %v2903_v36, %v2915_v37  ;;  %v17665_v14 = vcombine.low %v2903_v36, %v2915_v37  ;;  %v18051_v53 = vcombine.low %v3288_v12, %v3300_v26  ;;  %v3372_v36 = vld [vmem:[#allocation10 + $0x1f68] sm:$0xff] }
 0x551   :  { %10485 = vmatpush1.bf16.msra.mxu1 %v17569_v45  ;;  %v18052_v45 = vcombine.high %v3288_v12, %v3300_v26 }
 0x552   :  { %10657 = vmatpush1.bf16.msra.mxu0 %v17955_v18  ;;  %10486 = vmatprep.subr.bf16.mxu1 %v17594_v48  ;;  %v2927_v18 = vld [vmem:[#allocation10 + $0x1180] sm:$0xff] }
 0x553   :  { %10658 = vmatprep.subr.bf16.mxu0 %v17980_v63  ;;  %v2939_v48 = vld [vmem:[#allocation10 + $0x11e0] sm:$0xff]  ;;  %v3312_v63 = vld [vmem:[#allocation10 + $0x1d88] sm:$0xff] }
 0x554   :  { %v17690_v52 = vcombine.high %v2927_v18, %v2939_v48  ;;  %v17689_v2 = vcombine.low %v2927_v18, %v2939_v48  ;;  %v18075_v6 = vcombine.low %v3312_v63, %v3324_v21  ;;  %v3396_v18 = vld [vmem:[#allocation10 + $0x2028] sm:$0xff] }
 0x555   :  { %10487 = vmatpush1.bf16.msra.mxu1 %v17593_v54  ;;  %v18076_v54 = vcombine.high %v3312_v63, %v3324_v21 }
 0x556   :  { %10659 = vmatpush1.bf16.msra.mxu0 %v17979_v56  ;;  %10488 = vmatprep.subr.bf16.mxu1 %v17618_v20  ;;  %v2951_v56 = vld [vmem:[#allocation10 + $0x1240] sm:$0xff] }
 0x557   :  { %10660 = vmatprep.subr.bf16.mxu0 %v18004_v59  ;;  %v2963_v20 = vld [vmem:[#allocation10 + $0x12a0] sm:$0xff]  ;;  %v3336_v59 = vld [vmem:[#allocation10 + $0x1e48] sm:$0xff] }
 0x558   :  { %v17714_v29 = vcombine.high %v2951_v56, %v2963_v20  ;;  %v17713_v37 = vcombine.low %v2951_v56, %v2963_v20  ;;  %v18099_v12 = vcombine.low %v3336_v59, %v3348_v24  ;;  %v3420_v56 = vld [vmem:[#allocation10 + $0x20e8] sm:$0xff] }
 0x559   :  { %10489 = vmatpush1.bf16.msra.mxu1 %v17617_v31  ;;  %v18100_v31 = vcombine.high %v3336_v59, %v3348_v24 }
 0x55a   :  { %10661 = vmatpush1.bf16.msra.mxu0 %v18003_v61  ;;  %10490 = vmatprep.subr.bf16.mxu1 %v17642_v34  ;;  %v2975_v61 = vld [vmem:[#allocation10 + $0x1300] sm:$0xff] }
 0x55b   :  { %10662 = vmatprep.subr.bf16.mxu0 %v18028_v35  ;;  %v2987_v34 = vld [vmem:[#allocation10 + $0x1360] sm:$0xff]  ;;  %v3360_v35 = vld [vmem:[#allocation10 + $0x1f08] sm:$0xff] }
 0x55c   :  { %v17738_v26 = vcombine.high %v2975_v61, %v2987_v34  ;;  %v17737_v48 = vcombine.low %v2975_v61, %v2987_v34  ;;  %v18123_v63 = vcombine.low %v3360_v35, %v3372_v36  ;;  %v3444_v61 = vld [vmem:[#allocation10 + $0x21a8] sm:$0xff] }
 0x55d   :  { %10491 = vmatpush1.bf16.msra.mxu1 %v17641_v40  ;;  %v18124_v40 = vcombine.high %v3360_v35, %v3372_v36 }
 0x55e   :  { %10663 = vmatpush1.bf16.msra.mxu0 %v18027_v41  ;;  %10492 = vmatprep.subr.bf16.mxu1 %v17666_v44  ;;  %v2999_v41 = vld [vmem:[#allocation10 + $0x13c0] sm:$0xff] }
 0x55f   :  { %10664 = vmatprep.subr.bf16.mxu0 %v18052_v45  ;;  %v3011_v44 = vld [vmem:[#allocation10 + $0x1420] sm:$0xff]  ;;  %v3384_v45 = vld [vmem:[#allocation10 + $0x1fc8] sm:$0xff] }
 0x560   :  { %v17762_v21 = vcombine.high %v2999_v41, %v3011_v44  ;;  %v17761_v20 = vcombine.low %v2999_v41, %v3011_v44  ;;  %v18147_v59 = vcombine.low %v3384_v45, %v3396_v18  ;;  %v3468_v41 = vld [vmem:[#allocation10 + $0x2268] sm:$0xff] }
 0x561   :  { %10493 = vmatpush1.bf16.msra.mxu1 %v17665_v14  ;;  %v18148_v14 = vcombine.high %v3384_v45, %v3396_v18 }
 0x562   :  { %10665 = vmatpush1.bf16.msra.mxu0 %v18051_v53  ;;  %10494 = vmatprep.subr.bf16.mxu1 %v17690_v52  ;;  %v3023_v53 = vld [vmem:[#allocation10 + $0x1480] sm:$0xff] }
 0x563   :  { %10666 = vmatprep.subr.bf16.mxu0 %v18076_v54  ;;  %v3035_v52 = vld [vmem:[#allocation10 + $0x14e0] sm:$0xff]  ;;  %v3408_v54 = vld [vmem:[#allocation10 + $0x2088] sm:$0xff] }
 0x564   :  { %v17786_v24 = vcombine.high %v3023_v53, %v3035_v52  ;;  %v17785_v34 = vcombine.low %v3023_v53, %v3035_v52  ;;  %v18171_v35 = vcombine.low %v3408_v54, %v3420_v56  ;;  %v3492_v53 = vld [vmem:[#allocation10 + $0x2328] sm:$0xff] }
 0x565   :  { %10495 = vmatpush1.bf16.msra.mxu1 %v17689_v2  ;;  %v18172_v2 = vcombine.high %v3408_v54, %v3420_v56 }
 0x566   :  { %10667 = vmatpush1.bf16.msra.mxu0 %v18075_v6  ;;  %10496 = vmatprep.subr.bf16.mxu1 %v17714_v29  ;;  %v3047_v6 = vld [vmem:[#allocation10 + $0x1540] sm:$0xff] }
 0x567   :  { %10668 = vmatprep.subr.bf16.mxu0 %v18100_v31  ;;  %v3059_v29 = vld [vmem:[#allocation10 + $0x15a0] sm:$0xff]  ;;  %v3432_v31 = vld [vmem:[#allocation10 + $0x2148] sm:$0xff] }
 0x568   :  { %v17810_v36 = vcombine.high %v3047_v6, %v3059_v29  ;;  %v17809_v44 = vcombine.low %v3047_v6, %v3059_v29  ;;  %v18195_v45 = vcombine.low %v3432_v31, %v3444_v61  ;;  %v3516_v6 = vld [vmem:[#allocation10 + $0x23e8] sm:$0xff] }
 0x569   :  { %10497 = vmatpush1.bf16.msra.mxu1 %v17713_v37  ;;  %v18196_v37 = vcombine.high %v3432_v31, %v3444_v61 }
 0x56a   :  { %10669 = vmatpush1.bf16.msra.mxu0 %v18099_v12  ;;  %10498 = vmatprep.subr.bf16.mxu1 %v17738_v26  ;;  %v3071_v12 = vld [vmem:[#allocation10 + $0x1600] sm:$0xff] }
 0x56b   :  { %10670 = vmatprep.subr.bf16.mxu0 %v18124_v40  ;;  %v3083_v26 = vld [vmem:[#allocation10 + $0x1660] sm:$0xff]  ;;  %v3456_v40 = vld [vmem:[#allocation10 + $0x2208] sm:$0xff] }
 0x56c   :  { %v17834_v18 = vcombine.high %v3071_v12, %v3083_v26  ;;  %v17833_v52 = vcombine.low %v3071_v12, %v3083_v26  ;;  %v18219_v54 = vcombine.low %v3456_v40, %v3468_v41  ;;  %v2390_v12 = vld [vmem:[#allocation10 + $0xb8] sm:$0xff] }
 0x56d   :  { %10499 = vmatpush1.bf16.msra.mxu1 %v17737_v48  ;;  %v18220_v48 = vcombine.high %v3456_v40, %v3468_v41 }
 0x56e   :  { %10671 = vmatpush1.bf16.msra.mxu0 %v18123_v63  ;;  %10500 = vmatprep.subr.bf16.mxu1 %v17762_v21  ;;  %v3095_v63 = vld [vmem:[#allocation10 + $0x16c0] sm:$0xff] }
 0x56f   :  { %10672 = vmatprep.subr.bf16.mxu0 %v18148_v14  ;;  %v3107_v21 = vld [vmem:[#allocation10 + $0x1720] sm:$0xff]  ;;  %v3480_v14 = vld [vmem:[#allocation10 + $0x22c8] sm:$0xff] }
 0x570   :  { %v17858_v56 = vcombine.high %v3095_v63, %v3107_v21  ;;  %v17857_v29 = vcombine.low %v3095_v63, %v3107_v21  ;;  %v18243_v31 = vcombine.low %v3480_v14, %v3492_v53  ;;  %v2414_v63 = vld [vmem:[#allocation10 + $0x178] sm:$0xff] }
 0x571   :  { %10501 = vmatpush1.bf16.msra.mxu1 %v17761_v20  ;;  %v18244_v20 = vcombine.high %v3480_v14, %v3492_v53 }
 0x572   :  { %10673 = vmatpush1.bf16.msra.mxu0 %v18147_v59  ;;  %10502 = vmatprep.subr.bf16.mxu1 %v17786_v24  ;;  %v3119_v59 = vld [vmem:[#allocation10 + $0x1780] sm:$0xff] }
 0x573   :  { %10674 = vmatprep.subr.bf16.mxu0 %v18172_v2  ;;  %v3131_v24 = vld [vmem:[#allocation10 + $0x17e0] sm:$0xff]  ;;  %v3504_v2 = vld [vmem:[#allocation10 + $0x2388] sm:$0xff] }
 0x574   :  { %v17882_v61 = vcombine.high %v3119_v59, %v3131_v24  ;;  %v17881_v26 = vcombine.low %v3119_v59, %v3131_v24  ;;  %v18267_v40 = vcombine.low %v3504_v2, %v3516_v6  ;;  %v2438_v59 = vld [vmem:[#allocation10 + $0x238] sm:$0xff] }
 0x575   :  { %10503 = vmatpush1.bf16.msra.mxu1 %v17785_v34  ;;  %v18268_v34 = vcombine.high %v3504_v2, %v3516_v6 }
 0x576   :  { %10675 = vmatpush1.bf16.msra.mxu0 %v18171_v35  ;;  %10504 = vmatprep.subr.bf16.mxu1 %v17810_v36  ;;  %v3143_v35 = vld [vmem:[#allocation10 + $0x1840] sm:$0xff] }
 0x577   :  { %10676 = vmatprep.subr.bf16.mxu0 %v18196_v37  ;;  %v3155_v36 = vld [vmem:[#allocation10 + $0x18a0] sm:$0xff]  ;;  %v2378_v37 = vld [vmem:[#allocation10 + $0x58] sm:$0xff] }
 0x578   :  { %v17906_v41 = vcombine.high %v3143_v35, %v3155_v36  ;;  %v17905_v21 = vcombine.low %v3143_v35, %v3155_v36  ;;  %v17143_v14 = vcombine.low %v2378_v37, %v2390_v12  ;;  %v2462_v35 = vld [vmem:[#allocation10 + $0x2f8] sm:$0xff] }
 0x579   :  { %10505 = vmatpush1.bf16.msra.mxu1 %v17809_v44  ;;  %v17144_v44 = vcombine.high %v2378_v37, %v2390_v12 }
 0x57a   :  { %10677 = vmatpush1.bf16.msra.mxu0 %v18195_v45  ;;  %10506 = vmatprep.subr.bf16.mxu1 %v17834_v18  ;;  %v3167_v45 = vld [vmem:[#allocation10 + $0x1900] sm:$0xff] }
 0x57b   :  { %10678 = vmatprep.subr.bf16.mxu0 %v18220_v48  ;;  %v3179_v18 = vld [vmem:[#allocation10 + $0x1960] sm:$0xff]  ;;  %v2402_v48 = vld [vmem:[#allocation10 + $0x118] sm:$0xff] }
 0x57c   :  { %v17930_v53 = vcombine.high %v3167_v45, %v3179_v18  ;;  %v17929_v24 = vcombine.low %v3167_v45, %v3179_v18  ;;  %v17167_v2 = vcombine.low %v2402_v48, %v2414_v63  ;;  %v2486_v45 = vld [vmem:[#allocation10 + $0x3b8] sm:$0xff] }
 0x57d   :  { %10507 = vmatpush1.bf16.msra.mxu1 %v17833_v52  ;;  %v17168_v52 = vcombine.high %v2402_v48, %v2414_v63 }
 0x57e   :  { %10679 = vmatpush1.bf16.msra.mxu0 %v18219_v54  ;;  %10508 = vmatprep.subr.bf16.mxu1 %v17858_v56  ;;  %v3191_v54 = vld [vmem:[#allocation10 + $0x19c0] sm:$0xff] }
 0x57f   :  { %10680 = vmatprep.subr.bf16.mxu0 %v18244_v20  ;;  %v3203_v56 = vld [vmem:[#allocation10 + $0x1a20] sm:$0xff]  ;;  %v2426_v20 = vld [vmem:[#allocation10 + $0x1d8] sm:$0xff] }
 0x580   :  { %v17954_v6 = vcombine.high %v3191_v54, %v3203_v56  ;;  %v17953_v36 = vcombine.low %v3191_v54, %v3203_v56  ;;  %v17191_v37 = vcombine.low %v2426_v20, %v2438_v59  ;;  %v2510_v54 = vld [vmem:[#allocation10 + $0x478] sm:$0xff] }
 0x581   :  { %10509 = vmatpush1.bf16.msra.mxu1 %v17857_v29  ;;  %v17192_v29 = vcombine.high %v2426_v20, %v2438_v59 }
 0x582   :  { %10681 = vmatpush1.bf16.msra.mxu0 %v18243_v31  ;;  %10510 = vmatprep.subr.bf16.mxu1 %v17882_v61  ;;  %v3215_v31 = vld [vmem:[#allocation10 + $0x1a80] sm:$0xff] }
 0x583   :  { %10682 = vmatprep.subr.bf16.mxu0 %v18268_v34  ;;  %v3227_v61 = vld [vmem:[#allocation10 + $0x1ae0] sm:$0xff]  ;;  %v2450_v34 = vld [vmem:[#allocation10 + $0x298] sm:$0xff] }
 0x584   :  { %v17978_v12 = vcombine.high %v3215_v31, %v3227_v61  ;;  %v17977_v18 = vcombine.low %v3215_v31, %v3227_v61  ;;  %v17215_v48 = vcombine.low %v2450_v34, %v2462_v35  ;;  %v2534_v31 = vld [vmem:[#allocation10 + $0x538] sm:$0xff] }
 0x585   :  { %10511 = vmatpush1.bf16.msra.mxu1 %v17881_v26  ;;  %v17216_v26 = vcombine.high %v2450_v34, %v2462_v35 }
 0x586   :  { %10683 = vmatpush1.bf16.msra.mxu0 %v18267_v40  ;;  %10523 = vmatprep.subr.bf16.mxu1 %v17906_v41  ;;  %v3239_v40 = vld [vmem:[#allocation10 + $0x1b40] sm:$0xff] }
 0x587   :  { %10824 = vmatprep.subr.bf16.mxu0 %v17144_v44  ;;  %v3251_v41 = vld [vmem:[#allocation10 + $0x1ba0] sm:$0xff]  ;;  %v2474_v44 = vld [vmem:[#allocation10 + $0x358] sm:$0xff] }
 0x588   :  { %10513 = vmatmul.mubr.bf16.vlgmr.msra.gmra.mrb[36].mxu1 %v21062_v17  ;;  %v18002_v63 = vcombine.high %v3239_v40, %v3251_v41  ;;  %v18001_v56 = vcombine.low %v3239_v40, %v3251_v41  ;;  %v17239_v20 = vcombine.low %v2474_v44, %v2486_v45  ;;  %v2558_v40 = vld [vmem:[#allocation10 + $0x5f8] sm:$0xff] }
 0x589   :  { %10685 = vmatmul.mubr.bf16.vlgmr.msra.gmra.mrb[32].mxu0 %v21090_v10  ;;  %10524 = vmatpush1.bf16.msra.mxu1 %v17905_v21  ;;  %v17240_v21 = vcombine.high %v2474_v44, %v2486_v45 }
 0x58a   :  { %10825 = vmatpush1.bf16.msra.mxu0 %v17143_v14  ;;  %10525 = vmatprep.subr.bf16.mxu1 %v17930_v53  ;;  %v3263_v14 = vld [vmem:[#allocation10 + $0x1c00] sm:$0xff] }
 0x58b   :  { %10826 = vmatprep.subr.bf16.mxu0 %v17168_v52  ;;  %10555 = vmatprep.mubr.bf16.mxu1 %v21064_v33  ;;  %v3275_v53 = vld [vmem:[#allocation10 + $0x1c60] sm:$0xff]  ;;  %v2498_v52 = vld [vmem:[#allocation10 + $0x418] sm:$0xff] }
 0x58c   :  { %10856 = vmatprep.mubr.bf16.mxu0 %v21016_v49  ;;  %v18026_v59 = vcombine.high %v3263_v14, %v3275_v53  ;;  %v18025_v61 = vcombine.low %v3263_v14, %v3275_v53  ;;  %v17263_v34 = vcombine.low %v2498_v52, %v2510_v54  ;;  %v2582_v14 = vld [vmem:[#allocation10 + $0x6b8] sm:$0xff] }
 0x58d   :  { %10526 = vmatpush1.bf16.msra.mxu1 %v17929_v24  ;;  %v17264_v24 = vcombine.high %v2498_v52, %v2510_v54 }
 0x58e   :  { %10827 = vmatpush1.bf16.msra.mxu0 %v17167_v2  ;;  %10527 = vmatprep.subr.bf16.mxu1 %v17954_v6  ;;  %v3287_v2 = vld [vmem:[#allocation10 + $0x1cc0] sm:$0xff] }
 0x58f   :  { %10828 = vmatprep.subr.bf16.mxu0 %v17192_v29  ;;  %v3299_v6 = vld [vmem:[#allocation10 + $0x1d20] sm:$0xff]  ;;  %v2522_v29 = vld [vmem:[#allocation10 + $0x4d8] sm:$0xff] }
 0x590   :  { %v18050_v35 = vcombine.high %v3287_v2, %v3299_v6  ;;  %v18049_v41 = vcombine.low %v3287_v2, %v3299_v6  ;;  %v17287_v44 = vcombine.low %v2522_v29, %v2534_v31  ;;  %v2606_v2 = vld [vmem:[#allocation10 + $0x778] sm:$0xff] }
 0x591   :  { %10528 = vmatpush1.bf16.msra.mxu1 %v17953_v36  ;;  %v17288_v36 = vcombine.high %v2522_v29, %v2534_v31 }
 0x592   :  { %10829 = vmatpush1.bf16.msra.mxu0 %v17191_v37  ;;  %10529 = vmatprep.subr.bf16.mxu1 %v17978_v12  ;;  %v3311_v37 = vld [vmem:[#allocation10 + $0x1d80] sm:$0xff] }
 0x593   :  { %10830 = vmatprep.subr.bf16.mxu0 %v17216_v26  ;;  %v3323_v12 = vld [vmem:[#allocation10 + $0x1de0] sm:$0xff]  ;;  %v2546_v26 = vld [vmem:[#allocation10 + $0x598] sm:$0xff] }
 0x594   :  { %v18074_v45 = vcombine.high %v3311_v37, %v3323_v12  ;;  %v18073_v53 = vcombine.low %v3311_v37, %v3323_v12  ;;  %v17311_v52 = vcombine.low %v2546_v26, %v2558_v40  ;;  %v2630_v37 = vld [vmem:[#allocation10 + $0x838] sm:$0xff] }
 0x595   :  { %10530 = vmatpush1.bf16.msra.mxu1 %v17977_v18  ;;  %v17312_v18 = vcombine.high %v2546_v26, %v2558_v40 }
 0x596   :  { %10831 = vmatpush1.bf16.msra.mxu0 %v17215_v48  ;;  %10531 = vmatprep.subr.bf16.mxu1 %v18002_v63  ;;  %v3335_v48 = vld [vmem:[#allocation10 + $0x1e40] sm:$0xff] }
 0x597   :  { %10832 = vmatprep.subr.bf16.mxu0 %v17240_v21  ;;  %v3347_v63 = vld [vmem:[#allocation10 + $0x1ea0] sm:$0xff]  ;;  %v2570_v21 = vld [vmem:[#allocation10 + $0x658] sm:$0xff] }
 0x598   :  { %v18098_v54 = vcombine.high %v3335_v48, %v3347_v63  ;;  %v18097_v6 = vcombine.low %v3335_v48, %v3347_v63  ;;  %v17335_v29 = vcombine.low %v2570_v21, %v2582_v14  ;;  %v2654_v48 = vld [vmem:[#allocation10 + $0x8f8] sm:$0xff] }
 0x599   :  { %10532 = vmatpush1.bf16.msra.mxu1 %v18001_v56  ;;  %v17336_v56 = vcombine.high %v2570_v21, %v2582_v14 }
 0x59a   :  { %10833 = vmatpush1.bf16.msra.mxu0 %v17239_v20  ;;  %10533 = vmatprep.subr.bf16.mxu1 %v18026_v59  ;;  %v3359_v20 = vld [vmem:[#allocation10 + $0x1f00] sm:$0xff] }
 0x59b   :  { %10834 = vmatprep.subr.bf16.mxu0 %v17264_v24  ;;  %v3371_v59 = vld [vmem:[#allocation10 + $0x1f60] sm:$0xff]  ;;  %v2594_v24 = vld [vmem:[#allocation10 + $0x718] sm:$0xff] }
 0x59c   :  { %v18122_v31 = vcombine.high %v3359_v20, %v3371_v59  ;;  %v18121_v12 = vcombine.low %v3359_v20, %v3371_v59  ;;  %v17359_v26 = vcombine.low %v2594_v24, %v2606_v2  ;;  %v2678_v20 = vld [vmem:[#allocation10 + $0x9b8] sm:$0xff] }
 0x59d   :  { %10534 = vmatpush1.bf16.msra.mxu1 %v18025_v61  ;;  %v17360_v61 = vcombine.high %v2594_v24, %v2606_v2 }
 0x59e   :  { %10835 = vmatpush1.bf16.msra.mxu0 %v17263_v34  ;;  %10535 = vmatprep.subr.bf16.mxu1 %v18050_v35  ;;  %v3383_v34 = vld [vmem:[#allocation10 + $0x1fc0] sm:$0xff] }
 0x59f   :  { %10836 = vmatprep.subr.bf16.mxu0 %v17288_v36  ;;  %v3395_v35 = vld [vmem:[#allocation10 + $0x2020] sm:$0xff]  ;;  %v2618_v36 = vld [vmem:[#allocation10 + $0x7d8] sm:$0xff] }
 0x5a0   :  { %v18146_v40 = vcombine.high %v3383_v34, %v3395_v35  ;;  %v18145_v63 = vcombine.low %v3383_v34, %v3395_v35  ;;  %v17383_v21 = vcombine.low %v2618_v36, %v2630_v37  ;;  %v2702_v34 = vld [vmem:[#allocation10 + $0xa78] sm:$0xff] }
 0x5a1   :  { %10536 = vmatpush1.bf16.msra.mxu1 %v18049_v41  ;;  %v17384_v41 = vcombine.high %v2618_v36, %v2630_v37 }
 0x5a2   :  { %10837 = vmatpush1.bf16.msra.mxu0 %v17287_v44  ;;  %10537 = vmatprep.subr.bf16.mxu1 %v18074_v45  ;;  %v3407_v44 = vld [vmem:[#allocation10 + $0x2080] sm:$0xff] }
 0x5a3   :  { %10838 = vmatprep.subr.bf16.mxu0 %v17312_v18  ;;  %v3419_v45 = vld [vmem:[#allocation10 + $0x20e0] sm:$0xff]  ;;  %v2642_v18 = vld [vmem:[#allocation10 + $0x898] sm:$0xff] }
 0x5a4   :  { %v18170_v14 = vcombine.high %v3407_v44, %v3419_v45  ;;  %v18169_v59 = vcombine.low %v3407_v44, %v3419_v45  ;;  %v17407_v24 = vcombine.low %v2642_v18, %v2654_v48  ;;  %v2726_v44 = vld [vmem:[#allocation10 + $0xb38] sm:$0xff] }
 0x5a5   :  { %10538 = vmatpush1.bf16.msra.mxu1 %v18073_v53  ;;  %v17408_v53 = vcombine.high %v2642_v18, %v2654_v48 }
 0x5a6   :  { %10839 = vmatpush1.bf16.msra.mxu0 %v17311_v52  ;;  %10539 = vmatprep.subr.bf16.mxu1 %v18098_v54  ;;  %v3431_v52 = vld [vmem:[#allocation10 + $0x2140] sm:$0xff] }
 0x5a7   :  { %10840 = vmatprep.subr.bf16.mxu0 %v17336_v56  ;;  %v3443_v54 = vld [vmem:[#allocation10 + $0x21a0] sm:$0xff]  ;;  %v2666_v56 = vld [vmem:[#allocation10 + $0x958] sm:$0xff] }
 0x5a8   :  { %v18194_v2 = vcombine.high %v3431_v52, %v3443_v54  ;;  %v18193_v35 = vcombine.low %v3431_v52, %v3443_v54  ;;  %v17431_v36 = vcombine.low %v2666_v56, %v2678_v20  ;;  %v2750_v52 = vld [vmem:[#allocation10 + $0xbf8] sm:$0xff] }
 0x5a9   :  { %10540 = vmatpush1.bf16.msra.mxu1 %v18097_v6  ;;  %v17432_v6 = vcombine.high %v2666_v56, %v2678_v20 }
 0x5aa   :  { %10841 = vmatpush1.bf16.msra.mxu0 %v17335_v29  ;;  %10541 = vmatprep.subr.bf16.mxu1 %v18122_v31  ;;  %v3455_v29 = vld [vmem:[#allocation10 + $0x2200] sm:$0xff] }
 0x5ab   :  { %10842 = vmatprep.subr.bf16.mxu0 %v17360_v61  ;;  %v3467_v31 = vld [vmem:[#allocation10 + $0x2260] sm:$0xff]  ;;  %v2690_v61 = vld [vmem:[#allocation10 + $0xa18] sm:$0xff] }
 0x5ac   :  { %v18218_v37 = vcombine.high %v3455_v29, %v3467_v31  ;;  %v18217_v45 = vcombine.low %v3455_v29, %v3467_v31  ;;  %v17455_v18 = vcombine.low %v2690_v61, %v2702_v34  ;;  %v2774_v29 = vld [vmem:[#allocation10 + $0xcb8] sm:$0xff] }
 0x5ad   :  { %10542 = vmatpush1.bf16.msra.mxu1 %v18121_v12  ;;  %v17456_v12 = vcombine.high %v2690_v61, %v2702_v34 }
 0x5ae   :  { %10843 = vmatpush1.bf16.msra.mxu0 %v17359_v26  ;;  %10543 = vmatprep.subr.bf16.mxu1 %v18146_v40  ;;  %v3479_v26 = vld [vmem:[#allocation10 + $0x22c0] sm:$0xff] }
 0x5af   :  { %10844 = vmatprep.subr.bf16.mxu0 %v17384_v41  ;;  %v3491_v40 = vld [vmem:[#allocation10 + $0x2320] sm:$0xff]  ;;  %v2714_v41 = vld [vmem:[#allocation10 + $0xad8] sm:$0xff] }
 0x5b0   :  { %v18242_v48 = vcombine.high %v3479_v26, %v3491_v40  ;;  %v18241_v54 = vcombine.low %v3479_v26, %v3491_v40  ;;  %v17479_v56 = vcombine.low %v2714_v41, %v2726_v44  ;;  %v2798_v26 = vld [vmem:[#allocation10 + $0xd78] sm:$0xff] }
 0x5b1   :  { %10544 = vmatpush1.bf16.msra.mxu1 %v18145_v63  ;;  %v17480_v63 = vcombine.high %v2714_v41, %v2726_v44 }
 0x5b2   :  { %10845 = vmatpush1.bf16.msra.mxu0 %v17383_v21  ;;  %10545 = vmatprep.subr.bf16.mxu1 %v18170_v14  ;;  %v3503_v21 = vld [vmem:[#allocation10 + $0x2380] sm:$0xff] }
 0x5b3   :  { %10846 = vmatprep.subr.bf16.mxu0 %v17408_v53  ;;  %v3515_v14 = vld [vmem:[#allocation10 + $0x23e0] sm:$0xff]  ;;  %v2738_v53 = vld [vmem:[#allocation10 + $0xb98] sm:$0xff] }
 0x5b4   :  { %v18266_v20 = vcombine.high %v3503_v21, %v3515_v14  ;;  %v18265_v31 = vcombine.low %v3503_v21, %v3515_v14  ;;  %v17503_v61 = vcombine.low %v2738_v53, %v2750_v52  ;;  %v9654_v21 = vpop.f32.mrb[16].mxu0  ;;  %v2437_v14 = vld [vmem:[#allocation10 + $0x230] sm:$0xff] }
 0x5b5   :  { %10546 = vmatpush1.bf16.msra.mxu1 %v18169_v59  ;;  %v17504_v59 = vcombine.high %v2738_v53, %v2750_v52  ;;  %v2810_v53 = vld [vmem:[#allocation10 + $0xdd8] sm:$0xff] }
 0x5b6   :  { %10847 = vmatpush1.bf16.msra.mxu0 %v17407_v24  ;;  %10547 = vmatprep.subr.bf16.mxu1 %v18194_v2  ;;  %v2377_v24 = vld [vmem:[#allocation10 + $0x50] sm:$0xff]  ;;  %v2822_v52 = vld [vmem:[#allocation10 + $0xe38] sm:$0xff] }
 0x5b7   :  { %10848 = vmatprep.subr.bf16.mxu0 %v17432_v6  ;;  %v2389_v2 = vld [vmem:[#allocation10 + $0xb0] sm:$0xff]  ;;  %v2762_v6 = vld [vmem:[#allocation10 + $0xc58] sm:$0xff] }
 0x5b8   :  { %v17142_v34 = vcombine.high %v2377_v24, %v2389_v2  ;;  %v17141_v40 = vcombine.low %v2377_v24, %v2389_v2  ;;  %v17527_v41 = vcombine.low %v2762_v6, %v2774_v29  ;;  %v9656_v24 = vpop.f32.mrb[17].mxu0 }
 0x5b9   :  { %10548 = vmatpush1.bf16.msra.mxu1 %v18193_v35  ;;  %v17528_v35 = vcombine.high %v2762_v6, %v2774_v29  ;;  %v17576_v6 = vcombine.high %v2810_v53, %v2822_v52  ;;  %v2449_v29 = vld [vmem:[#allocation10 + $0x290] sm:$0xff] }
 0x5ba   :  { %10849 = vmatpush1.bf16.msra.mxu0 %v17431_v36  ;;  %10549 = vmatprep.subr.bf16.mxu1 %v18218_v37  ;;  %v2401_v36 = vld [vmem:[#allocation10 + $0x110] sm:$0xff] }
 0x5bb   :  { %10850 = vmatprep.subr.bf16.mxu0 %v17456_v12  ;;  %v2413_v37 = vld [vmem:[#allocation10 + $0x170] sm:$0xff]  ;;  %v2786_v12 = vld [vmem:[#allocation10 + $0xd18] sm:$0xff] }
 0x5bc   :  { %v17166_v44 = vcombine.high %v2401_v36, %v2413_v37 }
 0x5bd   :  { %10550 = vmatpush1.bf16.msra.mxu1 %v18217_v45  ;;  %v17552_v45 = vcombine.high %v2786_v12, %v2798_v26 }
 0x5be   :  { %10851 = vmatpush1.bf16.msra.mxu0 %v17455_v18  ;;  %10551 = vmatprep.subr.bf16.mxu1 %v18242_v48  ;;  %v2425_v18 = vld [vmem:[#allocation10 + $0x1d0] sm:$0xff]  ;;  %v20467_v48 = vld [vmem:[#allocation11] sm:$0xff] }
 0x5bf   :  { %10852 = vmatprep.subr.bf16.mxu0 %v17480_v63  ;;  %v21219_v63 = vrot.slane %v20467_v48, %v21071_v58  ;;  %v17190_v2 = vcombine.high %v2425_v18, %v2437_v14 }
 0x5c1   :  { %10552 = vmatpush1.bf16.msra.mxu1 %v18241_v54  ;;  %v21224_v54 = vadd.f32 %v9654_v21, %v21219_v63 }
 0x5c2   :  { %10853 = vmatpush1.bf16.msra.mxu0 %v17479_v56  ;;  %10553 = vmatprep.subr.bf16.mxu1 %v18266_v20  ;;  %v17165_v56 = vcombine.low %v2401_v36, %v2413_v37  ;;  %v17551_v20 = vcombine.low %v2786_v12, %v2798_v26 }
 0x5c3   :  { %10854 = vmatprep.subr.bf16.mxu0 %v17504_v59  ;;  %21843 = vst [vmem:[#allocation42_spill] sm:$0xff] %v21224_v54  ;;  %v21227_v59 = vrot.slane %v20467_v48, %v21074_v60  ;;  %v2906_v54 = vld [vmem:[#allocation10 + $0x10d8] sm:$0xff] }
 0x5c5   :  { %10554 = vmatpush1.bf16.msra.mxu1 %v18265_v31  ;;  %v21229_v31 = vpop.f32.mrb[18].mxu0  ;;  %v21237_v36 = vadd.f32 %v9656_v24, %v21227_v59  ;;  %v2473_v24 = vld [vmem:[#allocation10 + $0x350] sm:$0xff] }
 0x5c6   :  { %10855 = vmatpush1.bf16.msra.mxu0 %v17503_v61  ;;  %10695 = vmatprep.subr.bf16.mxu1 %v17142_v34  ;;  %v21232_v61 = vsub.s32 6, %v20981_v43  ;;  %v2461_v34 = vld [vmem:[#allocation10 + $0x2f0] sm:$0xff]  ;;  %v21239_v37 = vpop.f32.mrb[19].mxu0  ;;  %v17238_v50 = vcombine.high %v2473_v24, %v2485_v28 }
 0x5c7   :  { %10867 = vmatprep.subr.bf16.mxu0 %v17528_v35  ;;  %v2834_v35 = vld [vmem:[#allocation10 + $0xe98] sm:$0xff]  ;;  %21844 = vst [vmem:[#allocation43_spill] sm:$0xff] %v21237_v36  ;;  %v9912_v26 = vpop.f32.mrb[20].mxu0  ;;  %v2533_v36 = vld [vmem:[#allocation10 + $0x530] sm:$0xff] }
 0x5c8   :  { %10556 = vmatmul.mubr.bf16.vlgmr.msra.gmra.mrb[36].mxu1 %v21090_v10  ;;  %v21242_v12 = vrot.slane %v20467_v48, %v21232_v61  ;;  %v9914_v21 = vpop.f32.mrb[21].mxu0 }
 0x5c9   :  { %10857 = vmatmul.mubr.bf16.vlgmr.msra.gmra.mrb[36].mxu0 %v21030_v38  ;;  %10696 = vmatpush1.bf16.msra.mxu1 %v17141_v40  ;;  %v2846_v40 = vld [vmem:[#allocation10 + $0xef8] sm:$0xff]  ;;  %v21250_v27 = vpop.f32.mrb[22].mxu0 }
 0x5ca   :  { %10868 = vmatpush1.bf16.msra.mxu0 %v17527_v41  ;;  %10697 = vmatprep.subr.bf16.mxu1 %v17166_v44  ;;  %v17189_v41 = vcombine.low %v2425_v18, %v2437_v14  ;;  %v17575_v44 = vcombine.low %v2810_v53, %v2822_v52  ;;  %v17600_v16 = vcombine.high %v2834_v35, %v2846_v40  ;;  %v21255_v14 = vpop.f32.mrb[23].mxu0 }
 0x5cb   :  { %10869 = vmatprep.subr.bf16.mxu0 %v17552_v45  ;;  %10727 = vmatprep.mubr.bf16.mxu1 %v21016_v49  ;;  %v21245_v45 = vsub.s32 7, %v20981_v43  ;;  %v17214_v49 = vcombine.high %v2449_v29, %v2461_v34  ;;  %v21248_v30 = vadd.f32 %v9912_v26, %v21242_v12  ;;  %v21257_v43 = vld [vmem:[#allocation11 + $0x8] sm:$0xff]  ;;  %v17213_v52 = vcombine.low %v2449_v29, %v2461_v34  ;;  %v2509_v34 = vld [vmem:[#allocation10 + $0x470] sm:$0xff] }
 0x5cc   :  { %10899 = vmatprep.mubr.bf16.mxu0 %v21032_v46  ;;  %v21261_v53 = vrot.slane %v21257_v43, %v21071_v58  ;;  %v21271_v3 = vrot.slane %v21257_v43, %v21074_v60  ;;  %v21282_v7 = vrot.slane %v21257_v43, %v21111_v39  ;;  %v2581_v39 = vld [vmem:[#allocation10 + $0x6b0] sm:$0xff] }
 0x5cd   :  { %10698 = vmatpush1.bf16.msra.mxu1 %v17165_v56  ;;  %21845 = vst [vmem:[#allocation44_spill] sm:$0xff] %v21245_v45  ;;  %21846 = vst [vmem:[#allocation45_spill] sm:$0xff] %v21248_v30  ;;  %v2870_v56 = vld [vmem:[#allocation10 + $0xfb8] sm:$0xff]  ;;  %v21253_v18 = vrot.slane %v20467_v48, %v21245_v45 }
 0x5ce   :  { %10870 = vmatpush1.bf16.msra.mxu0 %v17551_v20  ;;  %10699 = vmatprep.subr.bf16.mxu1 %v17190_v2  ;;  %v10170_v20 = vpop.f32.mrb[24].mxu0  ;;  %v17599_v2 = vcombine.low %v2834_v35, %v2846_v40  ;;  %v17624_v30 = vcombine.high %v2858_v15, %v2870_v56  ;;  %v2882_v35 = vld [vmem:[#allocation10 + $0x1018] sm:$0xff] }
 0x5cf   :  { %10871 = vmatprep.subr.bf16.mxu0 %v17576_v6  ;;  %v21264_v6 = vadd.f32 %v9914_v21, %v21253_v18  ;;  %v21267_v26 = vadd.f32 %v10170_v20, %v21261_v53  ;;  %v10172_v48 = vpop.f32.mrb[25].mxu0  ;;  %v2894_v40 = vld [vmem:[#allocation10 + $0x1078] sm:$0xff]  ;;  %v17623_v21 = vcombine.low %v2858_v15, %v2870_v56  ;;  %v2521_v20 = vld [vmem:[#allocation10 + $0x4d0] sm:$0xff] }
 0x5d0   :  { %v21273_v29 = vpop.f32.mrb[26].mxu0  ;;  %v17647_v15 = vcombine.low %v2882_v35, %v2894_v40  ;;  %v2545_v56 = vld [vmem:[#allocation10 + $0x590] sm:$0xff] }
 0x5d1   :  { %10700 = vmatpush1.bf16.msra.mxu1 %v17189_v41  ;;  %21847 = vst [vmem:[#allocation46_spill] sm:$0xff] %v21264_v6  ;;  %21848 = vst [vmem:[#allocation47_spill] sm:$0xff] %v21267_v26  ;;  %v21276_v41 = vadd.f32 %v10172_v48, %v21271_v3  ;;  %v21278_v6 = vpop.f32.mrb[27].mxu0  ;;  %v2918_v26 = vld [vmem:[#allocation10 + $0x1138] sm:$0xff] }
 0x5d2   :  { %10872 = vmatpush1.bf16.msra.mxu0 %v17575_v44  ;;  %10701 = vmatprep.subr.bf16.mxu1 %v17214_v49  ;;  %v17237_v44 = vcombine.low %v2473_v24, %v2485_v28  ;;  %v17648_v49 = vcombine.high %v2882_v35, %v2894_v40  ;;  %v21286_v28 = vrot.slane %v21257_v43, %v21114_v51  ;;  %v2930_v48 = vld [vmem:[#allocation10 + $0x1198] sm:$0xff] }
 0x5d3   :  { %10873 = vmatprep.subr.bf16.mxu0 %v17600_v16  ;;  %21849 = vst [vmem:[#allocation48_spill] sm:$0xff] %v21276_v41  ;;  %v17262_v16 = vcombine.high %v2497_v11, %v2509_v34  ;;  %v17672_v24 = vcombine.high %v2906_v54, %v2918_v26  ;;  %v2942_v41 = vld [vmem:[#allocation10 + $0x11f8] sm:$0xff] }
 0x5d5   :  { %10702 = vmatpush1.bf16.msra.mxu1 %v17213_v52 }
 0x5d6   :  { %10874 = vmatpush1.bf16.msra.mxu0 %v17599_v2  ;;  %10703 = vmatprep.subr.bf16.mxu1 %v17238_v50  ;;  %v17261_v50 = vcombine.low %v2497_v11, %v2509_v34  ;;  %v2557_v2 = vld [vmem:[#allocation10 + $0x5f0] sm:$0xff]  ;;  %v17285_v11 = vcombine.low %v2521_v20, %v2533_v36  ;;  %v17671_v34 = vcombine.low %v2906_v54, %v2918_v26  ;;  %v2978_v26 = vld [vmem:[#allocation10 + $0x1318] sm:$0xff] }
 0x5d7   :  { %10875 = vmatprep.subr.bf16.mxu0 %v17624_v30  ;;  %v17286_v30 = vcombine.high %v2521_v20, %v2533_v36  ;;  %v17310_v40 = vcombine.high %v2545_v56, %v2557_v2  ;;  %v2593_v36 = vld [vmem:[#allocation10 + $0x710] sm:$0xff]  ;;  %v2990_v20 = vld [vmem:[#allocation10 + $0x1378] sm:$0xff] }
 0x5d8   :  { %v2605_v54 = vld [vmem:[#allocation10 + $0x770] sm:$0xff]  ;;  %v17744_v4 = vcombine.high %v2978_v26, %v2990_v20 }
 0x5d9   :  { %10704 = vmatpush1.bf16.msra.mxu1 %v17237_v44  ;;  %v17358_v8 = vcombine.high %v2593_v36, %v2605_v54 }
 0x5da   :  { %10876 = vmatpush1.bf16.msra.mxu0 %v17623_v21  ;;  %10705 = vmatprep.subr.bf16.mxu1 %v17262_v16  ;;  %v17696_v16 = vcombine.high %v2930_v48, %v2942_v41 }
 0x5db   :  { %10877 = vmatprep.subr.bf16.mxu0 %v17648_v49  ;;  %v10299_v52 = vpop.f32.mrb[32].mxu1  ;;  %v2569_v49 = vld [vmem:[#allocation10 + $0x650] sm:$0xff] }
 0x5dc   :  { %v21289_v0 = vadd.f32 %v10299_v52, %v21282_v7  ;;  %v10301_v44 = vpop.f32.mrb[33].mxu1  ;;  %v2954_v52 = vld [vmem:[#allocation10 + $0x1258] sm:$0xff] }
 0x5dd   :  { %v21292_v21 = vadd.f32 %v10301_v44, %v21286_v28  ;;  %v21294_v51 = vpop.f32.mrb[34].mxu1  ;;  %10706 = vmatpush1.bf16.msra.mxu1 %v17261_v50  ;;  %v17309_v44 = vcombine.low %v2545_v56, %v2557_v2  ;;  %v17334_v50 = vcombine.high %v2569_v49, %v2581_v39  ;;  %v3002_v56 = vld [vmem:[#allocation10 + $0x13d8] sm:$0xff]  ;;  %v17357_v2 = vcombine.low %v2593_v36, %v2605_v54 }
 0x5de   :  { %21850 = vst [vmem:[#allocation49_spill] sm:$0xff] %v21289_v0  ;;  %10878 = vmatpush1.bf16.msra.mxu0 %v17647_v15  ;;  %v21296_v35 = vpop.f32.mrb[35].mxu1  ;;  %10707 = vmatprep.subr.bf16.mxu1 %v17286_v30  ;;  %v2966_v0 = vld [vmem:[#allocation10 + $0x12b8] sm:$0xff]  ;;  %v17333_v30 = vcombine.low %v2569_v49, %v2581_v39 }
 0x5df   :  { %21851 = vst [vmem:[#allocation50_spill] sm:$0xff] %v21292_v21  ;;  %10879 = vmatprep.subr.bf16.mxu0 %v17672_v24  ;;  %v17695_v21 = vcombine.low %v2930_v48, %v2942_v41  ;;  %v17720_v15 = vcombine.high %v2954_v52, %v2966_v0  ;;  %v17719_v24 = vcombine.low %v2954_v52, %v2966_v0  ;;  %v3014_v41 = vld [vmem:[#allocation10 + $0x1438] sm:$0xff] }
 0x5e0   :  { %v17743_v48 = vcombine.low %v2978_v26, %v2990_v20  ;;  %v3026_v39 = vld [vmem:[#allocation10 + $0x1498] sm:$0xff]  ;;  %v17767_v52 = vcombine.low %v3002_v56, %v3014_v41 }
 0x5e1   :  { %10708 = vmatpush1.bf16.msra.mxu1 %v17285_v11  ;;  %v2617_v11 = vld [vmem:[#allocation10 + $0x7d0] sm:$0xff]  ;;  %v3038_v0 = vld [vmem:[#allocation10 + $0x14f8] sm:$0xff] }
 0x5e2   :  { %10880 = vmatpush1.bf16.msra.mxu0 %v17671_v34  ;;  %10709 = vmatprep.subr.bf16.mxu1 %v17310_v40  ;;  %v2629_v34 = vld [vmem:[#allocation10 + $0x830] sm:$0xff]  ;;  %v3050_v36 = vld [vmem:[#allocation10 + $0x1558] sm:$0xff] }
 0x5e3   :  { %10881 = vmatprep.subr.bf16.mxu0 %v17696_v16  ;;  %v17382_v40 = vcombine.high %v2617_v11, %v2629_v34  ;;  %v17768_v16 = vcombine.high %v3002_v56, %v3014_v41  ;;  %v17381_v49 = vcombine.low %v2617_v11, %v2629_v34  ;;  %v3062_v54 = vld [vmem:[#allocation10 + $0x15b8] sm:$0xff] }
 0x5e4   :  { %v17816_v20 = vcombine.high %v3050_v36, %v3062_v54  ;;  %v3074_v11 = vld [vmem:[#allocation10 + $0x1618] sm:$0xff]  ;;  %v17815_v41 = vcombine.low %v3050_v36, %v3062_v54 }
 0x5e5   :  { %10710 = vmatpush1.bf16.msra.mxu1 %v17309_v44  ;;  %v2641_v44 = vld [vmem:[#allocation10 + $0x890] sm:$0xff]  ;;  %v3086_v34 = vld [vmem:[#allocation10 + $0x1678] sm:$0xff] }
 0x5e6   :  { %10882 = vmatpush1.bf16.msra.mxu0 %v17695_v21  ;;  %10711 = vmatprep.subr.bf16.mxu1 %v17334_v50  ;;  %v2653_v21 = vld [vmem:[#allocation10 + $0x8f0] sm:$0xff] }
 0x5e7   :  { %10883 = vmatprep.subr.bf16.mxu0 %v17720_v15  ;;  %v17406_v50 = vcombine.high %v2641_v44, %v2653_v21  ;;  %v17792_v15 = vcombine.high %v3026_v39, %v3038_v0 }
 0x5e9   :  { %10712 = vmatpush1.bf16.msra.mxu1 %v17333_v30  ;;  %v2665_v30 = vld [vmem:[#allocation10 + $0x950] sm:$0xff] }
 0x5ea   :  { %10884 = vmatpush1.bf16.msra.mxu0 %v17719_v24  ;;  %10713 = vmatprep.subr.bf16.mxu1 %v17358_v8  ;;  %v2677_v24 = vld [vmem:[#allocation10 + $0x9b0] sm:$0xff]  ;;  %v17791_v8 = vcombine.low %v3026_v39, %v3038_v0  ;;  %v17839_v0 = vcombine.low %v3074_v11, %v3086_v34 }
 0x5eb   :  { %10885 = vmatprep.subr.bf16.mxu0 %v17744_v4  ;;  %v17405_v4 = vcombine.low %v2641_v44, %v2653_v21  ;;  %v17430_v26 = vcombine.high %v2665_v30, %v2677_v24  ;;  %v17429_v56 = vcombine.low %v2665_v30, %v2677_v24  ;;  %v3098_v44 = vld [vmem:[#allocation10 + $0x16d8] sm:$0xff] }
 0x5ec   :  { %v3110_v21 = vld [vmem:[#allocation10 + $0x1738] sm:$0xff] }
 0x5ed   :  { %10714 = vmatpush1.bf16.msra.mxu1 %v17357_v2  ;;  %v2689_v2 = vld [vmem:[#allocation10 + $0xa10] sm:$0xff]  ;;  %v3122_v30 = vld [vmem:[#allocation10 + $0x1798] sm:$0xff]  ;;  %v17863_v54 = vcombine.low %v3098_v44, %v3110_v21 }
 0x5ee   :  { %10886 = vmatpush1.bf16.msra.mxu0 %v17743_v48  ;;  %10715 = vmatprep.subr.bf16.mxu1 %v17382_v40  ;;  %v2701_v48 = vld [vmem:[#allocation10 + $0xa70] sm:$0xff]  ;;  %v3134_v24 = vld [vmem:[#allocation10 + $0x17f8] sm:$0xff] }
 0x5ef   :  { %10887 = vmatprep.subr.bf16.mxu0 %v17768_v16  ;;  %v17454_v40 = vcombine.high %v2689_v2, %v2701_v48  ;;  %v17840_v16 = vcombine.high %v3074_v11, %v3086_v34  ;;  %v17453_v39 = vcombine.low %v2689_v2, %v2701_v48  ;;  %v3146_v2 = vld [vmem:[#allocation10 + $0x1858] sm:$0xff]  ;;  %v17887_v34 = vcombine.low %v3122_v30, %v3134_v24 }
 0x5f0   :  { %v3158_v48 = vld [vmem:[#allocation10 + $0x18b8] sm:$0xff] }
 0x5f1   :  { %10716 = vmatpush1.bf16.msra.mxu1 %v17381_v49  ;;  %v2713_v49 = vld [vmem:[#allocation10 + $0xad0] sm:$0xff] }
 0x5f2   :  { %10888 = vmatpush1.bf16.msra.mxu0 %v17767_v52  ;;  %10717 = vmatprep.subr.bf16.mxu1 %v17406_v50  ;;  %v2725_v52 = vld [vmem:[#allocation10 + $0xb30] sm:$0xff] }
 0x5f3   :  { %10889 = vmatprep.subr.bf16.mxu0 %v17792_v15  ;;  %v17478_v50 = vcombine.high %v2713_v49, %v2725_v52  ;;  %v17864_v15 = vcombine.high %v3098_v44, %v3110_v21  ;;  %v17477_v36 = vcombine.low %v2713_v49, %v2725_v52  ;;  %v3170_v49 = vld [vmem:[#allocation10 + $0x1918] sm:$0xff]  ;;  %v17911_v21 = vcombine.low %v3146_v2, %v3158_v48 }
 0x5f4   :  { %v3182_v52 = vld [vmem:[#allocation10 + $0x1978] sm:$0xff] }
 0x5f5   :  { %10718 = vmatpush1.bf16.msra.mxu1 %v17405_v4  ;;  %v2737_v4 = vld [vmem:[#allocation10 + $0xb90] sm:$0xff] }
 0x5f6   :  { %10890 = vmatpush1.bf16.msra.mxu0 %v17791_v8  ;;  %10719 = vmatprep.subr.bf16.mxu1 %v17430_v26  ;;  %v2749_v8 = vld [vmem:[#allocation10 + $0xbf0] sm:$0xff] }
 0x5f7   :  { %10891 = vmatprep.subr.bf16.mxu0 %v17816_v20  ;;  %v17502_v26 = vcombine.high %v2737_v4, %v2749_v8  ;;  %v17888_v20 = vcombine.high %v3122_v30, %v3134_v24  ;;  %v17501_v11 = vcombine.low %v2737_v4, %v2749_v8  ;;  %v3194_v4 = vld [vmem:[#allocation10 + $0x19d8] sm:$0xff]  ;;  %v17935_v24 = vcombine.low %v3170_v49, %v3182_v52 }
 0x5f8   :  { %v3206_v8 = vld [vmem:[#allocation10 + $0x1a38] sm:$0xff] }
 0x5f9   :  { %10720 = vmatpush1.bf16.msra.mxu1 %v17429_v56  ;;  %v2761_v56 = vld [vmem:[#allocation10 + $0xc50] sm:$0xff] }
 0x5fa   :  { %10892 = vmatpush1.bf16.msra.mxu0 %v17815_v41  ;;  %10721 = vmatprep.subr.bf16.mxu1 %v17454_v40  ;;  %v2773_v41 = vld [vmem:[#allocation10 + $0xcb0] sm:$0xff] }
 0x5fb   :  { %10893 = vmatprep.subr.bf16.mxu0 %v17840_v16  ;;  %v17526_v40 = vcombine.high %v2761_v56, %v2773_v41  ;;  %v17912_v16 = vcombine.high %v3146_v2, %v3158_v48  ;;  %v17525_v44 = vcombine.low %v2761_v56, %v2773_v41  ;;  %v2833_v56 = vld [vmem:[#allocation10 + $0xe90] sm:$0xff]  ;;  %v3218_v2 = vld [vmem:[#allocation10 + $0x1a98] sm:$0xff] }
 0x5fc   :  { %v2845_v41 = vld [vmem:[#allocation10 + $0xef0] sm:$0xff]  ;;  %v3230_v48 = vld [vmem:[#allocation10 + $0x1af8] sm:$0xff] }
 0x5fd   :  { %10722 = vmatpush1.bf16.msra.mxu1 %v17453_v39  ;;  %v2785_v39 = vld [vmem:[#allocation10 + $0xd10] sm:$0xff] }
 0x5fe   :  { %10894 = vmatpush1.bf16.msra.mxu0 %v17839_v0  ;;  %10723 = vmatprep.subr.bf16.mxu1 %v17478_v50  ;;  %v2797_v0 = vld [vmem:[#allocation10 + $0xd70] sm:$0xff] }
 0x5ff   :  { %10895 = vmatprep.subr.bf16.mxu0 %v17864_v15  ;;  %v17550_v50 = vcombine.high %v2785_v39, %v2797_v0  ;;  %v17936_v15 = vcombine.high %v3170_v49, %v3182_v52  ;;  %v17549_v30 = vcombine.low %v2785_v39, %v2797_v0  ;;  %v2869_v39 = vld [vmem:[#allocation10 + $0xfb0] sm:$0xff]  ;;  %v3242_v0 = vld [vmem:[#allocation10 + $0x1b58] sm:$0xff]  ;;  %v17597_v52 = vcombine.low %v2833_v56, %v2845_v41 }
 0x600   :  { %v3254_v49 = vld [vmem:[#allocation10 + $0x1bb8] sm:$0xff] }
 0x601   :  { %10724 = vmatpush1.bf16.msra.mxu1 %v17477_v36  ;;  %v2809_v36 = vld [vmem:[#allocation10 + $0xdd0] sm:$0xff] }
 0x602   :  { %10896 = vmatpush1.bf16.msra.mxu0 %v17863_v54  ;;  %10725 = vmatprep.subr.bf16.mxu1 %v17502_v26  ;;  %v2821_v54 = vld [vmem:[#allocation10 + $0xe30] sm:$0xff] }
 0x603   :  { %10897 = vmatprep.subr.bf16.mxu0 %v17888_v20  ;;  %v17574_v26 = vcombine.high %v2809_v36, %v2821_v54  ;;  %v17960_v20 = vcombine.high %v3194_v4, %v3206_v8 }
 0x605   :  { %10726 = vmatpush1.bf16.msra.mxu1 %v17501_v11  ;;  %v17959_v11 = vcombine.low %v3194_v4, %v3206_v8  ;;  %v18007_v8 = vcombine.low %v3242_v0, %v3254_v49 }
 0x606   :  { %10898 = vmatpush1.bf16.msra.mxu0 %v17887_v34  ;;  %10738 = vmatprep.subr.bf16.mxu1 %v17526_v40  ;;  %v17598_v34 = vcombine.high %v2833_v56, %v2845_v41  ;;  %v17984_v40 = vcombine.high %v3218_v2, %v3230_v48  ;;  %v3290_v56 = vld [vmem:[#allocation10 + $0x1cd8] sm:$0xff] }
 0x607   :  { %10910 = vmatprep.subr.bf16.mxu0 %v17912_v16  ;;  %v2857_v16 = vld [vmem:[#allocation10 + $0xf50] sm:$0xff]  ;;  %v3302_v41 = vld [vmem:[#allocation10 + $0x1d38] sm:$0xff] }
 0x608   :  { %10728 = vmatmul.mubr.bf16.vlgmr.msra.gmra.mrb[40].mxu1 %v21030_v38  ;;  %v17573_v38 = vcombine.low %v2809_v36, %v2821_v54  ;;  %v3266_v36 = vld [vmem:[#allocation10 + $0x1c18] sm:$0xff]  ;;  %v17621_v4 = vcombine.low %v2857_v16, %v2869_v39 }
 0x609   :  { %10900 = vmatmul.mubr.bf16.vlgmr.msra.gmra.mrb[36].mxu0 %v21062_v17  ;;  %10739 = vmatpush1.bf16.msra.mxu1 %v17525_v44  ;;  %v17983_v44 = vcombine.low %v3218_v2, %v3230_v48  ;;  %v3278_v54 = vld [vmem:[#allocation10 + $0x1c78] sm:$0xff] }
 0x60a   :  { %10911 = vmatpush1.bf16.msra.mxu0 %v17911_v21  ;;  %10740 = vmatprep.subr.bf16.mxu1 %v17550_v50  ;;  %v18008_v21 = vcombine.high %v3242_v0, %v3254_v49  ;;  %v2881_v50 = vld [vmem:[#allocation10 + $0x1010] sm:$0xff]  ;;  %v18031_v48 = vcombine.low %v3266_v36, %v3278_v54  ;;  %v18055_v49 = vcombine.low %v3290_v56, %v3302_v41 }
 0x60b   :  { %10912 = vmatprep.subr.bf16.mxu0 %v17936_v15  ;;  %10770 = vmatprep.mubr.bf16.mxu1 %v21032_v46  ;;  %v17622_v46 = vcombine.high %v2857_v16, %v2869_v39  ;;  %v2893_v15 = vld [vmem:[#allocation10 + $0x1070] sm:$0xff]  ;;  %v3314_v16 = vld [vmem:[#allocation10 + $0x1d98] sm:$0xff] }
 0x60c   :  { %10942 = vmatprep.mubr.bf16.mxu0 %v21064_v33  ;;  %v17645_v2 = vcombine.low %v2881_v50, %v2893_v15  ;;  %v3326_v39 = vld [vmem:[#allocation10 + $0x1df8] sm:$0xff] }
 0x60d   :  { %10741 = vmatpush1.bf16.msra.mxu1 %v17549_v30  ;;  %v17646_v30 = vcombine.high %v2881_v50, %v2893_v15  ;;  %v3338_v50 = vld [vmem:[#allocation10 + $0x1e58] sm:$0xff] }
 0x60e   :  { %10913 = vmatpush1.bf16.msra.mxu0 %v17935_v24  ;;  %10742 = vmatprep.subr.bf16.mxu1 %v17574_v26  ;;  %v18032_v24 = vcombine.high %v3266_v36, %v3278_v54  ;;  %v2905_v26 = vld [vmem:[#allocation10 + $0x10d0] sm:$0xff]  ;;  %v3350_v15 = vld [vmem:[#allocation10 + $0x1eb8] sm:$0xff]  ;;  %v21304_v36 = vrot.slane %v21257_v43, %v21232_v61  ;;  %v10428_v54 = vpop.f32.mrb[28].mxu0 }
 0x60f   :  { %10914 = vmatprep.subr.bf16.mxu0 %v17960_v20  ;;  %v2917_v20 = vld [vmem:[#allocation10 + $0x1130] sm:$0xff] }
 0x610   :  { %v17669_v0 = vcombine.low %v2905_v26, %v2917_v20 }
 0x611   :  { %10743 = vmatpush1.bf16.msra.mxu1 %v17573_v38  ;;  %v17670_v38 = vcombine.high %v2905_v26, %v2917_v20  ;;  %v21311_v26 = vadd.f32 %v10428_v54, %v21304_v36  ;;  %v3013_v54 = vld [vmem:[#allocation10 + $0x1430] sm:$0xff] }
 0x612   :  { %10915 = vmatpush1.bf16.msra.mxu0 %v17959_v11  ;;  %10744 = vmatprep.subr.bf16.mxu1 %v17598_v34  ;;  %v18056_v11 = vcombine.high %v3290_v56, %v3302_v41  ;;  %v2929_v34 = vld [vmem:[#allocation10 + $0x1190] sm:$0xff] }
 0x613   :  { %10916 = vmatprep.subr.bf16.mxu0 %v17984_v40  ;;  %v2941_v40 = vld [vmem:[#allocation10 + $0x11f0] sm:$0xff]  ;;  %21852 = vst [vmem:[#allocation51_spill] sm:$0xff] %v21311_v26 }
 0x615   :  { %10745 = vmatpush1.bf16.msra.mxu1 %v17597_v52  ;;  %v17694_v52 = vcombine.high %v2929_v34, %v2941_v40 }
 0x616   :  { %10917 = vmatpush1.bf16.msra.mxu0 %v17983_v44  ;;  %10746 = vmatprep.subr.bf16.mxu1 %v17622_v46  ;;  %v18080_v44 = vcombine.high %v3314_v16, %v3326_v39  ;;  %v2953_v46 = vld [vmem:[#allocation10 + $0x1250] sm:$0xff] }
 0x617   :  { %10918 = vmatprep.subr.bf16.mxu0 %v18008_v21  ;;  %v2965_v21 = vld [vmem:[#allocation10 + $0x12b0] sm:$0xff] }
 0x618   :  { %v17718_v41 = vcombine.high %v2953_v46, %v2965_v21 }
 0x619   :  { %10747 = vmatpush1.bf16.msra.mxu1 %v17621_v4  ;;  %v21308_v4 = vrot.slane %v21257_v43, %v21245_v45 }
 0x61a   :  { %10919 = vmatpush1.bf16.msra.mxu0 %v18007_v8  ;;  %10748 = vmatprep.subr.bf16.mxu1 %v17646_v30  ;;  %v17693_v8 = vcombine.low %v2929_v34, %v2941_v40  ;;  %v10430_v30 = vpop.f32.mrb[29].mxu0  ;;  %v3374_v34 = vld [vmem:[#allocation10 + $0x1f78] sm:$0xff]  ;;  %v17717_v40 = vcombine.low %v2953_v46, %v2965_v21 }
 0x61b   :  { %10920 = vmatprep.subr.bf16.mxu0 %v18032_v24  ;;  %v18079_v24 = vcombine.low %v3314_v16, %v3326_v39  ;;  %v21314_v20 = vadd.f32 %v10430_v30, %v21308_v4  ;;  %v21316_v56 = vpop.f32.mrb[30].mxu0  ;;  %v18103_v16 = vcombine.low %v3338_v50, %v3350_v15  ;;  %v3410_v46 = vld [vmem:[#allocation10 + $0x2098] sm:$0xff] }
 0x61c   :  { %v21318_v43 = vpop.f32.mrb[31].mxu0  ;;  %v3422_v21 = vld [vmem:[#allocation10 + $0x20f8] sm:$0xff] }
 0x61d   :  { %10749 = vmatpush1.bf16.msra.mxu1 %v17645_v2  ;;  %21853 = vst [vmem:[#allocation52_spill] sm:$0xff] %v21314_v20  ;;  %v18104_v2 = vcombine.high %v3338_v50, %v3350_v15 }
 0x61e   :  { %10921 = vmatpush1.bf16.msra.mxu0 %v18031_v48  ;;  %10750 = vmatprep.subr.bf16.mxu1 %v17670_v38  ;;  %v2977_v48 = vld [vmem:[#allocation10 + $0x1310] sm:$0xff] }
 0x61f   :  { %10922 = vmatprep.subr.bf16.mxu0 %v18056_v11  ;;  %v2989_v38 = vld [vmem:[#allocation10 + $0x1370] sm:$0xff]  ;;  %v3362_v11 = vld [vmem:[#allocation10 + $0x1f18] sm:$0xff] }
 0x620   :  { %v17742_v39 = vcombine.high %v2977_v48, %v2989_v38  ;;  %v17741_v30 = vcombine.low %v2977_v48, %v2989_v38  ;;  %v18127_v20 = vcombine.low %v3362_v11, %v3374_v34  ;;  %v3434_v48 = vld [vmem:[#allocation10 + $0x2158] sm:$0xff] }
 0x621   :  { %10751 = vmatpush1.bf16.msra.mxu1 %v17669_v0  ;;  %v18128_v0 = vcombine.high %v3362_v11, %v3374_v34  ;;  %v3446_v38 = vld [vmem:[#allocation10 + $0x21b8] sm:$0xff]  ;;  %v18175_v34 = vcombine.low %v3410_v46, %v3422_v21 }
 0x622   :  { %10923 = vmatpush1.bf16.msra.mxu0 %v18055_v49  ;;  %10752 = vmatprep.subr.bf16.mxu1 %v17694_v52  ;;  %v3001_v49 = vld [vmem:[#allocation10 + $0x13d0] sm:$0xff]  ;;  %v3386_v52 = vld [vmem:[#allocation10 + $0x1fd8] sm:$0xff] }
 0x623   :  { %10924 = vmatprep.subr.bf16.mxu0 %v18080_v44  ;;  %v3398_v44 = vld [vmem:[#allocation10 + $0x2038] sm:$0xff]  ;;  %v17766_v26 = vcombine.high %v3001_v49, %v3013_v54  ;;  %v17765_v50 = vcombine.low %v3001_v49, %v3013_v54 }
 0x624   :  { %v18152_v45 = vcombine.high %v3386_v52, %v3398_v44  ;;  %v18151_v15 = vcombine.low %v3386_v52, %v3398_v44  ;;  %v3458_v49 = vld [vmem:[#allocation10 + $0x2218] sm:$0xff] }
 0x625   :  { %10753 = vmatpush1.bf16.msra.mxu1 %v17693_v8  ;;  %v3025_v8 = vld [vmem:[#allocation10 + $0x1490] sm:$0xff]  ;;  %v3470_v54 = vld [vmem:[#allocation10 + $0x2278] sm:$0xff] }
 0x626   :  { %10925 = vmatpush1.bf16.msra.mxu0 %v18079_v24  ;;  %10754 = vmatprep.subr.bf16.mxu1 %v17718_v41  ;;  %v3037_v24 = vld [vmem:[#allocation10 + $0x14f0] sm:$0xff]  ;;  %v18224_v44 = vcombine.high %v3458_v49, %v3470_v54 }
 0x627   :  { %10926 = vmatprep.subr.bf16.mxu0 %v18104_v2  ;;  %v17790_v41 = vcombine.high %v3025_v8, %v3037_v24  ;;  %v18176_v2 = vcombine.high %v3410_v46, %v3422_v21  ;;  %v17789_v11 = vcombine.low %v3025_v8, %v3037_v24  ;;  %v3482_v8 = vld [vmem:[#allocation10 + $0x22d8] sm:$0xff]  ;;  %v18223_v21 = vcombine.low %v3458_v49, %v3470_v54  ;;  %v3169_v54 = vld [vmem:[#allocation10 + $0x1910] sm:$0xff] }
 0x628   :  { %v3494_v24 = vld [vmem:[#allocation10 + $0x2338] sm:$0xff] }
 0x629   :  { %10755 = vmatpush1.bf16.msra.mxu1 %v17717_v40  ;;  %v3049_v40 = vld [vmem:[#allocation10 + $0x1550] sm:$0xff] }
 0x62a   :  { %10927 = vmatpush1.bf16.msra.mxu0 %v18103_v16  ;;  %10756 = vmatprep.subr.bf16.mxu1 %v17742_v39  ;;  %v3061_v16 = vld [vmem:[#allocation10 + $0x15b0] sm:$0xff] }
 0x62b   :  { %10928 = vmatprep.subr.bf16.mxu0 %v18128_v0  ;;  %v17814_v39 = vcombine.high %v3049_v40, %v3061_v16  ;;  %v18200_v0 = vcombine.high %v3434_v48, %v3446_v38 }
 0x62d   :  { %10757 = vmatpush1.bf16.msra.mxu1 %v17741_v30  ;;  %v3073_v30 = vld [vmem:[#allocation10 + $0x1610] sm:$0xff] }
 0x62e   :  { %10929 = vmatpush1.bf16.msra.mxu0 %v18127_v20  ;;  %10758 = vmatprep.subr.bf16.mxu1 %v17766_v26  ;;  %v3085_v20 = vld [vmem:[#allocation10 + $0x1670] sm:$0xff]  ;;  %v18199_v26 = vcombine.low %v3434_v48, %v3446_v38  ;;  %v18247_v38 = vcombine.low %v3482_v8, %v3494_v24 }
 0x62f   :  { %10930 = vmatprep.subr.bf16.mxu0 %v18152_v45  ;;  %v17813_v45 = vcombine.low %v3049_v40, %v3061_v16  ;;  %v17838_v52 = vcombine.high %v3073_v30, %v3085_v20  ;;  %v17837_v46 = vcombine.low %v3073_v30, %v3085_v20  ;;  %v3506_v40 = vld [vmem:[#allocation10 + $0x2398] sm:$0xff] }
 0x630   :  { %v3518_v16 = vld [vmem:[#allocation10 + $0x23f8] sm:$0xff] }
 0x631   :  { %10759 = vmatpush1.bf16.msra.mxu1 %v17765_v50  ;;  %v3097_v50 = vld [vmem:[#allocation10 + $0x16d0] sm:$0xff]  ;;  %v18271_v20 = vcombine.low %v3506_v40, %v3518_v16 }
 0x632   :  { %10931 = vmatpush1.bf16.msra.mxu0 %v18151_v15  ;;  %10760 = vmatprep.subr.bf16.mxu1 %v17790_v41  ;;  %v3109_v15 = vld [vmem:[#allocation10 + $0x1730] sm:$0xff] }
 0x633   :  { %10932 = vmatprep.subr.bf16.mxu0 %v18176_v2  ;;  %v17862_v41 = vcombine.high %v3097_v50, %v3109_v15  ;;  %v18248_v2 = vcombine.high %v3482_v8, %v3494_v24  ;;  %v17861_v48 = vcombine.low %v3097_v50, %v3109_v15  ;;  %v20767_v15 = vmov 0.0   ;;  %v3193_v8 = vld [vmem:[#allocation10 + $0x19d0] sm:$0xff] }
 0x634   :  { %v3205_v24 = vld [vmem:[#allocation10 + $0x1a30] sm:$0xff] }
 0x635   :  { %10761 = vmatpush1.bf16.msra.mxu1 %v17789_v11  ;;  %v3121_v11 = vld [vmem:[#allocation10 + $0x1790] sm:$0xff] }
 0x636   :  { %10933 = vmatpush1.bf16.msra.mxu0 %v18175_v34  ;;  %10762 = vmatprep.subr.bf16.mxu1 %v17814_v39  ;;  %v3133_v34 = vld [vmem:[#allocation10 + $0x17f0] sm:$0xff] }
 0x637   :  { %10934 = vmatprep.subr.bf16.mxu0 %v18200_v0  ;;  %v17886_v39 = vcombine.high %v3121_v11, %v3133_v34  ;;  %v18272_v0 = vcombine.high %v3506_v40, %v3518_v16  ;;  %v17885_v30 = vcombine.low %v3121_v11, %v3133_v34  ;;  %v19194_v11 = vadd.f32 %v21206_v1, %v21195_v62  ;;  %v3241_v16 = vld [vmem:[#allocation10 + $0x1b50] sm:$0xff] }
 0x638   :  { %v17957_v34 = vcombine.low %v3193_v8, %v3205_v24  ;;  %v19178_v40 = vadd.f32 %v21150_v9, %v21139_v25  ;;  %v19198_v62 = vadd.f32 %v21273_v29, %v21261_v53  ;;  %v3265_v25 = vld [vmem:[#allocation10 + $0x1c10] sm:$0xff]  ;;  %v19199_v53 = vadd.f32 %v21278_v6, %v21271_v3 }
 0x639   :  { %10763 = vmatpush1.bf16.msra.mxu1 %v17813_v45  ;;  %v3145_v45 = vld [vmem:[#allocation10 + $0x1850] sm:$0xff] }
 0x63a   :  { %10935 = vmatpush1.bf16.msra.mxu0 %v18199_v26  ;;  %10764 = vmatprep.subr.bf16.mxu1 %v17838_v52  ;;  %v3157_v26 = vld [vmem:[#allocation10 + $0x18b0] sm:$0xff] }
 0x63b   :  { %10936 = vmatprep.subr.bf16.mxu0 %v18224_v44  ;;  %v17910_v49 = vcombine.high %v3145_v45, %v3157_v26  ;;  %v3181_v52 = vld [vmem:[#allocation10 + $0x1970] sm:$0xff]  ;;  %v17909_v44 = vcombine.low %v3145_v45, %v3157_v26 }
 0x63c   :  { %v17934_v50 = vcombine.high %v3169_v54, %v3181_v52  ;;  %v3277_v9 = vld [vmem:[#allocation10 + $0x1c70] sm:$0xff] }
 0x63d   :  { %10765 = vmatpush1.bf16.msra.mxu1 %v17837_v46  ;;  %v17933_v46 = vcombine.low %v3169_v54, %v3181_v52  ;;  %v18030_v29 = vcombine.high %v3265_v25, %v3277_v9  ;;  %v3313_v45 = vld [vmem:[#allocation10 + $0x1d90] sm:$0xff] }
 0x63e   :  { %10937 = vmatpush1.bf16.msra.mxu0 %v18223_v21  ;;  %10766 = vmatprep.subr.bf16.mxu1 %v17862_v41  ;;  %v17958_v21 = vcombine.high %v3193_v8, %v3205_v24  ;;  %v3217_v41 = vld [vmem:[#allocation10 + $0x1a90] sm:$0xff]  ;;  %v19186_v8 = vadd.f32 %v21178_v13, %v21167_v42  ;;  %v19206_v42 = vadd.f32 %v21316_v56, %v21304_v36 }
 0x63f   :  { %10938 = vmatprep.subr.bf16.mxu0 %v18248_v2  ;;  %v3229_v2 = vld [vmem:[#allocation10 + $0x1af0] sm:$0xff]  ;;  %v19187_v13 = vadd.f32 %v21180_v32, %v21170_v55  ;;  %v19207_v36 = vadd.f32 %v21318_v43, %v21308_v4  ;;  %v19191_v56 = vadd.f32 %v21255_v14, %v21253_v18 }
 0x640   :  { %v3325_v26 = vld [vmem:[#allocation10 + $0x1df0] sm:$0xff] }
 0x641   :  { %10767 = vmatpush1.bf16.msra.mxu1 %v17861_v48  ;;  %v3253_v48 = vld [vmem:[#allocation10 + $0x1bb0] sm:$0xff]  ;;  %v18078_v52 = vcombine.high %v3313_v45, %v3325_v26 }
 0x642   :  { %10939 = vmatpush1.bf16.msra.mxu0 %v18247_v38  ;;  %10768 = vmatprep.subr.bf16.mxu1 %v17886_v39  ;;  %v17981_v38 = vcombine.low %v3217_v41, %v3229_v2  ;;  %v18006_v1 = vcombine.high %v3241_v16, %v3253_v48  ;;  %v19179_v39 = vadd.f32 %v21152_v23, %v21142_v57  ;;  %v3289_v57 = vld [vmem:[#allocation10 + $0x1cd0] sm:$0xff] }
 0x643   :  { %10940 = vmatprep.subr.bf16.mxu0 %v18272_v0  ;;  %v3301_v23 = vld [vmem:[#allocation10 + $0x1d30] sm:$0xff]  ;;  %v19183_v0 = vadd.f32 %v21239_v37, %v21227_v59 }
 0x644   :  { %v18054_v3 = vcombine.high %v3289_v57, %v3301_v23  ;;  %v3385_v55 = vld [vmem:[#allocation10 + $0x1fd0] sm:$0xff] }
 0x645   :  { %10769 = vmatpush1.bf16.msra.mxu1 %v17885_v30  ;;  %v19202_v30 = vadd.f32 %v21294_v51, %v21282_v7  ;;  %v3337_v51 = vld [vmem:[#allocation10 + $0x1e50] sm:$0xff] }
 0x646   :  { %10941 = vmatpush1.bf16.msra.mxu0 %v18271_v20  ;;  %10781 = vmatprep.subr.bf16.mxu1 %v17910_v49  ;;  %v18053_v49 = vcombine.low %v3289_v57, %v3301_v23  ;;  %v3349_v7 = vld [vmem:[#allocation10 + $0x1eb0] sm:$0xff] }
 0x647   :  { %18941 = vmatprep.subr.mxu0 %v20767_v15  ;;  %v3397_v32 = vld [vmem:[#allocation10 + $0x2030] sm:$0xff] }
 0x648   :  { %10771 = vmatmul.mubr.bf16.vlgmr.msra.gmra.mrb[40].mxu1 %v21062_v17  ;;  %v17982_v17 = vcombine.high %v3217_v41, %v3229_v2  ;;  %v18102_v41 = vcombine.high %v3337_v51, %v3349_v7  ;;  %v3361_v2 = vld [vmem:[#allocation10 + $0x1f10] sm:$0xff]  ;;  %v18149_v4 = vcombine.low %v3385_v55, %v3397_v32 }
 0x649   :  { %10943 = vmatmul.mubr.bf16.vlgmr.msra.gmra.mrb[36].mxu0 %v21090_v10  ;;  %10782 = vmatpush1.bf16.msra.mxu1 %v17909_v44 }
 0x64a   :  { %18943 = vmatprep.mubr.msk.f32.mxu0 %vm20768_vm0, %v20767_v15  ;;  %10783 = vmatprep.subr.bf16.mxu1 %v17934_v50 }
 0x64b   :  { %10813 = vmatprep.mubr.bf16.mxu1 %v21064_v33  ;;  %v19195_v33 = vadd.f32 %v21208_v22, %v21198_v47  ;;  %v19182_v47 = vadd.f32 %v21229_v31, %v21219_v63  ;;  %v18005_v22 = vcombine.low %v3241_v16, %v3253_v48  ;;  %v18029_v63 = vcombine.low %v3265_v25, %v3277_v9  ;;  %v21349_v31 = vld [vmem:[#allocation11 + $0x10] sm:$0xff] }
 0x64c   :  { %v21353_v6 = vrot.slane %v21349_v31, %v21071_v58  ;;  %v21362_v37 = vrot.slane %v21349_v31, %v21074_v60  ;;  %v3433_v16 = vld [vmem:[#allocation10 + $0x2150] sm:$0xff] }
 0x64d   :  { %10784 = vmatpush1.bf16.msra.mxu1 %v17933_v46  ;;  %v19203_v46 = vadd.f32 %v21296_v35, %v21286_v28  ;;  %v19190_v28 = vadd.f32 %v21250_v27, %v21242_v12  ;;  %v18101_v35 = vcombine.low %v3337_v51, %v3349_v7  ;;  %v18150_v12 = vcombine.high %v3385_v55, %v3397_v32  ;;  %v3445_v48 = vld [vmem:[#allocation10 + $0x21b0] sm:$0xff] }
 0x64e   :  { %10785 = vmatprep.subr.bf16.mxu1 %v17958_v21  ;;  %v18077_v21 = vcombine.low %v3313_v45, %v3325_v26  ;;  %v18198_v14 = vcombine.high %v3433_v16, %v3445_v48  ;;  %v3493_v25 = vld [vmem:[#allocation10 + $0x2330] sm:$0xff] }
 0x64f   :  { %18942 = vmatpush3.xpose.msra.mxu0 %v19194_v11  ;;  %v3373_v11 = vld [vmem:[#allocation10 + $0x1f70] sm:$0xff] }
 0x650   :  { %18951 = vmatprep.subr.mxu0 %v20767_v15  ;;  %v18125_v27 = vcombine.low %v3361_v2, %v3373_v11 }
 0x651   :  { %10786 = vmatpush1.bf16.msra.mxu1 %v17957_v34  ;;  %v18126_v34 = vcombine.high %v3361_v2, %v3373_v11 }
 0x652   :  { %18944 = vmatmul.mubr.f32.vlgmr.msra.gmra.mrb[40].mxu0 %v19178_v40  ;;  %10787 = vmatprep.subr.bf16.mxu1 %v17982_v17  ;;  %v3409_v17 = vld [vmem:[#allocation10 + $0x2090] sm:$0xff] }
 0x653   :  { %18952 = vmatpush3.xpose.msra.mxu0 %v19195_v33  ;;  %18953 = vmatprep.mubr.msk.f32.mxu0 %vm20768_vm0, %v20767_v15  ;;  %v3421_v40 = vld [vmem:[#allocation10 + $0x20f0] sm:$0xff] }
 0x654   :  { %18961 = vmatprep.subr.mxu0 %v20767_v15  ;;  %v18174_v43 = vcombine.high %v3409_v17, %v3421_v40  ;;  %v18173_v18 = vcombine.low %v3409_v17, %v3421_v40  ;;  %v3457_v33 = vld [vmem:[#allocation10 + $0x2210] sm:$0xff] }
 0x655   :  { %10788 = vmatpush1.bf16.msra.mxu1 %v17981_v38  ;;  %v3469_v38 = vld [vmem:[#allocation10 + $0x2270] sm:$0xff] }
 0x656   :  { %18954 = vmatmul.mubr.f32.vlgmr.msra.gmra.mrb[42].mxu0 %v19179_v39  ;;  %10789 = vmatprep.subr.bf16.mxu1 %v18006_v1  ;;  %v18222_v1 = vcombine.high %v3457_v33, %v3469_v38  ;;  %v3481_v39 = vld [vmem:[#allocation10 + $0x22d0] sm:$0xff]  ;;  %v18221_v9 = vcombine.low %v3457_v33, %v3469_v38 }
 0x657   :  { %18962 = vmatpush3.xpose.msra.mxu0 %v19198_v62  ;;  %18963 = vmatprep.mubr.msk.f32.mxu0 %vm20768_vm0, %v20767_v15  ;;  %v18197_v62 = vcombine.low %v3433_v16, %v3445_v48  ;;  %v21857_v17 = vld [vmem:[#allocation34_spill] sm:$0xff] }
 0x658   :  { %18971 = vmatprep.subr.mxu0 %v20767_v15  ;;  %v21451_v40 = vrot.slane %v21349_v31, %v21857_v17 }
 0x659   :  { %10790 = vmatpush1.bf16.msra.mxu1 %v18005_v22  ;;  %v3505_v22 = vld [vmem:[#allocation10 + $0x2390] sm:$0xff] }
 0x65a   :  { %18964 = vmatmul.mubr.f32.vlgmr.msra.gmra.mrb[44].mxu0 %v19182_v47  ;;  %10791 = vmatprep.subr.bf16.mxu1 %v18030_v29  ;;  %v18246_v47 = vcombine.high %v3481_v39, %v3493_v25  ;;  %v18245_v29 = vcombine.low %v3481_v39, %v3493_v25 }
 0x65b   :  { %18972 = vmatpush3.xpose.msra.mxu0 %v19199_v53  ;;  %18973 = vmatprep.mubr.msk.f32.mxu0 %vm20768_vm0, %v20767_v15  ;;  %v3517_v53 = vld [vmem:[#allocation10 + $0x23f0] sm:$0xff] }
 0x65c   :  { %18981 = vmatprep.subr.mxu0 %v20767_v15  ;;  %v21358_v59 = vpop.f32.mrb[32].mxu0  ;;  %v18270_v57 = vcombine.high %v3505_v22, %v3517_v53  ;;  %v18269_v23 = vcombine.low %v3505_v22, %v3517_v53 }
 0x65d   :  { %v21366_v20 = vpop.f32.mrb[33].mxu0  ;;  %10792 = vmatpush1.bf16.msra.mxu1 %v18029_v63 }
 0x65e   :  { %18974 = vmatmul.mubr.f32.vlgmr.msra.gmra.mrb[46].mxu0 %v19183_v0  ;;  %v10690_v54 = vpop.f32.mrb[34].mxu0  ;;  %10793 = vmatprep.subr.bf16.mxu1 %v18054_v3  ;;  %v21854_v0 = vld [vmem:[#allocation28_spill] sm:$0xff] }
 0x65f   :  { %18982 = vmatpush3.xpose.msra.mxu0 %v19202_v30  ;;  %v21369_v44 = vadd.f32 %v10690_v54, %v21353_v6  ;;  %v10692_v50 = vpop.f32.mrb[35].mxu0  ;;  %18983 = vmatprep.mubr.msk.f32.mxu0 %vm20768_vm0, %v20767_v15  ;;  %v3592_v63 = vrot.slane %v21349_v31, %v21854_v0  ;;  %v21855_v30 = vld [vmem:[#allocation29_spill] sm:$0xff] }
 0x660   :  { %18991 = vmatprep.subr.mxu0 %v20767_v15  ;;  %v21377_v24 = vadd.f32 %v10692_v50, %v21362_v37 }
 0x661   :  { %10794 = vmatpush1.bf16.msra.mxu1 %v18053_v49 }
 0x662   :  { %18984 = vmatmul.mubr.f32.vlgmr.msra.gmra.mrb[48].mxu0 %v19186_v8  ;;  %10795 = vmatprep.subr.bf16.mxu1 %v18078_v52  ;;  %v21856_v8 = vld [vmem:[#allocation44_spill] sm:$0xff] }
 0x663   :  { %18992 = vmatpush3.xpose.msra.mxu0 %v19203_v46  ;;  %18993 = vmatprep.mubr.msk.f32.mxu0 %vm20768_vm0, %v20767_v15  ;;  %v21425_v51 = vrot.slane %v21349_v31, %v21856_v8 }
 0x664   :  { %19001 = vmatprep.subr.mxu0 %v20767_v15 }
 0x665   :  { %10796 = vmatpush1.bf16.msra.mxu1 %v18077_v21 }
 0x666   :  { %18994 = vmatmul.mubr.f32.vlgmr.msra.gmra.mrb[50].mxu0 %v19187_v13  ;;  %10797 = vmatprep.subr.bf16.mxu1 %v18102_v41 }
 0x667   :  { %19002 = vmatpush3.xpose.msra.mxu0 %v19206_v42  ;;  %19003 = vmatprep.mubr.msk.f32.mxu0 %vm20768_vm0, %v20767_v15 }
 0x668   :  { %19011 = vmatprep.subr.mxu0 %v20767_v15 }
 0x669   :  { %10798 = vmatpush1.bf16.msra.mxu1 %v18101_v35 }
 0x66a   :  { %19004 = vmatmul.mubr.f32.vlgmr.msra.gmra.mrb[52].mxu0 %v19190_v28  ;;  %10799 = vmatprep.subr.bf16.mxu1 %v18126_v34 }
 0x66b   :  { %19012 = vmatpush3.xpose.msra.mxu0 %v19207_v36  ;;  %19013 = vmatprep.mubr.msk.f32.mxu0 %vm20768_vm0, %v20767_v15 }
 0x66d   :  { %10800 = vmatpush1.bf16.msra.mxu1 %v18125_v27 }
 0x66e   :  { %19014 = vmatmul.mubr.f32.vlgmr.msra.gmra.mrb[54].mxu0 %v19191_v56  ;;  %10801 = vmatprep.subr.bf16.mxu1 %v18150_v12 }
 0x671   :  { %10802 = vmatpush1.bf16.msra.mxu1 %v18149_v4 }
 0x672   :  { %10803 = vmatprep.subr.bf16.mxu1 %v18174_v43  ;;  %v21858_v43 = vld [vmem:[#allocation35_spill] sm:$0xff] }
 0x673   :  { %v21457_v16 = vrot.slane %v21349_v31, %v21858_v43 }
 0x675   :  { %10804 = vmatpush1.bf16.msra.mxu1 %v18173_v18 }
 0x676   :  { %10805 = vmatprep.subr.bf16.mxu1 %v18198_v14 }
 0x679   :  { %10806 = vmatpush1.bf16.msra.mxu1 %v18197_v62 }
 0x67a   :  { %10807 = vmatprep.subr.bf16.mxu1 %v18222_v1 }
 0x67d   :  { %10808 = vmatpush1.bf16.msra.mxu1 %v18221_v9 }
 0x67e   :  { %10809 = vmatprep.subr.bf16.mxu1 %v18246_v47 }
 0x681   :  { %10810 = vmatpush1.bf16.msra.mxu1 %v18245_v29 }
 0x682   :  { %10811 = vmatprep.subr.bf16.mxu1 %v18270_v57 }
 0x685   :  { %10812 = vmatpush1.bf16.msra.mxu1 %v18269_v23  ;;  %v21859_v23 = vld [vmem:[#allocation41_spill] sm:$0xff] }
 0x686   :  { %18861 = vmatprep.subr.mxu1 %v20767_v15 }
 0x688   :  { %10814 = vmatmul.mubr.bf16.vlgmr.msra.gmra.mrb[40].mxu1 %v21090_v10  ;;  %v3596_v10 = vrot.slane %v21349_v31, %v21855_v30 }
 0x689   :  { %18863 = vmatprep.mubr.msk.f32.mxu1 %vm20768_vm0, %v20767_v15 }
 0x68e   :  { %18862 = vmatpush3.xpose.msra.mxu1 %v21201_v19 }
 0x68f   :  { %18866 = vmatprep.subr.mxu1 %v20767_v15 }
 0x691   :  { %18864 = vmatmul.mubr.f32.vlgmr.msra.gmra.mrb[44].mxu1 %v21145_v5  ;;  %v21419_v5 = vrot.slane %v21349_v31, %v21232_v61 }
 0x692   :  { %18868 = vmatprep.mubr.msk.f32.mxu1 %vm20768_vm0, %v20767_v15 }
 0x69b   :  { %v10557_v3 = vpop.f32.mrb[36].mxu1 }
 0x69c   :  { %v19208_v45 = vadd.f32 %v10557_v3, %v3592_v63  ;;  %v10559_v26 = vpop.f32.mrb[37].mxu1  ;;  %v21860_v3 = vld [vmem:[#allocation38_spill] sm:$0xff] }
 0x69d   :  { %v10561_v49 = vpop.f32.mrb[38].mxu1 }
 0x69e   :  { %v21412_v54 = vadd.f32 %v10561_v49, %v3592_v63  ;;  %v10563_v19 = vpop.f32.mrb[39].mxu1  ;;  %18867 = vmatpush3.msra.mxu1 %v19208_v45  ;;  %v19209_v63 = vadd.f32 %v10559_v26, %v3596_v10 }
 0x69f   :  { %v21414_v52 = vadd.f32 %v10563_v19, %v3596_v10  ;;  %18871 = vmatprep.subr.mxu1 %v20767_v15 }
 0x71c   :  { %v21421_v50 = vpop.f32.mrb[36].mxu0 }
 0x71d   :  { %v21427_v7 = vpop.f32.mrb[37].mxu0 }
 0x71e   :  { %v10948_v46 = vpop.f32.mrb[38].mxu0 }
 0x71f   :  { %v21430_v21 = vadd.f32 %v10948_v46, %v21419_v5  ;;  %v10950_v41 = vpop.f32.mrb[39].mxu0 }
 0x720   :  { %v21433_v42 = vadd.f32 %v10950_v41, %v21425_v51 }
 0x725   :  { %v21435_v13 = vpop.f32.mrb[40].mxu0 }
 0x726   :  { %v18945_v61 = vpop.f32.mrb[41].mxu0 }
 0x729   :  { %v21437_v2 = vpop.f32.mrb[42].mxu0 }
 0x72a   :  { %v18955_v11 = vpop.f32.mrb[43].mxu0 }
 0x72d   :  { %v21439_v28 = vpop.f32.mrb[44].mxu0 }
 0x72e   :  { %v18965_v35 = vpop.f32.mrb[45].mxu0 }
 0x731   :  { %v21441_v34 = vpop.f32.mrb[46].mxu0 }
 0x732   :  { %v18975_v36 = vpop.f32.mrb[47].mxu0 }
 0x735   :  { %v21443_v55 = vpop.f32.mrb[48].mxu0 }
 0x736   :  { %v18985_v32 = vpop.f32.mrb[49].mxu0 }
 0x739   :  { %v21445_v56 = vpop.f32.mrb[50].mxu0 }
 0x73a   :  { %v18995_v27 = vpop.f32.mrb[51].mxu0 }
 0x73d   :  { %v21479_v61 = vpop.f32.mrb[52].mxu0 }
 0x73e   :  { %v19005_v26 = vpop.f32.mrb[53].mxu0 }
 0x741   :  { %v21481_v10 = vpop.f32.mrb[54].mxu0 }
 0x742   :  { %v19015_v11 = vpop.f32.mrb[55].mxu0 }
 0x75b   :  { %v21447_v12 = vpop.f32.mrb[40].mxu1 }
 0x75c   :  { %v21453_v4 = vpop.f32.mrb[41].mxu1 }
 0x75d   :  { %v10819_v48 = vpop.f32.mrb[42].mxu1 }
 0x75e   :  { %v21460_v18 = vadd.f32 %v10819_v48, %v21451_v40  ;;  %v10821_v14 = vpop.f32.mrb[43].mxu1 }
 0x75f   :  { %v21463_v33 = vadd.f32 %v10821_v14, %v21457_v16 }
 0x764   :  { %v11019_v38 = vpop.f32.mrb[44].mxu1 }
 0x765   :  { %v11023_v62 = vmul.f32 0.10206208, %v11019_v38  ;;  %v18865_v1 = vpop.f32.mrb[45].mxu1 }
 0x766   :  { %v19212_v1 = vadd.f32 %v21358_v59, %v21353_v6 }
 0x767   :  { %v11025_v39 = vsel %vm11024_vm1, %v11023_v62, -inf }
 0x768   :  { %11026 = vmax.xlane.f32.xlu0 %v11025_v39  ;;  %v21861_v39 = vld [vmem:[#allocation47_spill] sm:$0xff] }
 0x7f5   :  { %v11027_v25 = vpop.xlane.xlu0 %11026 }
 0x7f6   :  { %v11028_v9 = vsub.f32 %v11023_v62, %v11027_v25  ;;  %v21862_v25 = vld [vmem:[#allocation42_spill] sm:$0xff] }
 0x7f8   :  { %v11029_v47 = vmul.f32 1.442695, %v11028_v9 }
 0x7fa   :  { %20401 = vpow2.f32 %v11029_v47 }
 0x804   :  { %v20402_v31 = vpop.eup %20401 }
 0x805   :  { %v11031_v22 = vsel %vm11024_vm1, %v20402_v31, 0.0 }
 0x806   :  { %11032 = vadd.xlane.f32.xlu0 %v11031_v22 }
 0x893   :  { %v11033_v53 = vpop.xlane.xlu0 %11032 }
 0x894   :  { %20403 = vrcp.f32 %v11033_v53 }
 0x89e   :  { %v20404_v29 = vpop.eup %20403 }
 0x89f   :  { %v11035_v57 = vmul.f32 %v20404_v29, %v20402_v31 }
 0x8a1   :  { %18869 = vmatmul.mubr.msk.f32.vlgmr.msra.gmra.mrb[46].mxu1 %vm11024_vm1, %v11035_v57 }
 0x8a2   :  { %18872 = vmatpush3.xpose.msra.mxu1 %v21859_v23  ;;  %18873 = vmatprep.mubr.msk.f32.mxu1 %vm20768_vm0, %v20767_v15 }
 0x8a3   :  { %18876 = vmatprep.subr.mxu1 %v20767_v15 }
 0x8a5   :  { %18874 = vmatmul.mubr.f32.vlgmr.msra.gmra.mrb[48].mxu1 %v21860_v3 }
 0x8a6   :  { %18877 = vmatpush3.msra.mxu1 %v19209_v63  ;;  %18878 = vmatprep.mubr.msk.f32.mxu1 %vm20768_vm0, %v20767_v15 }
 0x8a7   :  { %18881 = vmatprep.subr.mxu1 %v20767_v15 }
 0x974   :  { %v21476_v45 = vpop.f32.mrb[46].mxu1 }
 0x975   :  { %v18870_v49 = vpop.f32.mrb[47].mxu1 }
 0x978   :  { %v11175_v19 = vpop.f32.mrb[48].mxu1 }
 0x979   :  { %v11179_v8 = vmul.f32 0.10206208, %v11175_v19  ;;  %v18875_v46 = vpop.f32.mrb[49].mxu1 }
 0x97a   :  { %v19213_v46 = vadd.f32 %v21366_v20, %v21362_v37 }
 0x97b   :  { %v11180_v41 = vsel %vm11024_vm1, %v11179_v8, -inf }
 0x97c   :  { %11181 = vmax.xlane.f32.xlu1 %v11180_v41  ;;  %v21864_v41 = vld [vmem:[#allocation43_spill] sm:$0xff] }
 0xa09   :  { %v11182_v35 = vpop.xlane.xlu1 %11181 }
 0xa0a   :  { %v11183_v36 = vsub.f32 %v11179_v8, %v11182_v35  ;;  %v21863_v8 = vld [vmem:[#allocation48_spill] sm:$0xff] }
 0xa0c   :  { %v11184_v32 = vmul.f32 1.442695, %v11183_v36 }
 0xa0e   :  { %20405 = vpow2.f32 %v11184_v32 }
 0xa18   :  { %v20406_v27 = vpop.eup %20405 }
 0xa19   :  { %v11186_v48 = vsel %vm11024_vm1, %v20406_v27, 0.0 }
 0xa1a   :  { %11187 = vadd.xlane.f32.xlu1 %v11186_v48 }
 0xaa7   :  { %v11188_v14 = vpop.xlane.xlu1 %11187 }
 0xaa8   :  { %20407 = vrcp.f32 %v11188_v14 }
 0xab2   :  { %v20408_v38 = vpop.eup %20407 }
 0xab3   :  { %v11190_v62 = vmul.f32 %v20408_v38, %v20406_v27 }
 0xab5   :  { %18879 = vmatmul.mubr.msk.f32.vlgmr.msra.gmra.mrb[50].mxu1 %vm11024_vm1, %v11190_v62 }
 0xab6   :  { %18882 = vmatpush3.xpose.msra.mxu1 %v21861_v39  ;;  %18883 = vmatprep.mubr.msk.f32.mxu1 %vm20768_vm0, %v20767_v15 }
 0xab7   :  { %18886 = vmatprep.subr.mxu1 %v20767_v15 }
 0xab9   :  { %18884 = vmatmul.mubr.f32.vlgmr.msra.gmra.mrb[52].mxu1 %v21862_v25  ;;  %v21865_v25 = vld [vmem:[#allocation49_spill] sm:$0xff] }
 0xaba   :  { %18887 = vmatpush3.msra.mxu1 %v19212_v1  ;;  %18888 = vmatprep.mubr.msk.f32.mxu1 %vm20768_vm0, %v20767_v15 }
 0xabb   :  { %18891 = vmatprep.subr.mxu1 %v20767_v15 }
 0xb88   :  { %v21495_v9 = vpop.f32.mrb[50].mxu1 }
 0xb89   :  { %v18880_v47 = vpop.f32.mrb[51].mxu1 }
 0xb8a   :  { %v19216_v47 = vadd.f32 %v21447_v12, %v21451_v40 }
 0xb8c   :  { %v11330_v31 = vpop.f32.mrb[52].mxu1 }
 0xb8d   :  { %v11334_v6 = vmul.f32 0.10206208, %v11330_v31  ;;  %v18885_v59 = vpop.f32.mrb[53].mxu1  ;;  %v21866_v31 = vld [vmem:[#allocation39_spill] sm:$0xff] }
 0xb8f   :  { %v11335_v22 = vsel %vm11024_vm1, %v11334_v6, -inf }
 0xb90   :  { %11336 = vmax.xlane.f32.xlu0 %v11335_v22 }
 0xc1d   :  { %v11337_v53 = vpop.xlane.xlu0 %11336 }
 0xc1e   :  { %v11338_v29 = vsub.f32 %v11334_v6, %v11337_v53 }
 0xc20   :  { %v11339_v57 = vmul.f32 1.442695, %v11338_v29 }
 0xc22   :  { %20409 = vpow2.f32 %v11339_v57 }
 0xc2c   :  { %v20410_v23 = vpop.eup %20409 }
 0xc2d   :  { %v11341_v63 = vsel %vm11024_vm1, %v20410_v23, 0.0 }
 0xc2e   :  { %11342 = vadd.xlane.f32.xlu1 %v11341_v63 }
 0xcbb   :  { %v11343_v3 = vpop.xlane.xlu1 %11342 }
 0xcbc   :  { %20411 = vrcp.f32 %v11343_v3 }
 0xcc6   :  { %v20412_v49 = vpop.eup %20411 }
 0xcc7   :  { %v11345_v19 = vmul.f32 %v20412_v49, %v20410_v23 }
 0xcc9   :  { %18889 = vmatmul.mubr.msk.f32.vlgmr.msra.gmra.mrb[54].mxu1 %vm11024_vm1, %v11345_v19 }
 0xcca   :  { %18892 = vmatpush3.xpose.msra.mxu1 %v21863_v8  ;;  %18893 = vmatprep.mubr.msk.f32.mxu1 %vm20768_vm0, %v20767_v15 }
 0xccb   :  { %18896 = vmatprep.subr.mxu1 %v20767_v15 }
 0xccd   :  { %18894 = vmatmul.mubr.f32.vlgmr.msra.gmra.mrb[56].mxu1 %v21864_v41  ;;  %v19217_v41 = vadd.f32 %v21453_v4, %v21457_v16 }
 0xcce   :  { %18897 = vmatpush3.msra.mxu1 %v19213_v46  ;;  %18898 = vmatprep.mubr.msk.f32.mxu1 %vm20768_vm0, %v20767_v15  ;;  %v21867_v46 = vld [vmem:[#allocation50_spill] sm:$0xff] }
 0xccf   :  { %18901 = vmatprep.subr.mxu1 %v20767_v15 }
 0xd9c   :  { %v21510_v26 = vpop.f32.mrb[54].mxu1 }
 0xd9d   :  { %v18890_v11 = vpop.f32.mrb[55].mxu1 }
 0xd9e   :  { %v21868_v11 = vld [vmem:[#allocation40_spill] sm:$0xff] }
 0xda0   :  { %v11485_v35 = vpop.f32.mrb[56].mxu1 }
 0xda1   :  { %v11489_v36 = vmul.f32 0.10206208, %v11485_v35  ;;  %v18895_v32 = vpop.f32.mrb[57].mxu1 }
 0xda3   :  { %v11490_v27 = vsel %vm11024_vm1, %v11489_v36, -inf }
 0xda4   :  { %11491 = vmax.xlane.f32.xlu0 %v11490_v27 }
 0xe31   :  { %v11492_v48 = vpop.xlane.xlu0 %11491 }
 0xe32   :  { %v11493_v14 = vsub.f32 %v11489_v36, %v11492_v48 }
 0xe34   :  { %v11494_v37 = vmul.f32 1.442695, %v11493_v14 }
 0xe36   :  { %20413 = vpow2.f32 %v11494_v37 }
 0xe40   :  { %v20414_v20 = vpop.eup %20413 }
 0xe41   :  { %v11496_v38 = vsel %vm11024_vm1, %v20414_v20, 0.0 }
 0xe42   :  { %11497 = vadd.xlane.f32.xlu1 %v11496_v38 }
 0xecf   :  { %v11498_v62 = vpop.xlane.xlu1 %11497 }
 0xed0   :  { %20415 = vrcp.f32 %v11498_v62 }
 0xeda   :  { %v20416_v1 = vpop.eup %20415 }
 0xedb   :  { %v11500_v39 = vmul.f32 %v20416_v1, %v20414_v20 }
 0xedd   :  { %18899 = vmatmul.mubr.msk.f32.vlgmr.msra.gmra.mrb[58].mxu1 %vm11024_vm1, %v11500_v39 }
 0xede   :  { %18902 = vmatpush3.xpose.msra.mxu1 %v21865_v25  ;;  %18903 = vmatprep.mubr.msk.f32.mxu1 %vm20768_vm0, %v20767_v15  ;;  %v19220_v25 = vadd.f32 %v21421_v50, %v21419_v5 }
 0xedf   :  { %18906 = vmatprep.subr.mxu1 %v20767_v15 }
 0xee1   :  { %18904 = vmatmul.mubr.f32.vlgmr.msra.gmra.mrb[60].mxu1 %v21866_v31  ;;  %v21870_v31 = vld [vmem:[#allocation45_spill] sm:$0xff] }
 0xee2   :  { %18907 = vmatpush3.msra.mxu1 %v19216_v47  ;;  %18908 = vmatprep.mubr.msk.f32.mxu1 %vm20768_vm0, %v20767_v15  ;;  %v21869_v47 = vld [vmem:[#allocation51_spill] sm:$0xff] }
 0xee3   :  { %18911 = vmatprep.subr.mxu1 %v20767_v15 }
 0xfb0   :  { %v21525_v6 = vpop.f32.mrb[58].mxu1 }
 0xfb1   :  { %v18900_v59 = vpop.f32.mrb[59].mxu1 }
 0xfb4   :  { %v11640_v22 = vpop.f32.mrb[60].mxu1 }
 0xfb5   :  { %v11644_v53 = vmul.f32 0.10206208, %v11640_v22  ;;  %v18905_v29 = vpop.f32.mrb[61].mxu1 }
 0xfb7   :  { %v11645_v57 = vsel %vm11024_vm1, %v11644_v53, -inf }
 0xfb8   :  { %11646 = vmax.xlane.f32.xlu0 %v11645_v57 }
0x1045   :  { %v11647_v23 = vpop.xlane.xlu0 %11646 }
0x1046   :  { %v11648_v63 = vsub.f32 %v11644_v53, %v11647_v23 }
0x1048   :  { %v11649_v12 = vmul.f32 1.442695, %v11648_v63 }
0x104a   :  { %20417 = vpow2.f32 %v11649_v12 }
0x1054   :  { %v20418_v40 = vpop.eup %20417 }
0x1055   :  { %v11651_v3 = vsel %vm11024_vm1, %v20418_v40, 0.0 }
0x1056   :  { %11652 = vadd.xlane.f32.xlu1 %v11651_v3 }
0x10e3   :  { %v11653_v49 = vpop.xlane.xlu1 %11652 }
0x10e4   :  { %20419 = vrcp.f32 %v11653_v49  ;;  %v12574_v49 = vmul.f32 0.10206208, %v21439_v28  ;;  %v21872_v28 = vld [vmem:[#allocation46_spill] sm:$0xff] }
0x10ee   :  { %v20420_v19 = vpop.eup %20419 }
0x10ef   :  { %v11655_v8 = vmul.f32 %v20420_v19, %v20418_v40  ;;  %v12264_v40 = vmul.f32 0.10206208, %v21435_v13  ;;  %v19221_v13 = vadd.f32 %v21427_v7, %v21425_v51  ;;  %v12419_v7 = vmul.f32 0.10206208, %v21437_v2 }
0x10f1   :  { %18909 = vmatmul.mubr.msk.f32.vlgmr.msra.gmra.mrb[62].mxu1 %vm11024_vm1, %v11655_v8  ;;  %v12265_v19 = vsel %vm11024_vm1, %v12264_v40, -inf  ;;  %v12575_v8 = vsel %vm11024_vm1, %v12574_v49, -inf }
0x10f2   :  { %18912 = vmatpush3.xpose.msra.mxu1 %v21867_v46  ;;  %18913 = vmatprep.mubr.msk.f32.mxu1 %vm20768_vm0, %v20767_v15 }
0x10f3   :  { %18916 = vmatprep.subr.mxu1 %v20767_v15 }
0x10f5   :  { %18914 = vmatmul.mubr.f32.vlgmr.msra.gmra.mrb[64].mxu1 %v21868_v11 }
0x10f6   :  { %18917 = vmatpush3.msra.mxu1 %v19217_v41  ;;  %18918 = vmatprep.mubr.msk.f32.mxu1 %vm20768_vm0, %v20767_v15 }
0x10f7   :  { %18921 = vmatprep.subr.mxu1 %v20767_v15 }
0x11c4   :  { %v21540_v35 = vpop.f32.mrb[62].mxu1 }
0x11c5   :  { %v18910_v36 = vpop.f32.mrb[63].mxu1 }
0x11c6   :  { %v21871_v36 = vld [vmem:[#allocation52_spill] sm:$0xff] }
0x11c8   :  { %v11795_v32 = vpop.f32.mrb[64].mxu1 }
0x11c9   :  { %v11799_v27 = vmul.f32 0.10206208, %v11795_v32  ;;  %v18915_v48 = vpop.f32.mrb[65].mxu1 }
0x11cb   :  { %v11800_v14 = vsel %vm11024_vm1, %v11799_v27, -inf }
0x11cc   :  { %11801 = vmax.xlane.f32.xlu0 %v11800_v14 }
0x1259   :  { %v11802_v37 = vpop.xlane.xlu0 %11801 }
0x125a   :  { %v11803_v20 = vsub.f32 %v11799_v27, %v11802_v37 }
0x125c   :  { %v11804_v4 = vmul.f32 1.442695, %v11803_v20 }
0x125e   :  { %20421 = vpow2.f32 %v11804_v4 }
0x1268   :  { %v20422_v16 = vpop.eup %20421 }
0x1269   :  { %v11806_v38 = vsel %vm11024_vm1, %v20422_v16, 0.0 }
0x126a   :  { %11807 = vadd.xlane.f32.xlu1 %v11806_v38 }
0x12f7   :  { %v11808_v62 = vpop.xlane.xlu1 %11807 }
0x12f8   :  { %20423 = vrcp.f32 %v11808_v62 }
0x1302   :  { %v20424_v1 = vpop.eup %20423 }
0x1303   :  { %v11810_v39 = vmul.f32 %v20424_v1, %v20422_v16 }
0x1305   :  { %18919 = vmatmul.mubr.msk.f32.vlgmr.msra.gmra.mrb[66].mxu1 %vm11024_vm1, %v11810_v39  ;;  %v12729_v39 = vmul.f32 0.10206208, %v21441_v34  ;;  %v13194_v34 = vmul.f32 0.10206208, %v21479_v61 }
0x1306   :  { %18922 = vmatpush3.xpose.msra.mxu1 %v21869_v47  ;;  %18923 = vmatprep.mubr.msk.f32.mxu1 %vm20768_vm0, %v20767_v15 }
0x1307   :  { %18926 = vmatprep.subr.mxu1 %v20767_v15  ;;  %v12730_v47 = vsel %vm11024_vm1, %v12729_v39, -inf }
0x1309   :  { %18924 = vmatmul.mubr.f32.vlgmr.msra.gmra.mrb[68].mxu1 %v21870_v31 }
0x130a   :  { %18927 = vmatpush3.msra.mxu1 %v19220_v25  ;;  %18928 = vmatprep.mubr.msk.f32.mxu1 %vm20768_vm0, %v20767_v15  ;;  %v12420_v25 = vsel %vm11024_vm1, %v12419_v7, -inf }
0x130b   :  { %18931 = vmatprep.subr.mxu1 %v20767_v15 }
0x13d8   :  { %v21555_v59 = vpop.f32.mrb[66].mxu1 }
0x13d9   :  { %v18920_v22 = vpop.f32.mrb[67].mxu1 }
0x13da   :  { %v12884_v22 = vmul.f32 0.10206208, %v21443_v55 }
0x13dc   :  { %v11950_v53 = vpop.f32.mrb[68].mxu1 }
0x13dd   :  { %v11954_v5 = vmul.f32 0.10206208, %v11950_v53  ;;  %v18925_v50 = vpop.f32.mrb[69].mxu1  ;;  %v12885_v53 = vsel %vm11024_vm1, %v12884_v22, -inf }
0x13df   :  { %v11955_v29 = vsel %vm11024_vm1, %v11954_v5, -inf }
0x13e0   :  { %11956 = vmax.xlane.f32.xlu0 %v11955_v29  ;;  %v13195_v29 = vsel %vm11024_vm1, %v13194_v34, -inf }
0x146d   :  { %v11957_v57 = vpop.xlane.xlu0 %11956 }
0x146e   :  { %v11958_v23 = vsub.f32 %v11954_v5, %v11957_v57 }
0x1470   :  { %v11959_v63 = vmul.f32 1.442695, %v11958_v23 }
0x1472   :  { %20425 = vpow2.f32 %v11959_v63 }
0x147c   :  { %v20426_v12 = vpop.eup %20425 }
0x147d   :  { %v11961_v3 = vsel %vm11024_vm1, %v20426_v12, 0.0 }
0x147e   :  { %11962 = vadd.xlane.f32.xlu1 %v11961_v3 }
0x1482   :  { %12266 = vmax.xlane.f32.xlu1 %v12265_v19 }
0x1486   :  { %12576 = vmax.xlane.f32.xlu1 %v12575_v8 }
0x150b   :  { %v11963_v46 = vpop.xlane.xlu1 %11962 }
0x150c   :  { %20427 = vrcp.f32 %v11963_v46 }
0x150f   :  { %v12267_v32 = vpop.xlane.xlu1 %12266 }
0x1510   :  { %v12268_v27 = vsub.f32 %v12264_v40, %v12267_v32 }
0x1512   :  { %v12269_v37 = vmul.f32 1.442695, %v12268_v27 }
0x1513   :  { %v12577_v20 = vpop.xlane.xlu1 %12576 }
0x1514   :  { %20429 = vpow2.f32 %v12269_v37  ;;  %v12578_v51 = vsub.f32 %v12574_v49, %v12577_v20 }
0x1516   :  { %v20428_v41 = vpop.eup %20427  ;;  %v12579_v1 = vmul.f32 1.442695, %v12578_v51 }
0x1517   :  { %v11965_v11 = vmul.f32 %v20428_v41, %v20426_v12 }
0x1518   :  { %20431 = vpow2.f32 %v12579_v1 }
0x1519   :  { %18929 = vmatmul.mubr.msk.f32.vlgmr.msra.gmra.mrb[70].mxu1 %vm11024_vm1, %v11965_v11 }
0x151a   :  { %18932 = vmatpush3.xpose.msra.mxu1 %v21871_v36  ;;  %18933 = vmatprep.mubr.msk.f32.mxu1 %vm20768_vm0, %v20767_v15 }
0x151b   :  { %18936 = vmatprep.subr.mxu1 %v20767_v15 }
0x151d   :  { %18934 = vmatmul.mubr.f32.vlgmr.msra.gmra.mrb[72].mxu1 %v21872_v28  ;;  %v13039_v28 = vmul.f32 0.10206208, %v21445_v56 }
0x151e   :  { %18937 = vmatpush3.msra.mxu1 %v19221_v13  ;;  %18938 = vmatprep.mubr.msk.f32.mxu1 %vm20768_vm0, %v20767_v15  ;;  %v21581_v31 = vpop.eup %20429 }
0x151f   :  { %18946 = vmatprep.subr.mxu1 %v20767_v15  ;;  %v12271_v2 = vsel %vm11024_vm1, %v21581_v31, 0.0  ;;  %v13040_v37 = vsel %vm11024_vm1, %v13039_v28, -inf }
0x1522   :  { %v21587_v5 = vpop.eup %20431 }
0x1523   :  { %v12581_v50 = vsel %vm11024_vm1, %v21587_v5, 0.0 }
0x15ec   :  { %v21574_v48 = vpop.f32.mrb[70].mxu1 }
0x15ed   :  { %v18930_v14 = vpop.f32.mrb[71].mxu1 }
0x15f0   :  { %v12105_v4 = vpop.f32.mrb[72].mxu1 }
0x15f1   :  { %v12109_v16 = vmul.f32 0.10206208, %v12105_v4  ;;  %v18935_v38 = vpop.f32.mrb[73].mxu1 }
0x15f2   :  { %v13349_v38 = vmul.f32 0.10206208, %v21481_v10 }
0x15f3   :  { %v12110_v62 = vsel %vm11024_vm1, %v12109_v16, -inf }
0x15f4   :  { %12111 = vmax.xlane.f32.xlu0 %v12110_v62  ;;  %v13350_v56 = vsel %vm11024_vm1, %v13349_v38, -inf }
0x15f8   :  { %12421 = vmax.xlane.f32.xlu0 %v12420_v25 }
0x15fc   :  { %12731 = vmax.xlane.f32.xlu0 %v12730_v47 }
0x1600   :  { %12272 = vadd.xlane.f32.xlu0 %v12271_v2 }
0x1604   :  { %12886 = vmax.xlane.f32.xlu0 %v12885_v53 }
0x1608   :  { %12582 = vadd.xlane.f32.xlu0 %v12581_v50 }
0x160c   :  { %13196 = vmax.xlane.f32.xlu0 %v13195_v29 }
0x1681   :  { %v12112_v57 = vpop.xlane.xlu0 %12111 }
0x1682   :  { %v12113_v55 = vsub.f32 %v12109_v16, %v12112_v57 }
0x1684   :  { %v12114_v23 = vmul.f32 1.442695, %v12113_v55 }
0x1685   :  { %v12422_v63 = vpop.xlane.xlu0 %12421 }
0x1686   :  { %20433 = vpow2.f32 %v12114_v23  ;;  %v12423_v12 = vsub.f32 %v12419_v7, %v12422_v63 }
0x1688   :  { %v12424_v40 = vmul.f32 1.442695, %v12423_v12 }
0x1689   :  { %v12732_v3 = vpop.xlane.xlu0 %12731 }
0x168a   :  { %20435 = vpow2.f32 %v12424_v40  ;;  %v12733_v49 = vsub.f32 %v12729_v39, %v12732_v3 }
0x168c   :  { %v12734_v19 = vmul.f32 1.442695, %v12733_v49 }
0x168d   :  { %v12273_v8 = vpop.xlane.xlu0 %12272 }
0x168e   :  { %20437 = vpow2.f32 %v12734_v19 }
0x1690   :  { %v20434_v61 = vpop.eup %20433 }
0x1691   :  { %v12887_v46 = vpop.xlane.xlu0 %12886  ;;  %v12116_v41 = vsel %vm11024_vm1, %v20434_v61, 0.0 }
0x1692   :  { %v12888_v11 = vsub.f32 %v12884_v22, %v12887_v46  ;;  %12117 = vadd.xlane.f32.xlu1 %v12116_v41  ;;  %v19825_v46 = vld [vmem:[#allocation13] ss:$24 sps:$4 sm:$0xff]   ;;  %v19830_v41 = vld [vmem:[#allocation13 + $0x34] ss:$24 sps:$4 sm:$0xff]  }
0x1694   :  { %v20436_v36 = vpop.eup %20435  ;;  %v12889_v13 = vmul.f32 1.442695, %v12888_v11  ;;  %v19828_v11 = vld [vmem:[#allocation13 + $0x30] ss:$24 sps:$4 sm:$0xff]  }
0x1695   :  { %v12583_v32 = vpop.xlane.xlu0 %12582  ;;  %v12426_v27 = vsel %vm11024_vm1, %v20436_v36, 0.0 }
0x1696   :  { %20439 = vpow2.f32 %v12889_v13  ;;  %12427 = vadd.xlane.f32.xlu1 %v12426_v27  ;;  %v19831_v13 = vld [vmem:[#allocation13 + $0x60] ss:$24 sps:$4 sm:$0xff]  }
0x1697   :  { %v19840_v27 = vld [vmem:[#allocation13 + $0xc0] ss:$24 sps:$4 sm:$0xff]  }
0x1698   :  { %v20438_v20 = vpop.eup %20437 }
0x1699   :  { %v13197_v14 = vpop.xlane.xlu0 %13196  ;;  %v12736_v51 = vsel %vm11024_vm1, %v20438_v20, 0.0 }
0x169a   :  { %v13198_v4 = vsub.f32 %v13194_v34, %v13197_v14  ;;  %13041 = vmax.xlane.f32.xlu1 %v13040_v37  ;;  %v19846_v14 = vld [vmem:[#allocation13 + $0xf0] ss:$24 sps:$4 sm:$0xff]   ;;  %v19848_v37 = vld [vmem:[#allocation13 + $0xf4] ss:$24 sps:$4 sm:$0xff]  }
0x169c   :  { %v13199_v16 = vmul.f32 1.442695, %v13198_v4  ;;  %v19854_v4 = vld [vmem:[#allocation13 + $0x124] ss:$24 sps:$4 sm:$0xff]  }
0x169e   :  { %20441 = vpow2.f32 %v13199_v16  ;;  %12737 = vadd.xlane.f32.xlu1 %v12736_v51  ;;  %v19858_v16 = vld [vmem:[#allocation13 + $0x150] ss:$24 sps:$4 sm:$0xff]   ;;  %v19864_v51 = vld [vmem:[#allocation13 + $0x180] ss:$24 sps:$4 sm:$0xff]  }
0x16a0   :  { %v20440_v7 = vpop.eup %20439 }
0x16a1   :  { %v12891_v62 = vsel %vm11024_vm1, %v20440_v7, 0.0 }
0x16a2   :  { %13351 = vmax.xlane.f32.xlu1 %v13350_v56  ;;  %12892 = vadd.xlane.f32.xlu0 %v12891_v62  ;;  %v19870_v56 = vld [vmem:[#allocation13 + $0x1b0] ss:$24 sps:$4 sm:$0xff]   ;;  %v19872_v62 = vld [vmem:[#allocation13 + $0x1b4] ss:$24 sps:$4 sm:$0xff]  }
0x16a8   :  { %v21601_v1 = vpop.eup %20441 }
0x16a9   :  { %v13201_v39 = vsel %vm11024_vm1, %v21601_v1, 0.0 }
0x16aa   :  { %13202 = vadd.xlane.f32.xlu0 %v13201_v39  ;;  %v19876_v39 = vld [vmem:[#allocation13 + $0x1e0] ss:$24 sps:$4 sm:$0xff]  }
0x171f   :  { %v12118_v25 = vpop.xlane.xlu1 %12117 }
0x1720   :  { %20443 = vrcp.f32 %v12118_v25  ;;  %v19878_v25 = vld [vmem:[#allocation13 + $0x1e4] ss:$24 sps:$4 sm:$0xff]  }
0x1721   :  { %20445 = vrcp.f32 %v12273_v8 }
0x1723   :  { %v12428_v10 = vpop.xlane.xlu1 %12427 }
0x1724   :  { %20447 = vrcp.f32 %v12428_v10  ;;  %v19882_v10 = vld [vmem:[#allocation13 + $0x210] ss:$24 sps:$4 sm:$0xff]  }
0x1725   :  { %20449 = vrcp.f32 %v12583_v32  ;;  %v19834_v32 = vld [vmem:[#allocation13 + $0x90] ss:$24 sps:$4 sm:$0xff]  }
0x1727   :  { %v13042_v47 = vpop.xlane.xlu1 %13041 }
0x1728   :  { %v13043_v22 = vsub.f32 %v13039_v28, %v13042_v47  ;;  %v19836_v28 = vld [vmem:[#allocation13 + $0x94] ss:$24 sps:$4 sm:$0xff]  }
0x1729   :  { %v19884_v47 = vld [vmem:[#allocation13 + $0x214] ss:$24 sps:$4 sm:$0xff]  }
0x172a   :  { %v20444_v2 = vpop.eup %20443  ;;  %v13044_v53 = vmul.f32 1.442695, %v13043_v22  ;;  %v19888_v22 = vld [vmem:[#allocation13 + $0x240] ss:$24 sps:$4 sm:$0xff]  }
0x172b   :  { %v12120_v34 = vmul.f32 %v20444_v2, %v20434_v61  ;;  %v12738_v50 = vpop.xlane.xlu1 %12737  ;;  %v20446_v29 = vpop.eup %20445  ;;  %v19890_v2 = vld [vmem:[#allocation13 + $0x244] ss:$24 sps:$4 sm:$0xff]  }
0x172c   :  { %20451 = vpow2.f32 %v13044_v53  ;;  %v12275_v57 = vmul.f32 %v20446_v29, %v21581_v31  ;;  %v19894_v53 = vld [vmem:[#allocation13 + $0x270] ss:$24 sps:$4 sm:$0xff]   ;;  %v19902_v29 = vld [vmem:[#allocation13 + $0x2a4] ss:$24 sps:$4 sm:$0xff]  }
0x172d   :  { %18939 = vmatmul.mubr.msk.f32.vlgmr.msra.gmra.mrb[74].mxu1 %vm11024_vm1, %v12120_v34  ;;  %20453 = vrcp.f32 %v12738_v50  ;;  %v19896_v34 = vld [vmem:[#allocation13 + $0x274] ss:$24 sps:$4 sm:$0xff]   ;;  %v19900_v50 = vld [vmem:[#allocation13 + $0x2a0] ss:$24 sps:$4 sm:$0xff]  }
0x172e   :  { %18947 = vmatpush3.msra.mxu1 %v21412_v54  ;;  %18948 = vmatprep.mubr.msk.f32.mxu1 %vm20768_vm0, %v20767_v15  ;;  %v20448_v63 = vpop.eup %20447 }
0x172f   :  { %v13352_v55 = vpop.xlane.xlu1 %13351  ;;  %v12893_v23 = vpop.xlane.xlu0 %12892  ;;  %18956 = vmatprep.subr.mxu1 %v20767_v15  ;;  %v12430_v54 = vmul.f32 %v20448_v63, %v20436_v36  ;;  %v19833_v36 = vld [vmem:[#allocation13 + $0x64] ss:$24 sps:$4 sm:$0xff]  }
0x1730   :  { %v13353_v12 = vsub.f32 %v13349_v38, %v13352_v55  ;;  %20455 = vrcp.f32 %v12893_v23  ;;  %v20450_v3 = vpop.eup %20449  ;;  %v19860_v38 = vld [vmem:[#allocation13 + $0x154] ss:$24 sps:$4 sm:$0xff]   ;;  %v19914_v23 = vld [vmem:[#allocation13 + $0x304] ss:$24 sps:$4 sm:$0xff]  }
0x1731   :  { %18949 = vmatmul.mubr.msk.f32.vlgmr.msra.gmra.mrb[76].mxu1 %vm11024_vm1, %v12275_v57  ;;  %v12585_v49 = vmul.f32 %v20450_v3, %v21587_v5  ;;  %v19906_v57 = vld [vmem:[#allocation13 + $0x2d0] ss:$24 sps:$4 sm:$0xff]   ;;  %v19908_v55 = vld [vmem:[#allocation13 + $0x2d4] ss:$24 sps:$4 sm:$0xff]  }
0x1732   :  { %v13354_v40 = vmul.f32 1.442695, %v13353_v12  ;;  %18957 = vmatpush3.msra.mxu1 %v21414_v52  ;;  %18958 = vmatprep.mubr.msk.f32.mxu1 %vm20768_vm0, %v20767_v15 }
0x1733   :  { %18966 = vmatprep.subr.mxu1 %v20767_v15 }
0x1734   :  { %20457 = vpow2.f32 %v13354_v40 }
0x1735   :  { %18959 = vmatmul.mubr.msk.f32.vlgmr.msra.gmra.mrb[78].mxu1 %vm11024_vm1, %v12430_v54 }
0x1736   :  { %v21617_v31 = vpop.eup %20451  ;;  %18967 = vmatpush3.msra.mxu1 %v21369_v44  ;;  %18968 = vmatprep.mubr.msk.f32.mxu1 %vm20768_vm0, %v20767_v15 }
0x1737   :  { %v13046_v52 = vsel %vm11024_vm1, %v21617_v31, 0.0  ;;  %18976 = vmatprep.subr.mxu1 %v20767_v15  ;;  %v20454_v19 = vpop.eup %20453  ;;  %v13203_v63 = vpop.xlane.xlu0 %13202 }
0x1738   :  { %13047 = vadd.xlane.f32.xlu1 %v13046_v52  ;;  %v12740_v44 = vmul.f32 %v20454_v19, %v20438_v20  ;;  %v19852_v20 = vld [vmem:[#allocation13 + $0x120] ss:$24 sps:$4 sm:$0xff]   ;;  %v19839_v19 = vld [vmem:[#allocation13 + $0xc] ss:$24 sps:$4 sm:$0xff]  }
0x1739   :  { %18969 = vmatmul.mubr.msk.f32.vlgmr.msra.gmra.mrb[80].mxu1 %vm11024_vm1, %v12585_v49 }
0x173a   :  { %18977 = vmatpush3.msra.mxu1 %v21377_v24  ;;  %18978 = vmatprep.mubr.msk.f32.mxu1 %vm20768_vm0, %v20767_v15  ;;  %v20456_v8 = vpop.eup %20455 }
0x173b   :  { %18986 = vmatprep.subr.mxu1 %v20767_v15  ;;  %v12895_v61 = vmul.f32 %v20456_v8, %v20440_v7  ;;  %v19866_v7 = vld [vmem:[#allocation13 + $0x184] ss:$24 sps:$4 sm:$0xff]  }
0x173d   :  { %18979 = vmatmul.mubr.msk.f32.vlgmr.msra.gmra.mrb[82].mxu1 %vm11024_vm1, %v12740_v44 }
0x173e   :  { %v21632_v5 = vpop.eup %20457  ;;  %18987 = vmatpush3.msra.mxu1 %v21460_v18  ;;  %18988 = vmatprep.mubr.msk.f32.mxu1 %vm20768_vm0, %v20767_v15  ;;  %v19827_v18 = vld [vmem:[#allocation13 + $0x4] ss:$24 sps:$4 sm:$0xff]  }
0x173f   :  { %v13356_v24 = vsel %vm11024_vm1, %v21632_v5, 0.0  ;;  %18996 = vmatprep.subr.mxu1 %v20767_v15  ;;  %15778 = vmatprep.subr.bf16.mxu0 %v19827_v18  ;;  %v19857_v18 = vld [vmem:[#allocation13 + $0x9c] ss:$24 sps:$4 sm:$0xff]  }
0x1740   :  { %13357 = vadd.xlane.f32.xlu1 %v13356_v24  ;;  %15779 = vmatpush1.bf16.msra.mxu0 %v19825_v46  ;;  %v19849_v24 = vld [vmem:[#allocation13 + $0x68] ss:$24 sps:$4 sm:$0xff]   ;;  %v19863_v46 = vld [vmem:[#allocation13 + $0xcc] ss:$24 sps:$4 sm:$0xff]  }
0x1741   :  { %18989 = vmatmul.mubr.msk.f32.vlgmr.msra.gmra.mrb[84].mxu1 %vm11024_vm1, %v12895_v61  ;;  %15780 = vmatprep.subr.bf16.mxu0 %v19830_v41  ;;  %v19851_v61 = vld [vmem:[#allocation13 + $0x6c] ss:$24 sps:$4 sm:$0xff]   ;;  %v19861_v41 = vld [vmem:[#allocation13 + $0xc8] ss:$24 sps:$4 sm:$0xff]  }
0x1742   :  { %18997 = vmatpush3.msra.mxu1 %v21463_v33  ;;  %18998 = vmatprep.mubr.msk.f32.mxu1 %vm20768_vm0, %v20767_v15  ;;  %v19842_v33 = vld [vmem:[#allocation13 + $0xc4] ss:$24 sps:$4 sm:$0xff]  }
0x1743   :  { %19006 = vmatprep.subr.mxu1 %v20767_v15 }
0x1744   :  { %15781 = vmatpush1.bf16.msra.mxu0 %v19828_v11  ;;  %v19867_v11 = vld [vmem:[#allocation13 + $0xf8] ss:$24 sps:$4 sm:$0xff]  }
0x1745   :  { %15782 = vmatprep.subr.bf16.mxu0 %v19833_v36  ;;  %v19875_v36 = vld [vmem:[#allocation13 + $0x12c] ss:$24 sps:$4 sm:$0xff]  }
0x1748   :  { %15783 = vmatpush1.bf16.msra.mxu0 %v19831_v13  ;;  %v19873_v13 = vld [vmem:[#allocation13 + $0x128] ss:$24 sps:$4 sm:$0xff]  }
0x1749   :  { %15784 = vmatprep.subr.bf16.mxu0 %v19836_v28  ;;  %v19881_v28 = vld [vmem:[#allocation13 + $0x15c] ss:$24 sps:$4 sm:$0xff]  }
0x174c   :  { %15785 = vmatpush1.bf16.msra.mxu0 %v19834_v32  ;;  %v19879_v32 = vld [vmem:[#allocation13 + $0x158] ss:$24 sps:$4 sm:$0xff]  }
0x174d   :  { %15786 = vmatprep.subr.bf16.mxu0 %v19842_v33  ;;  %v19887_v33 = vld [vmem:[#allocation13 + $0x18c] ss:$24 sps:$4 sm:$0xff]  }
0x1750   :  { %15787 = vmatpush1.bf16.msra.mxu0 %v19840_v27  ;;  %v19885_v27 = vld [vmem:[#allocation13 + $0x188] ss:$24 sps:$4 sm:$0xff]  }
0x1751   :  { %15788 = vmatprep.subr.bf16.mxu0 %v19848_v37  ;;  %v19891_v37 = vld [vmem:[#allocation13 + $0x1b8] ss:$24 sps:$4 sm:$0xff]  }
0x1754   :  { %15789 = vmatpush1.bf16.msra.mxu0 %v19846_v14  ;;  %v19893_v14 = vld [vmem:[#allocation13 + $0x1bc] ss:$24 sps:$4 sm:$0xff]  }
0x1755   :  { %15790 = vmatprep.subr.bf16.mxu0 %v19854_v4 }
0x1758   :  { %15791 = vmatpush1.bf16.msra.mxu0 %v19852_v20  ;;  %v19899_v20 = vld [vmem:[#allocation13 + $0x1ec] ss:$24 sps:$4 sm:$0xff]  }
0x1759   :  { %15792 = vmatprep.subr.bf16.mxu0 %v19860_v38 }
0x175c   :  { %15793 = vmatpush1.bf16.msra.mxu0 %v19858_v16  ;;  %v19897_v16 = vld [vmem:[#allocation13 + $0x1e8] ss:$24 sps:$4 sm:$0xff]  }
0x175d   :  { %15794 = vmatprep.subr.bf16.mxu0 %v19866_v7 }
0x1760   :  { %15795 = vmatpush1.bf16.msra.mxu0 %v19864_v51  ;;  %v19905_v51 = vld [vmem:[#allocation13 + $0x21c] ss:$24 sps:$4 sm:$0xff]  }
0x1761   :  { %15796 = vmatprep.subr.bf16.mxu0 %v19872_v62 }
0x1764   :  { %15797 = vmatpush1.bf16.msra.mxu0 %v19870_v56  ;;  %v19903_v56 = vld [vmem:[#allocation13 + $0x218] ss:$24 sps:$4 sm:$0xff]  }
0x1765   :  { %15798 = vmatprep.subr.bf16.mxu0 %v19878_v25  ;;  %v19911_v25 = vld [vmem:[#allocation13 + $0x24c] ss:$24 sps:$4 sm:$0xff]  }
0x1768   :  { %15799 = vmatpush1.bf16.msra.mxu0 %v19876_v39 }
0x1769   :  { %15800 = vmatprep.subr.bf16.mxu0 %v19884_v47  ;;  %v19909_v47 = vld [vmem:[#allocation13 + $0x248] ss:$24 sps:$4 sm:$0xff]  }
0x176c   :  { %15801 = vmatpush1.bf16.msra.mxu0 %v19882_v10 }
0x176d   :  { %15802 = vmatprep.subr.bf16.mxu0 %v19890_v2 }
0x1770   :  { %15803 = vmatpush1.bf16.msra.mxu0 %v19888_v22 }
0x1771   :  { %15804 = vmatprep.subr.bf16.mxu0 %v19896_v34  ;;  %v19917_v34 = vld [vmem:[#allocation13 + $0x27c] ss:$24 sps:$4 sm:$0xff]  }
0x1774   :  { %15805 = vmatpush1.bf16.msra.mxu0 %v19894_v53  ;;  %v19912_v53 = vld [vmem:[#allocation13 + $0x300] ss:$24 sps:$4 sm:$0xff]  }
0x1775   :  { %15806 = vmatprep.subr.bf16.mxu0 %v19902_v29  ;;  %v19915_v29 = vld [vmem:[#allocation13 + $0x278] ss:$24 sps:$4 sm:$0xff]  }
0x1778   :  { %15807 = vmatpush1.bf16.msra.mxu0 %v19900_v50  ;;  %v19920_v50 = vld [vmem:[#allocation13 + $0x334] ss:$24 sps:$4 sm:$0xff]  }
0x1779   :  { %15808 = vmatprep.subr.bf16.mxu0 %v19908_v55  ;;  %v19918_v55 = vld [vmem:[#allocation13 + $0x330] ss:$24 sps:$4 sm:$0xff]  }
0x177c   :  { %15809 = vmatpush1.bf16.msra.mxu0 %v19906_v57 }
0x177d   :  { %15821 = vmatprep.subr.bf16.mxu0 %v19914_v23  ;;  %v19923_v23 = vld [vmem:[#allocation13 + $0x2ac] ss:$24 sps:$4 sm:$0xff]  }
0x17c5   :  { %v13048_v12 = vpop.xlane.xlu1 %13047 }
0x17c6   :  { %20459 = vrcp.f32 %v13048_v12 }
0x17c7   :  { %20461 = vrcp.f32 %v13203_v63  ;;  %v19926_v63 = vld [vmem:[#allocation13 + $0x364] ss:$24 sps:$4 sm:$0xff]  }
0x17cd   :  { %v13358_v40 = vpop.xlane.xlu1 %13357 }
0x17ce   :  { %20463 = vrcp.f32 %v13358_v40  ;;  %v19921_v40 = vld [vmem:[#allocation13 + $0x2a8] ss:$24 sps:$4 sm:$0xff]  }
0x17d0   :  { %v20460_v54 = vpop.eup %20459 }
0x17d1   :  { %v13050_v3 = vmul.f32 %v20460_v54, %v21617_v31  ;;  %v20462_v49 = vpop.eup %20461  ;;  %v19837_v31 = vld [vmem:[#allocation13 + $0x8] ss:$24 sps:$4 sm:$0xff]  }
0x17d2   :  { %v13205_v52 = vmul.f32 %v20462_v49, %v21601_v1  ;;  %v19843_v1 = vld [vmem:[#allocation13 + $0x38] ss:$24 sps:$4 sm:$0xff]  }
0x17d3   :  { %18999 = vmatmul.mubr.msk.f32.vlgmr.msra.gmra.mrb[86].mxu1 %vm11024_vm1, %v13050_v3  ;;  %v19924_v49 = vld [vmem:[#allocation13 + $0x360] ss:$24 sps:$4 sm:$0xff]  }
0x17d4   :  { %19007 = vmatpush3.msra.mxu1 %v21430_v21  ;;  %19008 = vmatprep.mubr.msk.f32.mxu1 %vm20768_vm0, %v20767_v15  ;;  %v19845_v21 = vld [vmem:[#allocation13 + $0x3c] ss:$24 sps:$4 sm:$0xff]  }
0x17d5   :  { %19016 = vmatprep.subr.mxu1 %v20767_v15 }
0x17d7   :  { %19009 = vmatmul.mubr.msk.f32.vlgmr.msra.gmra.mrb[88].mxu1 %vm11024_vm1, %v13205_v52  ;;  %v19929_v52 = vld [vmem:[#allocation13 + $0x2dc] ss:$24 sps:$4 sm:$0xff]  }
0x17d8   :  { %v20464_v44 = vpop.eup %20463  ;;  %19017 = vmatpush3.msra.mxu1 %v21433_v42  ;;  %19018 = vmatprep.mubr.msk.f32.mxu1 %vm20768_vm0, %v20767_v15  ;;  %v19855_v42 = vld [vmem:[#allocation13 + $0x98] ss:$24 sps:$4 sm:$0xff]  }
0x17d9   :  { %v13360_v8 = vmul.f32 %v20464_v44, %v21632_v5  ;;  %15950 = vmatprep.subr.bf16.mxu1 %v19839_v19  ;;  %v19869_v5 = vld [vmem:[#allocation13 + $0xfc] ss:$24 sps:$4 sm:$0xff]   ;;  %v19927_v44 = vld [vmem:[#allocation13 + $0x2d8] ss:$24 sps:$4 sm:$0xff]  }
0x17db   :  { %19019 = vmatmul.mubr.msk.f32.vlgmr.msra.gmra.mrb[90].mxu1 %vm11024_vm1, %v13360_v8 }
0x17dc   :  { %15951 = vmatpush1.bf16.msra.mxu1 %v19837_v31 }
0x17dd   :  { %15952 = vmatprep.subr.bf16.mxu1 %v19845_v21  ;;  %v19935_v21 = vld [vmem:[#allocation13 + $0x30c] ss:$24 sps:$4 sm:$0xff]  }
0x17e0   :  { %15953 = vmatpush1.bf16.msra.mxu1 %v19843_v1  ;;  %v19938_v1 = vld [vmem:[#allocation13 + $0x3c4] ss:$24 sps:$4 sm:$0xff]  }
0x17e1   :  { %15954 = vmatprep.subr.bf16.mxu1 %v19851_v61  ;;  %v19933_v61 = vld [vmem:[#allocation13 + $0x308] ss:$24 sps:$4 sm:$0xff]  }
0x17e4   :  { %15955 = vmatpush1.bf16.msra.mxu1 %v19849_v24  ;;  %v19936_v24 = vld [vmem:[#allocation13 + $0x3c0] ss:$24 sps:$4 sm:$0xff]  }
0x17e5   :  { %15956 = vmatprep.subr.bf16.mxu1 %v19857_v18  ;;  %v19941_v18 = vld [vmem:[#allocation13 + $0x33c] ss:$24 sps:$4 sm:$0xff]  }
0x17e8   :  { %15957 = vmatpush1.bf16.msra.mxu1 %v19855_v42  ;;  %v19944_v42 = vld [vmem:[#allocation13 + $0x3f4] ss:$24 sps:$4 sm:$0xff]  }
0x17e9   :  { %15958 = vmatprep.subr.bf16.mxu1 %v19863_v46  ;;  %v19942_v46 = vld [vmem:[#allocation13 + $0x3f0] ss:$24 sps:$4 sm:$0xff]  }
0x17ec   :  { %15959 = vmatpush1.bf16.msra.mxu1 %v19861_v41  ;;  %v19947_v41 = vld [vmem:[#allocation13 + $0x36c] ss:$24 sps:$4 sm:$0xff]  }
0x17ed   :  { %15960 = vmatprep.subr.bf16.mxu1 %v19869_v5  ;;  %v19950_v5 = vld [vmem:[#allocation13 + $0x424] ss:$24 sps:$4 sm:$0xff]  }
0x17f0   :  { %15961 = vmatpush1.bf16.msra.mxu1 %v19867_v11  ;;  %v19945_v11 = vld [vmem:[#allocation13 + $0x368] ss:$24 sps:$4 sm:$0xff]  }
0x17f1   :  { %15962 = vmatprep.subr.bf16.mxu1 %v19875_v36  ;;  %v19948_v36 = vld [vmem:[#allocation13 + $0x420] ss:$24 sps:$4 sm:$0xff]  }
0x17f4   :  { %15963 = vmatpush1.bf16.msra.mxu1 %v19873_v13  ;;  %v19953_v13 = vld [vmem:[#allocation13 + $0x39c] ss:$24 sps:$4 sm:$0xff]  }
0x17f5   :  { %15964 = vmatprep.subr.bf16.mxu1 %v19881_v28  ;;  %v19956_v28 = vld [vmem:[#allocation13 + $0x454] ss:$24 sps:$4 sm:$0xff]  }
0x17f8   :  { %15965 = vmatpush1.bf16.msra.mxu1 %v19879_v32  ;;  %v19951_v32 = vld [vmem:[#allocation13 + $0x398] ss:$24 sps:$4 sm:$0xff]  }
0x17f9   :  { %15966 = vmatprep.subr.bf16.mxu1 %v19887_v33  ;;  %v19954_v33 = vld [vmem:[#allocation13 + $0x450] ss:$24 sps:$4 sm:$0xff]  }
0x17fc   :  { %15967 = vmatpush1.bf16.msra.mxu1 %v19885_v27  ;;  %v19959_v27 = vld [vmem:[#allocation13 + $0x3cc] ss:$24 sps:$4 sm:$0xff]  }
0x17fd   :  { %15968 = vmatprep.subr.bf16.mxu1 %v19893_v14  ;;  %v19962_v14 = vld [vmem:[#allocation13 + $0x484] ss:$24 sps:$4 sm:$0xff]  }
0x1800   :  { %15969 = vmatpush1.bf16.msra.mxu1 %v19891_v37  ;;  %v21658_v4 = vpop.f32.mrb[74].mxu1  ;;  %v19957_v37 = vld [vmem:[#allocation13 + $0x3c8] ss:$24 sps:$4 sm:$0xff]  }
0x1801   :  { %v18940_v38 = vpop.f32.mrb[75].mxu1  ;;  %15970 = vmatprep.subr.bf16.mxu1 %v19899_v20  ;;  %v19960_v20 = vld [vmem:[#allocation13 + $0x480] ss:$24 sps:$4 sm:$0xff]  }
0x1802   :  { %v19968_v38 = vld [vmem:[#allocation13 + $0x4b4] ss:$24 sps:$4 sm:$0xff]  }
0x1804   :  { %15971 = vmatpush1.bf16.msra.mxu1 %v19897_v16  ;;  %v12345_v7 = vpop.f32.mrb[76].mxu1  ;;  %v19965_v16 = vld [vmem:[#allocation13 + $0x3fc] ss:$24 sps:$4 sm:$0xff]  }
0x1805   :  { %v21661_v62 = vpack.c.bf16 %v12345_v7, %v21476_v45  ;;  %v18950_v39 = vpop.f32.mrb[77].mxu1  ;;  %15972 = vmatprep.subr.bf16.mxu1 %v19905_v51  ;;  %v19963_v51 = vld [vmem:[#allocation13 + $0x3f8] ss:$24 sps:$4 sm:$0xff]  }
0x1806   :  { %v19966_v7 = vld [vmem:[#allocation13 + $0x4b0] ss:$24 sps:$4 sm:$0xff]   ;;  %v19974_v39 = vld [vmem:[#allocation13 + $0x4e4] ss:$24 sps:$4 sm:$0xff]  }
0x1808   :  { %15973 = vmatpush1.bf16.msra.mxu1 %v19903_v56  ;;  %v12500_v10 = vpop.f32.mrb[78].mxu1  ;;  %v19971_v56 = vld [vmem:[#allocation13 + $0x42c] ss:$24 sps:$4 sm:$0xff]  }
0x1809   :  { %v21664_v22 = vpack.c.bf16 %v12500_v10, %v21495_v9  ;;  %v18960_v2 = vpop.f32.mrb[79].mxu1  ;;  %15974 = vmatprep.subr.bf16.mxu1 %v19911_v25  ;;  %v19969_v25 = vld [vmem:[#allocation13 + $0x428] ss:$24 sps:$4 sm:$0xff]  }
0x180a   :  { %v19972_v10 = vld [vmem:[#allocation13 + $0x4e0] ss:$24 sps:$4 sm:$0xff]   ;;  %v19980_v2 = vld [vmem:[#allocation13 + $0x514] ss:$24 sps:$4 sm:$0xff]  }
0x180b   :  { %15810 = vmatprep.mubr.bf16.mxu0 %v21664_v22  ;;  %15982 = vmatprep.mubr.bf16.mxu1 %v21664_v22 }
0x180c   :  { %15975 = vmatpush1.bf16.msra.mxu1 %v19909_v47  ;;  %v12655_v45 = vpop.f32.mrb[80].mxu1  ;;  %15811 = vmatmul.mubr.bf16.vlgmr.msra.gmra.mrb[56].mxu0 %v21661_v62  ;;  %v19977_v47 = vld [vmem:[#allocation13 + $0x45c] ss:$24 sps:$4 sm:$0xff]  }
0x180d   :  { %v21670_v57 = vpack.c.bf16 %v12655_v45, %v21510_v26  ;;  %15822 = vmatpush1.bf16.msra.mxu0 %v19912_v53  ;;  %v18970_v9 = vpop.f32.mrb[81].mxu1  ;;  %15976 = vmatprep.subr.bf16.mxu1 %v19917_v34  ;;  %v19932_v26 = vld [vmem:[#allocation13 + $0x394] ss:$24 sps:$4 sm:$0xff]   ;;  %v19975_v53 = vld [vmem:[#allocation13 + $0x458] ss:$24 sps:$4 sm:$0xff]  }
0x180e   :  { %15823 = vmatprep.subr.bf16.mxu0 %v19920_v50  ;;  %v19978_v34 = vld [vmem:[#allocation13 + $0x510] ss:$24 sps:$4 sm:$0xff]   ;;  %v19983_v50 = vld [vmem:[#allocation13 + $0x48c] ss:$24 sps:$4 sm:$0xff]   ;;  %v19984_v9 = vld [vmem:[#allocation13 + $0x540] ss:$24 sps:$4 sm:$0xff]  }
0x180f   :  { %v19986_v45 = vld [vmem:[#allocation13 + $0x544] ss:$24 sps:$4 sm:$0xff]  }
0x1810   :  { %15977 = vmatpush1.bf16.msra.mxu1 %v19915_v29  ;;  %v12810_v12 = vpop.f32.mrb[82].mxu1  ;;  %v19981_v29 = vld [vmem:[#allocation13 + $0x488] ss:$24 sps:$4 sm:$0xff]  }
0x1811   :  { %v21673_v54 = vpack.c.bf16 %v12810_v12, %v21525_v6  ;;  %15824 = vmatpush1.bf16.msra.mxu0 %v19918_v55  ;;  %v18980_v3 = vpop.f32.mrb[83].mxu1  ;;  %15978 = vmatprep.subr.bf16.mxu1 %v19923_v23  ;;  %v19930_v6 = vld [vmem:[#allocation13 + $0x390] ss:$24 sps:$4 sm:$0xff]   ;;  %v19989_v55 = vld [vmem:[#allocation13 + $0x4bc] ss:$24 sps:$4 sm:$0xff]  }
0x1812   :  { %15825 = vmatprep.subr.bf16.mxu0 %v19926_v63  ;;  %v19992_v23 = vld [vmem:[#allocation13 + $0x574] ss:$24 sps:$4 sm:$0xff]   ;;  %v19987_v63 = vld [vmem:[#allocation13 + $0x4b8] ss:$24 sps:$4 sm:$0xff]   ;;  %v19998_v3 = vld [vmem:[#allocation13 + $0x5a4] ss:$24 sps:$4 sm:$0xff]  }
0x1813   :  { %15853 = vmatprep.mubr.bf16.mxu0 %v21673_v54  ;;  %v19990_v12 = vld [vmem:[#allocation13 + $0x570] ss:$24 sps:$4 sm:$0xff]  }
0x1814   :  { %15979 = vmatpush1.bf16.msra.mxu1 %v19921_v40  ;;  %v12965_v19 = vpop.f32.mrb[84].mxu1  ;;  %v19995_v40 = vld [vmem:[#allocation13 + $0x4ec] ss:$24 sps:$4 sm:$0xff]  }
0x1815   :  { %v21677_v31 = vpack.c.bf16 %v12965_v19, %v21540_v35  ;;  %15826 = vmatpush1.bf16.msra.mxu0 %v19924_v49  ;;  %v18990_v8 = vpop.f32.mrb[85].mxu1  ;;  %15980 = vmatprep.subr.bf16.mxu1 %v19929_v52  ;;  %v19939_v35 = vld [vmem:[#allocation13 + $0x338] ss:$24 sps:$4 sm:$0xff]   ;;  %v19993_v49 = vld [vmem:[#allocation13 + $0x4e8] ss:$24 sps:$4 sm:$0xff]  }
0x1816   :  { %15827 = vmatprep.subr.bf16.mxu0 %v19932_v26  ;;  %v19996_v52 = vld [vmem:[#allocation13 + $0x5a0] ss:$24 sps:$4 sm:$0xff]   ;;  %v20001_v26 = vld [vmem:[#allocation13 + $0x51c] ss:$24 sps:$4 sm:$0xff]   ;;  %v20002_v8 = vld [vmem:[#allocation13 + $0x5d0] ss:$24 sps:$4 sm:$0xff]  }
0x1817   :  { %v20004_v19 = vld [vmem:[#allocation13 + $0x5d4] ss:$24 sps:$4 sm:$0xff]  }
0x1818   :  { %15981 = vmatpush1.bf16.msra.mxu1 %v19927_v44  ;;  %v19999_v44 = vld [vmem:[#allocation13 + $0x518] ss:$24 sps:$4 sm:$0xff]  }
0x1819   :  { %15828 = vmatpush1.bf16.msra.mxu0 %v19930_v6  ;;  %15993 = vmatprep.subr.bf16.mxu1 %v19935_v21  ;;  %v20007_v6 = vld [vmem:[#allocation13 + $0x54c] ss:$24 sps:$4 sm:$0xff]  }
0x181a   :  { %15829 = vmatprep.subr.bf16.mxu0 %v19938_v1  ;;  %v20019_v21 = vld [vmem:[#allocation13 + $0x604] ss:$24 sps:$4 sm:$0xff]   ;;  %v20005_v1 = vld [vmem:[#allocation13 + $0x548] ss:$24 sps:$4 sm:$0xff]  }
0x181b   :  { %15983 = vmatmul.mubr.bf16.vlgmr.msra.gmra.mrb[92].mxu1 %v21661_v62 }
0x181c   :  { %15994 = vmatpush1.bf16.msra.mxu1 %v19933_v61  ;;  %16025 = vmatprep.mubr.bf16.mxu1 %v21673_v54  ;;  %v20010_v61 = vld [vmem:[#allocation13 + $0x57c] ss:$24 sps:$4 sm:$0xff]  }
0x181d   :  { %15830 = vmatpush1.bf16.msra.mxu0 %v19936_v24  ;;  %15995 = vmatprep.subr.bf16.mxu1 %v19941_v18  ;;  %v20017_v24 = vld [vmem:[#allocation13 + $0x600] ss:$24 sps:$4 sm:$0xff]   ;;  %v20025_v18 = vld [vmem:[#allocation13 + $0x634] ss:$24 sps:$4 sm:$0xff]  }
0x181e   :  { %15831 = vmatprep.subr.bf16.mxu0 %v19944_v42  ;;  %v20008_v42 = vld [vmem:[#allocation13 + $0x578] ss:$24 sps:$4 sm:$0xff]  }
0x1820   :  { %15996 = vmatpush1.bf16.msra.mxu1 %v19939_v35  ;;  %v20013_v35 = vld [vmem:[#allocation13 + $0x5ac] ss:$24 sps:$4 sm:$0xff]  }
0x1821   :  { %15832 = vmatpush1.bf16.msra.mxu0 %v19942_v46  ;;  %15997 = vmatprep.subr.bf16.mxu1 %v19947_v41  ;;  %v20023_v46 = vld [vmem:[#allocation13 + $0x630] ss:$24 sps:$4 sm:$0xff]   ;;  %v20031_v41 = vld [vmem:[#allocation13 + $0x664] ss:$24 sps:$4 sm:$0xff]  }
0x1822   :  { %15833 = vmatprep.subr.bf16.mxu0 %v19950_v5  ;;  %v20011_v5 = vld [vmem:[#allocation13 + $0x5a8] ss:$24 sps:$4 sm:$0xff]  }
0x1824   :  { %15998 = vmatpush1.bf16.msra.mxu1 %v19945_v11  ;;  %v20016_v11 = vld [vmem:[#allocation13 + $0x5dc] ss:$24 sps:$4 sm:$0xff]  }
0x1825   :  { %15834 = vmatpush1.bf16.msra.mxu0 %v19948_v36  ;;  %15999 = vmatprep.subr.bf16.mxu1 %v19953_v13  ;;  %v20029_v36 = vld [vmem:[#allocation13 + $0x660] ss:$24 sps:$4 sm:$0xff]   ;;  %v20037_v13 = vld [vmem:[#allocation13 + $0x694] ss:$24 sps:$4 sm:$0xff]  }
0x1826   :  { %15835 = vmatprep.subr.bf16.mxu0 %v19956_v28  ;;  %v20014_v28 = vld [vmem:[#allocation13 + $0x5d8] ss:$24 sps:$4 sm:$0xff]  }
0x1828   :  { %16000 = vmatpush1.bf16.msra.mxu1 %v19951_v32  ;;  %v20022_v32 = vld [vmem:[#allocation13 + $0x60c] ss:$24 sps:$4 sm:$0xff]  }
0x1829   :  { %15836 = vmatpush1.bf16.msra.mxu0 %v19954_v33  ;;  %16001 = vmatprep.subr.bf16.mxu1 %v19959_v27  ;;  %v20035_v33 = vld [vmem:[#allocation13 + $0x690] ss:$24 sps:$4 sm:$0xff]   ;;  %v20043_v27 = vld [vmem:[#allocation13 + $0x6c4] ss:$24 sps:$4 sm:$0xff]  }
0x182a   :  { %15837 = vmatprep.subr.bf16.mxu0 %v19962_v14  ;;  %v20020_v14 = vld [vmem:[#allocation13 + $0x608] ss:$24 sps:$4 sm:$0xff]  }
0x182c   :  { %16002 = vmatpush1.bf16.msra.mxu1 %v19957_v37  ;;  %v20028_v37 = vld [vmem:[#allocation13 + $0x63c] ss:$24 sps:$4 sm:$0xff]  }
0x182d   :  { %15838 = vmatpush1.bf16.msra.mxu0 %v19960_v20  ;;  %16003 = vmatprep.subr.bf16.mxu1 %v19965_v16  ;;  %v20041_v20 = vld [vmem:[#allocation13 + $0x6c0] ss:$24 sps:$4 sm:$0xff]   ;;  %v20049_v16 = vld [vmem:[#allocation13 + $0x6f4] ss:$24 sps:$4 sm:$0xff]  }
0x182e   :  { %15839 = vmatprep.subr.bf16.mxu0 %v19968_v38  ;;  %v20026_v38 = vld [vmem:[#allocation13 + $0x638] ss:$24 sps:$4 sm:$0xff]  }
0x1830   :  { %16004 = vmatpush1.bf16.msra.mxu1 %v19963_v51  ;;  %v20034_v51 = vld [vmem:[#allocation13 + $0x66c] ss:$24 sps:$4 sm:$0xff]  }
0x1831   :  { %15840 = vmatpush1.bf16.msra.mxu0 %v19966_v7  ;;  %16005 = vmatprep.subr.bf16.mxu1 %v19971_v56  ;;  %v20047_v7 = vld [vmem:[#allocation13 + $0x6f0] ss:$24 sps:$4 sm:$0xff]   ;;  %v20055_v56 = vld [vmem:[#allocation13 + $0x724] ss:$24 sps:$4 sm:$0xff]  }
0x1832   :  { %15841 = vmatprep.subr.bf16.mxu0 %v19974_v39  ;;  %v20032_v39 = vld [vmem:[#allocation13 + $0x668] ss:$24 sps:$4 sm:$0xff]  }
0x1834   :  { %16006 = vmatpush1.bf16.msra.mxu1 %v19969_v25  ;;  %v20040_v25 = vld [vmem:[#allocation13 + $0x69c] ss:$24 sps:$4 sm:$0xff]  }
0x1835   :  { %15842 = vmatpush1.bf16.msra.mxu0 %v19972_v10  ;;  %16007 = vmatprep.subr.bf16.mxu1 %v19977_v47  ;;  %v20053_v10 = vld [vmem:[#allocation13 + $0x720] ss:$24 sps:$4 sm:$0xff]   ;;  %v20061_v47 = vld [vmem:[#allocation13 + $0x754] ss:$24 sps:$4 sm:$0xff]  }
0x1836   :  { %15843 = vmatprep.subr.bf16.mxu0 %v19980_v2  ;;  %v20038_v2 = vld [vmem:[#allocation13 + $0x698] ss:$24 sps:$4 sm:$0xff]  }
0x1838   :  { %16008 = vmatpush1.bf16.msra.mxu1 %v19975_v53  ;;  %v20046_v53 = vld [vmem:[#allocation13 + $0x6cc] ss:$24 sps:$4 sm:$0xff]  }
0x1839   :  { %15844 = vmatpush1.bf16.msra.mxu0 %v19978_v34  ;;  %16009 = vmatprep.subr.bf16.mxu1 %v19983_v50  ;;  %v20059_v34 = vld [vmem:[#allocation13 + $0x750] ss:$24 sps:$4 sm:$0xff]   ;;  %v20067_v50 = vld [vmem:[#allocation13 + $0x784] ss:$24 sps:$4 sm:$0xff]  }
0x183a   :  { %15845 = vmatprep.subr.bf16.mxu0 %v19986_v45  ;;  %v20044_v45 = vld [vmem:[#allocation13 + $0x6c8] ss:$24 sps:$4 sm:$0xff]  }
0x183c   :  { %16010 = vmatpush1.bf16.msra.mxu1 %v19981_v29  ;;  %v20052_v29 = vld [vmem:[#allocation13 + $0x6fc] ss:$24 sps:$4 sm:$0xff]  }
0x183d   :  { %15846 = vmatpush1.bf16.msra.mxu0 %v19984_v9  ;;  %16011 = vmatprep.subr.bf16.mxu1 %v19989_v55  ;;  %v20065_v9 = vld [vmem:[#allocation13 + $0x780] ss:$24 sps:$4 sm:$0xff]   ;;  %v20073_v55 = vld [vmem:[#allocation13 + $0x7b4] ss:$24 sps:$4 sm:$0xff]  }
0x183e   :  { %15847 = vmatprep.subr.bf16.mxu0 %v19992_v23  ;;  %v20050_v23 = vld [vmem:[#allocation13 + $0x6f8] ss:$24 sps:$4 sm:$0xff]  }
0x1840   :  { %16012 = vmatpush1.bf16.msra.mxu1 %v19987_v63  ;;  %v20058_v63 = vld [vmem:[#allocation13 + $0x72c] ss:$24 sps:$4 sm:$0xff]  }
0x1841   :  { %15848 = vmatpush1.bf16.msra.mxu0 %v19990_v12  ;;  %16013 = vmatprep.subr.bf16.mxu1 %v19995_v40  ;;  %v20071_v12 = vld [vmem:[#allocation13 + $0x7b0] ss:$24 sps:$4 sm:$0xff]   ;;  %v20079_v40 = vld [vmem:[#allocation13 + $0x7e4] ss:$24 sps:$4 sm:$0xff]  }
0x1842   :  { %15849 = vmatprep.subr.bf16.mxu0 %v19998_v3  ;;  %v20056_v3 = vld [vmem:[#allocation13 + $0x728] ss:$24 sps:$4 sm:$0xff]  }
0x1844   :  { %16014 = vmatpush1.bf16.msra.mxu1 %v19993_v49  ;;  %v20064_v49 = vld [vmem:[#allocation13 + $0x75c] ss:$24 sps:$4 sm:$0xff]  }
0x1845   :  { %15850 = vmatpush1.bf16.msra.mxu0 %v19996_v52  ;;  %16015 = vmatprep.subr.bf16.mxu1 %v20001_v26  ;;  %v20077_v52 = vld [vmem:[#allocation13 + $0x7e0] ss:$24 sps:$4 sm:$0xff]   ;;  %v20085_v26 = vld [vmem:[#allocation13 + $0x814] ss:$24 sps:$4 sm:$0xff]  }
0x1846   :  { %15851 = vmatprep.subr.bf16.mxu0 %v20004_v19  ;;  %v20062_v19 = vld [vmem:[#allocation13 + $0x758] ss:$24 sps:$4 sm:$0xff]  }
0x1848   :  { %16016 = vmatpush1.bf16.msra.mxu1 %v19999_v44  ;;  %v20070_v44 = vld [vmem:[#allocation13 + $0x78c] ss:$24 sps:$4 sm:$0xff]  }
0x1849   :  { %15852 = vmatpush1.bf16.msra.mxu0 %v20002_v8  ;;  %16017 = vmatprep.subr.bf16.mxu1 %v20007_v6  ;;  %v20083_v8 = vld [vmem:[#allocation13 + $0x810] ss:$24 sps:$4 sm:$0xff]   ;;  %v20091_v6 = vld [vmem:[#allocation13 + $0x844] ss:$24 sps:$4 sm:$0xff]  }
0x184a   :  { %15864 = vmatprep.subr.bf16.mxu0 %v20019_v21  ;;  %v20068_v21 = vld [vmem:[#allocation13 + $0x788] ss:$24 sps:$4 sm:$0xff]  }
0x184c   :  { %15854 = vmatmul.mubr.bf16.vlgmr.msra.gmra.mrb[56].mxu0 %v21670_v57  ;;  %16018 = vmatpush1.bf16.msra.mxu1 %v20005_v1  ;;  %v20076_v1 = vld [vmem:[#allocation13 + $0x7bc] ss:$24 sps:$4 sm:$0xff]  }
0x184d   :  { %16019 = vmatprep.subr.bf16.mxu1 %v20010_v61  ;;  %15865 = vmatpush1.bf16.msra.mxu0 %v20017_v24  ;;  %v20089_v61 = vld [vmem:[#allocation13 + $0x840] ss:$24 sps:$4 sm:$0xff]   ;;  %v20097_v24 = vld [vmem:[#allocation13 + $0x874] ss:$24 sps:$4 sm:$0xff]  }
0x184e   :  { %15866 = vmatprep.subr.bf16.mxu0 %v20025_v18  ;;  %v20074_v18 = vld [vmem:[#allocation13 + $0x7b8] ss:$24 sps:$4 sm:$0xff]  }
0x1850   :  { %16020 = vmatpush1.bf16.msra.mxu1 %v20008_v42  ;;  %v20082_v42 = vld [vmem:[#allocation13 + $0x7ec] ss:$24 sps:$4 sm:$0xff]  }
0x1851   :  { %16021 = vmatprep.subr.bf16.mxu1 %v20013_v35  ;;  %15867 = vmatpush1.bf16.msra.mxu0 %v20023_v46  ;;  %v20095_v35 = vld [vmem:[#allocation13 + $0x870] ss:$24 sps:$4 sm:$0xff]   ;;  %v20103_v46 = vld [vmem:[#allocation13 + $0x8a4] ss:$24 sps:$4 sm:$0xff]  }
0x1852   :  { %15868 = vmatprep.subr.bf16.mxu0 %v20031_v41  ;;  %v20080_v41 = vld [vmem:[#allocation13 + $0x7e8] ss:$24 sps:$4 sm:$0xff]  }
0x1854   :  { %16022 = vmatpush1.bf16.msra.mxu1 %v20011_v5  ;;  %v20088_v5 = vld [vmem:[#allocation13 + $0x81c] ss:$24 sps:$4 sm:$0xff]  }
0x1855   :  { %16023 = vmatprep.subr.bf16.mxu1 %v20016_v11  ;;  %15869 = vmatpush1.bf16.msra.mxu0 %v20029_v36  ;;  %v20101_v11 = vld [vmem:[#allocation13 + $0x8a0] ss:$24 sps:$4 sm:$0xff]   ;;  %v20109_v36 = vld [vmem:[#allocation13 + $0x8d4] ss:$24 sps:$4 sm:$0xff]  }
0x1856   :  { %15870 = vmatprep.subr.bf16.mxu0 %v20037_v13  ;;  %v20086_v13 = vld [vmem:[#allocation13 + $0x818] ss:$24 sps:$4 sm:$0xff]  }
0x1858   :  { %16024 = vmatpush1.bf16.msra.mxu1 %v20014_v28  ;;  %v20094_v28 = vld [vmem:[#allocation13 + $0x84c] ss:$24 sps:$4 sm:$0xff]  }
0x1859   :  { %16036 = vmatprep.subr.bf16.mxu1 %v20022_v32  ;;  %15871 = vmatpush1.bf16.msra.mxu0 %v20035_v33  ;;  %v20107_v32 = vld [vmem:[#allocation13 + $0x8d0] ss:$24 sps:$4 sm:$0xff]   ;;  %v20115_v33 = vld [vmem:[#allocation13 + $0x904] ss:$24 sps:$4 sm:$0xff]  }
0x185a   :  { %15872 = vmatprep.subr.bf16.mxu0 %v20043_v27  ;;  %v20092_v27 = vld [vmem:[#allocation13 + $0x848] ss:$24 sps:$4 sm:$0xff]  }
0x185b   :  { %16026 = vmatmul.mubr.bf16.vlgmr.msra.gmra.mrb[92].mxu1 %v21670_v57 }
0x185c   :  { %16037 = vmatpush1.bf16.msra.mxu1 %v20020_v14  ;;  %v20100_v14 = vld [vmem:[#allocation13 + $0x87c] ss:$24 sps:$4 sm:$0xff]  }
0x185d   :  { %16038 = vmatprep.subr.bf16.mxu1 %v20028_v37  ;;  %15873 = vmatpush1.bf16.msra.mxu0 %v20041_v20  ;;  %v20098_v37 = vld [vmem:[#allocation13 + $0x878] ss:$24 sps:$4 sm:$0xff]   ;;  %v20106_v20 = vld [vmem:[#allocation13 + $0x8ac] ss:$24 sps:$4 sm:$0xff]  }
0x185e   :  { %15874 = vmatprep.subr.bf16.mxu0 %v20049_v16  ;;  %v20104_v16 = vld [vmem:[#allocation13 + $0x8a8] ss:$24 sps:$4 sm:$0xff]  }
0x1860   :  { %16039 = vmatpush1.bf16.msra.mxu1 %v20026_v38  ;;  %v20112_v38 = vld [vmem:[#allocation13 + $0x8dc] ss:$24 sps:$4 sm:$0xff]  }
0x1861   :  { %16040 = vmatprep.subr.bf16.mxu1 %v20034_v51  ;;  %15875 = vmatpush1.bf16.msra.mxu0 %v20047_v7  ;;  %v20110_v51 = vld [vmem:[#allocation13 + $0x8d8] ss:$24 sps:$4 sm:$0xff]   ;;  %v20118_v7 = vld [vmem:[#allocation13 + $0x90c] ss:$24 sps:$4 sm:$0xff]  }
0x1862   :  { %15876 = vmatprep.subr.bf16.mxu0 %v20055_v56 }
0x1864   :  { %16041 = vmatpush1.bf16.msra.mxu1 %v20032_v39 }
0x1865   :  { %16042 = vmatprep.subr.bf16.mxu1 %v20040_v25  ;;  %15877 = vmatpush1.bf16.msra.mxu0 %v20053_v10  ;;  %v20113_v10 = vld [vmem:[#allocation13 + $0x900] ss:$24 sps:$4 sm:$0xff]  }
0x1866   :  { %15878 = vmatprep.subr.bf16.mxu0 %v20061_v47  ;;  %v20116_v47 = vld [vmem:[#allocation13 + $0x908] ss:$24 sps:$4 sm:$0xff]  }
0x1868   :  { %16043 = vmatpush1.bf16.msra.mxu1 %v20038_v2  ;;  %v20121_v2 = vld [vmem:[#allocation13 + $0x934] ss:$24 sps:$4 sm:$0xff]  }
0x1869   :  { %16044 = vmatprep.subr.bf16.mxu1 %v20046_v53  ;;  %15879 = vmatpush1.bf16.msra.mxu0 %v20059_v34  ;;  %v20124_v53 = vld [vmem:[#allocation13 + $0x93c] ss:$24 sps:$4 sm:$0xff]  }
0x186a   :  { %15880 = vmatprep.subr.bf16.mxu0 %v20067_v50 }
0x186c   :  { %16045 = vmatpush1.bf16.msra.mxu1 %v20044_v45  ;;  %v20119_v45 = vld [vmem:[#allocation13 + $0x930] ss:$24 sps:$4 sm:$0xff]  }
0x186d   :  { %16046 = vmatprep.subr.bf16.mxu1 %v20052_v29  ;;  %15881 = vmatpush1.bf16.msra.mxu0 %v20065_v9  ;;  %v20122_v29 = vld [vmem:[#allocation13 + $0x938] ss:$24 sps:$4 sm:$0xff]   ;;  %v20127_v9 = vld [vmem:[#allocation13 + $0x964] ss:$24 sps:$4 sm:$0xff]  }
0x186e   :  { %15882 = vmatprep.subr.bf16.mxu0 %v20073_v55  ;;  %v20130_v55 = vld [vmem:[#allocation13 + $0x96c] ss:$24 sps:$4 sm:$0xff]  }
0x1870   :  { %16047 = vmatpush1.bf16.msra.mxu1 %v20050_v23 }
0x1871   :  { %16048 = vmatprep.subr.bf16.mxu1 %v20058_v63  ;;  %15883 = vmatpush1.bf16.msra.mxu0 %v20071_v12 }
0x1872   :  { %15884 = vmatprep.subr.bf16.mxu0 %v20079_v40  ;;  %v20125_v40 = vld [vmem:[#allocation13 + $0x960] ss:$24 sps:$4 sm:$0xff]  }
0x1874   :  { %16049 = vmatpush1.bf16.msra.mxu1 %v20056_v3  ;;  %v20128_v3 = vld [vmem:[#allocation13 + $0x968] ss:$24 sps:$4 sm:$0xff]  }
0x1875   :  { %16050 = vmatprep.subr.bf16.mxu1 %v20064_v49  ;;  %15885 = vmatpush1.bf16.msra.mxu0 %v20077_v52  ;;  %v20136_v49 = vld [vmem:[#allocation13 + $0x99c] ss:$24 sps:$4 sm:$0xff]   ;;  %v20131_v52 = vld [vmem:[#allocation13 + $0x990] ss:$24 sps:$4 sm:$0xff]  }
0x1876   :  { %15886 = vmatprep.subr.bf16.mxu0 %v20085_v26  ;;  %v20134_v26 = vld [vmem:[#allocation13 + $0x998] ss:$24 sps:$4 sm:$0xff]  }
0x1878   :  { %16051 = vmatpush1.bf16.msra.mxu1 %v20062_v19  ;;  %v20142_v19 = vld [vmem:[#allocation13 + $0x9cc] ss:$24 sps:$4 sm:$0xff]  }
0x1879   :  { %16052 = vmatprep.subr.bf16.mxu1 %v20070_v44  ;;  %15887 = vmatpush1.bf16.msra.mxu0 %v20083_v8  ;;  %v20137_v44 = vld [vmem:[#allocation13 + $0x9c0] ss:$24 sps:$4 sm:$0xff]  }
0x187a   :  { %15888 = vmatprep.subr.bf16.mxu0 %v20091_v6  ;;  %v20140_v8 = vld [vmem:[#allocation13 + $0x9c8] ss:$24 sps:$4 sm:$0xff]   ;;  %v20145_v6 = vld [vmem:[#allocation13 + $0x9f4] ss:$24 sps:$4 sm:$0xff]  }
0x187c   :  { %16053 = vmatpush1.bf16.msra.mxu1 %v20068_v21  ;;  %v20148_v21 = vld [vmem:[#allocation13 + $0x9fc] ss:$24 sps:$4 sm:$0xff]  }
0x187d   :  { %16054 = vmatprep.subr.bf16.mxu1 %v20076_v1  ;;  %15889 = vmatpush1.bf16.msra.mxu0 %v20089_v61  ;;  %v20143_v1 = vld [vmem:[#allocation13 + $0x9f0] ss:$24 sps:$4 sm:$0xff]  }
0x187e   :  { %15890 = vmatprep.subr.bf16.mxu0 %v20097_v24  ;;  %v20146_v61 = vld [vmem:[#allocation13 + $0x9f8] ss:$24 sps:$4 sm:$0xff]   ;;  %v20151_v24 = vld [vmem:[#allocation13 + $0xa24] ss:$24 sps:$4 sm:$0xff]  }
0x1880   :  { %16055 = vmatpush1.bf16.msra.mxu1 %v20074_v18  ;;  %v20154_v18 = vld [vmem:[#allocation13 + $0xa2c] ss:$24 sps:$4 sm:$0xff]  }
0x1881   :  { %16056 = vmatprep.subr.bf16.mxu1 %v20082_v42  ;;  %15891 = vmatpush1.bf16.msra.mxu0 %v20095_v35  ;;  %v20149_v42 = vld [vmem:[#allocation13 + $0xa20] ss:$24 sps:$4 sm:$0xff]  }
0x1882   :  { %15892 = vmatprep.subr.bf16.mxu0 %v20103_v46  ;;  %v20152_v35 = vld [vmem:[#allocation13 + $0xa28] ss:$24 sps:$4 sm:$0xff]   ;;  %v20157_v46 = vld [vmem:[#allocation13 + $0xa54] ss:$24 sps:$4 sm:$0xff]  }
0x1884   :  { %16057 = vmatpush1.bf16.msra.mxu1 %v20080_v41  ;;  %v20160_v41 = vld [vmem:[#allocation13 + $0xa5c] ss:$24 sps:$4 sm:$0xff]  }
0x1885   :  { %16058 = vmatprep.subr.bf16.mxu1 %v20088_v5  ;;  %15893 = vmatpush1.bf16.msra.mxu0 %v20101_v11  ;;  %v20155_v5 = vld [vmem:[#allocation13 + $0xa50] ss:$24 sps:$4 sm:$0xff]  }
0x1886   :  { %15894 = vmatprep.subr.bf16.mxu0 %v20109_v36  ;;  %v20158_v11 = vld [vmem:[#allocation13 + $0xa58] ss:$24 sps:$4 sm:$0xff]   ;;  %v20163_v36 = vld [vmem:[#allocation13 + $0xa84] ss:$24 sps:$4 sm:$0xff]  }
0x1888   :  { %16059 = vmatpush1.bf16.msra.mxu1 %v20086_v13  ;;  %v20166_v13 = vld [vmem:[#allocation13 + $0xa8c] ss:$24 sps:$4 sm:$0xff]  }
0x1889   :  { %16060 = vmatprep.subr.bf16.mxu1 %v20094_v28  ;;  %15895 = vmatpush1.bf16.msra.mxu0 %v20107_v32  ;;  %v20161_v28 = vld [vmem:[#allocation13 + $0xa80] ss:$24 sps:$4 sm:$0xff]  }
0x188a   :  { %15907 = vmatprep.subr.bf16.mxu0 %v20115_v33  ;;  %v20164_v32 = vld [vmem:[#allocation13 + $0xa88] ss:$24 sps:$4 sm:$0xff]   ;;  %v20169_v33 = vld [vmem:[#allocation13 + $0xab4] ss:$24 sps:$4 sm:$0xff]  }
0x188c   :  { %16061 = vmatpush1.bf16.msra.mxu1 %v20092_v27  ;;  %v20172_v27 = vld [vmem:[#allocation13 + $0xabc] ss:$24 sps:$4 sm:$0xff]  }
0x188d   :  { %16062 = vmatprep.subr.bf16.mxu1 %v20100_v14  ;;  %v20167_v14 = vld [vmem:[#allocation13 + $0xab0] ss:$24 sps:$4 sm:$0xff]  }
0x1890   :  { %16063 = vmatpush1.bf16.msra.mxu1 %v20098_v37  ;;  %v20170_v37 = vld [vmem:[#allocation13 + $0xab8] ss:$24 sps:$4 sm:$0xff]  }
0x1891   :  { %16064 = vmatprep.subr.bf16.mxu1 %v20106_v20  ;;  %v20175_v20 = vld [vmem:[#allocation13 + $0xae4] ss:$24 sps:$4 sm:$0xff]  }
0x1894   :  { %16065 = vmatpush1.bf16.msra.mxu1 %v20104_v16  ;;  %v20178_v16 = vld [vmem:[#allocation13 + $0xaec] ss:$24 sps:$4 sm:$0xff]  }
0x1895   :  { %16066 = vmatprep.subr.bf16.mxu1 %v20112_v38  ;;  %v20173_v38 = vld [vmem:[#allocation13 + $0xae0] ss:$24 sps:$4 sm:$0xff]  }
0x1898   :  { %16067 = vmatpush1.bf16.msra.mxu1 %v20110_v51  ;;  %v20176_v51 = vld [vmem:[#allocation13 + $0xae8] ss:$24 sps:$4 sm:$0xff]  }
0x1899   :  { %16079 = vmatprep.subr.bf16.mxu1 %v20118_v7  ;;  %v20181_v7 = vld [vmem:[#allocation13 + $0xb14] ss:$24 sps:$4 sm:$0xff]  }
0x18a6   :  { %v13120_v56 = vpop.f32.mrb[86].mxu1 }
0x18a7   :  { %v21684_v39 = vpack.c.bf16 %v13120_v56, %v21555_v59  ;;  %v19000_v25 = vpop.f32.mrb[87].mxu1  ;;  %v20184_v56 = vld [vmem:[#allocation13 + $0xb1c] ss:$24 sps:$4 sm:$0xff]  }
0x18a8   :  { %v20179_v25 = vld [vmem:[#allocation13 + $0xb10] ss:$24 sps:$4 sm:$0xff]  }
0x18a9   :  { %15896 = vmatprep.mubr.bf16.mxu0 %v21684_v39  ;;  %16068 = vmatprep.mubr.bf16.mxu1 %v21684_v39 }
0x18aa   :  { %v13275_v34 = vpop.f32.mrb[88].mxu1  ;;  %15897 = vmatmul.mubr.bf16.vlgmr.msra.gmra.mrb[56].mxu0 %v21677_v31  ;;  %16069 = vmatmul.mubr.bf16.vlgmr.msra.gmra.mrb[92].mxu1 %v21677_v31 }
0x18ab   :  { %v21691_v50 = vpack.c.bf16 %v13275_v34, %v21574_v48  ;;  %15908 = vmatpush1.bf16.msra.mxu0 %v20113_v10  ;;  %16080 = vmatpush1.bf16.msra.mxu1 %v20116_v47  ;;  %v19010_v59 = vpop.f32.mrb[89].mxu1  ;;  %v20133_v48 = vld [vmem:[#allocation13 + $0x994] ss:$24 sps:$4 sm:$0xff]   ;;  %v20182_v10 = vld [vmem:[#allocation13 + $0xb18] ss:$24 sps:$4 sm:$0xff]  }
0x18ac   :  { %15909 = vmatprep.subr.bf16.mxu0 %v20121_v2  ;;  %16081 = vmatprep.subr.bf16.mxu1 %v20124_v53  ;;  %v20187_v47 = vld [vmem:[#allocation13 + $0xb44] ss:$24 sps:$4 sm:$0xff]   ;;  %v20185_v53 = vld [vmem:[#allocation13 + $0xb40] ss:$24 sps:$4 sm:$0xff]   ;;  %v20193_v59 = vld [vmem:[#allocation13 + $0xb74] ss:$24 sps:$4 sm:$0xff]  }
0x18ad   :  { %v20190_v2 = vld [vmem:[#allocation13 + $0xb4c] ss:$24 sps:$4 sm:$0xff]   ;;  %v20188_v34 = vld [vmem:[#allocation13 + $0xb48] ss:$24 sps:$4 sm:$0xff]  }
0x18ae   :  { %v13430_v23 = vpop.f32.mrb[90].mxu1 }
0x18af   :  { %v21694_v63 = vpack.c.bf16 %v13430_v23, %v21658_v4  ;;  %15910 = vmatpush1.bf16.msra.mxu0 %v20119_v45  ;;  %16082 = vmatpush1.bf16.msra.mxu1 %v20122_v29  ;;  %v19020_v12 = vpop.f32.mrb[91].mxu1  ;;  %v20139_v4 = vld [vmem:[#allocation13 + $0x9c4] ss:$24 sps:$4 sm:$0xff]   ;;  %v20191_v29 = vld [vmem:[#allocation13 + $0xb70] ss:$24 sps:$4 sm:$0xff]  }
0x18b0   :  { %15911 = vmatprep.subr.bf16.mxu0 %v20127_v9  ;;  %16083 = vmatprep.subr.bf16.mxu1 %v20130_v55  ;;  %v20196_v45 = vld [vmem:[#allocation13 + $0xb7c] ss:$24 sps:$4 sm:$0xff]   ;;  %v20194_v9 = vld [vmem:[#allocation13 + $0xb78] ss:$24 sps:$4 sm:$0xff]   ;;  %v20202_v23 = vld [vmem:[#allocation13 + $0xbac] ss:$24 sps:$4 sm:$0xff]  }
0x18b1   :  { %15939 = vmatprep.mubr.bf16.mxu0 %v21694_v63  ;;  %16111 = vmatprep.mubr.bf16.mxu1 %v21694_v63  ;;  %v20199_v55 = vld [vmem:[#allocation13 + $0xba4] ss:$24 sps:$4 sm:$0xff]   ;;  %v20197_v12 = vld [vmem:[#allocation13 + $0xba0] ss:$24 sps:$4 sm:$0xff]  }
0x18b3   :  { %15912 = vmatpush1.bf16.msra.mxu0 %v20125_v40  ;;  %16084 = vmatpush1.bf16.msra.mxu1 %v20128_v3  ;;  %v20200_v40 = vld [vmem:[#allocation13 + $0xba8] ss:$24 sps:$4 sm:$0xff]   ;;  %v20205_v3 = vld [vmem:[#allocation13 + $0xbd4] ss:$24 sps:$4 sm:$0xff]  }
0x18b4   :  { %15913 = vmatprep.subr.bf16.mxu0 %v20133_v48  ;;  %16085 = vmatprep.subr.bf16.mxu1 %v20136_v49  ;;  %v20208_v48 = vld [vmem:[#allocation13 + $0xbdc] ss:$24 sps:$4 sm:$0xff]   ;;  %v20203_v49 = vld [vmem:[#allocation13 + $0xbd0] ss:$24 sps:$4 sm:$0xff]  }
0x18b7   :  { %15914 = vmatpush1.bf16.msra.mxu0 %v20131_v52  ;;  %16086 = vmatpush1.bf16.msra.mxu1 %v20134_v26  ;;  %v20206_v52 = vld [vmem:[#allocation13 + $0xbd8] ss:$24 sps:$4 sm:$0xff]   ;;  %v20211_v26 = vld [vmem:[#allocation13 + $0x14] ss:$24 sps:$4 sm:$0xff]  }
0x18b8   :  { %15915 = vmatprep.subr.bf16.mxu0 %v20139_v4  ;;  %16087 = vmatprep.subr.bf16.mxu1 %v20142_v19  ;;  %v20209_v4 = vld [vmem:[#allocation13 + $0x10] ss:$24 sps:$4 sm:$0xff]   ;;  %v20214_v19 = vld [vmem:[#allocation13 + $0x44] ss:$24 sps:$4 sm:$0xff]  }
0x18bb   :  { %15916 = vmatpush1.bf16.msra.mxu0 %v20137_v44  ;;  %16088 = vmatpush1.bf16.msra.mxu1 %v20140_v8  ;;  %v20212_v44 = vld [vmem:[#allocation13 + $0x40] ss:$24 sps:$4 sm:$0xff]   ;;  %v20217_v8 = vld [vmem:[#allocation13 + $0x74] ss:$24 sps:$4 sm:$0xff]  }
0x18bc   :  { %15917 = vmatprep.subr.bf16.mxu0 %v20145_v6  ;;  %16089 = vmatprep.subr.bf16.mxu1 %v20148_v21  ;;  %v20215_v6 = vld [vmem:[#allocation13 + $0x70] ss:$24 sps:$4 sm:$0xff]   ;;  %v20220_v21 = vld [vmem:[#allocation13 + $0xa4] ss:$24 sps:$4 sm:$0xff]  }
0x18bf   :  { %15918 = vmatpush1.bf16.msra.mxu0 %v20143_v1  ;;  %16090 = vmatpush1.bf16.msra.mxu1 %v20146_v61  ;;  %v20218_v1 = vld [vmem:[#allocation13 + $0xa0] ss:$24 sps:$4 sm:$0xff]   ;;  %v20223_v61 = vld [vmem:[#allocation13 + $0xd4] ss:$24 sps:$4 sm:$0xff]  }
0x18c0   :  { %15919 = vmatprep.subr.bf16.mxu0 %v20151_v24  ;;  %16091 = vmatprep.subr.bf16.mxu1 %v20154_v18  ;;  %v20221_v24 = vld [vmem:[#allocation13 + $0xd0] ss:$24 sps:$4 sm:$0xff]   ;;  %v20226_v18 = vld [vmem:[#allocation13 + $0x104] ss:$24 sps:$4 sm:$0xff]  }
0x18c3   :  { %15920 = vmatpush1.bf16.msra.mxu0 %v20149_v42  ;;  %16092 = vmatpush1.bf16.msra.mxu1 %v20152_v35  ;;  %v20224_v42 = vld [vmem:[#allocation13 + $0x100] ss:$24 sps:$4 sm:$0xff]   ;;  %v20229_v35 = vld [vmem:[#allocation13 + $0x134] ss:$24 sps:$4 sm:$0xff]  }
0x18c4   :  { %15921 = vmatprep.subr.bf16.mxu0 %v20157_v46  ;;  %16093 = vmatprep.subr.bf16.mxu1 %v20160_v41  ;;  %v20232_v46 = vld [vmem:[#allocation13 + $0x164] ss:$24 sps:$4 sm:$0xff]   ;;  %v20230_v41 = vld [vmem:[#allocation13 + $0x160] ss:$24 sps:$4 sm:$0xff]  }
0x18c7   :  { %15922 = vmatpush1.bf16.msra.mxu0 %v20155_v5  ;;  %16094 = vmatpush1.bf16.msra.mxu1 %v20158_v11  ;;  %v20235_v5 = vld [vmem:[#allocation13 + $0x194] ss:$24 sps:$4 sm:$0xff]   ;;  %v20233_v11 = vld [vmem:[#allocation13 + $0x190] ss:$24 sps:$4 sm:$0xff]  }
0x18c8   :  { %15923 = vmatprep.subr.bf16.mxu0 %v20163_v36  ;;  %16095 = vmatprep.subr.bf16.mxu1 %v20166_v13  ;;  %v20238_v36 = vld [vmem:[#allocation13 + $0x1c4] ss:$24 sps:$4 sm:$0xff]   ;;  %v20236_v13 = vld [vmem:[#allocation13 + $0x1c0] ss:$24 sps:$4 sm:$0xff]  }
0x18cb   :  { %15924 = vmatpush1.bf16.msra.mxu0 %v20161_v28  ;;  %16096 = vmatpush1.bf16.msra.mxu1 %v20164_v32  ;;  %v20241_v28 = vld [vmem:[#allocation13 + $0x1f4] ss:$24 sps:$4 sm:$0xff]   ;;  %v20239_v32 = vld [vmem:[#allocation13 + $0x1f0] ss:$24 sps:$4 sm:$0xff]  }
0x18cc   :  { %15925 = vmatprep.subr.bf16.mxu0 %v20169_v33  ;;  %16097 = vmatprep.subr.bf16.mxu1 %v20172_v27  ;;  %v20244_v33 = vld [vmem:[#allocation13 + $0x224] ss:$24 sps:$4 sm:$0xff]   ;;  %v20242_v27 = vld [vmem:[#allocation13 + $0x220] ss:$24 sps:$4 sm:$0xff]  }
0x18cf   :  { %15926 = vmatpush1.bf16.msra.mxu0 %v20167_v14  ;;  %16098 = vmatpush1.bf16.msra.mxu1 %v20170_v37  ;;  %v20247_v14 = vld [vmem:[#allocation13 + $0x254] ss:$24 sps:$4 sm:$0xff]   ;;  %v20245_v37 = vld [vmem:[#allocation13 + $0x250] ss:$24 sps:$4 sm:$0xff]  }
0x18d0   :  { %15927 = vmatprep.subr.bf16.mxu0 %v20175_v20  ;;  %16099 = vmatprep.subr.bf16.mxu1 %v20178_v16  ;;  %v20250_v20 = vld [vmem:[#allocation13 + $0x284] ss:$24 sps:$4 sm:$0xff]   ;;  %v20248_v16 = vld [vmem:[#allocation13 + $0x280] ss:$24 sps:$4 sm:$0xff]  }
0x18d3   :  { %15928 = vmatpush1.bf16.msra.mxu0 %v20173_v38  ;;  %16100 = vmatpush1.bf16.msra.mxu1 %v20176_v51  ;;  %v20253_v38 = vld [vmem:[#allocation13 + $0x2b4] ss:$24 sps:$4 sm:$0xff]   ;;  %v20251_v51 = vld [vmem:[#allocation13 + $0x2b0] ss:$24 sps:$4 sm:$0xff]  }
0x18d4   :  { %15929 = vmatprep.subr.bf16.mxu0 %v20181_v7  ;;  %16101 = vmatprep.subr.bf16.mxu1 %v20184_v56  ;;  %v20256_v7 = vld [vmem:[#allocation13 + $0x2e4] ss:$24 sps:$4 sm:$0xff]   ;;  %v20254_v56 = vld [vmem:[#allocation13 + $0x2e0] ss:$24 sps:$4 sm:$0xff]  }
0x18d7   :  { %15930 = vmatpush1.bf16.msra.mxu0 %v20179_v25  ;;  %16102 = vmatpush1.bf16.msra.mxu1 %v20182_v10  ;;  %v20259_v25 = vld [vmem:[#allocation13 + $0x314] ss:$24 sps:$4 sm:$0xff]   ;;  %v20257_v10 = vld [vmem:[#allocation13 + $0x310] ss:$24 sps:$4 sm:$0xff]  }
0x18d8   :  { %15931 = vmatprep.subr.bf16.mxu0 %v20187_v47  ;;  %16103 = vmatprep.subr.bf16.mxu1 %v20190_v2  ;;  %v20262_v47 = vld [vmem:[#allocation13 + $0x344] ss:$24 sps:$4 sm:$0xff]   ;;  %v20260_v2 = vld [vmem:[#allocation13 + $0x340] ss:$24 sps:$4 sm:$0xff]  }
0x18db   :  { %15932 = vmatpush1.bf16.msra.mxu0 %v20185_v53  ;;  %16104 = vmatpush1.bf16.msra.mxu1 %v20188_v34  ;;  %v20265_v53 = vld [vmem:[#allocation13 + $0x374] ss:$24 sps:$4 sm:$0xff]   ;;  %v20263_v34 = vld [vmem:[#allocation13 + $0x370] ss:$24 sps:$4 sm:$0xff]  }
0x18dc   :  { %15933 = vmatprep.subr.bf16.mxu0 %v20193_v59  ;;  %16105 = vmatprep.subr.bf16.mxu1 %v20196_v45  ;;  %v20268_v59 = vld [vmem:[#allocation13 + $0x3a4] ss:$24 sps:$4 sm:$0xff]  }
0x18dd   :  { %v16419_v45 = vld [vmem:[#allocation16 + $0x80] sm:$0xff] }
0x18df   :  { %15934 = vmatpush1.bf16.msra.mxu0 %v20191_v29  ;;  %16106 = vmatpush1.bf16.msra.mxu1 %v20194_v9  ;;  %v16420_v29 = vld [vmem:[#allocation16 + $0x88] sm:$0xff] }
0x18e0   :  { %15935 = vmatprep.subr.bf16.mxu0 %v20199_v55  ;;  %16107 = vmatprep.subr.bf16.mxu1 %v20202_v23  ;;  %v19056_v9 = vpack.c.bf16 %v16420_v29, %v16419_v45  ;;  %v16403_v55 = vld [vmem:[#allocation16] sm:$0xff]  ;;  %v16404_v23 = vld [vmem:[#allocation16 + $0x8] sm:$0xff]  ;;  %v20284_v29 = vld [vmem:[#allocation13 + $0x4c0] ss:$24 sps:$4 sm:$0xff]  }
0x18e1   :  { %v16416_v45 = vld [vmem:[#allocation16 + $0x68] sm:$0xff] }
0x18e3   :  { %15936 = vmatpush1.bf16.msra.mxu0 %v20197_v12  ;;  %16108 = vmatpush1.bf16.msra.mxu1 %v20200_v40  ;;  %v20266_v12 = vld [vmem:[#allocation13 + $0x3a0] ss:$24 sps:$4 sm:$0xff]   ;;  %v19058_v40 = vpack.c.bf16 %v16404_v23, %v16403_v55  ;;  %v20289_v55 = vld [vmem:[#allocation13 + $0x4f4] ss:$24 sps:$4 sm:$0xff]  }
0x18e4   :  { %15937 = vmatprep.subr.bf16.mxu0 %v20205_v3  ;;  %16109 = vmatprep.subr.bf16.mxu1 %v20208_v48  ;;  %v16422_v3 = vld [vmem:[#allocation16 + $0x98] sm:$0xff]  ;;  %v16433_v23 = vld [vmem:[#allocation16 + $0xf0] sm:$0xff] }
0x18e7   :  { %15938 = vmatpush1.bf16.msra.mxu0 %v20203_v49  ;;  %16110 = vmatpush1.bf16.msra.mxu1 %v20206_v52  ;;  %v16405_v49 = vld [vmem:[#allocation16 + $0x10] sm:$0xff]  ;;  %v16406_v52 = vld [vmem:[#allocation16 + $0x18] sm:$0xff] }
0x18e8   :  { %16122 = vmatprep.subr.bf16.mxu0 %v20211_v26  ;;  %19057 = vmatprep.subr.bf16.mxu1 %v19056_v9  ;;  %v20269_v26 = vld [vmem:[#allocation13 + $0x3d0] ss:$24 sps:$4 sm:$0xff]  }
0x18ea   :  { %15940 = vmatmul.mubr.bf16.vlgmr.msra.gmra.mrb[56].mxu0 %v21691_v50  ;;  %16112 = vmatmul.mubr.bf16.vlgmr.msra.gmra.mrb[92].mxu1 %v21691_v50 }
0x18eb   :  { %16123 = vmatpush1.bf16.msra.mxu0 %v20209_v4  ;;  %16154 = vmatprep.mubr.bf16.mxu0 %v21664_v22  ;;  %v20227_v22 = vld [vmem:[#allocation13 + $0x130] ss:$24 sps:$4 sm:$0xff]   ;;  %v19062_v4 = vpack.c.bf16 %v16406_v52, %v16405_v49  ;;  %v20292_v49 = vld [vmem:[#allocation13 + $0x524] ss:$24 sps:$4 sm:$0xff]  }
0x18ec   :  { %16124 = vmatprep.subr.bf16.mxu0 %v20214_v19  ;;  %19059 = vmatpush3.bf16.msra.mxu1 %v19058_v40  ;;  %v20274_v19 = vld [vmem:[#allocation13 + $0x404] ss:$24 sps:$4 sm:$0xff]  }
0x18ed   :  { %v16451_v52 = vld [vmem:[#allocation16 + $0x180] sm:$0xff] }
0x18ef   :  { %16125 = vmatpush1.bf16.msra.mxu0 %v20212_v44  ;;  %v16423_v44 = vld [vmem:[#allocation16 + $0xa0] sm:$0xff] }
0x18f0   :  { %16126 = vmatprep.subr.bf16.mxu0 %v20217_v8  ;;  %v16424_v8 = vld [vmem:[#allocation16 + $0xa8] sm:$0xff] }
0x18f3   :  { %16127 = vmatpush1.bf16.msra.mxu0 %v20215_v6  ;;  %v19064_v6 = vpack.c.bf16 %v16424_v8, %v16423_v44  ;;  %v20295_v44 = vld [vmem:[#allocation13 + $0x554] ss:$24 sps:$4 sm:$0xff]   ;;  %v20293_v8 = vld [vmem:[#allocation13 + $0x550] ss:$24 sps:$4 sm:$0xff]  }
0x18f4   :  { %16128 = vmatprep.subr.bf16.mxu0 %v20220_v21  ;;  %v16407_v21 = vld [vmem:[#allocation16 + $0x20] sm:$0xff] }
0x18f7   :  { %16129 = vmatpush1.bf16.msra.mxu0 %v20218_v1  ;;  %v16408_v1 = vld [vmem:[#allocation16 + $0x28] sm:$0xff] }
0x18f8   :  { %16130 = vmatprep.subr.bf16.mxu0 %v20223_v61  ;;  %v20272_v61 = vld [vmem:[#allocation13 + $0x400] ss:$24 sps:$4 sm:$0xff]  }
0x18fb   :  { %16131 = vmatpush1.bf16.msra.mxu0 %v20221_v24  ;;  %v19066_v24 = vpack.c.bf16 %v16408_v1, %v16407_v21  ;;  %v20296_v21 = vld [vmem:[#allocation13 + $0x580] ss:$24 sps:$4 sm:$0xff]   ;;  %v20301_v1 = vld [vmem:[#allocation13 + $0x5b4] ss:$24 sps:$4 sm:$0xff]  }
0x18fc   :  { %16132 = vmatprep.subr.bf16.mxu0 %v20226_v18  ;;  %v20277_v18 = vld [vmem:[#allocation13 + $0x434] ss:$24 sps:$4 sm:$0xff]  }
0x18ff   :  { %16133 = vmatpush1.bf16.msra.mxu0 %v20224_v42  ;;  %v16425_v42 = vld [vmem:[#allocation16 + $0xb0] sm:$0xff] }
0x1900   :  { %16134 = vmatprep.subr.bf16.mxu0 %v20229_v35  ;;  %v16426_v35 = vld [vmem:[#allocation16 + $0xb8] sm:$0xff] }
0x1903   :  { %16135 = vmatpush1.bf16.msra.mxu0 %v20227_v22  ;;  %v19068_v22 = vpack.c.bf16 %v16426_v35, %v16425_v42  ;;  %v20307_v42 = vld [vmem:[#allocation13 + $0x614] ss:$24 sps:$4 sm:$0xff]   ;;  %v20305_v35 = vld [vmem:[#allocation13 + $0x610] ss:$24 sps:$4 sm:$0xff]  }
0x1904   :  { %16136 = vmatprep.subr.bf16.mxu0 %v20232_v46  ;;  %v16409_v46 = vld [vmem:[#allocation16 + $0x30] sm:$0xff] }
0x1907   :  { %16137 = vmatpush1.bf16.msra.mxu0 %v20230_v41  ;;  %v16410_v41 = vld [vmem:[#allocation16 + $0x38] sm:$0xff] }
0x1908   :  { %16138 = vmatprep.subr.bf16.mxu0 %v20235_v5  ;;  %v20275_v5 = vld [vmem:[#allocation13 + $0x430] ss:$24 sps:$4 sm:$0xff]  }
0x190b   :  { %16139 = vmatpush1.bf16.msra.mxu0 %v20233_v11  ;;  %v19070_v11 = vpack.c.bf16 %v16410_v41, %v16409_v46  ;;  %v20308_v46 = vld [vmem:[#allocation13 + $0x640] ss:$24 sps:$4 sm:$0xff]   ;;  %v20313_v41 = vld [vmem:[#allocation13 + $0x674] ss:$24 sps:$4 sm:$0xff]  }
0x190c   :  { %16140 = vmatprep.subr.bf16.mxu0 %v20238_v36  ;;  %v20280_v36 = vld [vmem:[#allocation13 + $0x464] ss:$24 sps:$4 sm:$0xff]  }
0x190f   :  { %16141 = vmatpush1.bf16.msra.mxu0 %v20236_v13  ;;  %v16427_v13 = vld [vmem:[#allocation16 + $0xc0] sm:$0xff] }
0x1910   :  { %16142 = vmatprep.subr.bf16.mxu0 %v20241_v28  ;;  %v16428_v28 = vld [vmem:[#allocation16 + $0xc8] sm:$0xff] }
0x1913   :  { %16143 = vmatpush1.bf16.msra.mxu0 %v20239_v32  ;;  %v19072_v32 = vpack.c.bf16 %v16428_v28, %v16427_v13  ;;  %v20319_v13 = vld [vmem:[#allocation13 + $0x6d4] ss:$24 sps:$4 sm:$0xff]   ;;  %v20317_v28 = vld [vmem:[#allocation13 + $0x6d0] ss:$24 sps:$4 sm:$0xff]  }
0x1914   :  { %16144 = vmatprep.subr.bf16.mxu0 %v20244_v33  ;;  %v16411_v33 = vld [vmem:[#allocation16 + $0x40] sm:$0xff] }
0x1917   :  { %16145 = vmatpush1.bf16.msra.mxu0 %v20242_v27  ;;  %v16412_v27 = vld [vmem:[#allocation16 + $0x48] sm:$0xff] }
0x1918   :  { %16146 = vmatprep.subr.bf16.mxu0 %v20247_v14  ;;  %v20278_v14 = vld [vmem:[#allocation13 + $0x460] ss:$24 sps:$4 sm:$0xff]  }
0x191b   :  { %16147 = vmatpush1.bf16.msra.mxu0 %v20245_v37  ;;  %v19074_v37 = vpack.c.bf16 %v16412_v27, %v16411_v33  ;;  %v20325_v33 = vld [vmem:[#allocation13 + $0x734] ss:$24 sps:$4 sm:$0xff]   ;;  %v20328_v27 = vld [vmem:[#allocation13 + $0x764] ss:$24 sps:$4 sm:$0xff]  }
0x191c   :  { %16148 = vmatprep.subr.bf16.mxu0 %v20250_v20  ;;  %v20283_v20 = vld [vmem:[#allocation13 + $0x494] ss:$24 sps:$4 sm:$0xff]  }
0x191f   :  { %16149 = vmatpush1.bf16.msra.mxu0 %v20248_v16  ;;  %v16429_v16 = vld [vmem:[#allocation16 + $0xd0] sm:$0xff] }
0x1920   :  { %16150 = vmatprep.subr.bf16.mxu0 %v20253_v38  ;;  %v16430_v38 = vld [vmem:[#allocation16 + $0xd8] sm:$0xff] }
0x1923   :  { %16151 = vmatpush1.bf16.msra.mxu0 %v20251_v51  ;;  %v19076_v51 = vpack.c.bf16 %v16430_v38, %v16429_v16  ;;  %v20334_v16 = vld [vmem:[#allocation13 + $0x7c4] ss:$24 sps:$4 sm:$0xff]   ;;  %v20332_v38 = vld [vmem:[#allocation13 + $0x7c0] ss:$24 sps:$4 sm:$0xff]  }
0x1924   :  { %16152 = vmatprep.subr.bf16.mxu0 %v20256_v7  ;;  %v16413_v7 = vld [vmem:[#allocation16 + $0x50] sm:$0xff] }
0x1927   :  { %16153 = vmatpush1.bf16.msra.mxu0 %v20254_v56  ;;  %v16414_v56 = vld [vmem:[#allocation16 + $0x58] sm:$0xff] }
0x1928   :  { %16165 = vmatprep.subr.bf16.mxu0 %v20259_v25  ;;  %v20281_v25 = vld [vmem:[#allocation13 + $0x490] ss:$24 sps:$4 sm:$0xff]  }
0x192a   :  { %16155 = vmatmul.mubr.bf16.vlgmr.msra.gmra.mrb[60].mxu0 %v21661_v62  ;;  %v20271_v62 = vld [vmem:[#allocation13 + $0x3d4] ss:$24 sps:$4 sm:$0xff]  }
0x192b   :  { %16166 = vmatpush1.bf16.msra.mxu0 %v20257_v10  ;;  %16197 = vmatprep.mubr.bf16.mxu0 %v21673_v54  ;;  %v16421_v54 = vld [vmem:[#allocation16 + $0x90] sm:$0xff]  ;;  %v19078_v10 = vpack.c.bf16 %v16414_v56, %v16413_v7  ;;  %v20335_v7 = vld [vmem:[#allocation13 + $0x7f0] ss:$24 sps:$4 sm:$0xff]  }
0x192c   :  { %16167 = vmatprep.subr.bf16.mxu0 %v20262_v47  ;;  %v19060_v48 = vpack.c.bf16 %v16422_v3, %v16421_v54  ;;  %v20286_v47 = vld [vmem:[#allocation13 + $0x4c4] ss:$24 sps:$4 sm:$0xff]   ;;  %v20287_v3 = vld [vmem:[#allocation13 + $0x4f0] ss:$24 sps:$4 sm:$0xff]  }
0x192d   :  { %v16418_v54 = vld [vmem:[#allocation16 + $0x78] sm:$0xff] }
0x192e   :  { %19061 = vmatprep.subr.bf16.mxu1 %v19060_v48  ;;  %v20340_v56 = vld [vmem:[#allocation13 + $0x824] ss:$24 sps:$4 sm:$0xff]  }
0x192f   :  { %16168 = vmatpush1.bf16.msra.mxu0 %v20260_v2  ;;  %19063 = vmatpush3.bf16.msra.mxu1 %v19062_v4  ;;  %v16431_v2 = vld [vmem:[#allocation16 + $0xe0] sm:$0xff] }
0x1930   :  { %16169 = vmatprep.subr.bf16.mxu0 %v20265_v53  ;;  %19065 = vmatprep.subr.bf16.mxu1 %v19064_v6  ;;  %v16432_v53 = vld [vmem:[#allocation16 + $0xe8] sm:$0xff]  ;;  %v20298_v6 = vld [vmem:[#allocation13 + $0x584] ss:$24 sps:$4 sm:$0xff]  }
0x1933   :  { %16170 = vmatpush1.bf16.msra.mxu0 %v20263_v34  ;;  %19067 = vmatpush3.bf16.msra.mxu1 %v19066_v24  ;;  %v19080_v34 = vpack.c.bf16 %v16432_v53, %v16431_v2  ;;  %v20304_v24 = vld [vmem:[#allocation13 + $0x5e4] ss:$24 sps:$4 sm:$0xff]   ;;  %v20344_v53 = vld [vmem:[#allocation13 + $0x880] ss:$24 sps:$4 sm:$0xff]  }
0x1934   :  { %16171 = vmatprep.subr.bf16.mxu0 %v20268_v59  ;;  %19069 = vmatprep.subr.bf16.mxu1 %v19068_v22  ;;  %v16415_v59 = vld [vmem:[#allocation16 + $0x60] sm:$0xff] }
0x1935   :  { %v19082_v9 = vpack.c.bf16 %v16416_v45, %v16415_v59  ;;  %v20310_v22 = vld [vmem:[#allocation13 + $0x644] ss:$24 sps:$4 sm:$0xff]   ;;  %v20347_v59 = vld [vmem:[#allocation13 + $0x8b0] ss:$24 sps:$4 sm:$0xff]  }
0x1936   :  { %v20346_v2 = vld [vmem:[#allocation13 + $0x884] ss:$24 sps:$4 sm:$0xff]  }
0x1937   :  { %16172 = vmatpush1.bf16.msra.mxu0 %v20266_v12  ;;  %19071 = vmatpush3.bf16.msra.mxu1 %v19070_v11  ;;  %v16434_v12 = vld [vmem:[#allocation16 + $0xf8] sm:$0xff] }
0x1938   :  { %16173 = vmatprep.subr.bf16.mxu0 %v20271_v62  ;;  %19073 = vmatprep.subr.bf16.mxu1 %v19072_v32  ;;  %v19084_v40 = vpack.c.bf16 %v16434_v12, %v16433_v23  ;;  %v16417_v62 = vld [vmem:[#allocation16 + $0x70] sm:$0xff] }
0x1939   :  { %v19086_v48 = vpack.c.bf16 %v16418_v54, %v16417_v62  ;;  %v20316_v11 = vld [vmem:[#allocation13 + $0x6a4] ss:$24 sps:$4 sm:$0xff]   ;;  %v20356_v12 = vld [vmem:[#allocation13 + $0x940] ss:$24 sps:$4 sm:$0xff]   ;;  %v20359_v62 = vld [vmem:[#allocation13 + $0x970] ss:$24 sps:$4 sm:$0xff]  }
0x193a   :  { %v20322_v32 = vld [vmem:[#allocation13 + $0x704] ss:$24 sps:$4 sm:$0xff]  }
0x193b   :  { %16174 = vmatpush1.bf16.msra.mxu0 %v20269_v26  ;;  %19075 = vmatpush3.bf16.msra.mxu1 %v19074_v37  ;;  %v16452_v26 = vld [vmem:[#allocation16 + $0x188] sm:$0xff]  ;;  %v20352_v45 = vld [vmem:[#allocation13 + $0x8e4] ss:$24 sps:$4 sm:$0xff]  }
0x193c   :  { %16175 = vmatprep.subr.bf16.mxu0 %v20274_v19  ;;  %19077 = vmatprep.subr.bf16.mxu1 %v19076_v51  ;;  %v19088_v4 = vpack.c.bf16 %v16452_v26, %v16451_v52  ;;  %v20290_v19 = vld [vmem:[#allocation13 + $0x520] ss:$24 sps:$4 sm:$0xff]   ;;  %v20331_v37 = vld [vmem:[#allocation13 + $0x794] ss:$24 sps:$4 sm:$0xff]   ;;  %v20358_v23 = vld [vmem:[#allocation13 + $0x944] ss:$24 sps:$4 sm:$0xff]  }
0x193d   :  { %v20337_v51 = vld [vmem:[#allocation13 + $0x7f4] ss:$24 sps:$4 sm:$0xff]   ;;  %v20364_v54 = vld [vmem:[#allocation13 + $0x9a4] ss:$24 sps:$4 sm:$0xff]  }
0x193e   :  { %v21707_v52 = vld [vmem:[#allocation14] sm:$0x3f] }
0x193f   :  { %16176 = vmatpush1.bf16.msra.mxu0 %v20272_v61  ;;  %19079 = vmatpush3.bf16.msra.mxu1 %v19078_v10  ;;  %v20299_v61 = vld [vmem:[#allocation13 + $0x5b0] ss:$24 sps:$4 sm:$0xff]   ;;  %v20343_v10 = vld [vmem:[#allocation13 + $0x854] ss:$24 sps:$4 sm:$0xff]   ;;  %v13839_v26 = vrot.slane %v21707_v52, %v21071_v58 }
0x1940   :  { %16177 = vmatprep.subr.bf16.mxu0 %v20277_v18  ;;  %19081 = vmatprep.subr.bf16.mxu1 %v19080_v34  ;;  %v20302_v18 = vld [vmem:[#allocation13 + $0x5e0] ss:$24 sps:$4 sm:$0xff]   ;;  %v20349_v34 = vld [vmem:[#allocation13 + $0x8b4] ss:$24 sps:$4 sm:$0xff]  }
0x1943   :  { %16178 = vmatpush1.bf16.msra.mxu0 %v20275_v5  ;;  %19083 = vmatpush3.bf16.msra.mxu1 %v19082_v9  ;;  %v20311_v5 = vld [vmem:[#allocation13 + $0x670] ss:$24 sps:$4 sm:$0xff]   ;;  %v20355_v9 = vld [vmem:[#allocation13 + $0x914] ss:$24 sps:$4 sm:$0xff]  }
0x1944   :  { %16179 = vmatprep.subr.bf16.mxu0 %v20280_v36  ;;  %19085 = vmatprep.subr.bf16.mxu1 %v19084_v40  ;;  %v20314_v36 = vld [vmem:[#allocation13 + $0x6a0] ss:$24 sps:$4 sm:$0xff]   ;;  %v20361_v40 = vld [vmem:[#allocation13 + $0x974] ss:$24 sps:$4 sm:$0xff]  }
0x1947   :  { %16180 = vmatpush1.bf16.msra.mxu0 %v20278_v14  ;;  %19087 = vmatpush3.bf16.msra.mxu1 %v19086_v48  ;;  %v20326_v14 = vld [vmem:[#allocation13 + $0x760] ss:$24 sps:$4 sm:$0xff]   ;;  %v20367_v48 = vld [vmem:[#allocation13 + $0x9d4] ss:$24 sps:$4 sm:$0xff]  }
0x1948   :  { %16181 = vmatprep.subr.bf16.mxu0 %v20283_v20  ;;  %19089 = vmatprep.subr.bf16.mxu1 %v19088_v4  ;;  %v20329_v20 = vld [vmem:[#allocation13 + $0x790] ss:$24 sps:$4 sm:$0xff]   ;;  %v13835_v4 = vrot.slane %v21707_v52, %v21855_v30 }
0x194b   :  { %16182 = vmatpush1.bf16.msra.mxu0 %v20281_v25  ;;  %v20338_v25 = vld [vmem:[#allocation13 + $0x820] ss:$24 sps:$4 sm:$0xff]  }
0x194c   :  { %16183 = vmatprep.subr.bf16.mxu0 %v20286_v47  ;;  %v20341_v47 = vld [vmem:[#allocation13 + $0x850] ss:$24 sps:$4 sm:$0xff]  }
0x194f   :  { %16184 = vmatpush1.bf16.msra.mxu0 %v20284_v29  ;;  %v20350_v29 = vld [vmem:[#allocation13 + $0x8e0] ss:$24 sps:$4 sm:$0xff]  }
0x1950   :  { %16185 = vmatprep.subr.bf16.mxu0 %v20289_v55  ;;  %v20353_v55 = vld [vmem:[#allocation13 + $0x910] ss:$24 sps:$4 sm:$0xff]  }
0x1953   :  { %16186 = vmatpush1.bf16.msra.mxu0 %v20287_v3  ;;  %v20362_v3 = vld [vmem:[#allocation13 + $0x9a0] ss:$24 sps:$4 sm:$0xff]  }
0x1954   :  { %16187 = vmatprep.subr.bf16.mxu0 %v20292_v49  ;;  %v20365_v49 = vld [vmem:[#allocation13 + $0x9d0] ss:$24 sps:$4 sm:$0xff]  }
0x1957   :  { %16188 = vmatpush1.bf16.msra.mxu0 %v20290_v19  ;;  %v13843_v19 = vrot.slane %v21707_v52, %v21074_v60 }
0x1958   :  { %16189 = vmatprep.subr.bf16.mxu0 %v20295_v44  ;;  %v20368_v44 = vld [vmem:[#allocation13 + $0xa00] ss:$24 sps:$4 sm:$0xff]  }
0x195b   :  { %16190 = vmatpush1.bf16.msra.mxu0 %v20293_v8  ;;  %v20373_v8 = vld [vmem:[#allocation13 + $0xa34] ss:$24 sps:$4 sm:$0xff]  }
0x195c   :  { %16191 = vmatprep.subr.bf16.mxu0 %v20298_v6 }
0x195f   :  { %16192 = vmatpush1.bf16.msra.mxu0 %v20296_v21 }
0x1960   :  { %16193 = vmatprep.subr.bf16.mxu0 %v20301_v1 }
0x1963   :  { %16194 = vmatpush1.bf16.msra.mxu0 %v20299_v61 }
0x1964   :  { %16195 = vmatprep.subr.bf16.mxu0 %v20304_v24 }
0x1967   :  { %16196 = vmatpush1.bf16.msra.mxu0 %v20302_v18 }
0x1968   :  { %16208 = vmatprep.subr.bf16.mxu0 %v20307_v42 }
0x196a   :  { %16198 = vmatmul.mubr.bf16.vlgmr.msra.gmra.mrb[60].mxu0 %v21670_v57  ;;  %v20320_v57 = vld [vmem:[#allocation13 + $0x700] ss:$24 sps:$4 sm:$0xff]  }
0x196b   :  { %16209 = vmatpush1.bf16.msra.mxu0 %v20305_v35  ;;  %16240 = vmatprep.mubr.bf16.mxu0 %v21684_v39  ;;  %v20323_v39 = vld [vmem:[#allocation13 + $0x730] ss:$24 sps:$4 sm:$0xff]  }
0x196c   :  { %16210 = vmatprep.subr.bf16.mxu0 %v20310_v22  ;;  %v20371_v22 = vld [vmem:[#allocation13 + $0xa30] ss:$24 sps:$4 sm:$0xff]  }
0x196f   :  { %16211 = vmatpush1.bf16.msra.mxu0 %v20308_v46 }
0x1970   :  { %16212 = vmatprep.subr.bf16.mxu0 %v20313_v41 }
0x1973   :  { %16213 = vmatpush1.bf16.msra.mxu0 %v20311_v5 }
0x1974   :  { %16214 = vmatprep.subr.bf16.mxu0 %v20316_v11 }
0x1977   :  { %16215 = vmatpush1.bf16.msra.mxu0 %v20314_v36  ;;  %v20376_v36 = vld [vmem:[#allocation13 + $0xa64] ss:$24 sps:$4 sm:$0xff]  }
0x1978   :  { %16216 = vmatprep.subr.bf16.mxu0 %v20319_v13 }
0x197b   :  { %16217 = vmatpush1.bf16.msra.mxu0 %v20317_v28 }
0x197c   :  { %16218 = vmatprep.subr.bf16.mxu0 %v20322_v32 }
0x197f   :  { %16219 = vmatpush1.bf16.msra.mxu0 %v20320_v57 }
0x1980   :  { %16220 = vmatprep.subr.bf16.mxu0 %v20325_v33 }
0x1983   :  { %16221 = vmatpush1.bf16.msra.mxu0 %v20323_v39 }
0x1984   :  { %16222 = vmatprep.subr.bf16.mxu0 %v20328_v27 }
0x1987   :  { %16223 = vmatpush1.bf16.msra.mxu0 %v20326_v14 }
0x1988   :  { %16224 = vmatprep.subr.bf16.mxu0 %v20331_v37 }
0x198b   :  { %16225 = vmatpush1.bf16.msra.mxu0 %v20329_v20 }
0x198c   :  { %16226 = vmatprep.subr.bf16.mxu0 %v20334_v16 }
0x198f   :  { %16227 = vmatpush1.bf16.msra.mxu0 %v20332_v38 }
0x1990   :  { %16228 = vmatprep.subr.bf16.mxu0 %v20337_v51  ;;  %v20374_v51 = vld [vmem:[#allocation13 + $0xa60] ss:$24 sps:$4 sm:$0xff]  }
0x1993   :  { %16229 = vmatpush1.bf16.msra.mxu0 %v20335_v7 }
0x1994   :  { %16230 = vmatprep.subr.bf16.mxu0 %v20340_v56 }
0x1997   :  { %16231 = vmatpush1.bf16.msra.mxu0 %v20338_v25 }
0x1998   :  { %16232 = vmatprep.subr.bf16.mxu0 %v20343_v10 }
0x199b   :  { %16233 = vmatpush1.bf16.msra.mxu0 %v20341_v47  ;;  %v20379_v47 = vld [vmem:[#allocation13 + $0xa94] ss:$24 sps:$4 sm:$0xff]  }
0x199c   :  { %16234 = vmatprep.subr.bf16.mxu0 %v20346_v2 }
0x199f   :  { %16235 = vmatpush1.bf16.msra.mxu0 %v20344_v53 }
0x19a0   :  { %16236 = vmatprep.subr.bf16.mxu0 %v20349_v34 }
0x19a3   :  { %16237 = vmatpush1.bf16.msra.mxu0 %v20347_v59 }
0x19a4   :  { %16238 = vmatprep.subr.bf16.mxu0 %v20352_v45 }
0x19a7   :  { %16239 = vmatpush1.bf16.msra.mxu0 %v20350_v29 }
0x19a8   :  { %16251 = vmatprep.subr.bf16.mxu0 %v20355_v9 }
0x19aa   :  { %16241 = vmatmul.mubr.bf16.vlgmr.msra.gmra.mrb[60].mxu0 %v21677_v31  ;;  %v20370_v31 = vld [vmem:[#allocation13 + $0xa04] ss:$24 sps:$4 sm:$0xff]  }
0x19ab   :  { %16252 = vmatpush1.bf16.msra.mxu0 %v20353_v55  ;;  %16283 = vmatprep.mubr.bf16.mxu0 %v21694_v63  ;;  %v13831_v63 = vrot.slane %v21707_v52, %v21854_v0 }
0x19ac   :  { %16253 = vmatprep.subr.bf16.mxu0 %v20358_v23 }
0x19af   :  { %16254 = vmatpush1.bf16.msra.mxu0 %v20356_v12 }
0x19b0   :  { %16255 = vmatprep.subr.bf16.mxu0 %v20361_v40 }
0x19b3   :  { %16256 = vmatpush1.bf16.msra.mxu0 %v20359_v62 }
0x19b4   :  { %16257 = vmatprep.subr.bf16.mxu0 %v20364_v54  ;;  %v20377_v54 = vld [vmem:[#allocation13 + $0xa90] ss:$24 sps:$4 sm:$0xff]  }
0x19b7   :  { %16258 = vmatpush1.bf16.msra.mxu0 %v20362_v3 }
0x19b8   :  { %16259 = vmatprep.subr.bf16.mxu0 %v20367_v48 }
0x19bb   :  { %16260 = vmatpush1.bf16.msra.mxu0 %v20365_v49 }
0x19bc   :  { %16261 = vmatprep.subr.bf16.mxu0 %v20370_v31 }
0x19bd   :  { %v15941_v6 = vpop.f32.mrb[56].mxu0  ;;  %v16113_v21 = vpop.f32.mrb[92].mxu1 }
0x19be   :  { %v19224_v1 = vadd.f32 %v15941_v6, %v13831_v63  ;;  %v19228_v61 = vadd.f32 %v16113_v21, %v13839_v26  ;;  %v15943_v24 = vpop.f32.mrb[57].mxu0  ;;  %v16115_v18 = vpop.f32.mrb[93].mxu1 }
0x19bf   :  { %v19225_v0 = vadd.f32 %v15943_v24, %v13835_v4  ;;  %v19229_v42 = vadd.f32 %v16115_v18, %v13843_v19  ;;  %v15945_v35 = vpop.f32.mrb[58].mxu0  ;;  %v16117_v58 = vpop.f32.mrb[94].mxu1  ;;  %16262 = vmatpush1.bf16.msra.mxu0 %v20368_v44 }
0x19c0   :  { %v16294_v46 = vrot.slane %v19224_v1, 4  ;;  %v16306_v30 = vrot.slane %v19228_v61, 4  ;;  %v19226_v41 = vadd.f32 %v15945_v35, %v13831_v63  ;;  %v19230_v5 = vadd.f32 %v16117_v58, %v13839_v26  ;;  %v15947_v60 = vpop.f32.mrb[59].mxu0  ;;  %v16119_v11 = vpop.f32.mrb[95].mxu1  ;;  %16263 = vmatprep.subr.bf16.mxu0 %v20373_v8  ;;  %v20382_v63 = vld [vmem:[#allocation13 + $0xac4] ss:$24 sps:$4 sm:$0xff]  }
0x19c1   :  { %v16300_v13 = vrot.slane %v19225_v0, 4  ;;  %v16312_v28 = vrot.slane %v19229_v42, 4  ;;  %v19227_v32 = vadd.f32 %v15947_v60, %v13835_v4  ;;  %v19231_v57 = vadd.f32 %v16119_v11, %v13843_v19  ;;  %v20385_v35 = vld [vmem:[#allocation13 + $0xaf4] ss:$24 sps:$4 sm:$0xff]   ;;  %v20383_v60 = vld [vmem:[#allocation13 + $0xaf0] ss:$24 sps:$4 sm:$0xff]  }
0x19c2   :  { %v16295_v33 = vadd.f32 %v19224_v1, %v16294_v46  ;;  %v16307_v39 = vadd.f32 %v19228_v61, %v16306_v30  ;;  %v16330_v27 = vrot.slane %v19226_v41, 4  ;;  %v16342_v14 = vrot.slane %v19230_v5, 4  ;;  %v20380_v61 = vld [vmem:[#allocation13 + $0xac0] ss:$24 sps:$4 sm:$0xff]  }
0x19c3   :  { %v16301_v37 = vadd.f32 %v19225_v0, %v16300_v13  ;;  %v16313_v20 = vadd.f32 %v19229_v42, %v16312_v28  ;;  %v16336_v16 = vrot.slane %v19227_v32, 4  ;;  %v16348_v38 = vrot.slane %v19231_v57, 4  ;;  %16264 = vmatpush1.bf16.msra.mxu0 %v20371_v22  ;;  %v16435_v28 = vld [vmem:[#allocation16 + $0x100] sm:$0xff] }
0x19c4   :  { %v16296_v7 = vrot.slane %v16295_v33, 2  ;;  %v16308_v56 = vrot.slane %v16307_v39, 2  ;;  %v16331_v25 = vadd.f32 %v19226_v41, %v16330_v27  ;;  %v16343_v10 = vadd.f32 %v19230_v5, %v16342_v14  ;;  %16265 = vmatprep.subr.bf16.mxu0 %v20376_v36  ;;  %v21873_v36 = vld [vmem:[#allocation30_spill] sm:$0xff]  ;;  %v21875_v27 = vld [vmem:[#allocation31_spill] sm:$0xff] }
0x19c5   :  { %v16302_v2 = vrot.slane %v16301_v37, 2  ;;  %v16314_v53 = vrot.slane %v16313_v20, 2  ;;  %v16337_v34 = vadd.f32 %v19227_v32, %v16336_v16  ;;  %v16349_v59 = vadd.f32 %v19231_v57, %v16348_v38  ;;  %v16436_v32 = vld [vmem:[#allocation16 + $0x108] sm:$0xff]  ;;  %v16453_v38 = vld [vmem:[#allocation16 + $0x190] sm:$0xff] }
0x19c6   :  { %v16297_v45 = vadd.f32 %v16296_v7, %v16295_v33  ;;  %v16309_v29 = vadd.f32 %v16308_v56, %v16307_v39  ;;  %v16332_v9 = vrot.slane %v16331_v25, 2  ;;  %v16344_v55 = vrot.slane %v16343_v10, 2  ;;  %v21874_v33 = vld [vmem:[#allocation32_spill] sm:$0xff] }
0x19c7   :  { %v16303_v23 = vadd.f32 %v16302_v2, %v16301_v37  ;;  %v16315_v12 = vadd.f32 %v16314_v53, %v16313_v20  ;;  %v16338_v40 = vrot.slane %v16337_v34, 2  ;;  %v16350_v62 = vrot.slane %v16349_v59, 2  ;;  %16266 = vmatpush1.bf16.msra.mxu0 %v20374_v51  ;;  %v20388_v37 = vld [vmem:[#allocation13 + $0xb24] ss:$24 sps:$4 sm:$0xff]   ;;  %v21876_v20 = vld [vmem:[#allocation33_spill] sm:$0xff] }
0x19c8   :  { %v16298_v3 = vrot.slane %v16297_v45, 1  ;;  %v16310_v48 = vrot.slane %v16309_v29, 1  ;;  %v16333_v49 = vadd.f32 %v16332_v9, %v16331_v25  ;;  %v16345_v31 = vadd.f32 %v16344_v55, %v16343_v10  ;;  %16267 = vmatprep.subr.bf16.mxu0 %v20379_v47  ;;  %v16454_v51 = vld [vmem:[#allocation16 + $0x198] sm:$0xff]  ;;  %v16437_v2 = vld [vmem:[#allocation16 + $0x110] sm:$0xff]  ;;  %v20389_v55 = vld [vmem:[#allocation13 + $0xb50] ss:$24 sps:$4 sm:$0xff]  }
0x19c9   :  { %v16304_v26 = vrot.slane %v16303_v23, 1  ;;  %v16316_v4 = vrot.slane %v16315_v12, 1  ;;  %v16339_v19 = vadd.f32 %v16338_v40, %v16337_v34  ;;  %v16351_v44 = vadd.f32 %v16350_v62, %v16349_v59  ;;  %v20386_v10 = vld [vmem:[#allocation13 + $0xb20] ss:$24 sps:$4 sm:$0xff]   ;;  %v20391_v59 = vld [vmem:[#allocation13 + $0xb54] ss:$24 sps:$4 sm:$0xff]  }
0x19ca   :  { %v16334_v8 = vrot.slane %v16333_v49, 1  ;;  %v16346_v6 = vrot.slane %v16345_v31, 1  ;;  %v16299_v24 = vadd.f32 %v16298_v3, %v16297_v45  ;;  %v16311_v18 = vadd.f32 %v16310_v48, %v16309_v29  ;;  %v16438_v53 = vld [vmem:[#allocation16 + $0x118] sm:$0xff]  ;;  %v16455_v45 = vld [vmem:[#allocation16 + $0x1a0] sm:$0xff]  ;;  %v16456_v29 = vld [vmem:[#allocation16 + $0x1a8] sm:$0xff] }
0x19cb   :  { %v16340_v21 = vrot.slane %v16339_v19, 1  ;;  %v16352_v1 = vrot.slane %v16351_v44, 1  ;;  %16268 = vmatpush1.bf16.msra.mxu0 %v20377_v54  ;;  %v16305_v58 = vadd.f32 %v16304_v26, %v16303_v23  ;;  %v16317_v22 = vadd.f32 %v16316_v4, %v16315_v12  ;;  %v16439_v12 = vld [vmem:[#allocation16 + $0x120] sm:$0xff]  ;;  %v16440_v40 = vld [vmem:[#allocation16 + $0x128] sm:$0xff]  ;;  %v16457_v54 = vld [vmem:[#allocation16 + $0x1b0] sm:$0xff] }
0x19cc   :  { %v16335_v0 = vadd.f32 %v16334_v8, %v16333_v49  ;;  %v16347_v42 = vadd.f32 %v16346_v6, %v16345_v31  ;;  %16269 = vmatprep.subr.bf16.mxu0 %v20382_v63  ;;  %v19090_v56 = vpack.c.bf16 %v16436_v32, %v16435_v28  ;;  %v19092_v47 = vpack.c.bf16 %v16454_v51, %v16453_v38  ;;  %v20394_v62 = vld [vmem:[#allocation13 + $0xb84] ss:$24 sps:$4 sm:$0xff]   ;;  %v20392_v49 = vld [vmem:[#allocation13 + $0xb80] ss:$24 sps:$4 sm:$0xff]   ;;  %v20397_v4 = vld [vmem:[#allocation13 + $0xbb4] ss:$24 sps:$4 sm:$0xff]  }
0x19cd   :  { %v16341_v46 = vadd.f32 %v16340_v21, %v16339_v19  ;;  %v16353_v30 = vadd.f32 %v16352_v1, %v16351_v44  ;;  %v19094_v9 = vpack.c.bf16 %v16438_v53, %v16437_v2  ;;  %v19096_v23 = vpack.c.bf16 %v16456_v29, %v16455_v45  ;;  %v16458_v3 = vld [vmem:[#allocation16 + $0x1b8] sm:$0xff]  ;;  %v16441_v63 = vld [vmem:[#allocation16 + $0x130] sm:$0xff]  ;;  %v16459_v19 = vld [vmem:[#allocation16 + $0x1c0] sm:$0xff] }
0x19ce   :  { %v16379_v41 = vsel %vm16378_vm2, %v16335_v0, %v16299_v24  ;;  %v16381_v5 = vsel %vm16378_vm2, %v16347_v42, %v16311_v18  ;;  %v19098_v48 = vpack.c.bf16 %v16440_v40, %v16439_v12  ;;  %v19100_v31 = vpack.c.bf16 %v16458_v3, %v16457_v54  ;;  %v16442_v26 = vld [vmem:[#allocation16 + $0x138] sm:$0xff]  ;;  %v16460_v44 = vld [vmem:[#allocation16 + $0x1c8] sm:$0xff]  ;;  %v16443_v1 = vld [vmem:[#allocation16 + $0x140] sm:$0xff] }
0x19cf   :  { %16270 = vmatpush1.bf16.msra.mxu0 %v20380_v61  ;;  %v16380_v11 = vsel %vm16378_vm2, %v16341_v46, %v16305_v58  ;;  %v16391_v13 = vadd.f32 %v16379_v41, %v21873_v36  ;;  %v16382_v57 = vsel %vm16378_vm2, %v16353_v30, %v16317_v22  ;;  %v21723_v39 = vadd.f32 %v16381_v5, %v21874_v33  ;;  %v20395_v6 = vld [vmem:[#allocation13 + $0xbb0] ss:$24 sps:$4 sm:$0xff]   ;;  %v20400_v24 = vld [vmem:[#allocation13 + $0xbe4] ss:$24 sps:$4 sm:$0xff]  }
0x19d0   :  { %16271 = vmatprep.subr.bf16.mxu0 %v20385_v35  ;;  %v16392_v14 = vadd.f32 %v16380_v11, %v21875_v27  ;;  %v16394_v16 = vadd.f32 %v16382_v57, %v21876_v20  ;;  %v19102_v8 = vpack.c.bf16 %v16442_v26, %v16441_v63  ;;  %v19104_v21 = vpack.c.bf16 %v16460_v44, %v16459_v19  ;;  %v16444_v61 = vld [vmem:[#allocation16 + $0x148] sm:$0xff]  ;;  %v16461_v18 = vld [vmem:[#allocation16 + $0x1d0] sm:$0xff]  ;;  %v16462_v0 = vld [vmem:[#allocation16 + $0x1d8] sm:$0xff] }
0x19d1   :  { %v16397_v25 = vmul.f32 0.11111111, %v16391_v13  ;;  %v19106_v42 = vpack.c.bf16 %v16444_v61, %v16443_v1  ;;  %v20398_v35 = vld [vmem:[#allocation13 + $0xbe0] ss:$24 sps:$4 sm:$0xff]   ;;  %v19108_v58 = vpack.c.bf16 %v16462_v0, %v16461_v18  ;;  %v16463_v30 = vld [vmem:[#allocation16 + $0x1e0] sm:$0xff]  ;;  %v16464_v41 = vld [vmem:[#allocation16 + $0x1e8] sm:$0xff] }
0x19d2   :  { %v16398_v7 = vmul.f32 0.11111111, %v16392_v14  ;;  %v16400_v34 = vmul.f32 0.11111111, %v16394_v16  ;;  %v16445_v22 = vld [vmem:[#allocation16 + $0x150] sm:$0xff]  ;;  %v16446_v46 = vld [vmem:[#allocation16 + $0x158] sm:$0xff] }
0x19d3   :  { %16272 = vmatpush1.bf16.msra.mxu0 %v20383_v60  ;;  %v19110_v5 = vpack.c.bf16 %v16446_v46, %v16445_v22  ;;  %v19112_v60 = vpack.c.bf16 %v16464_v41, %v16463_v30  ;;  %v16447_v11 = vld [vmem:[#allocation16 + $0x160] sm:$0xff]  ;;  %v16448_v36 = vld [vmem:[#allocation16 + $0x168] sm:$0xff]  ;;  %v16465_v13 = vld [vmem:[#allocation16 + $0x1f0] sm:$0xff] }
0x19d4   :  { %16570 = vmatprep.mubr.f32.mxu1 %v16398_v7  ;;  %16273 = vmatprep.subr.bf16.mxu0 %v20388_v37  ;;  %v16466_v28 = vld [vmem:[#allocation16 + $0x1f8] sm:$0xff]  ;;  %v19114_v32 = vpack.c.bf16 %v16448_v36, %v16447_v11  ;;  %v16449_v33 = vld [vmem:[#allocation16 + $0x170] sm:$0xff]  ;;  %v16399_v37 = vmul.f32 0.11111111, %v21723_v39  ;;  %v16483_v20 = vld [vmem:[#allocation16 + $0x280] sm:$0xff] }
0x19d5   :  { %16571 = vmatmul.mubr.f32.vlgmr.msra.gmra.mrb[96].mxu1 %v16397_v25  ;;  %v19116_v57 = vpack.c.bf16 %v16466_v28, %v16465_v13  ;;  %v16450_v27 = vld [vmem:[#allocation16 + $0x178] sm:$0xff]  ;;  %v16484_v16 = vld [vmem:[#allocation16 + $0x288] sm:$0xff]  ;;  %v16467_v38 = vld [vmem:[#allocation16 + $0x200] sm:$0xff]  ;;  %v13847_v13 = vrot.slane %v21707_v52, %v21857_v17  ;;  %v13851_v28 = vrot.slane %v21707_v52, %v21858_v43 }
0x19d6   :  { %19091 = vmatpush3.bf16.msra.mxu1 %v19090_v56  ;;  %16640 = vmatprep.mubr.f32.mxu1 %v16400_v34  ;;  %v19118_v14 = vpack.c.bf16 %v16450_v27, %v16449_v33  ;;  %v19120_v51 = vpack.c.bf16 %v16484_v16, %v16483_v20  ;;  %v16468_v7 = vld [vmem:[#allocation16 + $0x208] sm:$0xff]  ;;  %v16485_v56 = vld [vmem:[#allocation16 + $0x290] sm:$0xff]  ;;  %v16486_v25 = vld [vmem:[#allocation16 + $0x298] sm:$0xff] }
0x19d7   :  { %16274 = vmatpush1.bf16.msra.mxu0 %v20386_v10  ;;  %19093 = vmatprep.subr.bf16.mxu1 %v19092_v47  ;;  %v19124_v10 = vpack.c.bf16 %v16486_v25, %v16485_v56  ;;  %v16469_v47 = vld [vmem:[#allocation16 + $0x210] sm:$0xff]  ;;  %v16470_v2 = vld [vmem:[#allocation16 + $0x218] sm:$0xff]  ;;  %v16487_v34 = vld [vmem:[#allocation16 + $0x2a0] sm:$0xff] }
0x19d8   :  { %16275 = vmatprep.subr.bf16.mxu0 %v20391_v59  ;;  %v19126_v53 = vpack.c.bf16 %v16470_v2, %v16469_v47  ;;  %v16488_v59 = vld [vmem:[#allocation16 + $0x2a8] sm:$0xff]  ;;  %v16471_v45 = vld [vmem:[#allocation16 + $0x220] sm:$0xff]  ;;  %v16473_v40 = vld [vmem:[#allocation16 + $0x230] sm:$0xff] }
0x19d9   :  { %v19128_v39 = vpack.c.bf16 %v16488_v59, %v16487_v34  ;;  %v16472_v29 = vld [vmem:[#allocation16 + $0x228] sm:$0xff]  ;;  %v16491_v3 = vld [vmem:[#allocation16 + $0x2c0] sm:$0xff]  ;;  %v16494_v19 = vld [vmem:[#allocation16 + $0x2d8] sm:$0xff] }
0x19da   :  { %19095 = vmatpush3.bf16.msra.mxu1 %v19094_v9  ;;  %v19130_v9 = vpack.c.bf16 %v16472_v29, %v16471_v45  ;;  %v16476_v63 = vld [vmem:[#allocation16 + $0x248] sm:$0xff]  ;;  %v16495_v1 = vld [vmem:[#allocation16 + $0x2e0] sm:$0xff]  ;;  %v16481_v22 = vld [vmem:[#allocation16 + $0x270] sm:$0xff] }
0x19db   :  { %16276 = vmatpush1.bf16.msra.mxu0 %v20389_v55  ;;  %19097 = vmatprep.subr.bf16.mxu1 %v19096_v23  ;;  %v16489_v55 = vld [vmem:[#allocation16 + $0x2b0] sm:$0xff]  ;;  %v16490_v23 = vld [vmem:[#allocation16 + $0x2b8] sm:$0xff]  ;;  %v16496_v61 = vld [vmem:[#allocation16 + $0x2e8] sm:$0xff] }
0x19dc   :  { %16277 = vmatprep.subr.bf16.mxu0 %v20394_v62  ;;  %v19132_v12 = vpack.c.bf16 %v16490_v23, %v16489_v55  ;;  %v16474_v62 = vld [vmem:[#allocation16 + $0x238] sm:$0xff]  ;;  %v16479_v18 = vld [vmem:[#allocation16 + $0x260] sm:$0xff]  ;;  %v16480_v0 = vld [vmem:[#allocation16 + $0x268] sm:$0xff] }
0x19dd   :  { %v19134_v54 = vpack.c.bf16 %v16474_v62, %v16473_v40  ;;  %v16482_v30 = vld [vmem:[#allocation16 + $0x278] sm:$0xff]  ;;  %v18673_v52 = vld [vmem:[#allocation17] ss:$0 sm:$0xff] }
0x19de   :  { %19099 = vmatpush3.bf16.msra.mxu1 %v19098_v48  ;;  %v16492_v48 = vld [vmem:[#allocation16 + $0x2c8] sm:$0xff]  ;;  %v19150_v41 = vpack.c.bf16 %v16482_v30, %v16481_v22  ;;  %v16722_v22 = vld [vmem:[%s21817_s10 + $0x28] sm:$0xff]  ;;  %v16723_v30 = vld [vmem:[%s21817_s10 + $0x30] sm:$0xff] }
0x19df   :  { %16278 = vmatpush1.bf16.msra.mxu0 %v20392_v49  ;;  %19101 = vmatprep.subr.bf16.mxu1 %v19100_v31  ;;  %v19136_v49 = vpack.c.bf16 %v16492_v48, %v16491_v3  ;;  %v16475_v31 = vld [vmem:[#allocation16 + $0x240] sm:$0xff] }
0x19e0   :  { %16279 = vmatprep.subr.bf16.mxu0 %v20397_v4  ;;  %v19138_v26 = vpack.c.bf16 %v16476_v63, %v16475_v31  ;;  %v16493_v4 = vld [vmem:[#allocation16 + $0x2d0] sm:$0xff] }
0x19e1   :  { %v19140_v44 = vpack.c.bf16 %v16494_v19, %v16493_v4  ;;  %v21877_v19 = vld [vmem:[#allocation36_spill] sm:$0xff] }
0x19e2   :  { %19103 = vmatpush3.bf16.msra.mxu1 %v19102_v8  ;;  %v16477_v8 = vld [vmem:[#allocation16 + $0x250] sm:$0xff] }
0x19e3   :  { %16280 = vmatpush1.bf16.msra.mxu0 %v20395_v6  ;;  %19105 = vmatprep.subr.bf16.mxu1 %v19104_v21  ;;  %v16478_v6 = vld [vmem:[#allocation16 + $0x258] sm:$0xff] }
0x19e4   :  { %16281 = vmatprep.subr.bf16.mxu0 %v20400_v24  ;;  %v19142_v21 = vpack.c.bf16 %v16478_v6, %v16477_v8  ;;  %v19144_v24 = vpack.c.bf16 %v16496_v61, %v16495_v1  ;;  %v16717_v8 = vld [vmem:[%s21817_s10] sm:$0xff]  ;;  %v16718_v6 = vld [vmem:[%s21817_s10 + $0x8] sm:$0xff] }
0x19e6   :  { %19107 = vmatpush3.bf16.msra.mxu1 %v19106_v42  ;;  %v19146_v42 = vpack.c.bf16 %v16480_v0, %v16479_v18  ;;  %v16719_v0 = vld [vmem:[%s21817_s10 + $0x10] sm:$0xff] }
0x19e7   :  { %16282 = vmatpush1.bf16.msra.mxu0 %v20398_v35  ;;  %19109 = vmatprep.subr.bf16.mxu1 %v19108_v58  ;;  %v16497_v35 = vld [vmem:[#allocation16 + $0x2f0] sm:$0xff]  ;;  %v16498_v58 = vld [vmem:[#allocation16 + $0x2f8] sm:$0xff] }
0x19e8   :  { %v19148_v46 = vpack.c.bf16 %v16498_v58, %v16497_v35  ;;  %v16721_v58 = vld [vmem:[%s21817_s10 + $0x20] sm:$0xff] }
0x19ea   :  { %19111 = vmatpush3.bf16.msra.mxu1 %v19110_v5  ;;  %16284 = vmatmul.mubr.bf16.vlgmr.msra.gmra.mrb[60].mxu0 %v21691_v50  ;;  %v19122_v50 = vpack.c.bf16 %v16468_v7, %v16467_v38  ;;  %v20769_v5 = vmov 0.0|0.0  }
0x19eb   :  { %19113 = vmatprep.subr.bf16.mxu1 %v19112_v60 }
0x19ee   :  { %19115 = vmatpush3.bf16.msra.mxu1 %v19114_v32 }
0x19ef   :  { %19117 = vmatprep.subr.bf16.mxu1 %v19116_v57 }
0x19f2   :  { %19119 = vmatpush3.bf16.msra.mxu1 %v19118_v14 }
0x19f3   :  { %19121 = vmatprep.subr.bf16.mxu1 %v19120_v51 }
0x19f5   :  { %16641 = vmatmul.mubr.f32.vlgmr.msra.gmra.mrb[98].mxu1 %v16399_v37 }
0x19f6   :  { %19123 = vmatpush3.bf16.msra.mxu1 %v19122_v50 }
0x19f7   :  { %19125 = vmatprep.subr.bf16.mxu1 %v19124_v10 }
0x19fa   :  { %19127 = vmatpush3.bf16.msra.mxu1 %v19126_v53 }
0x19fb   :  { %19129 = vmatprep.subr.bf16.mxu1 %v19128_v39 }
0x19fe   :  { %19131 = vmatpush3.bf16.msra.mxu1 %v19130_v9 }
0x19ff   :  { %19133 = vmatprep.subr.bf16.mxu1 %v19132_v12 }
0x1a02   :  { %19135 = vmatpush3.bf16.msra.mxu1 %v19134_v54 }
0x1a03   :  { %19137 = vmatprep.subr.bf16.mxu1 %v19136_v49 }
0x1a06   :  { %19139 = vmatpush3.bf16.msra.mxu1 %v19138_v26 }
0x1a07   :  { %19141 = vmatprep.subr.bf16.mxu1 %v19140_v44 }
0x1a0a   :  { %19143 = vmatpush3.bf16.msra.mxu1 %v19142_v21  ;;  %v21878_v21 = vld [vmem:[#allocation37_spill] sm:$0xff] }
0x1a0b   :  { %19145 = vmatprep.subr.bf16.mxu1 %v19144_v24  ;;  %v19153_v24 = vpack.c.bf16 %v16718_v6, %v16717_v8 }
0x1a0e   :  { %19147 = vmatpush3.bf16.msra.mxu1 %v19146_v42  ;;  %v16720_v42 = vld [vmem:[%s21817_s10 + $0x18] sm:$0xff] }
0x1a0f   :  { %19149 = vmatprep.subr.bf16.mxu1 %v19148_v46  ;;  %v19156_v35 = vpack.c.bf16 %v16720_v42, %v16719_v0  ;;  %v19159_v46 = vpack.c.bf16 %v16722_v22, %v16721_v58 }
0x1a12   :  { %19151 = vmatpush3.bf16.msra.mxu1 %v19150_v41 }
0x1a13   :  { %19152 = vmatprep.subr.bf16.mxu1 %v20769_v5 }
0x1aa8   :  { %v18771_v60 = vpop.f32.mrb[96].mxu1 }
0x1aa9   :  { %v18772_v11 = vpop.f32.mrb[97].mxu1 }
0x1aaa   :  { %v18773_v36 = vadd.f32 %v18772_v11, %v18771_v60  ;;  %v16725_v60 = vld [vmem:[%s21817_s10 + $0x40] sm:$0xff]  ;;  %v16726_v11 = vld [vmem:[%s21817_s10 + $0x48] sm:$0xff] }
0x1aac   :  { %v16573_v12 = vadd.f32 %v18773_v36, %v18673_v52  ;;  %v19165_v36 = vpack.c.bf16 %v16726_v11, %v16725_v60 }
0x1abd   :  { %v16285_v32 = vpop.f32.mrb[60].mxu0 }
0x1abe   :  { %v19232_v57 = vadd.f32 %v16285_v32, %v13847_v13  ;;  %v16287_v33 = vpop.f32.mrb[61].mxu0 }
0x1abf   :  { %v19233_v27 = vadd.f32 %v16287_v33, %v13851_v28  ;;  %v16289_v14 = vpop.f32.mrb[62].mxu0  ;;  %v16730_v33 = vld [vmem:[%s21817_s10 + $0x68] sm:$0xff] }
0x1ac0   :  { %v16318_v37 = vrot.slane %v19232_v57, 4  ;;  %v19234_v20 = vadd.f32 %v16289_v14, %v13847_v13  ;;  %v16291_v16 = vpop.f32.mrb[63].mxu0  ;;  %v16727_v13 = vld [vmem:[%s21817_s10 + $0x50] sm:$0xff] }
0x1ac1   :  { %v16324_v38 = vrot.slane %v19233_v27, 4  ;;  %v19235_v51 = vadd.f32 %v16291_v16, %v13851_v28  ;;  %v16728_v28 = vld [vmem:[%s21817_s10 + $0x58] sm:$0xff]  ;;  %v16731_v14 = vld [vmem:[%s21817_s10 + $0x70] sm:$0xff] }
0x1ac2   :  { %v16319_v7 = vadd.f32 %v19232_v57, %v16318_v37  ;;  %v16354_v56 = vrot.slane %v19234_v20, 4  ;;  %v19168_v32 = vpack.c.bf16 %v16728_v28, %v16727_v13  ;;  %v16729_v57 = vld [vmem:[%s21817_s10 + $0x60] sm:$0xff]  ;;  %v16732_v37 = vld [vmem:[%s21817_s10 + $0x78] sm:$0xff] }
0x1ac3   :  { %v16325_v25 = vadd.f32 %v19233_v27, %v16324_v38  ;;  %v16360_v50 = vrot.slane %v19235_v51, 4  ;;  %v19171_v27 = vpack.c.bf16 %v16730_v33, %v16729_v57 }
0x1ac4   :  { %v16320_v10 = vrot.slane %v16319_v7, 2  ;;  %v16355_v47 = vadd.f32 %v19234_v20, %v16354_v56  ;;  %v19174_v20 = vpack.c.bf16 %v16732_v37, %v16731_v14 }
0x1ac5   :  { %v16326_v17 = vrot.slane %v16325_v25, 2  ;;  %v16361_v2 = vadd.f32 %v19235_v51, %v16360_v50 }
0x1ac6   :  { %v16321_v53 = vadd.f32 %v16320_v10, %v16319_v7  ;;  %v16356_v43 = vrot.slane %v16355_v47, 2 }
0x1ac7   :  { %v16327_v34 = vadd.f32 %v16326_v17, %v16325_v25  ;;  %v16362_v59 = vrot.slane %v16361_v2, 2  ;;  %v18674_v25 = vld [vmem:[#allocation19] ss:$0 sm:$0xff] }
0x1ac8   :  { %v16322_v39 = vrot.slane %v16321_v53, 1  ;;  %v16357_v45 = vadd.f32 %v16356_v43, %v16355_v47  ;;  %v18806_v29 = vpop.f32.mrb[98].mxu1 }
0x1ac9   :  { %v16328_v9 = vrot.slane %v16327_v34, 1  ;;  %v16363_v55 = vadd.f32 %v16362_v59, %v16361_v2  ;;  %v18807_v23 = vpop.f32.mrb[99].mxu1 }
0x1aca   :  { %v16358_v40 = vrot.slane %v16357_v45, 1  ;;  %v18808_v62 = vadd.f32 %v18807_v23, %v18806_v29  ;;  %v16323_v3 = vadd.f32 %v16322_v39, %v16321_v53 }
0x1acb   :  { %v16364_v54 = vrot.slane %v16363_v55, 1  ;;  %v16329_v31 = vadd.f32 %v16328_v9, %v16327_v34 }
0x1acc   :  { %v16359_v48 = vadd.f32 %v16358_v40, %v16357_v45  ;;  %v16643_v49 = vadd.f32 %v18808_v62, %v16573_v12 }
0x1acd   :  { %v16365_v63 = vadd.f32 %v16364_v54, %v16363_v55 }
0x1ace   :  { %v16383_v26 = vsel %vm16378_vm2, %v16359_v48, %v16323_v3 }
0x1acf   :  { %v16384_v4 = vsel %vm16378_vm2, %v16365_v63, %v16329_v31  ;;  %v16395_v44 = vadd.f32 %v16383_v26, %v21877_v19 }
0x1ad0   :  { %v16396_v1 = vadd.f32 %v16384_v4, %v21878_v21 }
0x1ad1   :  { %v16401_v18 = vmul.f32 0.11111111, %v16395_v44 }
0x1ad2   :  { %v16402_v61 = vmul.f32 0.11111111, %v16396_v1 }
0x1ad4   :  { %16710 = vmatprep.mubr.f32.mxu1 %v16402_v61 }
0x1ad5   :  { %16711 = vmatmul.mubr.f32.vlgmr.msra.gmra.mrb[100].mxu1 %v16401_v18 }
0x1ad6   :  { %19154 = vmatpush3.bf16.msra.mxu1 %v19153_v24  ;;  %19053 = vmatprep.mubr.msk.f32.mxu1 %vm20768_vm0, %v20767_v15  ;;  %v16724_v15 = vld [vmem:[%s21817_s10 + $0x38] sm:$0xff] }
0x1ad7   :  { %19155 = vmatprep.subr.bf16.mxu1 %v20769_v5  ;;  %v19162_v41 = vpack.c.bf16 %v16724_v15, %v16723_v30 }
0x1ada   :  { %19157 = vmatpush3.bf16.msra.mxu1 %v19156_v35 }
0x1adb   :  { %19158 = vmatprep.subr.bf16.mxu1 %v20769_v5 }
0x1ade   :  { %19160 = vmatpush3.bf16.msra.mxu1 %v19159_v46 }
0x1adf   :  { %19161 = vmatprep.subr.bf16.mxu1 %v20769_v5 }
0x1ae2   :  { %19163 = vmatpush3.bf16.msra.mxu1 %v19162_v41 }
0x1ae3   :  { %19164 = vmatprep.subr.bf16.mxu1 %v20769_v5 }
0x1ae6   :  { %19166 = vmatpush3.bf16.msra.mxu1 %v19165_v36 }
0x1ae7   :  { %19167 = vmatprep.subr.bf16.mxu1 %v20769_v5 }
0x1aea   :  { %19169 = vmatpush3.bf16.msra.mxu1 %v19168_v32 }
0x1aeb   :  { %19170 = vmatprep.subr.bf16.mxu1 %v20769_v5 }
0x1aee   :  { %19172 = vmatpush3.bf16.msra.mxu1 %v19171_v27 }
0x1aef   :  { %19173 = vmatprep.subr.bf16.mxu1 %v20769_v5 }
0x1af2   :  { %19175 = vmatpush3.bf16.msra.mxu1 %v19174_v20 }
0x1ba8   :  { %v18841_v16 = vpop.f32.mrb[100].mxu1 }
0x1ba9   :  { %v18842_v38 = vpop.f32.mrb[101].mxu1 }
0x1baa   :  { %v18843_v51 = vadd.f32 %v18842_v38, %v18841_v16 }
0x1bac   :  { %v16713_v7 = vadd.f32 %v18843_v51, %v16643_v49 }
0x1bae   :  { %v16716_v56 = vmax.f32 %v16713_v7, 0.0 }
0x1bb0   :  { %19054 = vmatmul.mubr.f32.vlgmr.msra.gmra.mrb[102].mxu1 %v16716_v56 }
0x1c83   :  { %v16806_v5 = vpop.f32.mrb[102].mxu1 }
0x1c84   :  { %v16807_v50 = vadd.f32 %v18674_v25, %v16806_v5  ;;  %v19055_v10 = vpop.f32.mrb[103].mxu1 }
0x1c86   :  { %16811 = vst.msk [vmem:[#allocation20] sm:$0x3] %vm16810_vm3, %v16807_v50 }
0x1c87   :  { %20722 = shalt.err (!%p20719_p8)
}
0x1c88   :  { %s20723_s15 = scalar_lea.hbm %s21819_s12, 32 }
0x1c89   :  { %p20724_p9 = scmp.ne.s32.totalorder %s21819_s12, %s20723_s15  ;;  %p20727_p10 = scmp.lt.u32.totalorder %s20723_s15, %s21819_s12 }
0x1c8b   :  { %p20729_p11 = pnand %p20727_p10, %p20724_p9 }
0x1c8d   :  { %20732 = shalt.err (!%p20729_p11)
}
0x1c8e   :  { %16821 = dma.vmem_to_hbm [thread:$0]  %s16819_s5, 32, %s21819_s12, [#allocation4]  }
0x1c8f   :  { %20745 = dma.done.wait [#allocation4], 32  }
0x1c90   :  { %20746 = vsyncadd [#allocation4], 4294967264 }
0x1c91   :  { %16825 = vsyncpa [#allocation3], 1 }
0x1c92   :  { %16826 = vsyncpa [#allocation6], 1 }
0x1c93   :  { %16827 = vsyncpa [#allocation9], 1 }
0x1c94   :  { %16828 = vsyncpa [#allocation12], 1 }
0x1c95   :  { %16829 = vsyncpa [#allocation15], 1 }
0x1c96   :  { %16830 = vsyncpa [#allocation18], 1 }
0x1c97   :  { %16831 = vsyncpa [#allocation4], 1 }

</bundles_post_ra>
